<compile_context>
chip_gen: v7x
topology: tpu7x:2x2x1
jax: 0.10.0
libtpu: 0.0.40
codegen_flags: <defaults>
</compile_context>

<pallas_src>
import math
import functools

import jax
import jax.numpy as jnp
from jax.experimental import pallas as pl
from jax.experimental.pallas import tpu as pltpu


def _ru(v, m):
    return ((v + m - 1) // m) * m


# -----------------------------------------------------------------------------
# Kernel 1: fused time conditioning
#   time_mlp (Linear->GELU->Linear), time_pos_emb_mlp (GELU->Linear) and all
#   per-block AdaLN scale/shift projections (GELU->Linear, stacked on the lane axis).
# -----------------------------------------------------------------------------
def _time_kernel(se_ref, w1_ref, b1_ref, w2_ref, b2_ref,
                 wpe_ref, bpe_ref, wtc_ref, btc_ref, tpe_ref, tc_ref):
    se = se_ref[...].astype(jnp.bfloat16)
    z = jnp.dot(se, w1_ref[...], preferred_element_type=jnp.float32) + b1_ref[...]
    # TODO(synk): PyTorch nn.GELU defaults to exact erf-GELU; tanh approximation used here.
    z = jax.nn.gelu(z, approximate=True)
    te = jnp.dot(z.astype(jnp.bfloat16), w2_ref[...],
                 preferred_element_type=jnp.float32) + b2_ref[...]
    g = jax.nn.gelu(te, approximate=True).astype(jnp.bfloat16)
    tpe_ref[...] = jnp.dot(g, wpe_ref[...], preferred_element_type=jnp.float32) + bpe_ref[...]
    tc_ref[...] = jnp.dot(g, wtc_ref[...], preferred_element_type=jnp.float32) + btc_ref[...]


def _full_spec(shape):
    nd = len(shape)
    return pl.BlockSpec(tuple(shape), lambda *_, nd=nd: (0,) * nd)


def _time_call(pk, dm, se):
    b = se.shape[0]
    HD, NB = dm['HD'], dm['NB']
    args = (se, pk['w_t1'], pk['b_t1'], pk['w_t2'], pk['b_t2'],
            pk['w_pe'], pk['b_pe'], pk['w_tc'], pk['b_tc'])
    out_shape = (jax.ShapeDtypeStruct((b, HD), jnp.float32),
                 jax.ShapeDtypeStruct((b, NB * 2 * HD), jnp.float32))
    return pl.pallas_call(
        _time_kernel,
        out_shape=out_shape,
        in_specs=[_full_spec(a.shape) for a in args],
        out_specs=[_full_spec(s.shape) for s in out_shape],
    )(*args)


# -----------------------------------------------------------------------------
# Kernel 2 (only used when x_self_cond is provided): self-condition projection.
# -----------------------------------------------------------------------------
def _linear_kernel(x_ref, w_ref, b_ref, o_ref):
    o_ref[...] = (jnp.dot(x_ref[...].astype(jnp.bfloat16), w_ref[...],
                          preferred_element_type=jnp.float32) + b_ref[...])


def _self_proj_call(pk, dm, x_self_cond):
    b, n, xd = x_self_cond.shape
    HD = dm['HD']
    xf = x_self_cond.reshape(b * n, xd)
    out = pl.pallas_call(
        _linear_kernel,
        out_shape=jax.ShapeDtypeStruct((b * n, HD), jnp.float32),
        in_specs=[_full_spec(xf.shape), _full_spec(pk['w_self'].shape),
                  _full_spec(pk['b_self'].shape)],
        out_specs=_full_spec((b * n, HD)),
    )(xf, pk['w_self'], pk['b_self'])
    return out.reshape(b, n, HD)


# -----------------------------------------------------------------------------
# Kernel 3: the fused layer stack (one pallas_call for the whole network body).
# Grid axis = block index.  `h` lives in a VMEM scratch across the whole grid.
# -----------------------------------------------------------------------------
def _fused_stack_kernel(
        btype_ref,                                                     # scalar prefetch (SMEM)
        lng_ref, lnb_ref, tc_ref, wa_ref, ba_ref, wkv_ref, bkv_ref,    # streamed per block
        wb_ref, bb_ref,
        x_ref, win_ref, bin_ref, pos_ref, tpe_ref, ctx_ref,            # resident
        amx_ref, amc_ref, lane_ref, fg_ref, fb_ref, wout_ref, bout_ref,
        out_ref,                                                       # output
        h_ref,                                                         # VMEM scratch
        *, hd, heads, head_dim, dh_p, inner_p, ff_p):
    blk = pl.program_id(0)
    nblk = pl.num_programs(0)
    B, N, HD = h_ref.shape
    lane = lane_ref[...]                       # (1, 1, HD) {0,1} mask of real lanes
    inv_hd = 1.0 / hd
    attn_scale = 1.0 / math.sqrt(head_dim)
    eps = 1e-5

    # ---- prologue (block 0): input_proj(x) + pos_emb + time_pos_emb ----------
    @pl.when(blk == 0)
    def _():
        xb = x_ref[...]
        xd_in = xb.shape[-1]
        h0 = jnp.dot(xb.reshape(B * N, xd_in).astype(jnp.bfloat16), win_ref[...],
                     preferred_element_type=jnp.float32) + bin_ref[...]
        h_ref[...] = h0.reshape(B, N, HD) + pos_ref[...] + tpe_ref[...]

    h = h_ref[...]

    # ---- AdaLN: LayerNorm over the real lanes + time-cond scale/shift --------
    # TODO(synk): TransformerLayers source not in the reference; implemented as pre-LN
    # residual blocks with AdaLN time conditioning; dropout is an eval-time no-op.
    mu = jnp.sum(h, axis=-1, keepdims=True) * inv_hd
    xc = (h - mu) * lane
    var = jnp.sum(xc * xc, axis=-1, keepdims=True) * inv_hd
    xn = xc * jax.lax.rsqrt(var + eps) * lng_ref[...] + lnb_ref[...]
    tcv = tc_ref[0]                                              # (B, 2*HD)
    y = xn * (1.0 + tcv[:, :HD][:, None, :]) + tcv[:, HD:][:, None, :]
    yf = y.reshape(B * N, HD).astype(jnp.bfloat16)

    bt = btype_ref[blk]

    def _attn(q, k, v, addm, wo, bo):
        # q: (B, Nq, inner_p), k/v: (B, Nk, inner_p), addm: (B, 1, Nk) additive mask.
        # head_dim is padded to dh_p=128, so every per-head slice is 128-lane aligned and
        # head outputs fold straight into the output projection (no lane-axis concat).
        nq = q.shape[1]
        acc = jnp.zeros((B * nq, HD), jnp.float32)
        for hh in range(heads):
            sl = slice(hh * dh_p, (hh + 1) * dh_p)
            s = jnp.einsum('bqd,bkd->bqk',
                           q[..., sl].astype(jnp.bfloat16),
                           k[..., sl].astype(jnp.bfloat16),
                           preferred_element_type=jnp.float32) * attn_scale
            s = s + addm
            s = s - jnp.max(s, axis=-1, keepdims=True)
            p = jnp.exp(s)
            p = p / jnp.sum(p, axis=-1, keepdims=True)
            oh = jnp.einsum('bqk,bkd->bqd', p.astype(jnp.bfloat16),
                            v[..., sl].astype(jnp.bfloat16),
                            preferred_element_type=jnp.float32)
            acc = acc + jnp.dot(oh.reshape(B * nq, dh_p).astype(jnp.bfloat16),
                                wo[sl, :], preferred_element_type=jnp.float32)
        return (acc + bo).reshape(B, nq, HD)

    # ---- block type 0: masked self-attention ----------------------------------
    @pl.when(bt == 0)
    def _():
        qkv = jnp.dot(yf, wa_ref[0, :, :3 * inner_p],
                      preferred_element_type=jnp.float32) + ba_ref[0, :, :3 * inner_p]
        q = qkv[:, :inner_p].reshape(B, N, inner_p)
        k = qkv[:, inner_p:2 * inner_p].reshape(B, N, inner_p)
        v = qkv[:, 2 * inner_p:].reshape(B, N, inner_p)
        o = _attn(q, k, v, amx_ref[...], wb_ref[0, :inner_p, :], bb_ref[0])
        h_ref[...] = h + o

    # ---- block type 1: cross-attention over [self-cond, class] context --------
    @pl.when(bt == 1)
    def _():
        q = (jnp.dot(yf, wa_ref[0, :, :inner_p],
                     preferred_element_type=jnp.float32)
             + ba_ref[0, :, :inner_p]).reshape(B, N, inner_p)
        ctx = ctx_ref[...]
        nk = ctx.shape[1]
        kv = (jnp.dot(ctx.reshape(B * nk, HD).astype(jnp.bfloat16), wkv_ref[0],
                      preferred_element_type=jnp.float32) + bkv_ref[0])
        k = kv[:, :inner_p].reshape(B, nk, inner_p)
        v = kv[:, inner_p:].reshape(B, nk, inner_p)
        o = _attn(q, k, v, amc_ref[...], wb_ref[0, :inner_p, :], bb_ref[0])
        h_ref[...] = h + o

    # ---- block type 2: feed-forward --------------------------------------------
    @pl.when(bt == 2)
    def _():
        z = jnp.dot(yf, wa_ref[0, :, :ff_p],
                    preferred_element_type=jnp.float32) + ba_ref[0, :, :ff_p]
        # TODO(synk): tanh-approximate GELU (PyTorch default is exact erf-GELU).
        z = jax.nn.gelu(z, approximate=True)
        f = jnp.dot(z.astype(jnp.bfloat16), wb_ref[0, :ff_p, :],
                    preferred_element_type=jnp.float32) + bb_ref[0]
        h_ref[...] = h + f.reshape(B, N, HD)

    # ---- epilogue (last block): final LayerNorm + output projection ------------
    @pl.when(blk == nblk - 1)
    def _():
        hf = h_ref[...]
        mu2 = jnp.sum(hf, axis=-1, keepdims=True) * inv_hd
        c2 = (hf - mu2) * lane
        v2 = jnp.sum(c2 * c2, axis=-1, keepdims=True) * inv_hd
        yn = c2 * jax.lax.rsqrt(v2 + eps) * fg_ref[...] + fb_ref[...]
        out = jnp.dot(yn.reshape(B * N, HD).astype(jnp.bfloat16), wout_ref[...],
                      preferred_element_type=jnp.float32) + bout_ref[...]
        out_ref[...] = out.reshape(out_ref.shape)


def _stream_spec(shape):
    nd = len(shape)
    return pl.BlockSpec((1,) + tuple(shape[1:]),
                        lambda i, *_, nd=nd: (i,) + (0,) * (nd - 1))


def _const_spec(shape):
    nd = len(shape)
    return pl.BlockSpec(tuple(shape), lambda i, *_, nd=nd: (0,) * nd)


def _fused_stack_call(pk, dm, x, tpe, tc_stack, ctx, addm_x, addm_c):
    b, n, _ = x.shape
    HD, XDP, NB = dm['HD'], dm['XDP'], dm['NB']
    kernel = functools.partial(
        _fused_stack_kernel,
        hd=dm['hd'], heads=dm['heads'], head_dim=dm['dh'],
        dh_p=dm['DH'], inner_p=dm['INNER'], ff_p=dm['FF'])

    streamed = (pk['lng'], pk['lnb'], tc_stack, pk['wA'], pk['bA'],
                pk['wKV'], pk['bKV'], pk['wB'], pk['bB'])
    resident = (x, pk['w_in'], pk['b_in'], pk['pos'][:, :n, :], tpe, ctx,
                addm_x, addm_c, pk['lane'], pk['fg'], pk['fb'],
                pk['w_out'], pk['b_out'])
    in_specs = ([_stream_spec(a.shape) for a in streamed]
                + [_const_spec(a.shape) for a in resident])

    bn = b * n
    flops = int(NB * (2 * bn * HD * dm['POUT'] + 2 * bn * dm['PIN2'] * HD
                      + 4 * b * dm['heads'] * n * n * dm['DH'])
                + 2 * bn * HD * XDP)
    transcend = int(NB * bn * max(dm['FF'], n))
    nbytes = int(sum(a.size * a.dtype.itemsize for a in streamed + resident)
                 + bn * XDP * 4)

    grid_spec = pltpu.PrefetchScalarGridSpec(
        num_scalar_prefetch=1,
        grid=(NB,),
        in_specs=in_specs,
        out_specs=_const_spec((b, n, XDP)),
        scratch_shapes=[pltpu.VMEM((b, n, HD), jnp.float32)])

    return pl.pallas_call(
        kernel,
        out_shape=jax.ShapeDtypeStruct((b, n, XDP), jnp.float32),
        grid_spec=grid_spec,
        compiler_params=pltpu.CompilerParams(
            dimension_semantics=("arbitrary",),
            vmem_limit_bytes=32 * 1024 * 1024),
        cost_estimate=pl.CostEstimate(flops=flops, transcendentals=transcend,
                                      bytes_accessed=nbytes),
    )(pk['btype'], *streamed, *resident)


# --------------------------------- parameters ---------------------------------
def make_dims(cfg):
    hd, xd = cfg['hidden_dim'], cfg['x_dim']
    heads, dh = cfg['heads'], cfg['head_dim']
    d = dict(hd=hd, xd=xd, heads=heads, dh=dh, ted=xd * 4, ff=hd * 4,
             HD=_ru(hd, 128), DH=_ru(dh, 128), TED=_ru(xd * 4, 128),
             FF=_ru(hd * 4, 128), XDP=_ru(xd, 128),
             NB=cfg['depth'] * len(cfg['layer_block']), seq=cfg['seq_len'])
    d['INNER'] = heads * d['DH']
    d['POUT'] = max(3 * d['INNER'], d['FF'])
    d['PIN2'] = max(d['INNER'], d['FF'])
    return d


def init_params(key, cfg):
    hd, xd = cfg['hidden_dim'], cfg['x_dim']
    ted, inner, ff = xd * 4, cfg['heads'] * cfg['head_dim'], hd * 4
    keys = iter(jax.random.split(key, 256))
    nk = lambda: next(keys)
    lin = lambda fi, fo: {'w': jax.random.normal(nk(), (fi, fo), jnp.float32) * 0.02,
                          'b': jnp.zeros((1, fo), jnp.float32)}
    p = {'input_proj': lin(xd, hd), 'output_proj': lin(hd, xd),
         'norm_g': jnp.ones((hd,), jnp.float32), 'norm_b': jnp.zeros((hd,), jnp.float32),
         'time_lin1': lin(hd, ted), 'time_lin2': lin(ted, ted),
         'time_pos_emb': lin(ted, hd),
         'pos_emb': jax.random.normal(nk(), (1, cfg['seq_len'], hd), jnp.float32) * 0.02,
         'null_emb': jax.random.normal(nk(), (1, hd), jnp.float32) * 0.02,
         'self_proj': lin(xd, hd),
         'class_emb': jax.random.normal(nk(), (cfg['num_classes'] + 1, hd), jnp.float32) * 0.02}
    blocks = []
    for _ in range(cfg['depth']):
        for blk in cfg['layer_block']:
            bp = {'type': blk,
                  'ln_g': jnp.ones((hd,), jnp.float32),
                  'ln_b': jnp.zeros((hd,), jnp.float32),
                  'time_cond': lin(ted, 2 * hd)}
            if blk == 'a':
                bp['wqkv'] = lin(hd, 3 * inner)
                bp['wo'] = lin(inner, hd)
            elif blk == 'c':
                bp['wq'] = lin(hd, inner)
                bp['wkv'] = lin(hd, 2 * inner)
                bp['wo'] = lin(inner, hd)
            else:
                bp['w1'] = lin(hd, ff)
                bp['w2'] = lin(ff, hd)
            blocks.append(bp)
    p['blocks'] = blocks
    return p


def pack_params(p, cfg, dm):
    f32, bf16 = jnp.float32, jnp.bfloat16
    hd, xd, heads, dh = dm['hd'], dm['xd'], dm['heads'], dm['dh']
    HD, DH, INNER, FF, TED, XDP = dm['HD'], dm['DH'], dm['INNER'], dm['FF'], dm['TED'], dm['XDP']
    POUT, PIN2, NB = dm['POUT'], dm['PIN2'], dm['NB']
    ted, ff, inner = dm['ted'], dm['ff'], heads * dh

    def mat(w, rows, cols):
        return jnp.zeros((rows, cols), f32).at[:w.shape[0], :w.shape[1]].set(w)

    def head_cols(w, rows):          # (in, heads*dh) -> (rows, heads*DH)
        o = jnp.zeros((rows, heads * DH), f32)
        for h in range(heads):
            o = o.at[:w.shape[0], h * DH:h * DH + dh].set(w[:, h * dh:(h + 1) * dh])
        return o

    def head_rows(w, cols):          # (heads*dh, out) -> (heads*DH, cols)
        o = jnp.zeros((heads * DH, cols), f32)
        for h in range(heads):
            o = o.at[h * DH:h * DH + dh, :w.shape[1]].set(w[h * dh:(h + 1) * dh, :])
        return o

    def head_vec(v):                 # (1, heads*dh) -> (1, heads*DH)
        o = jnp.zeros((1, heads * DH), f32)
        for h in range(heads):
            o = o.at[:, h * DH:h * DH + dh].set(v[:, h * dh:(h + 1) * dh])
        return o

    bmap = {'a': 0, 'c': 1, 'f': 2}
    wA = jnp.zeros((NB, HD, POUT), f32); bA = jnp.zeros((NB, 1, POUT), f32)
    wKV = jnp.zeros((NB, HD, 2 * INNER), f32); bKV = jnp.zeros((NB, 1, 2 * INNER), f32)
    wB = jnp.zeros((NB, PIN2, HD), f32); bB = jnp.zeros((NB, 1, HD), f32)
    lng = jnp.zeros((NB, 1, HD), f32); lnb = jnp.zeros((NB, 1, HD), f32)
    wtc = jnp.zeros((TED, NB * 2 * HD), f32); btc = jnp.zeros((1, NB * 2 * HD), f32)
    btype = []
    for i, bp in enumerate(p['blocks']):
        t = bp['type']; btype.append(bmap[t])
        lng = lng.at[i, 0, :hd].set(bp['ln_g'])
        lnb = lnb.at[i, 0, :hd].set(bp['ln_b'])
        tcw, tcb = bp['time_cond']['w'], bp['time_cond']['b']
        wtc = wtc.at[:ted, i * 2 * HD:i * 2 * HD + hd].set(tcw[:, :hd])
        wtc = wtc.at[:ted, i * 2 * HD + HD:i * 2 * HD + HD + hd].set(tcw[:, hd:])
        btc = btc.at[:, i * 2 * HD:i * 2 * HD + hd].set(tcb[:, :hd])
        btc = btc.at[:, i * 2 * HD + HD:i * 2 * HD + HD + hd].set(tcb[:, hd:])
        if t == 'a':
            w, bq = bp['wqkv']['w'], bp['wqkv']['b']
            wA = wA.at[i, :, :3 * INNER].set(jnp.concatenate(
                [head_cols(w[:, :inner], HD), head_cols(w[:, inner:2 * inner], HD),
                 head_cols(w[:, 2 * inner:], HD)], axis=1))
            bA = bA.at[i, :, :3 * INNER].set(jnp.concatenate(
                [head_vec(bq[:, :inner]), head_vec(bq[:, inner:2 * inner]),
                 head_vec(bq[:, 2 * inner:])], axis=1))
            wB = wB.at[i, :INNER, :].set(head_rows(bp['wo']['w'], HD))
            bB = bB.at[i, :, :hd].set(bp['wo']['b'])
        elif t == 'c':
            wA = wA.at[i, :, :INNER].set(head_cols(bp['wq']['w'], HD))
            bA = bA.at[i, :, :INNER].set(head_vec(bp['wq']['b']))
            wk, bk = bp['wkv']['w'], bp['wkv']['b']
            wKV = wKV.at[i].set(jnp.concatenate(
                [head_cols(wk[:, :inner], HD), head_cols(wk[:, inner:], HD)], axis=1))
            bKV = bKV.at[i].set(jnp.concatenate(
                [head_vec(bk[:, :inner]), head_vec(bk[:, inner:])], axis=1))
            wB = wB.at[i, :INNER, :].set(head_rows(bp['wo']['w'], HD))
            bB = bB.at[i, :, :hd].set(bp['wo']['b'])
        else:
            wA = wA.at[i, :hd, :ff].set(bp['w1']['w'])
            bA = bA.at[i, :, :ff].set(bp['w1']['b'])
            wB = wB.at[i, :ff, :hd].set(bp['w2']['w'])
            bB = bB.at[i, :, :hd].set(bp['w2']['b'])

    return dict(
        btype=jnp.asarray(btype, jnp.int32),
        lng=lng, lnb=lnb,
        wA=wA.astype(bf16), bA=bA, wKV=wKV.astype(bf16), bKV=bKV,
        wB=wB.astype(bf16), bB=bB,
        w_in=mat(p['input_proj']['w'], xd, HD).astype(bf16),
        b_in=mat(p['input_proj']['b'], 1, HD),
        pos=jnp.zeros((1, dm['seq'], HD), f32).at[:, :, :hd].set(p['pos_emb']),
        w_t1=mat(p['time_lin1']['w'], hd, TED).astype(bf16),
        b_t1=mat(p['time_lin1']['b'], 1, TED),
        w_t2=mat(p['time_lin2']['w'], TED, TED).astype(bf16),
        b_t2=mat(p['time_lin2']['b'], 1, TED),
        w_pe=mat(p['time_pos_emb']['w'], TED, HD).astype(bf16),
        b_pe=mat(p['time_pos_emb']['b'], 1, HD),
        w_tc=wtc.astype(bf16), b_tc=btc,
        null_emb=mat(p['null_emb'], 1, HD),
        class_emb=mat(p['class_emb'], p['class_emb'].shape[0], HD),
        w_self=mat(p['self_proj']['w'], xd, HD).astype(bf16),
        b_self=mat(p['self_proj']['b'], 1, HD),
        fg=jnp.zeros((1, 1, HD), f32).at[0, 0, :hd].set(p['norm_g']),
        fb=jnp.zeros((1, 1, HD), f32).at[0, 0, :hd].set(p['norm_b']),
        w_out=mat(p['output_proj']['w'], HD, XDP).astype(bf16),
        b_out=mat(p['output_proj']['b'], 1, XDP),
        lane=jnp.zeros((1, 1, HD), f32).at[0, 0, :hd].set(1.0),
    )


# ----------------------------------- forward -----------------------------------
def sinusoidal_emb(t, dim):
    half = dim // 2
    freqs = jnp.exp(jnp.arange(half, dtype=jnp.float32)
                    * (-math.log(10000.0) / (half - 1)))
    args = t.astype(jnp.float32)[:, None] * freqs[None, :]
    return jnp.concatenate([jnp.sin(args), jnp.cos(args)], axis=-1)


def diffusion_transformer_forward(pk, cfg, dm, x, x_mask, t,
                                  x_self_cond=None, class_id=None):
    b, n, xd = x.shape
    HD, NB = dm['HD'], dm['NB']

    # time conditioning: one fused kernel -> time pos emb + all block scale/shifts
    se = sinusoidal_emb(t, cfg['hidden_dim'])
    tpe, tc = _time_call(pk, dm, se)
    tpe = tpe[:, None, :]                                           # (b, 1, HD)
    tc_stack = jnp.transpose(tc.reshape(b, NB, 2 * HD), (1, 0, 2))  # (NB, b, 2*HD)

    # context = [self-condition, class-condition]  (tiny XLA glue)
    if x_self_cond is None:
        c0 = jnp.broadcast_to(pk['null_emb'][None], (b, 1, HD))
        m0 = jnp.ones((b, 1), jnp.float32)
    else:
        c0 = _self_proj_call(pk, dm, x_self_cond)
        m0 = x_mask.astype(jnp.float32)
    c1 = jnp.take(pk['class_emb'], class_id, axis=0)[:, None, :]
    m1 = jnp.ones((b, 1), jnp.float32)
    ctx = jnp.concatenate([c0, c1], axis=1)
    cmask = jnp.concatenate([m0, m1], axis=1)
    addm_c = ((cmask - 1.0) * 1e9)[:, None, :]                      # (b, 1, Nk)
    addm_x = ((x_mask.astype(jnp.float32) - 1.0) * 1e9)[:, None, :]

    # input proj + pos/time emb + all blocks + final LN + output proj: ONE call.
    out = _fused_stack_call(pk, dm, x, tpe, tc_stack, ctx, addm_x, addm_c)
    return out[:, :, :xd]


# ------------------------------------- main -------------------------------------
if __name__ == "__main__":
    cfg = dict(x_dim=16, seq_len=8, hidden_dim=32, head_dim=8, heads=4, depth=2,
               layer_block=('a', 'c', 'f'), num_classes=4)
    dm = make_dims(cfg)

    key = jax.random.PRNGKey(0)
    pkey, xkey, tkey, ckey = jax.random.split(key, 4)
    params = init_params(pkey, cfg)
    pk = pack_params(params, cfg, dm)

    b, n, xd = 2, cfg['seq_len'], cfg['x_dim']
    x = jax.random.normal(xkey, (b, n, xd), jnp.float32)
    x_mask = jnp.ones((b, n), dtype=bool).at[1, 6:].set(False)   # ragged sequence mask
    t = jax.random.uniform(tkey, (b,), jnp.float32, 0.0, 1000.0)
    class_id = jax.random.randint(ckey, (b,), 0, cfg['num_classes'])

    fwd = jax.jit(lambda pk_, x_, m_, t_, c_: diffusion_transformer_forward(
        pk_, cfg, dm, x_, m_, t_, None, c_))
    out = jax.block_until_ready(fwd(pk, x, x_mask, t, class_id))
    assert out.shape == (b, n, xd) and out.dtype == jnp.float32
    print("KERNEL_OK")
</pallas_src>

<mosaic_0001>
module attributes {stable_mosaic.version = 11 : i64} {
  func.func @_time_kernel(%arg0: memref<2x32xf32, #tpu.memory_space<vmem>>, %arg1: memref<32x128xbf16, #tpu.memory_space<vmem>>, %arg2: memref<1x128xf32, #tpu.memory_space<vmem>>, %arg3: memref<128x128xbf16, #tpu.memory_space<vmem>>, %arg4: memref<1x128xf32, #tpu.memory_space<vmem>>, %arg5: memref<128x128xbf16, #tpu.memory_space<vmem>>, %arg6: memref<1x128xf32, #tpu.memory_space<vmem>>, %arg7: memref<128x1536xbf16, #tpu.memory_space<vmem>>, %arg8: memref<1x1536xf32, #tpu.memory_space<vmem>>, %arg9: memref<2x128xf32, #tpu.memory_space<vmem>>, %arg10: memref<2x1536xf32, #tpu.memory_space<vmem>>) attributes {dimension_semantics = [], scalar_prefetch = 0 : i64, scratch_operands = 0 : i64, tpu.core_type = #tpu.core_type<tc>} {
    %c0 = arith.constant 0 : index
    %c0_0 = arith.constant 0 : index
    %0 = vector.load %arg0[%c0, %c0_0] : memref<2x32xf32, #tpu.memory_space<vmem>>, vector<2x32xf32>
    %1 = arith.truncf %0 : vector<2x32xf32> to vector<2x32xbf16>
    %c0_1 = arith.constant 0 : index
    %c0_2 = arith.constant 0 : index
    %2 = vector.load %arg1[%c0_1, %c0_2] : memref<32x128xbf16, #tpu.memory_space<vmem>>, vector<32x128xbf16>
    %cst = arith.constant dense<0.000000e+00> : vector<2x128xf32>
    %3 = tpu.matmul %1, %2, %cst {dimension_numbers = #tpu.dot_dimension_numbers<[1], [0], [0], [1], [0, 0, 1, 1], [], []>} : vector<2x32xbf16>, vector<32x128xbf16>, vector<2x128xf32> -> vector<2x128xf32>
    %c0_3 = arith.constant 0 : index
    %c0_4 = arith.constant 0 : index
    %4 = vector.load %arg2[%c0_3, %c0_4] : memref<1x128xf32, #tpu.memory_space<vmem>>, vector<1x128xf32>
    %5 = vector.broadcast %4 : vector<1x128xf32> to vector<2x128xf32>
    %6 = arith.addf %3, %5 : vector<2x128xf32>
    %7 = arith.mulf %6, %6 : vector<2x128xf32>
    %8 = arith.mulf %6, %7 : vector<2x128xf32>
    %cst_5 = arith.constant 4.471500e-02 : f32
    %9 = vector.broadcast %cst_5 : f32 to vector<2x128xf32>
    %10 = arith.mulf %9, %8 : vector<2x128xf32>
    %11 = arith.addf %6, %10 : vector<2x128xf32>
    %cst_6 = arith.constant 0.797884583 : f32
    %12 = vector.broadcast %cst_6 : f32 to vector<2x128xf32>
    %13 = arith.mulf %12, %11 : vector<2x128xf32>
    %14 = math.tanh %13 : vector<2x128xf32>
    %cst_7 = arith.constant 1.000000e+00 : f32
    %15 = vector.broadcast %cst_7 : f32 to vector<2x128xf32>
    %16 = arith.addf %15, %14 : vector<2x128xf32>
    %cst_8 = arith.constant 5.000000e-01 : f32
    %17 = vector.broadcast %cst_8 : f32 to vector<2x128xf32>
    %18 = arith.mulf %17, %16 : vector<2x128xf32>
    %19 = arith.mulf %6, %18 : vector<2x128xf32>
    %20 = arith.truncf %19 : vector<2x128xf32> to vector<2x128xbf16>
    %c0_9 = arith.constant 0 : index
    %c0_10 = arith.constant 0 : index
    %21 = vector.load %arg3[%c0_9, %c0_10] : memref<128x128xbf16, #tpu.memory_space<vmem>>, vector<128x128xbf16>
    %cst_11 = arith.constant dense<0.000000e+00> : vector<2x128xf32>
    %22 = tpu.matmul %20, %21, %cst_11 {dimension_numbers = #tpu.dot_dimension_numbers<[1], [0], [0], [1], [0, 0, 1, 1], [], []>} : vector<2x128xbf16>, vector<128x128xbf16>, vector<2x128xf32> -> vector<2x128xf32>
    %c0_12 = arith.constant 0 : index
    %c0_13 = arith.constant 0 : index
    %23 = vector.load %arg4[%c0_12, %c0_13] : memref<1x128xf32, #tpu.memory_space<vmem>>, vector<1x128xf32>
    %24 = vector.broadcast %23 : vector<1x128xf32> to vector<2x128xf32>
    %25 = arith.addf %22, %24 : vector<2x128xf32>
    %26 = arith.mulf %25, %25 : vector<2x128xf32>
    %27 = arith.mulf %25, %26 : vector<2x128xf32>
    %cst_14 = arith.constant 4.471500e-02 : f32
    %28 = vector.broadcast %cst_14 : f32 to vector<2x128xf32>
    %29 = arith.mulf %28, %27 : vector<2x128xf32>
    %30 = arith.addf %25, %29 : vector<2x128xf32>
    %cst_15 = arith.constant 0.797884583 : f32
    %31 = vector.broadcast %cst_15 : f32 to vector<2x128xf32>
    %32 = arith.mulf %31, %30 : vector<2x128xf32>
    %33 = math.tanh %32 : vector<2x128xf32>
    %cst_16 = arith.constant 1.000000e+00 : f32
    %34 = vector.broadcast %cst_16 : f32 to vector<2x128xf32>
    %35 = arith.addf %34, %33 : vector<2x128xf32>
    %cst_17 = arith.constant 5.000000e-01 : f32
    %36 = vector.broadcast %cst_17 : f32 to vector<2x128xf32>
    %37 = arith.mulf %36, %35 : vector<2x128xf32>
    %38 = arith.mulf %25, %37 : vector<2x128xf32>
    %39 = arith.truncf %38 : vector<2x128xf32> to vector<2x128xbf16>
    %c0_18 = arith.constant 0 : index
    %c0_19 = arith.constant 0 : index
    %40 = vector.load %arg5[%c0_18, %c0_19] : memref<128x128xbf16, #tpu.memory_space<vmem>>, vector<128x128xbf16>
    %cst_20 = arith.constant dense<0.000000e+00> : vector<2x128xf32>
    %41 = tpu.matmul %39, %40, %cst_20 {dimension_numbers = #tpu.dot_dimension_numbers<[1], [0], [0], [1], [0, 0, 1, 1], [], []>} : vector<2x128xbf16>, vector<128x128xbf16>, vector<2x128xf32> -> vector<2x128xf32>
    %c0_21 = arith.constant 0 : index
    %c0_22 = arith.constant 0 : index
    %42 = vector.load %arg6[%c0_21, %c0_22] : memref<1x128xf32, #tpu.memory_space<vmem>>, vector<1x128xf32>
    %43 = vector.broadcast %42 : vector<1x128xf32> to vector<2x128xf32>
    %44 = arith.addf %41, %43 : vector<2x128xf32>
    %c0_23 = arith.constant 0 : index
    %c0_24 = arith.constant 0 : index
    %45 = vector.load %arg9[%c0_23, %c0_24] : memref<2x128xf32, #tpu.memory_space<vmem>>, vector<2x128xf32>
    tpu.vector_store %arg9[%c0_23, %c0_24], %44 {strides = array<i32>} : memref<2x128xf32, #tpu.memory_space<vmem>>, vector<2x128xf32>,
    %c0_25 = arith.constant 0 : index
    %c0_26 = arith.constant 0 : index
    %46 = vector.load %arg7[%c0_25, %c0_26] : memref<128x1536xbf16, #tpu.memory_space<vmem>>, vector<128x1536xbf16>
    %cst_27 = arith.constant dense<0.000000e+00> : vector<2x1536xf32>
    %47 = tpu.matmul %39, %46, %cst_27 {dimension_numbers = #tpu.dot_dimension_numbers<[1], [0], [0], [1], [0, 0, 1, 1], [], []>} : vector<2x128xbf16>, vector<128x1536xbf16>, vector<2x1536xf32> -> vector<2x1536xf32>
    %c0_28 = arith.constant 0 : index
    %c0_29 = arith.constant 0 : index
    %48 = vector.load %arg8[%c0_28, %c0_29] : memref<1x1536xf32, #tpu.memory_space<vmem>>, vector<1x1536xf32>
    %49 = vector.broadcast %48 : vector<1x1536xf32> to vector<2x1536xf32>
    %50 = arith.addf %47, %49 : vector<2x1536xf32>
    %c0_30 = arith.constant 0 : index
    %c0_31 = arith.constant 0 : index
    %51 = vector.load %arg10[%c0_30, %c0_31] : memref<2x1536xf32, #tpu.memory_space<vmem>>, vector<2x1536xf32>
    tpu.vector_store %arg10[%c0_30, %c0_31], %50 {strides = array<i32>} : memref<2x1536xf32, #tpu.memory_space<vmem>>, vector<2x1536xf32>,
    return
  }
}

module attributes {stable_mosaic.version = 11 : i64} {
  func.func @_fused_stack_kernel(%arg0: i32, %arg1: memref<6xi32, #tpu.memory_space<smem>>, %arg2: memref<1x1x128xf32, #tpu.memory_space<vmem>>, %arg3: memref<1x1x128xf32, #tpu.memory_space<vmem>>, %arg4: memref<1x2x256xf32, #tpu.memory_space<vmem>>, %arg5: memref<1x128x1536xbf16, #tpu.memory_space<vmem>>, %arg6: memref<1x1x1536xf32, #tpu.memory_space<vmem>>, %arg7: memref<1x128x1024xbf16, #tpu.memory_space<vmem>>, %arg8: memref<1x1x1024xf32, #tpu.memory_space<vmem>>, %arg9: memref<1x512x128xbf16, #tpu.memory_space<vmem>>, %arg10: memref<1x1x128xf32, #tpu.memory_space<vmem>>, %arg11: memref<2x8x16xf32, #tpu.memory_space<vmem>>, %arg12: memref<16x128xbf16, #tpu.memory_space<vmem>>, %arg13: memref<1x128xf32, #tpu.memory_space<vmem>>, %arg14: memref<1x8x128xf32, #tpu.memory_space<vmem>>, %arg15: memref<2x1x128xf32, #tpu.memory_space<vmem>>, %arg16: memref<2x2x128xf32, #tpu.memory_space<vmem>>, %arg17: memref<2x1x8xf32, #tpu.memory_space<vmem>>, %arg18: memref<2x1x2xf32, #tpu.memory_space<vmem>>, %arg19: memref<1x1x128xf32, #tpu.memory_space<vmem>>, %arg20: memref<1x1x128xf32, #tpu.memory_space<vmem>>, %arg21: memref<1x1x128xf32, #tpu.memory_space<vmem>>, %arg22: memref<128x128xbf16, #tpu.memory_space<vmem>>, %arg23: memref<1x128xf32, #tpu.memory_space<vmem>>, %arg24: memref<2x8x128xf32, #tpu.memory_space<vmem>>, %arg25: memref<2x8x128xf32, #tpu.memory_space<vmem>>) attributes {dimension_semantics = [#tpu.dimension_semantics<arbitrary>], iteration_bounds = array<i64: 6>, scalar_prefetch = 1 : i64, scratch_operands = 1 : i64, tpu.core_type = #tpu.core_type<tc>, window_params = [{transform_indices = @transform_0, window_bounds = array<i64: 1, 1, 128>}, {transform_indices = @transform_1, window_bounds = array<i64: 1, 1, 128>}, {transform_indices = @transform_2, window_bounds = array<i64: 1, 2, 256>}, {transform_indices = @transform_3, window_bounds = array<i64: 1, 128, 1536>}, {transform_indices = @transform_4, window_bounds = array<i64: 1, 1, 1536>}, {transform_indices = @transform_5, window_bounds = array<i64: 1, 128, 1024>}, {transform_indices = @transform_6, window_bounds = array<i64: 1, 1, 1024>}, {transform_indices = @transform_7, window_bounds = array<i64: 1, 512, 128>}, {transform_indices = @transform_8, window_bounds = array<i64: 1, 1, 128>}, {pipeline_mode = #tpu.pipeline_mode<synchronous>, transform_indices = @transform_9, window_bounds = array<i64: 2, 8, 16>}, {pipeline_mode = #tpu.pipeline_mode<synchronous>, transform_indices = @transform_10, window_bounds = array<i64: 16, 128>}, {pipeline_mode = #tpu.pipeline_mode<synchronous>, transform_indices = @transform_11, window_bounds = array<i64: 1, 128>}, {pipeline_mode = #tpu.pipeline_mode<synchronous>, transform_indices = @transform_12, window_bounds = array<i64: 1, 8, 128>}, {pipeline_mode = #tpu.pipeline_mode<synchronous>, transform_indices = @transform_13, window_bounds = array<i64: 2, 1, 128>}, {pipeline_mode = #tpu.pipeline_mode<synchronous>, transform_indices = @transform_14, window_bounds = array<i64: 2, 2, 128>}, {pipeline_mode = #tpu.pipeline_mode<synchronous>, transform_indices = @transform_15, window_bounds = array<i64: 2, 1, 8>}, {pipeline_mode = #tpu.pipeline_mode<synchronous>, transform_indices = @transform_16, window_bounds = array<i64: 2, 1, 2>}, {pipeline_mode = #tpu.pipeline_mode<synchronous>, transform_indices = @transform_17, window_bounds = array<i64: 1, 1, 128>}, {pipeline_mode = #tpu.pipeline_mode<synchronous>, transform_indices = @transform_18, window_bounds = array<i64: 1, 1, 128>}, {pipeline_mode = #tpu.pipeline_mode<synchronous>, transform_indices = @transform_19, window_bounds = array<i64: 1, 1, 128>}, {pipeline_mode = #tpu.pipeline_mode<synchronous>, transform_indices = @transform_20, window_bounds = array<i64: 128, 128>}, {pipeline_mode = #tpu.pipeline_mode<synchronous>, transform_indices = @transform_21, window_bounds = array<i64: 1, 128>}, {pipeline_mode = #tpu.pipeline_mode<synchronous>, transform_indices = @transform_22, window_bounds = array<i64: 2, 8, 128>}]} {
    %c0 = arith.constant 0 : index
    %c0_0 = arith.constant 0 : index
    %c0_1 = arith.constant 0 : index
    %0 = vector.load %arg19[%c0, %c0_0, %c0_1] : memref<1x1x128xf32, #tpu.memory_space<vmem>>, vector<1x1x128xf32>
    %c0_i32 = arith.constant 0 : i32
    %1 = arith.cmpi eq, %arg0, %c0_i32 : i32
    %2 = arith.extui %1 : i1 to i32
    %c0_i32_2 = arith.constant 0 : i32
    %3 = arith.cmpi ne, %2, %c0_i32_2 : i32
    scf.if %3 {
      %c0_25 = arith.constant 0 : index
      %c0_26 = arith.constant 0 : index
      %c0_27 = arith.constant 0 : index
      %57 = vector.load %arg11[%c0_25, %c0_26, %c0_27] : memref<2x8x16xf32, #tpu.memory_space<vmem>>, vector<2x8x16xf32>
      %58 = vector.shape_cast %57 : vector<2x8x16xf32> to vector<16x16xf32>
      %59 = arith.truncf %58 : vector<16x16xf32> to vector<16x16xbf16>
      %c0_28 = arith.constant 0 : index
      %c0_29 = arith.constant 0 : index
      %60 = vector.load %arg12[%c0_28, %c0_29] : memref<16x128xbf16, #tpu.memory_space<vmem>>, vector<16x128xbf16>
      %cst_30 = arith.constant dense<0.000000e+00> : vector<16x128xf32>
      %61 = tpu.matmul %59, %60, %cst_30 {dimension_numbers = #tpu.dot_dimension_numbers<[1], [0], [0], [1], [0, 0, 1, 1], [], []>} : vector<16x16xbf16>, vector<16x128xbf16>, vector<16x128xf32> -> vector<16x128xf32>
      %c0_31 = arith.constant 0 : index
      %c0_32 = arith.constant 0 : index
      %62 = vector.load %arg13[%c0_31, %c0_32] : memref<1x128xf32, #tpu.memory_space<vmem>>, vector<1x128xf32>
      %63 = vector.broadcast %62 : vector<1x128xf32> to vector<16x128xf32>
      %64 = arith.addf %61, %63 : vector<16x128xf32>
      %65 = vector.shape_cast %64 : vector<16x128xf32> to vector<2x8x128xf32>
      %c0_33 = arith.constant 0 : index
      %c0_34 = arith.constant 0 : index
      %c0_35 = arith.constant 0 : index
      %66 = vector.load %arg14[%c0_33, %c0_34, %c0_35] : memref<1x8x128xf32, #tpu.memory_space<vmem>>, vector<1x8x128xf32>
      %67 = vector.broadcast %66 : vector<1x8x128xf32> to vector<2x8x128xf32>
      %68 = arith.addf %65, %67 : vector<2x8x128xf32>
      %c0_36 = arith.constant 0 : index
      %c0_37 = arith.constant 0 : index
      %c0_38 = arith.constant 0 : index
      %69 = vector.load %arg15[%c0_36, %c0_37, %c0_38] : memref<2x1x128xf32, #tpu.memory_space<vmem>>, vector<2x1x128xf32>
      %70 = vector.broadcast %69 : vector<2x1x128xf32> to vector<2x8x128xf32>
      %71 = arith.addf %68, %70 : vector<2x8x128xf32>
      %c0_39 = arith.constant 0 : index
      %c0_40 = arith.constant 0 : index
      %c0_41 = arith.constant 0 : index
      %72 = vector.load %arg25[%c0_39, %c0_40, %c0_41] : memref<2x8x128xf32, #tpu.memory_space<vmem>>, vector<2x8x128xf32>
      tpu.vector_store %arg25[%c0_39, %c0_40, %c0_41], %71 {strides = array<i32>} : memref<2x8x128xf32, #tpu.memory_space<vmem>>, vector<2x8x128xf32>,
    } else {
    }
    %c0_3 = arith.constant 0 : index
    %c0_4 = arith.constant 0 : index
    %c0_5 = arith.constant 0 : index
    %4 = vector.load %arg25[%c0_3, %c0_4, %c0_5] : memref<2x8x128xf32, #tpu.memory_space<vmem>>, vector<2x8x128xf32>
    %cst = arith.constant dense<0.000000e+00> : vector<2x8xf32>
    %5 = vector.multi_reduction <add>, %4, %cst [2] : vector<2x8x128xf32> to vector<2x8xf32>
    %6 = vector.shape_cast %5 : vector<2x8xf32> to vector<2x8x1xf32>
    %cst_6 = arith.constant 3.125000e-02 : f32
    %7 = vector.broadcast %cst_6 : f32 to vector<2x8x1xf32>
    %8 = arith.mulf %6, %7 : vector<2x8x1xf32>
    %9 = vector.broadcast %8 : vector<2x8x1xf32> to vector<2x8x128xf32>
    %10 = arith.subf %4, %9 : vector<2x8x128xf32>
    %11 = vector.broadcast %0 : vector<1x1x128xf32> to vector<2x8x128xf32>
    %12 = arith.mulf %10, %11 : vector<2x8x128xf32>
    %13 = arith.mulf %12, %12 : vector<2x8x128xf32>
    %cst_7 = arith.constant dense<0.000000e+00> : vector<2x8xf32>
    %14 = vector.multi_reduction <add>, %13, %cst_7 [2] : vector<2x8x128xf32> to vector<2x8xf32>
    %15 = vector.shape_cast %14 : vector<2x8xf32> to vector<2x8x1xf32>
    %cst_8 = arith.constant 3.125000e-02 : f32
    %16 = vector.broadcast %cst_8 : f32 to vector<2x8x1xf32>
    %17 = arith.mulf %15, %16 : vector<2x8x1xf32>
    %cst_9 = arith.constant 9.99999974E-6 : f32
    %18 = vector.broadcast %cst_9 : f32 to vector<2x8x1xf32>
    %19 = arith.addf %17, %18 : vector<2x8x1xf32>
    %20 = math.rsqrt %19 : vector<2x8x1xf32>
    %21 = vector.broadcast %20 : vector<2x8x1xf32> to vector<2x8x128xf32>
    %22 = arith.mulf %12, %21 : vector<2x8x128xf32>
    %c0_10 = arith.constant 0 : index
    %c0_11 = arith.constant 0 : index
    %c0_12 = arith.constant 0 : index
    %23 = vector.load %arg2[%c0_10, %c0_11, %c0_12] : memref<1x1x128xf32, #tpu.memory_space<vmem>>, vector<1x1x128xf32>
    %24 = vector.broadcast %23 : vector<1x1x128xf32> to vector<2x8x128xf32>
    %25 = arith.mulf %22, %24 : vector<2x8x128xf32>
    %c0_13 = arith.constant 0 : index
    %c0_14 = arith.constant 0 : index
    %c0_15 = arith.constant 0 : index
    %26 = vector.load %arg3[%c0_13, %c0_14, %c0_15] : memref<1x1x128xf32, #tpu.memory_space<vmem>>, vector<1x1x128xf32>
    %27 = vector.broadcast %26 : vector<1x1x128xf32> to vector<2x8x128xf32>
    %28 = arith.addf %25, %27 : vector<2x8x128xf32>
    %c0_16 = arith.constant 0 : index
    %c0_17 = arith.constant 0 : index
    %c0_18 = arith.constant 0 : index
    %29 = vector.load %arg4[%c0_16, %c0_17, %c0_18] : memref<1x2x256xf32, #tpu.memory_space<vmem>>, vector<1x2x256xf32>
    %30 = vector.shape_cast %29 : vector<1x2x256xf32> to vector<2x256xf32>
    %31 = vector.extract_strided_slice %30 {offsets = [0, 0], sizes = [2, 128], strides = [1, 1]} : vector<2x256xf32> to vector<2x128xf32>
    %32 = vector.shape_cast %31 : vector<2x128xf32> to vector<2x1x128xf32>
    %cst_19 = arith.constant 1.000000e+00 : f32
    %33 = vector.broadcast %cst_19 : f32 to vector<2x1x128xf32>
    %34 = arith.addf %33, %32 : vector<2x1x128xf32>
    %35 = vector.broadcast %34 : vector<2x1x128xf32> to vector<2x8x128xf32>
    %36 = arith.mulf %28, %35 : vector<2x8x128xf32>
    %37 = vector.extract_strided_slice %30 {offsets = [0, 128], sizes = [2, 128], strides = [1, 1]} : vector<2x256xf32> to vector<2x128xf32>
    %38 = vector.shape_cast %37 : vector<2x128xf32> to vector<2x1x128xf32>
    %39 = vector.broadcast %38 : vector<2x1x128xf32> to vector<2x8x128xf32>
    %40 = arith.addf %36, %39 : vector<2x8x128xf32>
    %41 = vector.shape_cast %40 : vector<2x8x128xf32> to vector<16x128xf32>
    %42 = arith.truncf %41 : vector<16x128xf32> to vector<16x128xbf16>
    %43 = arith.index_cast %arg0 : i32 to index
    %44 = memref.load %arg1[%43] : memref<6xi32, #tpu.memory_space<smem>>
    %c0_i32_20 = arith.constant 0 : i32
    %45 = arith.cmpi eq, %44, %c0_i32_20 : i32
    %46 = arith.extui %45 : i1 to i32
    %c0_i32_21 = arith.constant 0 : i32
    %47 = arith.cmpi ne, %46, %c0_i32_21 : i32
    scf.if %47 {
      %c0_25 = arith.constant 0 : index
      %c0_26 = arith.constant 0 : index
      %c0_27 = arith.constant 0 : index
      %57 = vector.load %arg5[%c0_25, %c0_26, %c0_27] : memref<1x128x1536xbf16, #tpu.memory_space<vmem>>, vector<1x128x1536xbf16>
      %58 = vector.shape_cast %57 : vector<1x128x1536xbf16> to vector<128x1536xbf16>
      %cst_28 = arith.constant dense<0.000000e+00> : vector<16x1536xf32>
      %59 = tpu.matmul %42, %58, %cst_28 {dimension_numbers = #tpu.dot_dimension_numbers<[1], [0], [0], [1], [0, 0, 1, 1], [], []>} : vector<16x128xbf16>, vector<128x1536xbf16>, vector<16x1536xf32> -> vector<16x1536xf32>
      %c0_29 = arith.constant 0 : index
      %c0_30 = arith.constant 0 : index
      %c0_31 = arith.constant 0 : index
      %60 = vector.load %arg6[%c0_29, %c0_30, %c0_31] : memref<1x1x1536xf32, #tpu.memory_space<vmem>>, vector<1x1x1536xf32>
      %61 = vector.shape_cast %60 : vector<1x1x1536xf32> to vector<1x1536xf32>
      %62 = vector.broadcast %61 : vector<1x1536xf32> to vector<16x1536xf32>
      %63 = arith.addf %59, %62 : vector<16x1536xf32>
      %64 = vector.extract_strided_slice %63 {offsets = [0, 0], sizes = [16, 512], strides = [1, 1]} : vector<16x1536xf32> to vector<16x512xf32>
      %65 = vector.shape_cast %64 : vector<16x512xf32> to vector<2x8x512xf32>
      %66 = vector.extract_strided_slice %63 {offsets = [0, 512], sizes = [16, 512], strides = [1, 1]} : vector<16x1536xf32> to vector<16x512xf32>
      %67 = vector.shape_cast %66 : vector<16x512xf32> to vector<2x8x512xf32>
      %68 = vector.extract_strided_slice %63 {offsets = [0, 1024], sizes = [16, 512], strides = [1, 1]} : vector<16x1536xf32> to vector<16x512xf32>
      %69 = vector.shape_cast %68 : vector<16x512xf32> to vector<2x8x512xf32>
      %c0_32 = arith.constant 0 : index
      %c0_33 = arith.constant 0 : index
      %c0_34 = arith.constant 0 : index
      %70 = vector.load %arg17[%c0_32, %c0_33, %c0_34] : memref<2x1x8xf32, #tpu.memory_space<vmem>>, vector<2x1x8xf32>
      %c0_35 = arith.constant 0 : index
      %c0_36 = arith.constant 0 : index
      %c0_37 = arith.constant 0 : index
      %71 = vector.load %arg9[%c0_35, %c0_36, %c0_37] : memref<1x512x128xbf16, #tpu.memory_space<vmem>>, vector<1x512x128xbf16>
      %72 = vector.shape_cast %71 : vector<1x512x128xbf16> to vector<512x128xbf16>
      %c0_38 = arith.constant 0 : index
      %c0_39 = arith.constant 0 : index
      %c0_40 = arith.constant 0 : index
      %73 = vector.load %arg10[%c0_38, %c0_39, %c0_40] : memref<1x1x128xf32, #tpu.memory_space<vmem>>, vector<1x1x128xf32>
      %74 = vector.shape_cast %73 : vector<1x1x128xf32> to vector<1x128xf32>
      %cst_41 = arith.constant 0.000000e+00 : f32
      %75 = vector.broadcast %cst_41 : f32 to vector<16x128xf32>
      %76 = vector.extract_strided_slice %65 {offsets = [0, 0, 0], sizes = [2, 8, 128], strides = [1, 1, 1]} : vector<2x8x512xf32> to vector<2x8x128xf32>
      %77 = arith.truncf %76 : vector<2x8x128xf32> to vector<2x8x128xbf16>
      %78 = vector.extract_strided_slice %67 {offsets = [0, 0, 0], sizes = [2, 8, 128], strides = [1, 1, 1]} : vector<2x8x512xf32> to vector<2x8x128xf32>
      %79 = arith.truncf %78 : vector<2x8x128xf32> to vector<2x8x128xbf16>
      "tpu.trace_start"() <{level = 10 : i32, message = "bqd,bkd->bqk"}> : () -> ()
      %cst_42 = arith.constant dense<0.000000e+00> : vector<2x8x8xf32>
      %80 = tpu.matmul %77, %79, %cst_42 {dimension_numbers = #tpu.dot_dimension_numbers<[2], [2], [1], [1], [0, 0, 0, 1, 1, 1], [0], [0]>} : vector<2x8x128xbf16>, vector<2x8x128xbf16>, vector<2x8x8xf32> -> vector<2x8x8xf32>
      "tpu.trace_stop"() : () -> ()
      %cst_43 = arith.constant 0.353553385 : f32
      %81 = vector.broadcast %cst_43 : f32 to vector<2x8x8xf32>
      %82 = arith.mulf %80, %81 : vector<2x8x8xf32>
      %83 = vector.broadcast %70 : vector<2x1x8xf32> to vector<2x8x8xf32>
      %84 = arith.addf %82, %83 : vector<2x8x8xf32>
      %cst_44 = arith.constant dense<0xFF800000> : vector<2x8xf32>
      %85 = vector.multi_reduction <maximumf>, %84, %cst_44 [2] : vector<2x8x8xf32> to vector<2x8xf32>
      %86 = vector.shape_cast %85 : vector<2x8xf32> to vector<2x8x1xf32>
      %87 = vector.broadcast %86 : vector<2x8x1xf32> to vector<2x8x8xf32>
      %88 = arith.subf %84, %87 : vector<2x8x8xf32>
      %89 = math.exp %88 : vector<2x8x8xf32>
      %cst_45 = arith.constant dense<0.000000e+00> : vector<2x8xf32>
      %90 = vector.multi_reduction <add>, %89, %cst_45 [2] : vector<2x8x8xf32> to vector<2x8xf32>
      %91 = vector.shape_cast %90 : vector<2x8xf32> to vector<2x8x1xf32>
      %92 = vector.broadcast %91 : vector<2x8x1xf32> to vector<2x8x8xf32>
      %93 = arith.divf %89, %92 : vector<2x8x8xf32>
      %94 = arith.truncf %93 : vector<2x8x8xf32> to vector<2x8x8xbf16>
      %95 = vector.extract_strided_slice %69 {offsets = [0, 0, 0], sizes = [2, 8, 128], strides = [1, 1, 1]} : vector<2x8x512xf32> to vector<2x8x128xf32>
      %96 = arith.truncf %95 : vector<2x8x128xf32> to vector<2x8x128xbf16>
      "tpu.trace_start"() <{level = 10 : i32, message = "bqk,bkd->bqd"}> : () -> ()
      %cst_46 = arith.constant dense<0.000000e+00> : vector<2x8x128xf32>
      %97 = tpu.matmul %94, %96, %cst_46 {dimension_numbers = #tpu.dot_dimension_numbers<[2], [1], [1], [2], [0, 0, 0, 1, 1, 2], [0], [0]>} : vector<2x8x8xbf16>, vector<2x8x128xbf16>, vector<2x8x128xf32> -> vector<2x8x128xf32>
      "tpu.trace_stop"() : () -> ()
      %98 = vector.shape_cast %97 : vector<2x8x128xf32> to vector<16x128xf32>
      %99 = arith.truncf %98 : vector<16x128xf32> to vector<16x128xbf16>
      %100 = vector.extract_strided_slice %72 {offsets = [0, 0], sizes = [128, 128], strides = [1, 1]} : vector<512x128xbf16> to vector<128x128xbf16>
      %cst_47 = arith.constant dense<0.000000e+00> : vector<16x128xf32>
      %101 = tpu.matmul %99, %100, %cst_47 {dimension_numbers = #tpu.dot_dimension_numbers<[1], [0], [0], [1], [0, 0, 1, 1], [], []>} : vector<16x128xbf16>, vector<128x128xbf16>, vector<16x128xf32> -> vector<16x128xf32>
      %102 = arith.addf %75, %101 : vector<16x128xf32>
      %103 = vector.extract_strided_slice %65 {offsets = [0, 0, 128], sizes = [2, 8, 128], strides = [1, 1, 1]} : vector<2x8x512xf32> to vector<2x8x128xf32>
      %104 = arith.truncf %103 : vector<2x8x128xf32> to vector<2x8x128xbf16>
      %105 = vector.extract_strided_slice %67 {offsets = [0, 0, 128], sizes = [2, 8, 128], strides = [1, 1, 1]} : vector<2x8x512xf32> to vector<2x8x128xf32>
      %106 = arith.truncf %105 : vector<2x8x128xf32> to vector<2x8x128xbf16>
      "tpu.trace_start"() <{level = 10 : i32, message = "bqd,bkd->bqk"}> : () -> ()
      %cst_48 = arith.constant dense<0.000000e+00> : vector<2x8x8xf32>
      %107 = tpu.matmul %104, %106, %cst_48 {dimension_numbers = #tpu.dot_dimension_numbers<[2], [2], [1], [1], [0, 0, 0, 1, 1, 1], [0], [0]>} : vector<2x8x128xbf16>, vector<2x8x128xbf16>, vector<2x8x8xf32> -> vector<2x8x8xf32>
      "tpu.trace_stop"() : () -> ()
      %cst_49 = arith.constant 0.353553385 : f32
      %108 = vector.broadcast %cst_49 : f32 to vector<2x8x8xf32>
      %109 = arith.mulf %107, %108 : vector<2x8x8xf32>
      %110 = vector.broadcast %70 : vector<2x1x8xf32> to vector<2x8x8xf32>
      %111 = arith.addf %109, %110 : vector<2x8x8xf32>
      %cst_50 = arith.constant dense<0xFF800000> : vector<2x8xf32>
      %112 = vector.multi_reduction <maximumf>, %111, %cst_50 [2] : vector<2x8x8xf32> to vector<2x8xf32>
      %113 = vector.shape_cast %112 : vector<2x8xf32> to vector<2x8x1xf32>
      %114 = vector.broadcast %113 : vector<2x8x1xf32> to vector<2x8x8xf32>
      %115 = arith.subf %111, %114 : vector<2x8x8xf32>
      %116 = math.exp %115 : vector<2x8x8xf32>
      %cst_51 = arith.constant dense<0.000000e+00> : vector<2x8xf32>
      %117 = vector.multi_reduction <add>, %116, %cst_51 [2] : vector<2x8x8xf32> to vector<2x8xf32>
      %118 = vector.shape_cast %117 : vector<2x8xf32> to vector<2x8x1xf32>
      %119 = vector.broadcast %118 : vector<2x8x1xf32> to vector<2x8x8xf32>
      %120 = arith.divf %116, %119 : vector<2x8x8xf32>
      %121 = arith.truncf %120 : vector<2x8x8xf32> to vector<2x8x8xbf16>
      %122 = vector.extract_strided_slice %69 {offsets = [0, 0, 128], sizes = [2, 8, 128], strides = [1, 1, 1]} : vector<2x8x512xf32> to vector<2x8x128xf32>
      %123 = arith.truncf %122 : vector<2x8x128xf32> to vector<2x8x128xbf16>
      "tpu.trace_start"() <{level = 10 : i32, message = "bqk,bkd->bqd"}> : () -> ()
      %cst_52 = arith.constant dense<0.000000e+00> : vector<2x8x128xf32>
      %124 = tpu.matmul %121, %123, %cst_52 {dimension_numbers = #tpu.dot_dimension_numbers<[2], [1], [1], [2], [0, 0, 0, 1, 1, 2], [0], [0]>} : vector<2x8x8xbf16>, vector<2x8x128xbf16>, vector<2x8x128xf32> -> vector<2x8x128xf32>
      "tpu.trace_stop"() : () -> ()
      %125 = vector.shape_cast %124 : vector<2x8x128xf32> to vector<16x128xf32>
      %126 = arith.truncf %125 : vector<16x128xf32> to vector<16x128xbf16>
      %127 = vector.extract_strided_slice %72 {offsets = [128, 0], sizes = [128, 128], strides = [1, 1]} : vector<512x128xbf16> to vector<128x128xbf16>
      %cst_53 = arith.constant dense<0.000000e+00> : vector<16x128xf32>
      %128 = tpu.matmul %126, %127, %cst_53 {dimension_numbers = #tpu.dot_dimension_numbers<[1], [0], [0], [1], [0, 0, 1, 1], [], []>} : vector<16x128xbf16>, vector<128x128xbf16>, vector<16x128xf32> -> vector<16x128xf32>
      %129 = arith.addf %102, %128 : vector<16x128xf32>
      %130 = vector.extract_strided_slice %65 {offsets = [0, 0, 256], sizes = [2, 8, 128], strides = [1, 1, 1]} : vector<2x8x512xf32> to vector<2x8x128xf32>
      %131 = arith.truncf %130 : vector<2x8x128xf32> to vector<2x8x128xbf16>
      %132 = vector.extract_strided_slice %67 {offsets = [0, 0, 256], sizes = [2, 8, 128], strides = [1, 1, 1]} : vector<2x8x512xf32> to vector<2x8x128xf32>
      %133 = arith.truncf %132 : vector<2x8x128xf32> to vector<2x8x128xbf16>
      "tpu.trace_start"() <{level = 10 : i32, message = "bqd,bkd->bqk"}> : () -> ()
      %cst_54 = arith.constant dense<0.000000e+00> : vector<2x8x8xf32>
      %134 = tpu.matmul %131, %133, %cst_54 {dimension_numbers = #tpu.dot_dimension_numbers<[2], [2], [1], [1], [0, 0, 0, 1, 1, 1], [0], [0]>} : vector<2x8x128xbf16>, vector<2x8x128xbf16>, vector<2x8x8xf32> -> vector<2x8x8xf32>
      "tpu.trace_stop"() : () -> ()
      %cst_55 = arith.constant 0.353553385 : f32
      %135 = vector.broadcast %cst_55 : f32 to vector<2x8x8xf32>
      %136 = arith.mulf %134, %135 : vector<2x8x8xf32>
      %137 = vector.broadcast %70 : vector<2x1x8xf32> to vector<2x8x8xf32>
      %138 = arith.addf %136, %137 : vector<2x8x8xf32>
      %cst_56 = arith.constant dense<0xFF800000> : vector<2x8xf32>
      %139 = vector.multi_reduction <maximumf>, %138, %cst_56 [2] : vector<2x8x8xf32> to vector<2x8xf32>
      %140 = vector.shape_cast %139 : vector<2x8xf32> to vector<2x8x1xf32>
      %141 = vector.broadcast %140 : vector<2x8x1xf32> to vector<2x8x8xf32>
      %142 = arith.subf %138, %141 : vector<2x8x8xf32>
      %143 = math.exp %142 : vector<2x8x8xf32>
      %cst_57 = arith.constant dense<0.000000e+00> : vector<2x8xf32>
      %144 = vector.multi_reduction <add>, %143, %cst_57 [2] : vector<2x8x8xf32> to vector<2x8xf32>
      %145 = vector.shape_cast %144 : vector<2x8xf32> to vector<2x8x1xf32>
      %146 = vector.broadcast %145 : vector<2x8x1xf32> to vector<2x8x8xf32>
      %147 = arith.divf %143, %146 : vector<2x8x8xf32>
      %148 = arith.truncf %147 : vector<2x8x8xf32> to vector<2x8x8xbf16>
      %149 = vector.extract_strided_slice %69 {offsets = [0, 0, 256], sizes = [2, 8, 128], strides = [1, 1, 1]} : vector<2x8x512xf32> to vector<2x8x128xf32>
      %150 = arith.truncf %149 : vector<2x8x128xf32> to vector<2x8x128xbf16>
      "tpu.trace_start"() <{level = 10 : i32, message = "bqk,bkd->bqd"}> : () -> ()
      %cst_58 = arith.constant dense<0.000000e+00> : vector<2x8x128xf32>
      %151 = tpu.matmul %148, %150, %cst_58 {dimension_numbers = #tpu.dot_dimension_numbers<[2], [1], [1], [2], [0, 0, 0, 1, 1, 2], [0], [0]>} : vector<2x8x8xbf16>, vector<2x8x128xbf16>, vector<2x8x128xf32> -> vector<2x8x128xf32>
      "tpu.trace_stop"() : () -> ()
      %152 = vector.shape_cast %151 : vector<2x8x128xf32> to vector<16x128xf32>
      %153 = arith.truncf %152 : vector<16x128xf32> to vector<16x128xbf16>
      %154 = vector.extract_strided_slice %72 {offsets = [256, 0], sizes = [128, 128], strides = [1, 1]} : vector<512x128xbf16> to vector<128x128xbf16>
      %cst_59 = arith.constant dense<0.000000e+00> : vector<16x128xf32>
      %155 = tpu.matmul %153, %154, %cst_59 {dimension_numbers = #tpu.dot_dimension_numbers<[1], [0], [0], [1], [0, 0, 1, 1], [], []>} : vector<16x128xbf16>, vector<128x128xbf16>, vector<16x128xf32> -> vector<16x128xf32>
      %156 = arith.addf %129, %155 : vector<16x128xf32>
      %157 = vector.extract_strided_slice %65 {offsets = [0, 0, 384], sizes = [2, 8, 128], strides = [1, 1, 1]} : vector<2x8x512xf32> to vector<2x8x128xf32>
      %158 = arith.truncf %157 : vector<2x8x128xf32> to vector<2x8x128xbf16>
      %159 = vector.extract_strided_slice %67 {offsets = [0, 0, 384], sizes = [2, 8, 128], strides = [1, 1, 1]} : vector<2x8x512xf32> to vector<2x8x128xf32>
      %160 = arith.truncf %159 : vector<2x8x128xf32> to vector<2x8x128xbf16>
      "tpu.trace_start"() <{level = 10 : i32, message = "bqd,bkd->bqk"}> : () -> ()
      %cst_60 = arith.constant dense<0.000000e+00> : vector<2x8x8xf32>
      %161 = tpu.matmul %158, %160, %cst_60 {dimension_numbers = #tpu.dot_dimension_numbers<[2], [2], [1], [1], [0, 0, 0, 1, 1, 1], [0], [0]>} : vector<2x8x128xbf16>, vector<2x8x128xbf16>, vector<2x8x8xf32> -> vector<2x8x8xf32>
      "tpu.trace_stop"() : () -> ()
      %cst_61 = arith.constant 0.353553385 : f32
      %162 = vector.broadcast %cst_61 : f32 to vector<2x8x8xf32>
      %163 = arith.mulf %161, %162 : vector<2x8x8xf32>
      %164 = vector.broadcast %70 : vector<2x1x8xf32> to vector<2x8x8xf32>
      %165 = arith.addf %163, %164 : vector<2x8x8xf32>
      %cst_62 = arith.constant dense<0xFF800000> : vector<2x8xf32>
      %166 = vector.multi_reduction <maximumf>, %165, %cst_62 [2] : vector<2x8x8xf32> to vector<2x8xf32>
      %167 = vector.shape_cast %166 : vector<2x8xf32> to vector<2x8x1xf32>
      %168 = vector.broadcast %167 : vector<2x8x1xf32> to vector<2x8x8xf32>
      %169 = arith.subf %165, %168 : vector<2x8x8xf32>
      %170 = math.exp %169 : vector<2x8x8xf32>
      %cst_63 = arith.constant dense<0.000000e+00> : vector<2x8xf32>
      %171 = vector.multi_reduction <add>, %170, %cst_63 [2] : vector<2x8x8xf32> to vector<2x8xf32>
      %172 = vector.shape_cast %171 : vector<2x8xf32> to vector<2x8x1xf32>
      %173 = vector.broadcast %172 : vector<2x8x1xf32> to vector<2x8x8xf32>
      %174 = arith.divf %170, %173 : vector<2x8x8xf32>
      %175 = arith.truncf %174 : vector<2x8x8xf32> to vector<2x8x8xbf16>
      %176 = vector.extract_strided_slice %69 {offsets = [0, 0, 384], sizes = [2, 8, 128], strides = [1, 1, 1]} : vector<2x8x512xf32> to vector<2x8x128xf32>
      %177 = arith.truncf %176 : vector<2x8x128xf32> to vector<2x8x128xbf16>
      "tpu.trace_start"() <{level = 10 : i32, message = "bqk,bkd->bqd"}> : () -> ()
      %cst_64 = arith.constant dense<0.000000e+00> : vector<2x8x128xf32>
      %178 = tpu.matmul %175, %177, %cst_64 {dimension_numbers = #tpu.dot_dimension_numbers<[2], [1], [1], [2], [0, 0, 0, 1, 1, 2], [0], [0]>} : vector<2x8x8xbf16>, vector<2x8x128xbf16>, vector<2x8x128xf32> -> vector<2x8x128xf32>
      "tpu.trace_stop"() : () -> ()
      %179 = vector.shape_cast %178 : vector<2x8x128xf32> to vector<16x128xf32>
      %180 = arith.truncf %179 : vector<16x128xf32> to vector<16x128xbf16>
      %181 = vector.extract_strided_slice %72 {offsets = [384, 0], sizes = [128, 128], strides = [1, 1]} : vector<512x128xbf16> to vector<128x128xbf16>
      %cst_65 = arith.constant dense<0.000000e+00> : vector<16x128xf32>
      %182 = tpu.matmul %180, %181, %cst_65 {dimension_numbers = #tpu.dot_dimension_numbers<[1], [0], [0], [1], [0, 0, 1, 1], [], []>} : vector<16x128xbf16>, vector<128x128xbf16>, vector<16x128xf32> -> vector<16x128xf32>
      %183 = arith.addf %156, %182 : vector<16x128xf32>
      %184 = vector.broadcast %74 : vector<1x128xf32> to vector<16x128xf32>
      %185 = arith.addf %183, %184 : vector<16x128xf32>
      %186 = vector.shape_cast %185 : vector<16x128xf32> to vector<2x8x128xf32>
      %187 = arith.addf %4, %186 : vector<2x8x128xf32>
      %c0_66 = arith.constant 0 : index
      %c0_67 = arith.constant 0 : index
      %c0_68 = arith.constant 0 : index
      %188 = vector.load %arg25[%c0_66, %c0_67, %c0_68] : memref<2x8x128xf32, #tpu.memory_space<vmem>>, vector<2x8x128xf32>
      tpu.vector_store %arg25[%c0_66, %c0_67, %c0_68], %187 {strides = array<i32>} : memref<2x8x128xf32, #tpu.memory_space<vmem>>, vector<2x8x128xf32>,
    } else {
    }
    %c1_i32 = arith.constant 1 : i32
    %48 = arith.cmpi eq, %44, %c1_i32 : i32
    %49 = arith.extui %48 : i1 to i32
    %c0_i32_22 = arith.constant 0 : i32
    %50 = arith.cmpi ne, %49, %c0_i32_22 : i32
    scf.if %50 {
      %c0_25 = arith.constant 0 : index
      %c0_26 = arith.constant 0 : index
      %c0_27 = arith.constant 0 : index
      %57 = vector.load %arg5[%c0_25, %c0_26, %c0_27] : memref<1x128x1536xbf16, #tpu.memory_space<vmem>>, vector<1x128x512xbf16>
      %58 = vector.shape_cast %57 : vector<1x128x512xbf16> to vector<128x512xbf16>
      %cst_28 = arith.constant dense<0.000000e+00> : vector<16x512xf32>
      %59 = tpu.matmul %42, %58, %cst_28 {dimension_numbers = #tpu.dot_dimension_numbers<[1], [0], [0], [1], [0, 0, 1, 1], [], []>} : vector<16x128xbf16>, vector<128x512xbf16>, vector<16x512xf32> -> vector<16x512xf32>
      %c0_29 = arith.constant 0 : index
      %c0_30 = arith.constant 0 : index
      %c0_31 = arith.constant 0 : index
      %60 = vector.load %arg6[%c0_29, %c0_30, %c0_31] : memref<1x1x1536xf32, #tpu.memory_space<vmem>>, vector<1x1x512xf32>
      %61 = vector.shape_cast %60 : vector<1x1x512xf32> to vector<1x512xf32>
      %62 = vector.broadcast %61 : vector<1x512xf32> to vector<16x512xf32>
      %63 = arith.addf %59, %62 : vector<16x512xf32>
      %64 = vector.shape_cast %63 : vector<16x512xf32> to vector<2x8x512xf32>
      %c0_32 = arith.constant 0 : index
      %c0_33 = arith.constant 0 : index
      %c0_34 = arith.constant 0 : index
      %65 = vector.load %arg16[%c0_32, %c0_33, %c0_34] : memref<2x2x128xf32, #tpu.memory_space<vmem>>, vector<2x2x128xf32>
      %66 = vector.shape_cast %65 : vector<2x2x128xf32> to vector<4x128xf32>
      %67 = arith.truncf %66 : vector<4x128xf32> to vector<4x128xbf16>
      %c0_35 = arith.constant 0 : index
      %c0_36 = arith.constant 0 : index
      %c0_37 = arith.constant 0 : index
      %68 = vector.load %arg7[%c0_35, %c0_36, %c0_37] : memref<1x128x1024xbf16, #tpu.memory_space<vmem>>, vector<1x128x1024xbf16>
      %69 = vector.shape_cast %68 : vector<1x128x1024xbf16> to vector<128x1024xbf16>
      %cst_38 = arith.constant dense<0.000000e+00> : vector<4x1024xf32>
      %70 = tpu.matmul %67, %69, %cst_38 {dimension_numbers = #tpu.dot_dimension_numbers<[1], [0], [0], [1], [0, 0, 1, 1], [], []>} : vector<4x128xbf16>, vector<128x1024xbf16>, vector<4x1024xf32> -> vector<4x1024xf32>
      %c0_39 = arith.constant 0 : index
      %c0_40 = arith.constant 0 : index
      %c0_41 = arith.constant 0 : index
      %71 = vector.load %arg8[%c0_39, %c0_40, %c0_41] : memref<1x1x1024xf32, #tpu.memory_space<vmem>>, vector<1x1x1024xf32>
      %72 = vector.shape_cast %71 : vector<1x1x1024xf32> to vector<1x1024xf32>
      %73 = vector.broadcast %72 : vector<1x1024xf32> to vector<4x1024xf32>
      %74 = arith.addf %70, %73 : vector<4x1024xf32>
      %75 = vector.extract_strided_slice %74 {offsets = [0, 0], sizes = [4, 512], strides = [1, 1]} : vector<4x1024xf32> to vector<4x512xf32>
      %76 = vector.shape_cast %75 : vector<4x512xf32> to vector<2x2x512xf32>
      %77 = vector.extract_strided_slice %74 {offsets = [0, 512], sizes = [4, 512], strides = [1, 1]} : vector<4x1024xf32> to vector<4x512xf32>
      %78 = vector.shape_cast %77 : vector<4x512xf32> to vector<2x2x512xf32>
      %c0_42 = arith.constant 0 : index
      %c0_43 = arith.constant 0 : index
      %c0_44 = arith.constant 0 : index
      %79 = vector.load %arg18[%c0_42, %c0_43, %c0_44] : memref<2x1x2xf32, #tpu.memory_space<vmem>>, vector<2x1x2xf32>
      %c0_45 = arith.constant 0 : index
      %c0_46 = arith.constant 0 : index
      %c0_47 = arith.constant 0 : index
      %80 = vector.load %arg9[%c0_45, %c0_46, %c0_47] : memref<1x512x128xbf16, #tpu.memory_space<vmem>>, vector<1x512x128xbf16>
      %81 = vector.shape_cast %80 : vector<1x512x128xbf16> to vector<512x128xbf16>
      %c0_48 = arith.constant 0 : index
      %c0_49 = arith.constant 0 : index
      %c0_50 = arith.constant 0 : index
      %82 = vector.load %arg10[%c0_48, %c0_49, %c0_50] : memref<1x1x128xf32, #tpu.memory_space<vmem>>, vector<1x1x128xf32>
      %83 = vector.shape_cast %82 : vector<1x1x128xf32> to vector<1x128xf32>
      %cst_51 = arith.constant 0.000000e+00 : f32
      %84 = vector.broadcast %cst_51 : f32 to vector<16x128xf32>
      %85 = vector.extract_strided_slice %64 {offsets = [0, 0, 0], sizes = [2, 8, 128], strides = [1, 1, 1]} : vector<2x8x512xf32> to vector<2x8x128xf32>
      %86 = arith.truncf %85 : vector<2x8x128xf32> to vector<2x8x128xbf16>
      %87 = vector.extract_strided_slice %76 {offsets = [0, 0, 0], sizes = [2, 2, 128], strides = [1, 1, 1]} : vector<2x2x512xf32> to vector<2x2x128xf32>
      %88 = arith.truncf %87 : vector<2x2x128xf32> to vector<2x2x128xbf16>
      "tpu.trace_start"() <{level = 10 : i32, message = "bqd,bkd->bqk"}> : () -> ()
      %cst_52 = arith.constant dense<0.000000e+00> : vector<2x8x2xf32>
      %89 = tpu.matmul %86, %88, %cst_52 {dimension_numbers = #tpu.dot_dimension_numbers<[2], [2], [1], [1], [0, 0, 0, 1, 1, 1], [0], [0]>} : vector<2x8x128xbf16>, vector<2x2x128xbf16>, vector<2x8x2xf32> -> vector<2x8x2xf32>
      "tpu.trace_stop"() : () -> ()
      %cst_53 = arith.constant 0.353553385 : f32
      %90 = vector.broadcast %cst_53 : f32 to vector<2x8x2xf32>
      %91 = arith.mulf %89, %90 : vector<2x8x2xf32>
      %92 = vector.broadcast %79 : vector<2x1x2xf32> to vector<2x8x2xf32>
      %93 = arith.addf %91, %92 : vector<2x8x2xf32>
      %cst_54 = arith.constant dense<0xFF800000> : vector<2x8xf32>
      %94 = vector.multi_reduction <maximumf>, %93, %cst_54 [2] : vector<2x8x2xf32> to vector<2x8xf32>
      %95 = vector.shape_cast %94 : vector<2x8xf32> to vector<2x8x1xf32>
      %96 = vector.broadcast %95 : vector<2x8x1xf32> to vector<2x8x2xf32>
      %97 = arith.subf %93, %96 : vector<2x8x2xf32>
      %98 = math.exp %97 : vector<2x8x2xf32>
      %cst_55 = arith.constant dense<0.000000e+00> : vector<2x8xf32>
      %99 = vector.multi_reduction <add>, %98, %cst_55 [2] : vector<2x8x2xf32> to vector<2x8xf32>
      %100 = vector.shape_cast %99 : vector<2x8xf32> to vector<2x8x1xf32>
      %101 = vector.broadcast %100 : vector<2x8x1xf32> to vector<2x8x2xf32>
      %102 = arith.divf %98, %101 : vector<2x8x2xf32>
      %103 = arith.truncf %102 : vector<2x8x2xf32> to vector<2x8x2xbf16>
      %104 = vector.extract_strided_slice %78 {offsets = [0, 0, 0], sizes = [2, 2, 128], strides = [1, 1, 1]} : vector<2x2x512xf32> to vector<2x2x128xf32>
      %105 = arith.truncf %104 : vector<2x2x128xf32> to vector<2x2x128xbf16>
      "tpu.trace_start"() <{level = 10 : i32, message = "bqk,bkd->bqd"}> : () -> ()
      %cst_56 = arith.constant dense<0.000000e+00> : vector<2x8x128xf32>
      %106 = tpu.matmul %103, %105, %cst_56 {dimension_numbers = #tpu.dot_dimension_numbers<[2], [1], [1], [2], [0, 0, 0, 1, 1, 2], [0], [0]>} : vector<2x8x2xbf16>, vector<2x2x128xbf16>, vector<2x8x128xf32> -> vector<2x8x128xf32>
      "tpu.trace_stop"() : () -> ()
      %107 = vector.shape_cast %106 : vector<2x8x128xf32> to vector<16x128xf32>
      %108 = arith.truncf %107 : vector<16x128xf32> to vector<16x128xbf16>
      %109 = vector.extract_strided_slice %81 {offsets = [0, 0], sizes = [128, 128], strides = [1, 1]} : vector<512x128xbf16> to vector<128x128xbf16>
      %cst_57 = arith.constant dense<0.000000e+00> : vector<16x128xf32>
      %110 = tpu.matmul %108, %109, %cst_57 {dimension_numbers = #tpu.dot_dimension_numbers<[1], [0], [0], [1], [0, 0, 1, 1], [], []>} : vector<16x128xbf16>, vector<128x128xbf16>, vector<16x128xf32> -> vector<16x128xf32>
      %111 = arith.addf %84, %110 : vector<16x128xf32>
      %112 = vector.extract_strided_slice %64 {offsets = [0, 0, 128], sizes = [2, 8, 128], strides = [1, 1, 1]} : vector<2x8x512xf32> to vector<2x8x128xf32>
      %113 = arith.truncf %112 : vector<2x8x128xf32> to vector<2x8x128xbf16>
      %114 = vector.extract_strided_slice %76 {offsets = [0, 0, 128], sizes = [2, 2, 128], strides = [1, 1, 1]} : vector<2x2x512xf32> to vector<2x2x128xf32>
      %115 = arith.truncf %114 : vector<2x2x128xf32> to vector<2x2x128xbf16>
      "tpu.trace_start"() <{level = 10 : i32, message = "bqd,bkd->bqk"}> : () -> ()
      %cst_58 = arith.constant dense<0.000000e+00> : vector<2x8x2xf32>
      %116 = tpu.matmul %113, %115, %cst_58 {dimension_numbers = #tpu.dot_dimension_numbers<[2], [2], [1], [1], [0, 0, 0, 1, 1, 1], [0], [0]>} : vector<2x8x128xbf16>, vector<2x2x128xbf16>, vector<2x8x2xf32> -> vector<2x8x2xf32>
      "tpu.trace_stop"() : () -> ()
      %cst_59 = arith.constant 0.353553385 : f32
      %117 = vector.broadcast %cst_59 : f32 to vector<2x8x2xf32>
      %118 = arith.mulf %116, %117 : vector<2x8x2xf32>
      %119 = vector.broadcast %79 : vector<2x1x2xf32> to vector<2x8x2xf32>
      %120 = arith.addf %118, %119 : vector<2x8x2xf32>
      %cst_60 = arith.constant dense<0xFF800000> : vector<2x8xf32>
      %121 = vector.multi_reduction <maximumf>, %120, %cst_60 [2] : vector<2x8x2xf32> to vector<2x8xf32>
      %122 = vector.shape_cast %121 : vector<2x8xf32> to vector<2x8x1xf32>
      %123 = vector.broadcast %122 : vector<2x8x1xf32> to vector<2x8x2xf32>
      %124 = arith.subf %120, %123 : vector<2x8x2xf32>
      %125 = math.exp %124 : vector<2x8x2xf32>
      %cst_61 = arith.constant dense<0.000000e+00> : vector<2x8xf32>
      %126 = vector.multi_reduction <add>, %125, %cst_61 [2] : vector<2x8x2xf32> to vector<2x8xf32>
      %127 = vector.shape_cast %126 : vector<2x8xf32> to vector<2x8x1xf32>
      %128 = vector.broadcast %127 : vector<2x8x1xf32> to vector<2x8x2xf32>
      %129 = arith.divf %125, %128 : vector<2x8x2xf32>
      %130 = arith.truncf %129 : vector<2x8x2xf32> to vector<2x8x2xbf16>
      %131 = vector.extract_strided_slice %78 {offsets = [0, 0, 128], sizes = [2, 2, 128], strides = [1, 1, 1]} : vector<2x2x512xf32> to vector<2x2x128xf32>
      %132 = arith.truncf %131 : vector<2x2x128xf32> to vector<2x2x128xbf16>
      "tpu.trace_start"() <{level = 10 : i32, message = "bqk,bkd->bqd"}> : () -> ()
      %cst_62 = arith.constant dense<0.000000e+00> : vector<2x8x128xf32>
      %133 = tpu.matmul %130, %132, %cst_62 {dimension_numbers = #tpu.dot_dimension_numbers<[2], [1], [1], [2], [0, 0, 0, 1, 1, 2], [0], [0]>} : vector<2x8x2xbf16>, vector<2x2x128xbf16>, vector<2x8x128xf32> -> vector<2x8x128xf32>
      "tpu.trace_stop"() : () -> ()
      %134 = vector.shape_cast %133 : vector<2x8x128xf32> to vector<16x128xf32>
      %135 = arith.truncf %134 : vector<16x128xf32> to vector<16x128xbf16>
      %136 = vector.extract_strided_slice %81 {offsets = [128, 0], sizes = [128, 128], strides = [1, 1]} : vector<512x128xbf16> to vector<128x128xbf16>
      %cst_63 = arith.constant dense<0.000000e+00> : vector<16x128xf32>
      %137 = tpu.matmul %135, %136, %cst_63 {dimension_numbers = #tpu.dot_dimension_numbers<[1], [0], [0], [1], [0, 0, 1, 1], [], []>} : vector<16x128xbf16>, vector<128x128xbf16>, vector<16x128xf32> -> vector<16x128xf32>
      %138 = arith.addf %111, %137 : vector<16x128xf32>
      %139 = vector.extract_strided_slice %64 {offsets = [0, 0, 256], sizes = [2, 8, 128], strides = [1, 1, 1]} : vector<2x8x512xf32> to vector<2x8x128xf32>
      %140 = arith.truncf %139 : vector<2x8x128xf32> to vector<2x8x128xbf16>
      %141 = vector.extract_strided_slice %76 {offsets = [0, 0, 256], sizes = [2, 2, 128], strides = [1, 1, 1]} : vector<2x2x512xf32> to vector<2x2x128xf32>
      %142 = arith.truncf %141 : vector<2x2x128xf32> to vector<2x2x128xbf16>
      "tpu.trace_start"() <{level = 10 : i32, message = "bqd,bkd->bqk"}> : () -> ()
      %cst_64 = arith.constant dense<0.000000e+00> : vector<2x8x2xf32>
      %143 = tpu.matmul %140, %142, %cst_64 {dimension_numbers = #tpu.dot_dimension_numbers<[2], [2], [1], [1], [0, 0, 0, 1, 1, 1], [0], [0]>} : vector<2x8x128xbf16>, vector<2x2x128xbf16>, vector<2x8x2xf32> -> vector<2x8x2xf32>
      "tpu.trace_stop"() : () -> ()
      %cst_65 = arith.constant 0.353553385 : f32
      %144 = vector.broadcast %cst_65 : f32 to vector<2x8x2xf32>
      %145 = arith.mulf %143, %144 : vector<2x8x2xf32>
      %146 = vector.broadcast %79 : vector<2x1x2xf32> to vector<2x8x2xf32>
      %147 = arith.addf %145, %146 : vector<2x8x2xf32>
      %cst_66 = arith.constant dense<0xFF800000> : vector<2x8xf32>
      %148 = vector.multi_reduction <maximumf>, %147, %cst_66 [2] : vector<2x8x2xf32> to vector<2x8xf32>
      %149 = vector.shape_cast %148 : vector<2x8xf32> to vector<2x8x1xf32>
      %150 = vector.broadcast %149 : vector<2x8x1xf32> to vector<2x8x2xf32>
      %151 = arith.subf %147, %150 : vector<2x8x2xf32>
      %152 = math.exp %151 : vector<2x8x2xf32>
      %cst_67 = arith.constant dense<0.000000e+00> : vector<2x8xf32>
      %153 = vector.multi_reduction <add>, %152, %cst_67 [2] : vector<2x8x2xf32> to vector<2x8xf32>
      %154 = vector.shape_cast %153 : vector<2x8xf32> to vector<2x8x1xf32>
      %155 = vector.broadcast %154 : vector<2x8x1xf32> to vector<2x8x2xf32>
      %156 = arith.divf %152, %155 : vector<2x8x2xf32>
      %157 = arith.truncf %156 : vector<2x8x2xf32> to vector<2x8x2xbf16>
      %158 = vector.extract_strided_slice %78 {offsets = [0, 0, 256], sizes = [2, 2, 128], strides = [1, 1, 1]} : vector<2x2x512xf32> to vector<2x2x128xf32>
      %159 = arith.truncf %158 : vector<2x2x128xf32> to vector<2x2x128xbf16>
      "tpu.trace_start"() <{level = 10 : i32, message = "bqk,bkd->bqd"}> : () -> ()
      %cst_68 = arith.constant dense<0.000000e+00> : vector<2x8x128xf32>
      %160 = tpu.matmul %157, %159, %cst_68 {dimension_numbers = #tpu.dot_dimension_numbers<[2], [1], [1], [2], [0, 0, 0, 1, 1, 2], [0], [0]>} : vector<2x8x2xbf16>, vector<2x2x128xbf16>, vector<2x8x128xf32> -> vector<2x8x128xf32>
      "tpu.trace_stop"() : () -> ()
      %161 = vector.shape_cast %160 : vector<2x8x128xf32> to vector<16x128xf32>
      %162 = arith.truncf %161 : vector<16x128xf32> to vector<16x128xbf16>
      %163 = vector.extract_strided_slice %81 {offsets = [256, 0], sizes = [128, 128], strides = [1, 1]} : vector<512x128xbf16> to vector<128x128xbf16>
      %cst_69 = arith.constant dense<0.000000e+00> : vector<16x128xf32>
      %164 = tpu.matmul %162, %163, %cst_69 {dimension_numbers = #tpu.dot_dimension_numbers<[1], [0], [0], [1], [0, 0, 1, 1], [], []>} : vector<16x128xbf16>, vector<128x128xbf16>, vector<16x128xf32> -> vector<16x128xf32>
      %165 = arith.addf %138, %164 : vector<16x128xf32>
      %166 = vector.extract_strided_slice %64 {offsets = [0, 0, 384], sizes = [2, 8, 128], strides = [1, 1, 1]} : vector<2x8x512xf32> to vector<2x8x128xf32>
      %167 = arith.truncf %166 : vector<2x8x128xf32> to vector<2x8x128xbf16>
      %168 = vector.extract_strided_slice %76 {offsets = [0, 0, 384], sizes = [2, 2, 128], strides = [1, 1, 1]} : vector<2x2x512xf32> to vector<2x2x128xf32>
      %169 = arith.truncf %168 : vector<2x2x128xf32> to vector<2x2x128xbf16>
      "tpu.trace_start"() <{level = 10 : i32, message = "bqd,bkd->bqk"}> : () -> ()
      %cst_70 = arith.constant dense<0.000000e+00> : vector<2x8x2xf32>
      %170 = tpu.matmul %167, %169, %cst_70 {dimension_numbers = #tpu.dot_dimension_numbers<[2], [2], [1], [1], [0, 0, 0, 1, 1, 1], [0], [0]>} : vector<2x8x128xbf16>, vector<2x2x128xbf16>, vector<2x8x2xf32> -> vector<2x8x2xf32>
      "tpu.trace_stop"() : () -> ()
      %cst_71 = arith.constant 0.353553385 : f32
      %171 = vector.broadcast %cst_71 : f32 to vector<2x8x2xf32>
      %172 = arith.mulf %170, %171 : vector<2x8x2xf32>
      %173 = vector.broadcast %79 : vector<2x1x2xf32> to vector<2x8x2xf32>
      %174 = arith.addf %172, %173 : vector<2x8x2xf32>
      %cst_72 = arith.constant dense<0xFF800000> : vector<2x8xf32>
      %175 = vector.multi_reduction <maximumf>, %174, %cst_72 [2] : vector<2x8x2xf32> to vector<2x8xf32>
      %176 = vector.shape_cast %175 : vector<2x8xf32> to vector<2x8x1xf32>
      %177 = vector.broadcast %176 : vector<2x8x1xf32> to vector<2x8x2xf32>
      %178 = arith.subf %174, %177 : vector<2x8x2xf32>
      %179 = math.exp %178 : vector<2x8x2xf32>
      %cst_73 = arith.constant dense<0.000000e+00> : vector<2x8xf32>
      %180 = vector.multi_reduction <add>, %179, %cst_73 [2] : vector<2x8x2xf32> to vector<2x8xf32>
      %181 = vector.shape_cast %180 : vector<2x8xf32> to vector<2x8x1xf32>
      %182 = vector.broadcast %181 : vector<2x8x1xf32> to vector<2x8x2xf32>
      %183 = arith.divf %179, %182 : vector<2x8x2xf32>
      %184 = arith.truncf %183 : vector<2x8x2xf32> to vector<2x8x2xbf16>
      %185 = vector.extract_strided_slice %78 {offsets = [0, 0, 384], sizes = [2, 2, 128], strides = [1, 1, 1]} : vector<2x2x512xf32> to vector<2x2x128xf32>
      %186 = arith.truncf %185 : vector<2x2x128xf32> to vector<2x2x128xbf16>
      "tpu.trace_start"() <{level = 10 : i32, message = "bqk,bkd->bqd"}> : () -> ()
      %cst_74 = arith.constant dense<0.000000e+00> : vector<2x8x128xf32>
      %187 = tpu.matmul %184, %186, %cst_74 {dimension_numbers = #tpu.dot_dimension_numbers<[2], [1], [1], [2], [0, 0, 0, 1, 1, 2], [0], [0]>} : vector<2x8x2xbf16>, vector<2x2x128xbf16>, vector<2x8x128xf32> -> vector<2x8x128xf32>
      "tpu.trace_stop"() : () -> ()
      %188 = vector.shape_cast %187 : vector<2x8x128xf32> to vector<16x128xf32>
      %189 = arith.truncf %188 : vector<16x128xf32> to vector<16x128xbf16>
      %190 = vector.extract_strided_slice %81 {offsets = [384, 0], sizes = [128, 128], strides = [1, 1]} : vector<512x128xbf16> to vector<128x128xbf16>
      %cst_75 = arith.constant dense<0.000000e+00> : vector<16x128xf32>
      %191 = tpu.matmul %189, %190, %cst_75 {dimension_numbers = #tpu.dot_dimension_numbers<[1], [0], [0], [1], [0, 0, 1, 1], [], []>} : vector<16x128xbf16>, vector<128x128xbf16>, vector<16x128xf32> -> vector<16x128xf32>
      %192 = arith.addf %165, %191 : vector<16x128xf32>
      %193 = vector.broadcast %83 : vector<1x128xf32> to vector<16x128xf32>
      %194 = arith.addf %192, %193 : vector<16x128xf32>
      %195 = vector.shape_cast %194 : vector<16x128xf32> to vector<2x8x128xf32>
      %196 = arith.addf %4, %195 : vector<2x8x128xf32>
      %c0_76 = arith.constant 0 : index
      %c0_77 = arith.constant 0 : index
      %c0_78 = arith.constant 0 : index
      %197 = vector.load %arg25[%c0_76, %c0_77, %c0_78] : memref<2x8x128xf32, #tpu.memory_space<vmem>>, vector<2x8x128xf32>
      tpu.vector_store %arg25[%c0_76, %c0_77, %c0_78], %196 {strides = array<i32>} : memref<2x8x128xf32, #tpu.memory_space<vmem>>, vector<2x8x128xf32>,
    } else {
    }
    %c2_i32 = arith.constant 2 : i32
    %51 = arith.cmpi eq, %44, %c2_i32 : i32
    %52 = arith.extui %51 : i1 to i32
    %c0_i32_23 = arith.constant 0 : i32
    %53 = arith.cmpi ne, %52, %c0_i32_23 : i32
    scf.if %53 {
      %c0_25 = arith.constant 0 : index
      %c0_26 = arith.constant 0 : index
      %c0_27 = arith.constant 0 : index
      %57 = vector.load %arg5[%c0_25, %c0_26, %c0_27] : memref<1x128x1536xbf16, #tpu.memory_space<vmem>>, vector<1x128x128xbf16>
      %58 = vector.shape_cast %57 : vector<1x128x128xbf16> to vector<128x128xbf16>
      %cst_28 = arith.constant dense<0.000000e+00> : vector<16x128xf32>
      %59 = tpu.matmul %42, %58, %cst_28 {dimension_numbers = #tpu.dot_dimension_numbers<[1], [0], [0], [1], [0, 0, 1, 1], [], []>} : vector<16x128xbf16>, vector<128x128xbf16>, vector<16x128xf32> -> vector<16x128xf32>
      %c0_29 = arith.constant 0 : index
      %c0_30 = arith.constant 0 : index
      %c0_31 = arith.constant 0 : index
      %60 = vector.load %arg6[%c0_29, %c0_30, %c0_31] : memref<1x1x1536xf32, #tpu.memory_space<vmem>>, vector<1x1x128xf32>
      %61 = vector.shape_cast %60 : vector<1x1x128xf32> to vector<1x128xf32>
      %62 = vector.broadcast %61 : vector<1x128xf32> to vector<16x128xf32>
      %63 = arith.addf %59, %62 : vector<16x128xf32>
      %64 = arith.mulf %63, %63 : vector<16x128xf32>
      %65 = arith.mulf %63, %64 : vector<16x128xf32>
      %cst_32 = arith.constant 4.471500e-02 : f32
      %66 = vector.broadcast %cst_32 : f32 to vector<16x128xf32>
      %67 = arith.mulf %66, %65 : vector<16x128xf32>
      %68 = arith.addf %63, %67 : vector<16x128xf32>
      %cst_33 = arith.constant 0.797884583 : f32
      %69 = vector.broadcast %cst_33 : f32 to vector<16x128xf32>
      %70 = arith.mulf %69, %68 : vector<16x128xf32>
      %71 = math.tanh %70 : vector<16x128xf32>
      %cst_34 = arith.constant 1.000000e+00 : f32
      %72 = vector.broadcast %cst_34 : f32 to vector<16x128xf32>
      %73 = arith.addf %72, %71 : vector<16x128xf32>
      %cst_35 = arith.constant 5.000000e-01 : f32
      %74 = vector.broadcast %cst_35 : f32 to vector<16x128xf32>
      %75 = arith.mulf %74, %73 : vector<16x128xf32>
      %76 = arith.mulf %63, %75 : vector<16x128xf32>
      %77 = arith.truncf %76 : vector<16x128xf32> to vector<16x128xbf16>
      %c0_36 = arith.constant 0 : index
      %c0_37 = arith.constant 0 : index
      %c0_38 = arith.constant 0 : index
      %78 = vector.load %arg9[%c0_36, %c0_37, %c0_38] : memref<1x512x128xbf16, #tpu.memory_space<vmem>>, vector<1x128x128xbf16>
      %79 = vector.shape_cast %78 : vector<1x128x128xbf16> to vector<128x128xbf16>
      %cst_39 = arith.constant dense<0.000000e+00> : vector<16x128xf32>
      %80 = tpu.matmul %77, %79, %cst_39 {dimension_numbers = #tpu.dot_dimension_numbers<[1], [0], [0], [1], [0, 0, 1, 1], [], []>} : vector<16x128xbf16>, vector<128x128xbf16>, vector<16x128xf32> -> vector<16x128xf32>
      %c0_40 = arith.constant 0 : index
      %c0_41 = arith.constant 0 : index
      %c0_42 = arith.constant 0 : index
      %81 = vector.load %arg10[%c0_40, %c0_41, %c0_42] : memref<1x1x128xf32, #tpu.memory_space<vmem>>, vector<1x1x128xf32>
      %82 = vector.shape_cast %81 : vector<1x1x128xf32> to vector<1x128xf32>
      %83 = vector.broadcast %82 : vector<1x128xf32> to vector<16x128xf32>
      %84 = arith.addf %80, %83 : vector<16x128xf32>
      %85 = vector.shape_cast %84 : vector<16x128xf32> to vector<2x8x128xf32>
      %86 = arith.addf %4, %85 : vector<2x8x128xf32>
      %c0_43 = arith.constant 0 : index
      %c0_44 = arith.constant 0 : index
      %c0_45 = arith.constant 0 : index
      %87 = vector.load %arg25[%c0_43, %c0_44, %c0_45] : memref<2x8x128xf32, #tpu.memory_space<vmem>>, vector<2x8x128xf32>
      tpu.vector_store %arg25[%c0_43, %c0_44, %c0_45], %86 {strides = array<i32>} : memref<2x8x128xf32, #tpu.memory_space<vmem>>, vector<2x8x128xf32>,
    } else {
    }
    %c5_i32 = arith.constant 5 : i32
    %54 = arith.cmpi eq, %arg0, %c5_i32 : i32
    %55 = arith.extui %54 : i1 to i32
    %c0_i32_24 = arith.constant 0 : i32
    %56 = arith.cmpi ne, %55, %c0_i32_24 : i32
    scf.if %56 {
      %c0_25 = arith.constant 0 : index
      %c0_26 = arith.constant 0 : index
      %c0_27 = arith.constant 0 : index
      %57 = vector.load %arg25[%c0_25, %c0_26, %c0_27] : memref<2x8x128xf32, #tpu.memory_space<vmem>>, vector<2x8x128xf32>
      %cst_28 = arith.constant dense<0.000000e+00> : vector<2x8xf32>
      %58 = vector.multi_reduction <add>, %57, %cst_28 [2] : vector<2x8x128xf32> to vector<2x8xf32>
      %59 = vector.shape_cast %58 : vector<2x8xf32> to vector<2x8x1xf32>
      %cst_29 = arith.constant 3.125000e-02 : f32
      %60 = vector.broadcast %cst_29 : f32 to vector<2x8x1xf32>
      %61 = arith.mulf %59, %60 : vector<2x8x1xf32>
      %62 = vector.broadcast %61 : vector<2x8x1xf32> to vector<2x8x128xf32>
      %63 = arith.subf %57, %62 : vector<2x8x128xf32>
      %64 = vector.broadcast %0 : vector<1x1x128xf32> to vector<2x8x128xf32>
      %65 = arith.mulf %63, %64 : vector<2x8x128xf32>
      %66 = arith.mulf %65, %65 : vector<2x8x128xf32>
      %cst_30 = arith.constant dense<0.000000e+00> : vector<2x8xf32>
      %67 = vector.multi_reduction <add>, %66, %cst_30 [2] : vector<2x8x128xf32> to vector<2x8xf32>
      %68 = vector.shape_cast %67 : vector<2x8xf32> to vector<2x8x1xf32>
      %cst_31 = arith.constant 3.125000e-02 : f32
      %69 = vector.broadcast %cst_31 : f32 to vector<2x8x1xf32>
      %70 = arith.mulf %68, %69 : vector<2x8x1xf32>
      %cst_32 = arith.constant 9.99999974E-6 : f32
      %71 = vector.broadcast %cst_32 : f32 to vector<2x8x1xf32>
      %72 = arith.addf %70, %71 : vector<2x8x1xf32>
      %73 = math.rsqrt %72 : vector<2x8x1xf32>
      %74 = vector.broadcast %73 : vector<2x8x1xf32> to vector<2x8x128xf32>
      %75 = arith.mulf %65, %74 : vector<2x8x128xf32>
      %c0_33 = arith.constant 0 : index
      %c0_34 = arith.constant 0 : index
      %c0_35 = arith.constant 0 : index
      %76 = vector.load %arg20[%c0_33, %c0_34, %c0_35] : memref<1x1x128xf32, #tpu.memory_space<vmem>>, vector<1x1x128xf32>
      %77 = vector.broadcast %76 : vector<1x1x128xf32> to vector<2x8x128xf32>
      %78 = arith.mulf %75, %77 : vector<2x8x128xf32>
      %c0_36 = arith.constant 0 : index
      %c0_37 = arith.constant 0 : index
      %c0_38 = arith.constant 0 : index
      %79 = vector.load %arg21[%c0_36, %c0_37, %c0_38] : memref<1x1x128xf32, #tpu.memory_space<vmem>>, vector<1x1x128xf32>
      %80 = vector.broadcast %79 : vector<1x1x128xf32> to vector<2x8x128xf32>
      %81 = arith.addf %78, %80 : vector<2x8x128xf32>
      %82 = vector.shape_cast %81 : vector<2x8x128xf32> to vector<16x128xf32>
      %83 = arith.truncf %82 : vector<16x128xf32> to vector<16x128xbf16>
      %c0_39 = arith.constant 0 : index
      %c0_40 = arith.constant 0 : index
      %84 = vector.load %arg22[%c0_39, %c0_40] : memref<128x128xbf16, #tpu.memory_space<vmem>>, vector<128x128xbf16>
      %cst_41 = arith.constant dense<0.000000e+00> : vector<16x128xf32>
      %85 = tpu.matmul %83, %84, %cst_41 {dimension_numbers = #tpu.dot_dimension_numbers<[1], [0], [0], [1], [0, 0, 1, 1], [], []>} : vector<16x128xbf16>, vector<128x128xbf16>, vector<16x128xf32> -> vector<16x128xf32>
      %c0_42 = arith.constant 0 : index
      %c0_43 = arith.constant 0 : index
      %86 = vector.load %arg23[%c0_42, %c0_43] : memref<1x128xf32, #tpu.memory_space<vmem>>, vector<1x128xf32>
      %87 = vector.broadcast %86 : vector<1x128xf32> to vector<16x128xf32>
      %88 = arith.addf %85, %87 : vector<16x128xf32>
      %89 = vector.shape_cast %88 : vector<16x128xf32> to vector<2x8x128xf32>
      %c0_44 = arith.constant 0 : index
      %c0_45 = arith.constant 0 : index
      %c0_46 = arith.constant 0 : index
      %90 = vector.load %arg24[%c0_44, %c0_45, %c0_46] : memref<2x8x128xf32, #tpu.memory_space<vmem>>, vector<2x8x128xf32>
      tpu.vector_store %arg24[%c0_44, %c0_45, %c0_46], %89 {strides = array<i32>} : memref<2x8x128xf32, #tpu.memory_space<vmem>>, vector<2x8x128xf32>,
    } else {
    }
    return
  }
  func.func @transform_0(%arg0: i32, %arg1: memref<6xi32, #tpu.memory_space<smem>>) -> (i32, i32, i32) {
    %c0_i32 = arith.constant 0 : i32
    %c0_i32_0 = arith.constant 0 : i32
    %c0_i32_1 = arith.constant 0 : i32
    return %arg0, %c0_i32, %c0_i32_0 : i32, i32, i32
  }
  func.func @transform_1(%arg0: i32, %arg1: memref<6xi32, #tpu.memory_space<smem>>) -> (i32, i32, i32) {
    %c0_i32 = arith.constant 0 : i32
    %c0_i32_0 = arith.constant 0 : i32
    %c0_i32_1 = arith.constant 0 : i32
    return %arg0, %c0_i32, %c0_i32_0 : i32, i32, i32
  }
  func.func @transform_2(%arg0: i32, %arg1: memref<6xi32, #tpu.memory_space<smem>>) -> (i32, i32, i32) {
    %c0_i32 = arith.constant 0 : i32
    %c0_i32_0 = arith.constant 0 : i32
    %c0_i32_1 = arith.constant 0 : i32
    return %arg0, %c0_i32, %c0_i32_0 : i32, i32, i32
  }
  func.func @transform_3(%arg0: i32, %arg1: memref<6xi32, #tpu.memory_space<smem>>) -> (i32, i32, i32) {
    %c0_i32 = arith.constant 0 : i32
    %c0_i32_0 = arith.constant 0 : i32
    %c0_i32_1 = arith.constant 0 : i32
    return %arg0, %c0_i32, %c0_i32_0 : i32, i32, i32
  }
  func.func @transform_4(%arg0: i32, %arg1: memref<6xi32, #tpu.memory_space<smem>>) -> (i32, i32, i32) {
    %c0_i32 = arith.constant 0 : i32
    %c0_i32_0 = arith.constant 0 : i32
    %c0_i32_1 = arith.constant 0 : i32
    return %arg0, %c0_i32, %c0_i32_0 : i32, i32, i32
  }
  func.func @transform_5(%arg0: i32, %arg1: memref<6xi32, #tpu.memory_space<smem>>) -> (i32, i32, i32) {
    %c0_i32 = arith.constant 0 : i32
    %c0_i32_0 = arith.constant 0 : i32
    %c0_i32_1 = arith.constant 0 : i32
    return %arg0, %c0_i32, %c0_i32_0 : i32, i32, i32
  }
  func.func @transform_6(%arg0: i32, %arg1: memref<6xi32, #tpu.memory_space<smem>>) -> (i32, i32, i32) {
    %c0_i32 = arith.constant 0 : i32
    %c0_i32_0 = arith.constant 0 : i32
    %c0_i32_1 = arith.constant 0 : i32
    return %arg0, %c0_i32, %c0_i32_0 : i32, i32, i32
  }
  func.func @transform_7(%arg0: i32, %arg1: memref<6xi32, #tpu.memory_space<smem>>) -> (i32, i32, i32) {
    %c0_i32 = arith.constant 0 : i32
    %c0_i32_0 = arith.constant 0 : i32
    %c0_i32_1 = arith.constant 0 : i32
    return %arg0, %c0_i32, %c0_i32_0 : i32, i32, i32
  }
  func.func @transform_8(%arg0: i32, %arg1: memref<6xi32, #tpu.memory_space<smem>>) -> (i32, i32, i32) {
    %c0_i32 = arith.constant 0 : i32
    %c0_i32_0 = arith.constant 0 : i32
    %c0_i32_1 = arith.constant 0 : i32
    return %arg0, %c0_i32, %c0_i32_0 : i32, i32, i32
  }
  func.func @transform_9(%arg0: i32, %arg1: memref<6xi32, #tpu.memory_space<smem>>) -> (i32, i32, i32) {
    %c0_i32 = arith.constant 0 : i32
    %c0_i32_0 = arith.constant 0 : i32
    %c0_i32_1 = arith.constant 0 : i32
    %c0_i32_2 = arith.constant 0 : i32
    return %c0_i32, %c0_i32_0, %c0_i32_1 : i32, i32, i32
  }
  func.func @transform_10(%arg0: i32, %arg1: memref<6xi32, #tpu.memory_space<smem>>) -> (i32, i32) {
    %c0_i32 = arith.constant 0 : i32
    %c0_i32_0 = arith.constant 0 : i32
    %c0_i32_1 = arith.constant 0 : i32
    return %c0_i32, %c0_i32_0 : i32, i32
  }
  func.func @transform_11(%arg0: i32, %arg1: memref<6xi32, #tpu.memory_space<smem>>) -> (i32, i32) {
    %c0_i32 = arith.constant 0 : i32
    %c0_i32_0 = arith.constant 0 : i32
    %c0_i32_1 = arith.constant 0 : i32
    return %c0_i32, %c0_i32_0 : i32, i32
  }
  func.func @transform_12(%arg0: i32, %arg1: memref<6xi32, #tpu.memory_space<smem>>) -> (i32, i32, i32) {
    %c0_i32 = arith.constant 0 : i32
    %c0_i32_0 = arith.constant 0 : i32
    %c0_i32_1 = arith.constant 0 : i32
    %c0_i32_2 = arith.constant 0 : i32
    return %c0_i32, %c0_i32_0, %c0_i32_1 : i32, i32, i32
  }
  func.func @transform_13(%arg0: i32, %arg1: memref<6xi32, #tpu.memory_space<smem>>) -> (i32, i32, i32) {
    %c0_i32 = arith.constant 0 : i32
    %c0_i32_0 = arith.constant 0 : i32
    %c0_i32_1 = arith.constant 0 : i32
    %c0_i32_2 = arith.constant 0 : i32
    return %c0_i32, %c0_i32_0, %c0_i32_1 : i32, i32, i32
  }
  func.func @transform_14(%arg0: i32, %arg1: memref<6xi32, #tpu.memory_space<smem>>) -> (i32, i32, i32) {
    %c0_i32 = arith.constant 0 : i32
    %c0_i32_0 = arith.constant 0 : i32
    %c0_i32_1 = arith.constant 0 : i32
    %c0_i32_2 = arith.constant 0 : i32
    return %c0_i32, %c0_i32_0, %c0_i32_1 : i32, i32, i32
  }
  func.func @transform_15(%arg0: i32, %arg1: memref<6xi32, #tpu.memory_space<smem>>) -> (i32, i32, i32) {
    %c0_i32 = arith.constant 0 : i32
    %c0_i32_0 = arith.constant 0 : i32
    %c0_i32_1 = arith.constant 0 : i32
    %c0_i32_2 = arith.constant 0 : i32
    return %c0_i32, %c0_i32_0, %c0_i32_1 : i32, i32, i32
  }
  func.func @transform_16(%arg0: i32, %arg1: memref<6xi32, #tpu.memory_space<smem>>) -> (i32, i32, i32) {
    %c0_i32 = arith.constant 0 : i32
    %c0_i32_0 = arith.constant 0 : i32
    %c0_i32_1 = arith.constant 0 : i32
    %c0_i32_2 = arith.constant 0 : i32
    return %c0_i32, %c0_i32_0, %c0_i32_1 : i32, i32, i32
  }
  func.func @transform_17(%arg0: i32, %arg1: memref<6xi32, #tpu.memory_space<smem>>) -> (i32, i32, i32) {
    %c0_i32 = arith.constant 0 : i32
    %c0_i32_0 = arith.constant 0 : i32
    %c0_i32_1 = arith.constant 0 : i32
    %c0_i32_2 = arith.constant 0 : i32
    return %c0_i32, %c0_i32_0, %c0_i32_1 : i32, i32, i32
  }
  func.func @transform_18(%arg0: i32, %arg1: memref<6xi32, #tpu.memory_space<smem>>) -> (i32, i32, i32) {
    %c0_i32 = arith.constant 0 : i32
    %c0_i32_0 = arith.constant 0 : i32
    %c0_i32_1 = arith.constant 0 : i32
    %c0_i32_2 = arith.constant 0 : i32
    return %c0_i32, %c0_i32_0, %c0_i32_1 : i32, i32, i32
  }
  func.func @transform_19(%arg0: i32, %arg1: memref<6xi32, #tpu.memory_space<smem>>) -> (i32, i32, i32) {
    %c0_i32 = arith.constant 0 : i32
    %c0_i32_0 = arith.constant 0 : i32
    %c0_i32_1 = arith.constant 0 : i32
    %c0_i32_2 = arith.constant 0 : i32
    return %c0_i32, %c0_i32_0, %c0_i32_1 : i32, i32, i32
  }
  func.func @transform_20(%arg0: i32, %arg1: memref<6xi32, #tpu.memory_space<smem>>) -> (i32, i32) {
    %c0_i32 = arith.constant 0 : i32
    %c0_i32_0 = arith.constant 0 : i32
    %c0_i32_1 = arith.constant 0 : i32
    return %c0_i32, %c0_i32_0 : i32, i32
  }
  func.func @transform_21(%arg0: i32, %arg1: memref<6xi32, #tpu.memory_space<smem>>) -> (i32, i32) {
    %c0_i32 = arith.constant 0 : i32
    %c0_i32_0 = arith.constant 0 : i32
    %c0_i32_1 = arith.constant 0 : i32
    return %c0_i32, %c0_i32_0 : i32, i32
  }
  func.func @transform_22(%arg0: i32, %arg1: memref<6xi32, #tpu.memory_space<smem>>) -> (i32, i32, i32) {
    %c0_i32 = arith.constant 0 : i32
    %c0_i32_0 = arith.constant 0 : i32
    %c0_i32_1 = arith.constant 0 : i32
    %c0_i32_2 = arith.constant 0 : i32
    return %c0_i32, %c0_i32_0, %c0_i32_1 : i32, i32, i32
  }
}

</mosaic_0001>

<bundles_post_ra>
// kernel: _lambda_.2
= control target key start
LH: loop header
LB: loop body
LE: loop exit
PB: predicated region body
PF: predicated region fallthrough
CT: control target
= control target key end

     0   :  { %16 = vsyncpa [#allocation3], 0  ;;  %s2223_s0 = inlined_call_operand.vmem [shape: f32[2,32], index: 0, kind: input, shape index: {}]   ;;  %s2224_s1 = inlined_call_operand.hbm [shape: bf16[32,128], index: 1, kind: input, shape index: {}]   ;;  %s2225_s2 = inlined_call_operand.hbm [shape: f32[1,128], index: 2, kind: input, shape index: {}]   ;;  %s2226_s3 = inlined_call_operand.hbm [shape: bf16[128,128], index: 3, kind: input, shape index: {}]   ;;  %s2227_s4 = inlined_call_operand.hbm [shape: f32[1,128], index: 4, kind: input, shape index: {}]   ;;  %s2228_s5 = inlined_call_operand.hbm [shape: bf16[128,128], index: 5, kind: input, shape index: {}]   ;;  %s2229_s6 = inlined_call_operand.hbm [shape: f32[1,128], index: 6, kind: input, shape index: {}]   ;;  %s2230_s7 = inlined_call_operand.hbm [shape: bf16[128,1536], index: 7, kind: input, shape index: {}]   ;;  %s2231_s8 = inlined_call_operand.hbm [shape: f32[1,1536], index: 8, kind: input, shape index: {}]   ;;  %s2232_s9 = inlined_call_operand.vmem [shape: f32[2,128], index: 9, kind: output, shape index: {0}]   ;;  %s2233_s10 = inlined_call_operand.vmem [shape: f32[2,1536], index: 10, kind: output, shape index: {1}]  }
   0x1   :  { %17 = vsyncpa [#allocation5], 0 }
   0x2   :  { %18 = vsyncpa [#allocation8], 0 }
   0x3   :  { %19 = vsyncpa [#allocation11], 0 }
   0x4   :  { %20 = vsyncpa [#allocation14], 0  ;;  %s1971_s13 = smov [#allocation4]   ;;  %s1972_s15 = smov [#allocation7]  }
   0x5   :  { %s41_s14 = sshll.u32 %s1971_s13, 4  ;;  %s63_s16 = sshll.u32 %s1972_s15, 4  ;;  %s42_s14 = int_to_ptr.vmem [resolvable:$true] %s41_s14  ;;  %s64_s16 = int_to_ptr.vmem [resolvable:$true] %s63_s16 }
   0x6   :  { %s1785_s19 = scalar_lea.hbm %s2225_s2, 16 }
   0x7   :  { %p1786_p0 = scmp.ne.s32.totalorder %s2225_s2, %s1785_s19  ;;  %p1789_p1 = scmp.lt.u32.totalorder %s1785_s19, %s2225_s2 }
   0x9   :  { %p1791_p2 = pnand %p1789_p1, %p1786_p0 }
   0xb   :  { %1794 = shalt.err (!%p1791_p2)
}
   0xc   :  { %s1795_s24 = scalar_lea.vmem %s42_s14, 16  ;;  %s1799_s25 = scalar_lea.vmem %s42_s14, 32 }
   0xd   :  { %p1796_p3 = scmp.ne.s32.totalorder %s42_s14, %s1795_s24  ;;  %p1800_p4 = scmp.lt.s32.totalorder %s42_s14, %s42_s14 }
   0xe   :  { %p1801_p5 = scmp.lt.s32.totalorder %s1799_s25, %s1795_s24 }
  0x10   :  { %p1802_p6 = por %p1801_p5, %p1800_p4 }
  0x12   :  { %p1803_p7 = pnand %p1802_p6, %p1796_p3 }
  0x14   :  { %1806 = shalt.err (!%p1803_p7)
}
  0x15   :  { %44 = dma.hbm_to_vmem [thread:$0]  %s2225_s2, 16, %s42_s14, [#allocation5]  }
  0x16   :  { %s1807_s30 = scalar_lea.hbm %s2227_s4, 16 }
  0x17   :  { %p1808_p8 = scmp.ne.s32.totalorder %s2227_s4, %s1807_s30  ;;  %p1811_p9 = scmp.lt.u32.totalorder %s1807_s30, %s2227_s4 }
  0x19   :  { %p1813_p10 = pnand %p1811_p9, %p1808_p8 }
  0x1b   :  { %1816 = shalt.err (!%p1813_p10)
}
  0x1c   :  { %s1817_s17 = scalar_lea.vmem %s64_s16, 16  ;;  %s1821_s18 = scalar_lea.vmem %s64_s16, 32 }
  0x1d   :  { %p1818_p11 = scmp.ne.s32.totalorder %s64_s16, %s1817_s17  ;;  %p1822_p12 = scmp.lt.s32.totalorder %s64_s16, %s64_s16 }
  0x1e   :  { %p1823_p13 = scmp.lt.s32.totalorder %s1821_s18, %s1817_s17 }
  0x20   :  { %p1824_p0 = por %p1823_p13, %p1822_p12 }
  0x22   :  { %p1825_p1 = pnand %p1824_p0, %p1818_p11 }
  0x24   :  { %1828 = shalt.err (!%p1825_p1)
}
  0x25   :  { %66 = dma.hbm_to_vmem [thread:$0]  %s2227_s4, 16, %s64_s16, [#allocation8]  }
  0x26   :  { %s1973_s19 = smov [#allocation10]   ;;  %s1974_s21 = smov [#allocation2]  }
  0x27   :  { %s85_s20 = sshll.u32 %s1973_s19, 4  ;;  %s28_s22 = sshll.u32 %s1974_s21, 4  ;;  %s86_s20 = int_to_ptr.vmem [resolvable:$true] %s85_s20  ;;  %s2066_s22 = int_to_ptr.vmem [resolvable:$true] %s28_s22 }
  0x28   :  { %s1829_s25 = scalar_lea.hbm %s2229_s6, 16 }
  0x29   :  { %p1830_p2 = scmp.ne.s32.totalorder %s2229_s6, %s1829_s25  ;;  %p1833_p3 = scmp.lt.u32.totalorder %s1829_s25, %s2229_s6 }
  0x2b   :  { %p1835_p4 = pnand %p1833_p3, %p1830_p2 }
  0x2d   :  { %1838 = shalt.err (!%p1835_p4)
}
  0x2e   :  { %s1839_s4 = scalar_lea.vmem %s86_s20, 16  ;;  %s1843_s16 = scalar_lea.vmem %s86_s20, 32 }
  0x2f   :  { %p1840_p5 = scmp.ne.s32.totalorder %s86_s20, %s1839_s4  ;;  %p1844_p6 = scmp.lt.s32.totalorder %s86_s20, %s86_s20 }
  0x30   :  { %p1845_p7 = scmp.lt.s32.totalorder %s1843_s16, %s1839_s4 }
  0x32   :  { %p1846_p8 = por %p1845_p7, %p1844_p6 }
  0x34   :  { %p1847_p9 = pnand %p1846_p8, %p1840_p5 }
  0x36   :  { %1850 = shalt.err (!%p1847_p9)
}
  0x37   :  { %88 = dma.hbm_to_vmem [thread:$0]  %s2229_s6, 16, %s86_s20, [#allocation11]  }
  0x38   :  { %s1851_s15 = scalar_lea.hbm %s2224_s1, 256 }
  0x39   :  { %p1852_p10 = scmp.ne.s32.totalorder %s2224_s1, %s1851_s15  ;;  %p1855_p11 = scmp.lt.u32.totalorder %s1851_s15, %s2224_s1 }
  0x3b   :  { %p1857_p12 = pnand %p1855_p11, %p1852_p10 }
  0x3d   :  { %1860 = shalt.err (!%p1857_p12)
}
  0x3e   :  { %s1861_s19 = scalar_lea.vmem %s2066_s22, 256  ;;  %p1866_p0 = scmp.lt.s32.totalorder %s2066_s22, %s2066_s22 }
  0x3f   :  { %p1862_p13 = scmp.ne.s32.totalorder %s2066_s22, %s1861_s19  ;;  %p1867_p1 = scmp.lt.s32.totalorder %s1861_s19, %s1861_s19 }
  0x41   :  { %p1868_p2 = por %p1867_p1, %p1866_p0 }
  0x43   :  { %p1869_p3 = pnand %p1868_p2, %p1862_p13 }
  0x45   :  { %1872 = shalt.err (!%p1869_p3)
}
  0x46   :  { %s1975_s6 = smov 64   ;;  %s1976_s20 = smov 4  }
  0x47   :  { %34 = dma.hbm_to_vmem [thread:$0]  %s2224_s1, 256, %s2066_s22, [#allocation3], %s1975_s6, %s1975_s6, %s1976_s20  }
  0x48   :  { %s1977_s24 = smov [#allocation6]   ;;  %s1978_s26 = smov [#allocation9]  }
  0x49   :  { %s50_s25 = sshll.u32 %s1977_s24, 4  ;;  %s72_s27 = sshll.u32 %s1978_s26, 4  ;;  %s51_s25 = int_to_ptr.vmem [resolvable:$true] %s50_s25  ;;  %s2100_s27 = int_to_ptr.vmem [resolvable:$true] %s72_s27 }
  0x4a   :  { %s1873_s4 = scalar_lea.hbm %s2226_s3, 1024 }
  0x4b   :  { %p1874_p4 = scmp.ne.s32.totalorder %s2226_s3, %s1873_s4  ;;  %p1877_p5 = scmp.lt.u32.totalorder %s1873_s4, %s2226_s3 }
  0x4d   :  { %p1879_p6 = pnand %p1877_p5, %p1874_p4 }
  0x4f   :  { %1882 = shalt.err (!%p1879_p6)
}
  0x50   :  { %s1883_s1 = scalar_lea.vmem %s51_s25, 1024  ;;  %p1888_p8 = scmp.lt.s32.totalorder %s51_s25, %s51_s25 }
  0x51   :  { %p1884_p7 = scmp.ne.s32.totalorder %s51_s25, %s1883_s1  ;;  %p1889_p9 = scmp.lt.s32.totalorder %s1883_s1, %s1883_s1 }
  0x53   :  { %p1890_p10 = por %p1889_p9, %p1888_p8 }
  0x55   :  { %p1891_p11 = pnand %p1890_p10, %p1884_p7 }
  0x57   :  { %1894 = shalt.err (!%p1891_p11)
}
  0x58   :  { %56 = dma.hbm_to_vmem [thread:$0]  %s2226_s3, 1024, %s51_s25, [#allocation5], %s1975_s6, %s1975_s6, %s1976_s20  }
  0x59   :  { %s1895_s18 = scalar_lea.hbm %s2228_s5, 1024 }
  0x5a   :  { %p1896_p12 = scmp.ne.s32.totalorder %s2228_s5, %s1895_s18  ;;  %p1899_p13 = scmp.lt.u32.totalorder %s1895_s18, %s2228_s5 }
  0x5c   :  { %p1901_p0 = pnand %p1899_p13, %p1896_p12 }
  0x5e   :  { %1904 = shalt.err (!%p1901_p0)
}
  0x5f   :  { %s1905_s23 = scalar_lea.vmem %s2100_s27, 1024  ;;  %p1910_p2 = scmp.lt.s32.totalorder %s2100_s27, %s2100_s27 }
  0x60   :  { %p1906_p1 = scmp.ne.s32.totalorder %s2100_s27, %s1905_s23  ;;  %p1911_p3 = scmp.lt.s32.totalorder %s1905_s23, %s1905_s23 }
  0x62   :  { %p1912_p4 = por %p1911_p3, %p1910_p2 }
  0x64   :  { %p1913_p5 = pnand %p1912_p4, %p1906_p1 }
  0x66   :  { %1916 = shalt.err (!%p1913_p5)
}
  0x67   :  { %78 = dma.hbm_to_vmem [thread:$0]  %s2228_s5, 1024, %s2100_s27, [#allocation8], %s1975_s6, %s1975_s6, %s1976_s20  }
  0x68   :  { %s1979_s25 = smov [#allocation12]   ;;  %s1917_s4 = scalar_lea.hbm %s2230_s7, 12288 }
  0x69   :  { %s94_s26 = sshll.u32 %s1979_s25, 4  ;;  %p1918_p6 = scmp.ne.s32.totalorder %s2230_s7, %s1917_s4  ;;  %s95_s26 = int_to_ptr.vmem [resolvable:$true] %s94_s26 }
  0x6a   :  { %p1921_p7 = scmp.lt.u32.totalorder %s1917_s4, %s2230_s7 }
  0x6c   :  { %p1923_p8 = pnand %p1921_p7, %p1918_p6 }
  0x6e   :  { %1926 = shalt.err (!%p1923_p8)
}
  0x6f   :  { %s1927_s1 = scalar_lea.vmem %s95_s26, 12288  ;;  %p1932_p10 = scmp.lt.s32.totalorder %s95_s26, %s95_s26 }
  0x70   :  { %p1928_p9 = scmp.ne.s32.totalorder %s95_s26, %s1927_s1  ;;  %p1933_p11 = scmp.lt.s32.totalorder %s1927_s1, %s1927_s1 }
  0x72   :  { %p1934_p12 = por %p1933_p11, %p1932_p10 }
  0x74   :  { %p1935_p13 = pnand %p1934_p12, %p1928_p9 }
  0x76   :  { %1938 = shalt.err (!%p1935_p13)
}
  0x77   :  { %s1980_s5 = smov 768   ;;  %s1981_s6 = smov 48  }
  0x78   :  { %100 = dma.hbm_to_vmem [thread:$0]  %s2230_s7, 12288, %s95_s26, [#allocation11], %s1980_s5, %s1980_s5, %s1981_s6  }
  0x79   :  { %s1982_s22 = smov [#allocation13]   ;;  %s1939_s18 = scalar_lea.hbm %s2231_s8, 192 }
  0x7a   :  { %s107_s13 = sshll.u32 %s1982_s22, 4  ;;  %p1940_p0 = scmp.ne.s32.totalorder %s2231_s8, %s1939_s18  ;;  %s108_s13 = int_to_ptr.vmem [resolvable:$true] %s107_s13 }
  0x7b   :  { %p1943_p1 = scmp.lt.u32.totalorder %s1939_s18, %s2231_s8 }
  0x7d   :  { %p1945_p2 = pnand %p1943_p1, %p1940_p0 }
  0x7f   :  { %1948 = shalt.err (!%p1945_p2)
}
  0x80   :  { %s1949_s23 = scalar_lea.vmem %s108_s13, 192  ;;  %p1954_p4 = scmp.lt.s32.totalorder %s108_s13, %s108_s13 }
  0x81   :  { %p1950_p3 = scmp.ne.s32.totalorder %s108_s13, %s1949_s23  ;;  %p1955_p5 = scmp.lt.s32.totalorder %s1949_s23, %s1949_s23 }
  0x83   :  { %p1956_p6 = por %p1955_p5, %p1954_p4 }
  0x85   :  { %p1957_p7 = pnand %p1956_p6, %p1950_p3 }
  0x87   :  { %1960 = shalt.err (!%p1957_p7)
}
  0x88   :  { %110 = dma.hbm_to_vmem [thread:$0]  %s2231_s8, 192, %s108_s13, [#allocation14]  }
  0x89   :  { %1961 = dma.done.wait [#allocation3], 256  }
  0x8a   :  { %1962 = vsyncadd [#allocation3], 4294967040 }
  0x8b   :  { %1963 = dma.done.wait [#allocation5], 1040  }
  0x8c   :  { %1964 = vsyncadd [#allocation5], 4294966256 }
  0x8d   :  { %1965 = dma.done.wait [#allocation8], 1040  }
  0x8e   :  { %1966 = vsyncadd [#allocation8], 4294966256 }
  0x8f   :  { %1967 = dma.done.wait [#allocation11], 12304  }
  0x90   :  { %1968 = vsyncadd [#allocation11], 4294954992 }
  0x91   :  { %1969 = dma.done.wait [#allocation14], 192  }
  0x92   :  { %1970 = vsyncadd [#allocation14], 4294967104  ;;  %v1983_v0 = vmov 0.0   ;;  %vm1984_vm0 = vmmov 0   ;;  %v1619_v1 = vld [vmem:[#allocation2] sm:$0xff]   ;;  %v1620_v2 = vld [vmem:[#allocation2 + $0x8] sm:$0xff]  }
  0x93   :  { %1555 = vmatprep.subr.bf16.mxu0 %v1983_v0  ;;  %1559 = vmatprep.mubr.msk.bf16.mxu0 %vm1984_vm0, %v1983_v0  ;;  %v136_v3 = vld [vmem:[%s2223_s0] sm:$0x3]  ;;  %vm161_vm1 = vcmask 261120   ;;  %v1621_v5 = vld [vmem:[#allocation6] sm:$0xff]   ;;  %v1623_v7 = vld [vmem:[#allocation6 + $0x10] sm:$0xff]   ;;  %v1985_v55 = vmov 0  }
  0x94   :  { %1563 = vmatprep.subr.bf16.mxu1 %v1983_v0  ;;  %1579 = vmatprep.mubr.msk.bf16.mxu1 %vm1984_vm0, %v1983_v0  ;;  %v137_v4 = vpack.c.bf16 %v136_v3, %v136_v3  ;;  %v1622_v6 = vld [vmem:[#allocation6 + $0x8] sm:$0xff]   ;;  %v1624_v8 = vld [vmem:[#allocation6 + $0x18] sm:$0xff]   ;;  %v1625_v9 = vld [vmem:[#allocation6 + $0x20] sm:$0xff]  }
  0x95   :  { %1556 = vmatpush3.bf16.msra.mxu0 %v1619_v1  ;;  %1564 = vmatpush3.bf16.msra.mxu1 %v1621_v5  ;;  %v1626_v10 = vld [vmem:[#allocation6 + $0x28] sm:$0xff]   ;;  %v1627_v11 = vld [vmem:[#allocation6 + $0x30] sm:$0xff]   ;;  %v1628_v12 = vld [vmem:[#allocation6 + $0x38] sm:$0xff]  }
  0x96   :  { %1557 = vmatprep.subr.bf16.mxu0 %v1983_v0  ;;  %1565 = vmatprep.subr.bf16.mxu1 %v1983_v0  ;;  %v1631_v13 = vld [vmem:[#allocation12 + $0x4] ss:$48 sps:$4 sm:$0xff]   ;;  %v1416_v14 = vld [vmem:[#allocation4] ss:$0 sm:$0xff]  ;;  %v1629_v29 = vld [vmem:[#allocation12] ss:$48 sps:$4 sm:$0xff]  }
  0x97   :  { %v1632_v31 = vld [vmem:[#allocation9] sm:$0xff]   ;;  %v1636_v34 = vld [vmem:[#allocation9 + $0x8] sm:$0xff]   ;;  %v1640_v37 = vld [vmem:[#allocation9 + $0x10] sm:$0xff]  }
  0x98   :  { %v1635_v32 = vld [vmem:[#allocation12 + $0x64] ss:$48 sps:$4 sm:$0xff]   ;;  %v1633_v33 = vld [vmem:[#allocation12 + $0x60] ss:$48 sps:$4 sm:$0xff]   ;;  %v1663_v53 = vld [vmem:[#allocation12 + $0xc] ss:$48 sps:$4 sm:$0xff]  }
  0x99   :  { %1558 = vmatpush3.bf16.msra.mxu0 %v1620_v2  ;;  %1566 = vmatpush3.bf16.msra.mxu1 %v1622_v6  ;;  %v1639_v35 = vld [vmem:[#allocation12 + $0xc4] ss:$48 sps:$4 sm:$0xff]   ;;  %v1637_v36 = vld [vmem:[#allocation12 + $0xc0] ss:$48 sps:$4 sm:$0xff]   ;;  %v1420_v56 = vld [vmem:[#allocation7] ss:$0 sm:$0xff] }
  0x9a   :  { %1583 = vmatprep.subr.bf16.mxu0 %v1983_v0  ;;  %1567 = vmatprep.subr.bf16.mxu1 %v1983_v0  ;;  %v1643_v38 = vld [vmem:[#allocation12 + $0x124] ss:$48 sps:$4 sm:$0xff]   ;;  %v1641_v39 = vld [vmem:[#allocation12 + $0x120] ss:$48 sps:$4 sm:$0xff]  }
  0x9b   :  { %v1644_v40 = vld [vmem:[#allocation9 + $0x18] sm:$0xff]   ;;  %v1645_v42 = vld [vmem:[#allocation12 + $0x180] ss:$48 sps:$4 sm:$0xff]   ;;  %v1652_v46 = vld [vmem:[#allocation9 + $0x28] sm:$0xff]  }
  0x9c   :  { %1560 = vmatmul.mubr.msk.bf16.vlgmr.msra.gmra.mrb[0].mxu0 %vm161_vm1, %v137_v4  ;;  %v1647_v41 = vld [vmem:[#allocation12 + $0x184] ss:$48 sps:$4 sm:$0xff]   ;;  %v1649_v45 = vld [vmem:[#allocation12 + $0x1e0] ss:$48 sps:$4 sm:$0xff]  }
  0x9d   :  { %1599 = vmatprep.mubr.msk.bf16.mxu0 %vm1984_vm0, %v1983_v0  ;;  %1568 = vmatpush3.bf16.msra.mxu1 %v1623_v7  ;;  %v1648_v43 = vld [vmem:[#allocation9 + $0x20] sm:$0xff]   ;;  %v1656_v49 = vld [vmem:[#allocation9 + $0x30] sm:$0xff]   ;;  %v1660_v52 = vld [vmem:[#allocation9 + $0x38] sm:$0xff]  }
  0x9e   :  { %1569 = vmatprep.subr.bf16.mxu1 %v1983_v0  ;;  %1584 = vmatpush3.bf16.msra.mxu0 %v1632_v31  ;;  %v1651_v44 = vld [vmem:[#allocation12 + $0x1e4] ss:$48 sps:$4 sm:$0xff]   ;;  %v1653_v48 = vld [vmem:[#allocation12 + $0x240] ss:$48 sps:$4 sm:$0xff]   ;;  %v1661_v7 = vld [vmem:[#allocation12 + $0x8] ss:$48 sps:$4 sm:$0xff]  }
  0x9f   :  { %1585 = vmatprep.subr.bf16.mxu0 %v1983_v0  ;;  %v1655_v47 = vld [vmem:[#allocation12 + $0x244] ss:$48 sps:$4 sm:$0xff]   ;;  %v1657_v51 = vld [vmem:[#allocation12 + $0x2a0] ss:$48 sps:$4 sm:$0xff]  }
  0xa0   :  { %v1659_v50 = vld [vmem:[#allocation12 + $0x2a4] ss:$48 sps:$4 sm:$0xff]  }
  0xa1   :  { %1570 = vmatpush3.bf16.msra.mxu1 %v1624_v8  ;;  %v1666_v54 = vld [vmem:[#allocation12 + $0x14] ss:$48 sps:$4 sm:$0xff]   ;;  %v1664_v8 = vld [vmem:[#allocation12 + $0x10] ss:$48 sps:$4 sm:$0xff]  }
  0xa2   :  { %1571 = vmatprep.subr.bf16.mxu1 %v1983_v0  ;;  %1586 = vmatpush3.bf16.msra.mxu0 %v1636_v34  ;;  %v1702_v31 = vld [vmem:[#allocation12 + $0x254] ss:$48 sps:$4 sm:$0xff]   ;;  %v1705_v34 = vld [vmem:[#allocation12 + $0x2ac] ss:$48 sps:$4 sm:$0xff]  }
  0xa3   :  { %1587 = vmatprep.subr.bf16.mxu0 %v1983_v0 }
  0xa5   :  { %1572 = vmatpush3.bf16.msra.mxu1 %v1625_v9 }
  0xa6   :  { %1573 = vmatprep.subr.bf16.mxu1 %v1983_v0  ;;  %1588 = vmatpush3.bf16.msra.mxu0 %v1640_v37  ;;  %v1706_v37 = vld [vmem:[#allocation12 + $0x2b0] ss:$48 sps:$4 sm:$0xff]  }
  0xa7   :  { %1589 = vmatprep.subr.bf16.mxu0 %v1983_v0 }
  0xa9   :  { %1574 = vmatpush3.bf16.msra.mxu1 %v1626_v10  ;;  %v1669_v10 = vld [vmem:[#allocation12 + $0x6c] ss:$48 sps:$4 sm:$0xff]  }
  0xaa   :  { %1575 = vmatprep.subr.bf16.mxu1 %v1983_v0  ;;  %1590 = vmatpush3.bf16.msra.mxu0 %v1644_v40  ;;  %v1709_v40 = vld [vmem:[#allocation12 + $0x18] ss:$48 sps:$4 sm:$0xff]  }
  0xab   :  { %1591 = vmatprep.subr.bf16.mxu0 %v1983_v0 }
  0xad   :  { %1576 = vmatpush3.bf16.msra.mxu1 %v1627_v11  ;;  %v1672_v11 = vld [vmem:[#allocation12 + $0x74] ss:$48 sps:$4 sm:$0xff]  }
  0xae   :  { %1577 = vmatprep.subr.bf16.mxu1 %v1983_v0  ;;  %1592 = vmatpush3.bf16.msra.mxu0 %v1648_v43  ;;  %v1720_v43 = vld [vmem:[#allocation12 + $0x84] ss:$48 sps:$4 sm:$0xff]  }
  0xaf   :  { %1593 = vmatprep.subr.bf16.mxu0 %v1983_v0 }
  0xb1   :  { %1578 = vmatpush3.bf16.msra.mxu1 %v1628_v12  ;;  %v1667_v12 = vld [vmem:[#allocation12 + $0x68] ss:$48 sps:$4 sm:$0xff]  }
  0xb2   :  { %1088 = vmatprep.subr.bf16.mxu1 %v1631_v13  ;;  %1594 = vmatpush3.bf16.msra.mxu0 %v1652_v46  ;;  %v1670_v13 = vld [vmem:[#allocation12 + $0x70] ss:$48 sps:$4 sm:$0xff]   ;;  %v1723_v46 = vld [vmem:[#allocation12 + $0xdc] ss:$48 sps:$4 sm:$0xff]  }
  0xb3   :  { %1595 = vmatprep.subr.bf16.mxu0 %v1983_v0 }
  0xb6   :  { %1596 = vmatpush3.bf16.msra.mxu0 %v1656_v49  ;;  %v1724_v49 = vld [vmem:[#allocation12 + $0xe0] ss:$48 sps:$4 sm:$0xff]  }
  0xb7   :  { %1597 = vmatprep.subr.bf16.mxu0 %v1983_v0 }
  0xba   :  { %1598 = vmatpush3.bf16.msra.mxu0 %v1660_v52  ;;  %v1727_v52 = vld [vmem:[#allocation12 + $0x138] ss:$48 sps:$4 sm:$0xff]  }
  0xbb   :  { %1129 = vmatprep.subr.bf16.mxu0 %v1663_v53  ;;  %v1730_v53 = vld [vmem:[#allocation12 + $0x140] ss:$48 sps:$4 sm:$0xff]  }
 0x16f   :  { %v199_v15 = vpop.f32.mrb[0].mxu0 }
 0x170   :  { %v200_v16 = vadd.f32 %v1416_v14, %v199_v15  ;;  %v1561_v17 = vpop.f32.mrb[1].mxu0  ;;  %v1675_v14 = vld [vmem:[#allocation12 + $0xcc] ss:$48 sps:$4 sm:$0xff]   ;;  %v1678_v15 = vld [vmem:[#allocation12 + $0xd4] ss:$48 sps:$4 sm:$0xff]  }
 0x171   :  { %v202_v18 = vpop.f32.mrb[2].mxu0  ;;  %v1676_v17 = vld [vmem:[#allocation12 + $0xd0] ss:$48 sps:$4 sm:$0xff]  }
 0x172   :  { %v205_v19 = vmul.f32 %v200_v16, %v200_v16  ;;  %v1562_v20 = vpop.f32.mrb[3].mxu0  ;;  %v1681_v18 = vld [vmem:[#allocation12 + $0x12c] ss:$48 sps:$4 sm:$0xff]  }
 0x173   :  { %v1679_v20 = vld [vmem:[#allocation12 + $0x128] ss:$48 sps:$4 sm:$0xff]  }
 0x174   :  { %v206_v21 = vmul.f32 %v205_v19, %v200_v16  ;;  %v1684_v19 = vld [vmem:[#allocation12 + $0x134] ss:$48 sps:$4 sm:$0xff]  }
 0x176   :  { %v207_v22 = vmul.f32 0.044715, %v206_v21  ;;  %v1682_v21 = vld [vmem:[#allocation12 + $0x130] ss:$48 sps:$4 sm:$0xff]  }
 0x178   :  { %v208_v23 = vadd.f32 %v207_v22, %v200_v16  ;;  %v1687_v22 = vld [vmem:[#allocation12 + $0x18c] ss:$48 sps:$4 sm:$0xff]  }
 0x17a   :  { %v209_v24 = vmul.f32 0.7978846, %v208_v23  ;;  %v1690_v23 = vld [vmem:[#allocation12 + $0x194] ss:$48 sps:$4 sm:$0xff]  }
 0x17c   :  { %1781 = vtanh.f32 %v209_v24  ;;  %v1685_v24 = vld [vmem:[#allocation12 + $0x188] ss:$48 sps:$4 sm:$0xff]  }
 0x186   :  { %v1782_v25 = vpop.eup %1781 }
 0x187   :  { %v211_v26 = vadd.f32 1.0, %v1782_v25  ;;  %v1688_v25 = vld [vmem:[#allocation12 + $0x190] ss:$48 sps:$4 sm:$0xff]  }
 0x189   :  { %v212_v27 = vmul.f32 0.5, %v211_v26  ;;  %v1693_v26 = vld [vmem:[#allocation12 + $0x1ec] ss:$48 sps:$4 sm:$0xff]  }
 0x18b   :  { %v213_v28 = vmul.f32 %v212_v27, %v200_v16  ;;  %v1673_v16 = vld [vmem:[#allocation12 + $0xc8] ss:$48 sps:$4 sm:$0xff]   ;;  %v1696_v27 = vld [vmem:[#allocation12 + $0x1f4] ss:$48 sps:$4 sm:$0xff]  }
 0x18d   :  { %v214_v30 = vpack.c.bf16 %v213_v28, %v213_v28  ;;  %v1691_v28 = vld [vmem:[#allocation12 + $0x1e8] ss:$48 sps:$4 sm:$0xff]  }
 0x18f   :  { %1580 = vmatmul.mubr.bf16.vlgmr.msra.gmra.mrb[0].mxu1 %v214_v30  ;;  %v1699_v30 = vld [vmem:[#allocation12 + $0x24c] ss:$48 sps:$4 sm:$0xff]  }
 0x190   :  { %1089 = vmatpush1.bf16.msra.mxu1 %v1629_v29  ;;  %1120 = vmatprep.mubr.bf16.mxu1 %v1985_v55  ;;  %v1694_v29 = vld [vmem:[#allocation12 + $0x1f0] ss:$48 sps:$4 sm:$0xff]  }
 0x191   :  { %1090 = vmatprep.subr.bf16.mxu1 %v1635_v32  ;;  %v1697_v32 = vld [vmem:[#allocation12 + $0x248] ss:$48 sps:$4 sm:$0xff]  }
 0x194   :  { %1091 = vmatpush1.bf16.msra.mxu1 %v1633_v33  ;;  %v1700_v33 = vld [vmem:[#allocation12 + $0x250] ss:$48 sps:$4 sm:$0xff]  }
 0x195   :  { %1092 = vmatprep.subr.bf16.mxu1 %v1639_v35  ;;  %v1708_v35 = vld [vmem:[#allocation12 + $0x2b4] ss:$48 sps:$4 sm:$0xff]  }
 0x198   :  { %1093 = vmatpush1.bf16.msra.mxu1 %v1637_v36  ;;  %v1703_v36 = vld [vmem:[#allocation12 + $0x2a8] ss:$48 sps:$4 sm:$0xff]  }
 0x199   :  { %1094 = vmatprep.subr.bf16.mxu1 %v1643_v38  ;;  %v1711_v38 = vld [vmem:[#allocation12 + $0x1c] ss:$48 sps:$4 sm:$0xff]  }
 0x19c   :  { %1095 = vmatpush1.bf16.msra.mxu1 %v1641_v39  ;;  %v1714_v39 = vld [vmem:[#allocation12 + $0x24] ss:$48 sps:$4 sm:$0xff]  }
 0x19d   :  { %1096 = vmatprep.subr.bf16.mxu1 %v1647_v41  ;;  %v1712_v41 = vld [vmem:[#allocation12 + $0x20] ss:$48 sps:$4 sm:$0xff]  }
 0x1a0   :  { %1097 = vmatpush1.bf16.msra.mxu1 %v1645_v42  ;;  %v1717_v42 = vld [vmem:[#allocation12 + $0x7c] ss:$48 sps:$4 sm:$0xff]  }
 0x1a1   :  { %1098 = vmatprep.subr.bf16.mxu1 %v1651_v44  ;;  %v1715_v44 = vld [vmem:[#allocation12 + $0x78] ss:$48 sps:$4 sm:$0xff]  }
 0x1a4   :  { %1099 = vmatpush1.bf16.msra.mxu1 %v1649_v45  ;;  %v1718_v45 = vld [vmem:[#allocation12 + $0x80] ss:$48 sps:$4 sm:$0xff]  }
 0x1a5   :  { %1100 = vmatprep.subr.bf16.mxu1 %v1655_v47  ;;  %v1726_v47 = vld [vmem:[#allocation12 + $0xe4] ss:$48 sps:$4 sm:$0xff]  }
 0x1a8   :  { %1101 = vmatpush1.bf16.msra.mxu1 %v1653_v48  ;;  %v1721_v48 = vld [vmem:[#allocation12 + $0xd8] ss:$48 sps:$4 sm:$0xff]  }
 0x1a9   :  { %1102 = vmatprep.subr.bf16.mxu1 %v1659_v50  ;;  %v1729_v50 = vld [vmem:[#allocation12 + $0x13c] ss:$48 sps:$4 sm:$0xff]  }
 0x1ac   :  { %1103 = vmatpush1.bf16.msra.mxu1 %v1657_v51  ;;  %v1732_v51 = vld [vmem:[#allocation12 + $0x144] ss:$48 sps:$4 sm:$0xff]  }
 0x1ad   :  { %1170 = vmatprep.subr.bf16.mxu1 %v1666_v54  ;;  %v1735_v54 = vld [vmem:[#allocation12 + $0x19c] ss:$48 sps:$4 sm:$0xff]  }
 0x262   :  { %v320_v57 = vpop.f32.mrb[0].mxu1 }
 0x263   :  { %v321_v58 = vadd.f32 %v1420_v56, %v320_v57  ;;  %v1581_v59 = vpop.f32.mrb[1].mxu1  ;;  %v1738_v56 = vld [vmem:[#allocation12 + $0x1a4] ss:$48 sps:$4 sm:$0xff]   ;;  %v1733_v57 = vld [vmem:[#allocation12 + $0x198] ss:$48 sps:$4 sm:$0xff]  }
 0x264   :  { %v323_v60 = vpop.f32.mrb[2].mxu1  ;;  %v1741_v59 = vld [vmem:[#allocation12 + $0x1fc] ss:$48 sps:$4 sm:$0xff]  }
 0x265   :  { %v326_v61 = vmul.f32 %v321_v58, %v321_v58  ;;  %v1582_v62 = vpop.f32.mrb[3].mxu1  ;;  %v1744_v60 = vld [vmem:[#allocation12 + $0x204] ss:$48 sps:$4 sm:$0xff]  }
 0x266   :  { %v1742_v62 = vld [vmem:[#allocation12 + $0x200] ss:$48 sps:$4 sm:$0xff]  }
 0x267   :  { %v327_v63 = vmul.f32 %v326_v61, %v321_v58  ;;  %v1739_v61 = vld [vmem:[#allocation12 + $0x1f8] ss:$48 sps:$4 sm:$0xff]  }
 0x269   :  { %v328_v0 = vmul.f32 0.044715, %v327_v63  ;;  %v1747_v63 = vld [vmem:[#allocation12 + $0x25c] ss:$48 sps:$4 sm:$0xff]  }
 0x26b   :  { %v329_v1 = vadd.f32 %v328_v0, %v321_v58  ;;  %v1750_v0 = vld [vmem:[#allocation12 + $0x264] ss:$48 sps:$4 sm:$0xff]  }
 0x26d   :  { %v330_v2 = vmul.f32 0.7978846, %v329_v1  ;;  %v1745_v1 = vld [vmem:[#allocation12 + $0x258] ss:$48 sps:$4 sm:$0xff]  }
 0x26f   :  { %1783 = vtanh.f32 %v330_v2  ;;  %v1748_v2 = vld [vmem:[#allocation12 + $0x260] ss:$48 sps:$4 sm:$0xff]  }
 0x279   :  { %v1784_v3 = vpop.eup %1783 }
 0x27a   :  { %v332_v4 = vadd.f32 1.0, %v1784_v3  ;;  %v1753_v3 = vld [vmem:[#allocation12 + $0x2bc] ss:$48 sps:$4 sm:$0xff]  }
 0x27c   :  { %v333_v5 = vmul.f32 0.5, %v332_v4  ;;  %v1756_v4 = vld [vmem:[#allocation12 + $0x2c4] ss:$48 sps:$4 sm:$0xff]  }
 0x27e   :  { %v334_v6 = vmul.f32 %v333_v5, %v321_v58  ;;  %v1736_v58 = vld [vmem:[#allocation12 + $0x1a0] ss:$48 sps:$4 sm:$0xff]   ;;  %v1751_v5 = vld [vmem:[#allocation12 + $0x2b8] ss:$48 sps:$4 sm:$0xff]  }
 0x280   :  { %v2186_v9 = vpack.c.bf16 %v334_v6, %v334_v6  ;;  %v1754_v6 = vld [vmem:[#allocation12 + $0x2c0] ss:$48 sps:$4 sm:$0xff]  }
 0x282   :  { %1600 = vmatmul.mubr.bf16.vlgmr.msra.gmra.mrb[4].mxu0 %v2186_v9  ;;  %1121 = vmatmul.mubr.bf16.vlgmr.msra.gmra.mrb[4].mxu1 %v2186_v9 }
 0x283   :  { %1130 = vmatpush1.bf16.msra.mxu0 %v1661_v7  ;;  %1171 = vmatpush1.bf16.msra.mxu1 %v1664_v8  ;;  %v1759_v7 = vld [vmem:[#allocation12 + $0x2c] ss:$48 sps:$4 sm:$0xff]   ;;  %v1757_v8 = vld [vmem:[#allocation12 + $0x28] ss:$48 sps:$4 sm:$0xff]  }
 0x284   :  { %1131 = vmatprep.subr.bf16.mxu0 %v1669_v10  ;;  %1172 = vmatprep.subr.bf16.mxu1 %v1672_v11  ;;  %v1762_v10 = vld [vmem:[#allocation12 + $0x8c] ss:$48 sps:$4 sm:$0xff]   ;;  %v1760_v11 = vld [vmem:[#allocation12 + $0x88] ss:$48 sps:$4 sm:$0xff]  }
 0x285   :  { %1161 = vmatprep.mubr.bf16.mxu0 %v1985_v55  ;;  %1202 = vmatprep.mubr.bf16.mxu1 %v1985_v55 }
 0x287   :  { %1132 = vmatpush1.bf16.msra.mxu0 %v1667_v12  ;;  %1173 = vmatpush1.bf16.msra.mxu1 %v1670_v13  ;;  %v1765_v12 = vld [vmem:[#allocation12 + $0xec] ss:$48 sps:$4 sm:$0xff]   ;;  %v1763_v13 = vld [vmem:[#allocation12 + $0xe8] ss:$48 sps:$4 sm:$0xff]  }
 0x288   :  { %1133 = vmatprep.subr.bf16.mxu0 %v1675_v14  ;;  %1174 = vmatprep.subr.bf16.mxu1 %v1678_v15  ;;  %v1768_v14 = vld [vmem:[#allocation12 + $0x14c] ss:$48 sps:$4 sm:$0xff]   ;;  %v1766_v15 = vld [vmem:[#allocation12 + $0x148] ss:$48 sps:$4 sm:$0xff]  }
 0x28b   :  { %1134 = vmatpush1.bf16.msra.mxu0 %v1673_v16  ;;  %1175 = vmatpush1.bf16.msra.mxu1 %v1676_v17  ;;  %v1771_v16 = vld [vmem:[#allocation12 + $0x1ac] ss:$48 sps:$4 sm:$0xff]   ;;  %v1769_v17 = vld [vmem:[#allocation12 + $0x1a8] ss:$48 sps:$4 sm:$0xff]  }
 0x28c   :  { %1135 = vmatprep.subr.bf16.mxu0 %v1681_v18  ;;  %1176 = vmatprep.subr.bf16.mxu1 %v1684_v19  ;;  %v1774_v18 = vld [vmem:[#allocation12 + $0x20c] ss:$48 sps:$4 sm:$0xff]   ;;  %v1772_v19 = vld [vmem:[#allocation12 + $0x208] ss:$48 sps:$4 sm:$0xff]  }
 0x28f   :  { %1136 = vmatpush1.bf16.msra.mxu0 %v1679_v20  ;;  %1177 = vmatpush1.bf16.msra.mxu1 %v1682_v21  ;;  %v1777_v20 = vld [vmem:[#allocation12 + $0x26c] ss:$48 sps:$4 sm:$0xff]  }
 0x290   :  { %1137 = vmatprep.subr.bf16.mxu0 %v1687_v22  ;;  %1178 = vmatprep.subr.bf16.mxu1 %v1690_v23  ;;  %v1780_v21 = vld [vmem:[#allocation12 + $0x2cc] ss:$48 sps:$4 sm:$0xff]   ;;  %v1778_v22 = vld [vmem:[#allocation12 + $0x2c8] ss:$48 sps:$4 sm:$0xff]   ;;  %v548_v23 = vlaneseq }
 0x293   :  { %1138 = vmatpush1.bf16.msra.mxu0 %v1685_v24  ;;  %1179 = vmatpush1.bf16.msra.mxu1 %v1688_v25  ;;  %v2200_v24 = vshrl.u32 %v548_v23, 7 }
 0x294   :  { %1139 = vmatprep.subr.bf16.mxu0 %v1693_v26  ;;  %1180 = vmatprep.subr.bf16.mxu1 %v1696_v27  ;;  %v544_v26 = vld [vmem:[#allocation13] sm:$0xff] }
 0x295   :  { %v550_v25 = vsub.s32 0, %v2200_v24  ;;  %v554_v27 = vsub.s32 1, %v2200_v24 }
 0x297   :  { %1140 = vmatpush1.bf16.msra.mxu0 %v1691_v28  ;;  %1181 = vmatpush1.bf16.msra.mxu1 %v1694_v29  ;;  %v551_v28 = vrot.slane %v544_v26, %v550_v25  ;;  %v1429_v29 = vld [vmem:[#allocation10] ss:$0 sm:$0xff] }
 0x298   :  { %1141 = vmatprep.subr.bf16.mxu0 %v1699_v30  ;;  %1182 = vmatprep.subr.bf16.mxu1 %v1702_v31  ;;  %v555_v30 = vrot.slane %v544_v26, %v554_v27 }
 0x29b   :  { %1142 = vmatpush1.bf16.msra.mxu0 %v1697_v32  ;;  %1183 = vmatpush1.bf16.msra.mxu1 %v1700_v33 }
 0x29c   :  { %1143 = vmatprep.subr.bf16.mxu0 %v1705_v34  ;;  %1184 = vmatprep.subr.bf16.mxu1 %v1708_v35 }
 0x29f   :  { %1144 = vmatpush1.bf16.msra.mxu0 %v1703_v36  ;;  %1185 = vmatpush1.bf16.msra.mxu1 %v1706_v37 }
 0x2a0   :  { %1211 = vmatprep.subr.bf16.mxu0 %v1711_v38  ;;  %1252 = vmatprep.subr.bf16.mxu1 %v1714_v39 }
 0x2a2   :  { %1162 = vmatmul.mubr.bf16.vlgmr.msra.gmra.mrb[8].mxu0 %v2186_v9  ;;  %1203 = vmatmul.mubr.bf16.vlgmr.msra.gmra.mrb[8].mxu1 %v2186_v9 }
 0x2a3   :  { %1212 = vmatpush1.bf16.msra.mxu0 %v1709_v40  ;;  %1253 = vmatpush1.bf16.msra.mxu1 %v1712_v41 }
 0x2a4   :  { %1213 = vmatprep.subr.bf16.mxu0 %v1717_v42  ;;  %1254 = vmatprep.subr.bf16.mxu1 %v1720_v43  ;;  %v558_v42 = vsub.s32 2, %v2200_v24  ;;  %v566_v43 = vsub.s32 4, %v2200_v24 }
 0x2a5   :  { %1243 = vmatprep.mubr.bf16.mxu0 %v1985_v55  ;;  %1284 = vmatprep.mubr.bf16.mxu1 %v1985_v55 }
 0x2a7   :  { %1214 = vmatpush1.bf16.msra.mxu0 %v1715_v44  ;;  %1255 = vmatpush1.bf16.msra.mxu1 %v1718_v45  ;;  %v1986_v44 = vmov 1983009808  }
 0x2a8   :  { %1215 = vmatprep.subr.bf16.mxu0 %v1723_v46  ;;  %1256 = vmatprep.subr.bf16.mxu1 %v1726_v47  ;;  %v1349_v45 = vunpack.c.l.s4 %v1986_v44  ;;  %v562_v46 = vsub.s32 3, %v2200_v24  ;;  %v570_v47 = vsub.s32 5, %v2200_v24 }
 0x2ab   :  { %1216 = vmatpush1.bf16.msra.mxu0 %v1721_v48  ;;  %1257 = vmatpush1.bf16.msra.mxu1 %v1724_v49  ;;  %v559_v48 = vrot.slane %v544_v26, %v558_v42  ;;  %v567_v49 = vrot.slane %v544_v26, %v566_v43 }
 0x2ac   :  { %1217 = vmatprep.subr.bf16.mxu0 %v1729_v50  ;;  %1258 = vmatprep.subr.bf16.mxu1 %v1732_v51  ;;  %v1350_v50 = vunpack.c.0.s8 %v1349_v45  ;;  %v563_v51 = vrot.slane %v544_v26, %v562_v46 }
 0x2af   :  { %1218 = vmatpush1.bf16.msra.mxu0 %v1727_v52  ;;  %1259 = vmatpush1.bf16.msra.mxu1 %v1730_v53  ;;  %v571_v52 = vrot.slane %v544_v26, %v570_v47 }
 0x2b0   :  { %1219 = vmatprep.subr.bf16.mxu0 %v1735_v54  ;;  %1260 = vmatprep.subr.bf16.mxu1 %v1738_v56 }
 0x2b3   :  { %1220 = vmatpush1.bf16.msra.mxu0 %v1733_v57  ;;  %1261 = vmatpush1.bf16.msra.mxu1 %v1736_v58 }
 0x2b4   :  { %1221 = vmatprep.subr.bf16.mxu0 %v1741_v59  ;;  %1262 = vmatprep.subr.bf16.mxu1 %v1744_v60  ;;  %v1353_v60 = vsub.s32 %v1350_v50, %v2200_v24 }
 0x2b7   :  { %1222 = vmatpush1.bf16.msra.mxu0 %v1739_v61  ;;  %1263 = vmatpush1.bf16.msra.mxu1 %v1742_v62 }
 0x2b8   :  { %1223 = vmatprep.subr.bf16.mxu0 %v1747_v63  ;;  %1264 = vmatprep.subr.bf16.mxu1 %v1750_v0 }
 0x2bb   :  { %1224 = vmatpush1.bf16.msra.mxu0 %v1745_v1  ;;  %1265 = vmatpush1.bf16.msra.mxu1 %v1748_v2 }
 0x2bc   :  { %1225 = vmatprep.subr.bf16.mxu0 %v1753_v3  ;;  %1266 = vmatprep.subr.bf16.mxu1 %v1756_v4 }
 0x2bf   :  { %1226 = vmatpush1.bf16.msra.mxu0 %v1751_v5  ;;  %1267 = vmatpush1.bf16.msra.mxu1 %v1754_v6 }
 0x2c0   :  { %1293 = vmatprep.subr.bf16.mxu0 %v1759_v7 }
 0x2c2   :  { %1244 = vmatmul.mubr.bf16.vlgmr.msra.gmra.mrb[12].mxu0 %v2186_v9  ;;  %1285 = vmatmul.mubr.bf16.vlgmr.msra.gmra.mrb[12].mxu1 %v2186_v9 }
 0x2c3   :  { %1294 = vmatpush1.bf16.msra.mxu0 %v1757_v8  ;;  %1325 = vmatprep.mubr.bf16.mxu0 %v1985_v55  ;;  %v1775_v55 = vld [vmem:[#allocation12 + $0x268] ss:$48 sps:$4 sm:$0xff]   ;;  %v574_v8 = vsub.s32 6, %v2200_v24 }
 0x2c4   :  { %1295 = vmatprep.subr.bf16.mxu0 %v1762_v10  ;;  %v545_v10 = vld [vmem:[#allocation13 + $0x8] sm:$0xf] }
 0x2c7   :  { %1296 = vmatpush1.bf16.msra.mxu0 %v1760_v11  ;;  %v578_v11 = vsub.s32 7, %v2200_v24 }
 0x2c8   :  { %1297 = vmatprep.subr.bf16.mxu0 %v1765_v12  ;;  %v575_v12 = vrot.slane %v544_v26, %v574_v8 }
 0x2cb   :  { %1298 = vmatpush1.bf16.msra.mxu0 %v1763_v13  ;;  %v583_v13 = vrot.slane %v545_v10, %v550_v25 }
 0x2cc   :  { %1299 = vmatprep.subr.bf16.mxu0 %v1768_v14  ;;  %v579_v14 = vrot.slane %v544_v26, %v578_v11  ;;  %v591_v26 = vrot.slane %v545_v10, %v558_v42 }
 0x2cf   :  { %1300 = vmatpush1.bf16.msra.mxu0 %v1766_v15  ;;  %v587_v15 = vrot.slane %v545_v10, %v554_v27  ;;  %v595_v27 = vrot.slane %v545_v10, %v562_v46 }
 0x2d0   :  { %1301 = vmatprep.subr.bf16.mxu0 %v1771_v16 }
 0x2d3   :  { %1302 = vmatpush1.bf16.msra.mxu0 %v1769_v17 }
 0x2d4   :  { %1303 = vmatprep.subr.bf16.mxu0 %v1774_v18 }
 0x2d7   :  { %1304 = vmatpush1.bf16.msra.mxu0 %v1772_v19 }
 0x2d8   :  { %1305 = vmatprep.subr.bf16.mxu0 %v1777_v20 }
 0x2db   :  { %1306 = vmatpush1.bf16.msra.mxu0 %v1775_v55 }
 0x2dc   :  { %1307 = vmatprep.subr.bf16.mxu0 %v1780_v21 }
 0x2df   :  { %1308 = vmatpush1.bf16.msra.mxu0 %v1778_v22 }
 0x2e2   :  { %1326 = vmatmul.mubr.bf16.vlgmr.msra.gmra.mrb[16].mxu0 %v2186_v9 }
 0x355   :  { %v441_v31 = vpop.f32.mrb[4].mxu0  ;;  %v1122_v32 = vpop.f32.mrb[4].mxu1 }
 0x356   :  { %v442_v33 = vadd.f32 %v1429_v29, %v441_v31  ;;  %v1123_v34 = vadd.f32 %v1122_v32, %v551_v28  ;;  %v1601_v35 = vpop.f32.mrb[5].mxu0  ;;  %v1124_v36 = vpop.f32.mrb[5].mxu1 }
 0x357   :  { %v1125_v37 = vadd.f32 %v1124_v36, %v555_v30  ;;  %v444_v38 = vpop.f32.mrb[6].mxu0  ;;  %v1126_v9 = vpop.f32.mrb[6].mxu1 }
 0x358   :  { %447 = vst [vmem:[%s2232_s9] sm:$0x3] %v442_v33  ;;  %v1602_v39 = vpop.f32.mrb[7].mxu0  ;;  %v1127_v40 = vpop.f32.mrb[7].mxu1 }
 0x359   :  { %v1346_v41 = vcombine.low %v1123_v34, %v1125_v37 }
 0x35b   :  { %v1354_v5 = vrot.slane %v1346_v41, %v1353_v60 }
 0x375   :  { %v1163_v53 = vpop.f32.mrb[8].mxu0  ;;  %v1204_v54 = vpop.f32.mrb[8].mxu1 }
 0x376   :  { %v1164_v56 = vadd.f32 %v1163_v53, %v559_v48  ;;  %v1205_v57 = vadd.f32 %v1204_v54, %v567_v49  ;;  %v1165_v58 = vpop.f32.mrb[9].mxu0  ;;  %v1206_v59 = vpop.f32.mrb[9].mxu1 }
 0x377   :  { %v1166_v61 = vadd.f32 %v1165_v58, %v563_v51  ;;  %v1207_v62 = vadd.f32 %v1206_v59, %v571_v52  ;;  %v1167_v63 = vpop.f32.mrb[10].mxu0  ;;  %v1208_v0 = vpop.f32.mrb[10].mxu1 }
 0x378   :  { %v1168_v1 = vpop.f32.mrb[11].mxu0  ;;  %v1209_v2 = vpop.f32.mrb[11].mxu1 }
 0x379   :  { %v1347_v3 = vcombine.low %v1164_v56, %v1166_v61  ;;  %v1363_v4 = vcombine.low %v1205_v57, %v1207_v62 }
 0x37b   :  { %v1361_v6 = vrot.slane %v1347_v3, %v1353_v60  ;;  %v1371_v33 = vrot.slane %v1363_v4, %v1353_v60 }
 0x37d   :  { %v1362_v7 = vcombine.low %v1354_v5, %v1361_v6 }
 0x37f   :  { %1400 = vst [vmem:[%s2233_s10] sm:$0xff] %v1362_v7 }
 0x395   :  { %v1245_v16 = vpop.f32.mrb[12].mxu0  ;;  %v1286_v17 = vpop.f32.mrb[12].mxu1 }
 0x396   :  { %v1246_v18 = vadd.f32 %v1245_v16, %v575_v12  ;;  %v1287_v19 = vadd.f32 %v1286_v17, %v583_v13  ;;  %v1247_v20 = vpop.f32.mrb[13].mxu0  ;;  %v1288_v55 = vpop.f32.mrb[13].mxu1 }
 0x397   :  { %v1248_v21 = vadd.f32 %v1247_v20, %v579_v14  ;;  %v1289_v22 = vadd.f32 %v1288_v55, %v587_v15  ;;  %v1249_v23 = vpop.f32.mrb[14].mxu0  ;;  %v1290_v28 = vpop.f32.mrb[14].mxu1 }
 0x398   :  { %v1250_v29 = vpop.f32.mrb[15].mxu0  ;;  %v1291_v30 = vpop.f32.mrb[15].mxu1 }
 0x399   :  { %v1364_v31 = vcombine.low %v1246_v18, %v1248_v21  ;;  %v1380_v32 = vcombine.low %v1287_v19, %v1289_v22 }
 0x39b   :  { %v1378_v24 = vrot.slane %v1364_v31, %v1353_v60  ;;  %v1388_v34 = vrot.slane %v1380_v32, %v1353_v60 }
 0x39d   :  { %v1379_v25 = vcombine.low %v1371_v33, %v1378_v24 }
 0x39f   :  { %1401 = vst [vmem:[%s2233_s10 + $0x8] sm:$0xff] %v1379_v25 }
 0x3b5   :  { %v1327_v35 = vpop.f32.mrb[16].mxu0 }
 0x3b6   :  { %v1328_v36 = vadd.f32 %v1327_v35, %v591_v26  ;;  %v1329_v37 = vpop.f32.mrb[17].mxu0 }
 0x3b7   :  { %v1330_v38 = vadd.f32 %v1329_v37, %v595_v27  ;;  %v1331_v9 = vpop.f32.mrb[18].mxu0 }
 0x3b8   :  { %v1332_v39 = vpop.f32.mrb[19].mxu0 }
 0x3b9   :  { %v1381_v40 = vcombine.low %v1328_v36, %v1330_v38 }
 0x3bb   :  { %v1395_v41 = vrot.slane %v1381_v40, %v1353_v60 }
 0x3bd   :  { %v1396_v43 = vcombine.low %v1388_v34, %v1395_v41 }
 0x3bf   :  { %1402 = vst [vmem:[%s2233_s10 + $0x10] sm:$0xff] %v1396_v43 }
 0x3c0   :  { %1411 = vsyncpa [#allocation3], 1 }
 0x3c1   :  { %1412 = vsyncpa [#allocation5], 1 }
 0x3c2   :  { %1413 = vsyncpa [#allocation8], 1 }
 0x3c3   :  { %1414 = vsyncpa [#allocation11], 1 }
 0x3c4   :  { %1415 = vsyncpa [#allocation14], 1 }

// kernel: _lambda_.3
= control target key start
LH: loop header
LB: loop body
LE: loop exit
PB: predicated region body
PF: predicated region fallthrough
CT: control target
= control target key end

     0   :  { %s10252_s0 = inlined_call_operand.hbm [shape: s32[6], index: 0, kind: input, shape index: {}]   ;;  %s10253_s1 = inlined_call_operand.hbm [shape: f32[6,1,128], index: 1, kind: input, shape index: {}]   ;;  %s10254_s2 = inlined_call_operand.hbm [shape: f32[6,1,128], index: 2, kind: input, shape index: {}]   ;;  %s10255_s3 = inlined_call_operand.vmem [shape: f32[6,2,256], index: 3, kind: input, shape index: {}]   ;;  %s10256_s4 = inlined_call_operand.hbm [shape: bf16[6,128,1536], index: 4, kind: input, shape index: {}]   ;;  %s10257_s5 = inlined_call_operand.hbm [shape: f32[6,1,1536], index: 5, kind: input, shape index: {}]   ;;  %s10258_s6 = inlined_call_operand.hbm [shape: bf16[6,128,1024], index: 6, kind: input, shape index: {}]   ;;  %s10259_s7 = inlined_call_operand.hbm [shape: f32[6,1,1024], index: 7, kind: input, shape index: {}]   ;;  %s10260_s8 = inlined_call_operand.hbm [shape: bf16[6,512,128], index: 8, kind: input, shape index: {}]   ;;  %s10261_s9 = inlined_call_operand.hbm [shape: f32[6,1,128], index: 9, kind: input, shape index: {}]   ;;  %s10262_s10 = inlined_call_operand.hbm [shape: f32[2,8,16], index: 10, kind: input, shape index: {}]   ;;  %s10263_s11 = inlined_call_operand.hbm [shape: bf16[16,128], index: 11, kind: input, shape index: {}]   ;;  %s10264_s12 = inlined_call_operand.hbm [shape: f32[1,128], index: 12, kind: input, shape index: {}]   ;;  %s10265_s13 = inlined_call_operand.hbm [shape: f32[1,8,128], index: 13, kind: input, shape index: {}]   ;;  %s10266_s14 = inlined_call_operand.vmem [shape: f32[2,1,128], index: 14, kind: input, shape index: {}]   ;;  %s10267_s15 = inlined_call_operand.vmem [shape: f32[2,2,128], index: 15, kind: input, shape index: {}]   ;;  %s10268_s16 = inlined_call_operand.vmem [shape: f32[2,1,8], index: 16, kind: input, shape index: {}]   ;;  %s10269_s17 = inlined_call_operand.vmem [shape: f32[2,1,2], index: 17, kind: input, shape index: {}]   ;;  %s10270_s18 = inlined_call_operand.hbm [shape: f32[1,1,128], index: 18, kind: input, shape index: {}]   ;;  %s10271_s19 = inlined_call_operand.hbm [shape: f32[1,1,128], index: 19, kind: input, shape index: {}]   ;;  %s10272_s20 = inlined_call_operand.hbm [shape: f32[1,1,128], index: 20, kind: input, shape index: {}]   ;;  %s10273_s21 = inlined_call_operand.hbm [shape: bf16[128,128], index: 21, kind: input, shape index: {}]   ;;  %s10274_s22 = inlined_call_operand.hbm [shape: f32[1,128], index: 22, kind: input, shape index: {}]   ;;  %s10275_s23 = inlined_call_operand.hbm [shape: f32[2,8,128], index: 23, kind: output, shape index: {}]  }
   0x1   :  { %10315 = sst [smem:[#allocation50_spill]] %s10252_s0 }
   0x2   :  { %10316 = sst [smem:[#allocation51_spill]] %s10253_s1  ;;  %s10334_s24 = sld [smem:[#allocation50_spill]] }
   0x3   :  { %10317 = sst [smem:[#allocation52_spill]] %s10254_s2 }
   0x4   :  { %10318 = sst [smem:[#allocation53_spill]] %s10255_s3 }
   0x5   :  { %10319 = sst [smem:[#allocation54_spill]] %s10256_s4 }
   0x6   :  { %10320 = sst [smem:[#allocation55_spill]] %s10257_s5 }
   0x7   :  { %10321 = sst [smem:[#allocation56_spill]] %s10258_s6 }
   0x8   :  { %10322 = sst [smem:[#allocation57_spill]] %s10259_s7 }
   0x9   :  { %10323 = sst [smem:[#allocation58_spill]] %s10261_s9 }
   0xa   :  { %10324 = sst [smem:[#allocation59_spill]] %s10262_s10 }
   0xb   :  { %10325 = sst [smem:[#allocation60_spill]] %s10263_s11 }
   0xc   :  { %10326 = sst [smem:[#allocation61_spill]] %s10265_s13 }
   0xd   :  { %10327 = sst [smem:[#allocation62_spill]] %s10266_s14 }
   0xe   :  { %10328 = sst [smem:[#allocation63_spill]] %s10267_s15 }
   0xf   :  { %10329 = sst [smem:[#allocation64_spill]] %s10268_s16 }
  0x10   :  { %10330 = sst [smem:[#allocation65_spill]] %s10269_s17  ;;  %s7995_s17 = scalar_lea.hbm %s10334_s24, 16 }
  0x11   :  { %10331 = sst [smem:[#allocation66_spill]] %s10271_s19  ;;  %p7996_p0 = scmp.ne.s32.totalorder %s10334_s24, %s7995_s17 }
  0x12   :  { %10332 = sst [smem:[#allocation67_spill]] %s10273_s21  ;;  %p7999_p1 = scmp.lt.u32.totalorder %s7995_s17, %s10334_s24 }
  0x13   :  { %10333 = sst [smem:[#allocation68_spill]] %s10275_s23 }
  0x14   :  { %p8001_p2 = pnand %p7999_p1, %p7996_p0 }
  0x16   :  { %8004 = shalt.err (!%p8001_p2)  }
  0x17   :  { %s8601_s2 = smov [#allocation4]  }
  0x18   :  { %29 = dma.hbm_to_smem %s10334_s24, 16, %s8601_s2, [#allocation3] }
  0x19   :  { %8539 = dma.done.wait [#allocation3], 16 }
  0x1a   :  { %8540 = vsyncadd [#allocation3], 4294967280 }
  0x1b   :  { %31 = sfence }
  0x1c   :  { %32 = vsyncpa [#allocation6], 0 }
  0x1d   :  { %34 = vsyncpa [#allocation6 + $0x1], 0 }
  0x1e   :  { %35 = vsyncpa [#allocation9], 0 }
  0x1f   :  { %37 = vsyncpa [#allocation9 + $0x1], 0 }
  0x20   :  { %38 = vsyncpa [#allocation12], 0 }
  0x21   :  { %40 = vsyncpa [#allocation12 + $0x1], 0 }
  0x22   :  { %41 = vsyncpa [#allocation15], 0 }
  0x23   :  { %43 = vsyncpa [#allocation15 + $0x1], 0 }
  0x24   :  { %44 = vsyncpa [#allocation18], 0 }
  0x25   :  { %46 = vsyncpa [#allocation18 + $0x1], 0 }
  0x26   :  { %47 = vsyncpa [#allocation21], 0 }
  0x27   :  { %48 = vsyncpa [#allocation24], 0 }
  0x28   :  { %49 = vsyncpa [#allocation27], 0 }
  0x29   :  { %50 = vsyncpa [#allocation30], 0 }
  0x2a   :  { %51 = vsyncpa [#allocation7], 0  ;;  %s8775_s17 = smov 0   ;;  %s8777_s7 = smov 0  }
  0x2b   :  { %s8779_s28 = smov 0   ;;  %s8781_s29 = smov 0  }
  0x2c LB: > { %10335 = sst [smem:[#allocation45_spill]] %s8595_s28  ;;  %s8602_s3 = smov [#allocation19]   ;;  %s8599_s29 = sphi %s8781_s29, %s10396_s29   ;;  %s8595_s28 = sphi %s8779_s28, %s10398_s28   ;;  %s8591_s7 = sphi %s8777_s7, %s10400_s7   ;;  %s8587_s17 = sphi %s8775_s17, %s10399_s17  }
  0x2d   : > { %s602_s0 = sshll.u32 %s8602_s3, 4  ;;  %s8796_s4 = sadd.s32 4294967295, %s8599_s29   ;;  %s8802_s0 = int_to_ptr.vmem [resolvable:$true] %s602_s0 }
  0x2e   : > { %10336 = sst [smem:[#allocation46_spill]] %s8796_s4  ;;  %p6480_p3 = scmp.ge.s32.totalorder %s8599_s29, 1 }
  0x2f   : > { %p10290_p4 = scmp.eq.s32.totalorder %s8796_s4, 0  ;;  %p590_p5 = scmp.lt.s32.totalorder %s8599_s29, 7 }
  0x30   : > { %s8603_s24 = smov [#allocation20]   ;;  %s8604_s1 = smov [#allocation23]  }
  0x31   : > { %p8804_p7 = pnand %p6480_p3, %p590_p5  ;;  %s615_s25 = sshll.u32 %s8603_s24, 4  ;;  %s8816_s25 = int_to_ptr.vmem [resolvable:$true] %s615_s25 }
  0x32   : > { %s8818_s26 = sshll.u32 %s8604_s1, 4  ;;  %s10340_s10 = sld [smem:[#allocation59_spill]]  ;;  %s641_s26 = int_to_ptr.vmem [resolvable:$true] %s8818_s26 }
  0x33   : > { %s10337_s30 = scalar_select %p8804_p7, 1, 0 }
  0x34   : > { %p7498_p8 = pneg %p8804_p7 }
  0x35   : > { %10338 = sst [smem:[#allocation47_spill]] %s10337_s30 }
  0x36   : > { %p8812_p9 = pnand %p7498_p8, %p10290_p4 }
  0x38   : > { %s10339_s5 = scalar_select %p8812_p9, 1, 0 }
  0x39   : > { %s8005_s27 = scalar_lea.hbm %s10340_s10, 256  ;;  %p8828_p11 = pneg %p8812_p9 }
  0x3a   : > { %p8006_p10 = scmp.ne.s32.totalorder %s10340_s10, %s8005_s27  ;;  %p8012_p0 = scmp.lt.u32.totalorder %s8005_s27, %s10340_s10 }
  0x3b   : > { %s10341_s24 = scalar_select %p8828_p11, 1, 0 }
  0x3c   : > { %p8008_p12 = pnand %p8828_p11, %p8006_p10 }
  0x3e   : > { %p8009_p13 = pneg %p8008_p12 }
  0x40   : > { %p8014_p1 = pnand %p8012_p0, %p8009_p13 }
  0x42   : > { %8017 = shalt.err (!%p8014_p1)
}
  0x43   : > { %s8018_s23 = scalar_lea.vmem %s8802_s0, 256  ;;  %p8026_p8 = scmp.lt.s32.totalorder %s8802_s0, %s8802_s0 }
  0x44   : > { %p8019_p2 = scmp.ne.s32.totalorder %s8802_s0, %s8018_s23  ;;  %p8027_p6 = scmp.lt.s32.totalorder %s8018_s23, %s8018_s23 }
  0x46   : > { %p8021_p3 = pnand %p8019_p2, %p8828_p11  ;;  %p8028_p10 = por %p8027_p6, %p8026_p8 }
  0x48   : > { %p8022_p5 = pneg %p8021_p3 }
  0x4a   : > { %p8029_p12 = pnand %p8028_p10, %p8022_p5 }
  0x4c   : > { %8032 = shalt.err (!%p8029_p12)
}
  0x4d   : > { %s8605_s2 = smov 128   ;;  %s8606_s15 = smov 8  }
  0x4e   : > { %7501 = dma.hbm_to_vmem [thread:$0]  (!%p8812_p9), %s10340_s10, 256, %s8802_s0, [#allocation18], %s8605_s2, %s8605_s2, %s8606_s15  }
  0x4f   : > { %s10342_s11 = sld [smem:[#allocation60_spill]] }
  0x55   : > { %s8033_s16 = scalar_lea.hbm %s10342_s11, 128 }
  0x56   : > { %p8034_p6 = scmp.ne.s32.totalorder %s10342_s11, %s8033_s16  ;;  %p8040_p1 = scmp.lt.u32.totalorder %s8033_s16, %s10342_s11 }
  0x58   : > { %p8036_p13 = pnand %p8034_p6, %p8828_p11 }
  0x5a   : > { %p8037_p0 = pneg %p8036_p13 }
  0x5c   : > { %p8042_p2 = pnand %p8040_p1, %p8037_p0 }
  0x5e   : > { %8045 = shalt.err (!%p8042_p2)
}
  0x5f   : > { %s8046_s0 = scalar_lea.vmem %s8816_s25, 128  ;;  %p8054_p10 = scmp.lt.s32.totalorder %s8816_s25, %s8816_s25 }
  0x60   : > { %p8047_p3 = scmp.ne.s32.totalorder %s8816_s25, %s8046_s0  ;;  %p8055_p12 = scmp.lt.s32.totalorder %s8046_s0, %s8046_s0 }
  0x62   : > { %p8049_p5 = pnand %p8047_p3, %p8828_p11  ;;  %p8056_p6 = por %p8055_p12, %p8054_p10 }
  0x64   : > { %p8050_p8 = pneg %p8049_p5 }
  0x66   : > { %p8057_p13 = pnand %p8056_p6, %p8050_p8 }
  0x68   : > { %8060 = shalt.err (!%p8057_p13)
}
  0x69   : > { %s10292_s14 = smov 64   ;;  %s10294_s9 = smov 4  }
  0x6a   : > { %7504 = dma.hbm_to_vmem [thread:$0]  (!%p8812_p9), %s10342_s11, 128, %s8816_s25, [#allocation21], %s10292_s14, %s10292_s14, %s10294_s9  }
  0x6b   : > { %s10343_s13 = sld [smem:[#allocation61_spill]] }
  0x71   : > { %s8061_s6 = scalar_lea.hbm %s10343_s13, 128 }
  0x72   : > { %p8062_p0 = scmp.ne.s32.totalorder %s10343_s13, %s8061_s6  ;;  %p8068_p3 = scmp.lt.u32.totalorder %s8061_s6, %s10343_s13 }
  0x74   : > { %p8064_p1 = pnand %p8062_p0, %p8828_p11 }
  0x76   : > { %p8065_p2 = pneg %p8064_p1 }
  0x78   : > { %p8070_p5 = pnand %p8068_p3, %p8065_p2 }
  0x7a   : > { %8073 = shalt.err (!%p8070_p5)
}
  0x7b   : > { %s8074_s0 = scalar_lea.vmem %s641_s26, 128  ;;  %p8082_p6 = scmp.lt.s32.totalorder %s641_s26, %s641_s26 }
  0x7c   : > { %p8075_p8 = scmp.ne.s32.totalorder %s641_s26, %s8074_s0  ;;  %p8083_p13 = scmp.lt.s32.totalorder %s8074_s0, %s8074_s0 }
  0x7e   : > { %p8077_p10 = pnand %p8075_p8, %p8828_p11  ;;  %p8084_p4 = por %p8083_p13, %p8082_p6 }
  0x80   : > { %p8078_p12 = pneg %p8077_p10 }
  0x82   : > { %p8085_p7 = pnand %p8084_p4, %p8078_p12 }
  0x84   : > { %8088 = shalt.err (!%p8085_p7)
}
  0x85   : > { %7510 = dma.hbm_to_vmem [thread:$0]  (!%p8812_p9), %s10343_s13, 128, %s641_s26, [#allocation24]  }
  0x86   : > { %s8609_s30 = smov [#allocation26]   ;;  %s8610_s15 = smov [#allocation29]  }
  0x87   : > { %s674_s2 = sshll.u32 %s8609_s30, 4  ;;  %s695_s6 = sshll.u32 %s8610_s15, 4  ;;  %s675_s2 = int_to_ptr.vmem [resolvable:$true] %s674_s2  ;;  %s696_s6 = int_to_ptr.vmem [resolvable:$true] %s695_s6 }
  0x88   : > { %s10344_s19 = sld [smem:[#allocation66_spill]] }
  0x8e   : > { %s8089_s1 = scalar_lea.hbm %s10344_s19, 16 }
  0x8f   : > { %p8090_p4 = scmp.ne.s32.totalorder %s10344_s19, %s8089_s1  ;;  %p8096_p1 = scmp.lt.u32.totalorder %s8089_s1, %s10344_s19 }
  0x91   : > { %p8092_p7 = pnand %p8090_p4, %p8828_p11 }
  0x93   : > { %p8093_p0 = pneg %p8092_p7 }
  0x95   : > { %p8098_p2 = pnand %p8096_p1, %p8093_p0 }
  0x97   : > { %8101 = shalt.err (!%p8098_p2)
}
  0x98   : > { %s8102_s26 = scalar_lea.vmem %s675_s2, 16  ;;  %s8109_s16 = scalar_lea.vmem %s675_s2, 32 }
  0x99   : > { %p8103_p3 = scmp.ne.s32.totalorder %s675_s2, %s8102_s26  ;;  %p8110_p10 = scmp.lt.s32.totalorder %s675_s2, %s675_s2 }
  0x9a   : > { %p8111_p12 = scmp.lt.s32.totalorder %s8109_s16, %s8102_s26 }
  0x9b   : > { %p8105_p5 = pnand %p8103_p3, %p8828_p11 }
  0x9c   : > { %p8112_p6 = por %p8111_p12, %p8110_p10 }
  0x9d   : > { %p8106_p8 = pneg %p8105_p5 }
  0x9f   : > { %p8113_p13 = pnand %p8112_p6, %p8106_p8 }
  0xa1   : > { %8116 = shalt.err (!%p8113_p13)
}
  0xa2   : > { %7516 = dma.hbm_to_vmem [thread:$0]  (!%p8812_p9), %s10344_s19, 16, %s675_s2, [#allocation27]  }
  0xa3   : > { %s10345_s21 = sld [smem:[#allocation67_spill]] }
  0xa9   : > { %s8117_s3 = scalar_lea.hbm %s10345_s21, 1024 }
  0xaa   : > { %p8118_p4 = scmp.ne.s32.totalorder %s10345_s21, %s8117_s3  ;;  %p8124_p1 = scmp.lt.u32.totalorder %s8117_s3, %s10345_s21 }
  0xac   : > { %p8120_p7 = pnand %p8118_p4, %p8828_p11 }
  0xae   : > { %p8121_p0 = pneg %p8120_p7 }
  0xb0   : > { %p8126_p2 = pnand %p8124_p1, %p8121_p0 }
  0xb2   : > { %8129 = shalt.err (!%p8126_p2)
}
  0xb3   : > { %s8130_s26 = scalar_lea.vmem %s696_s6, 1024  ;;  %p8138_p10 = scmp.lt.s32.totalorder %s696_s6, %s696_s6 }
  0xb4   : > { %p8131_p3 = scmp.ne.s32.totalorder %s696_s6, %s8130_s26  ;;  %p8139_p12 = scmp.lt.s32.totalorder %s8130_s26, %s8130_s26 }
  0xb6   : > { %p8133_p5 = pnand %p8131_p3, %p8828_p11  ;;  %p8140_p6 = por %p8139_p12, %p8138_p10 }
  0xb8   : > { %p8134_p8 = pneg %p8133_p5 }
  0xba   : > { %p8141_p13 = pnand %p8140_p6, %p8134_p8 }
  0xbc   : > { %8144 = shalt.err (!%p8141_p13)
}
  0xbd   : > { %s10346_s2 = smov 64   ;;  %s8934_s15 = sadd.s32 1, %s8599_s29  }
  0xbe   : > { %7522 = dma.hbm_to_vmem [thread:$0]  (!%p8812_p9), %s10345_s21, 1024, %s696_s6, [#allocation30], %s10346_s2, %s10346_s2, %s10294_s9  }
  0xbf   : > { %10347 = sst [smem:[#allocation48_spill]] %s8934_s15  ;;  %s61_s14 = ssub.s32 %s8599_s29, %s8934_s15 }
  0xc0   : > { %s64_s27 = sadd.s32 1, %s8595_s28  ;;  %p62_p4 = scmp.eq.s32.totalorder %s61_s14, 0 }
  0xc1   : > { %p71_p7 = scmp.ne.s32.totalorder %s8595_s28, %s8591_s7  ;;  %p72_p0 = scmp.eq.s32.totalorder %s8599_s29, 0 }
  0xc2   : > { %p77_p1 = scmp.ne.s32.totalorder %s8591_s7, %s8587_s17  ;;  %p10349_p3 = scmp.eq.s32.totalorder %s8796_s4, 0 }
  0xc3   : > { %s8945_s3 = scalar_select %p62_p4, %s8595_s28, %s64_s27  }
  0xc4   : > { %p73_p2 = por %p72_p0, %p71_p7  ;;  %p8949_p5 = por %p10349_p3, %p77_p1 }
  0xc5   : > { %10348 = sst [smem:[#allocation49_spill]] %s8945_s3  ;;  %p7560_p8 = scmp.lt.s32.totalorder %s8599_s29, 6 }
  0xc6   : > { %s10350_s1 = scalar_select %p8949_p5, 1, 0 }
  0xc7   : > { %s8955_s23 = sand.u32 1, %s8595_s28   ;;  %s8958_s6 = sshll.u32 %s8599_s29, 4 }
  0xc8   : > { %s8961_s0 = sand.u32 1, %s8599_s29   ;;  %p8963_p10 = pnand %p7560_p8, %p73_p2 }
  0xc9   : > { %s10352_s16 = sld [smem:[#allocation52_spill]]  ;;  %s740_s14 = scalar_lea.vmem [#allocation8], %s8955_s23 }
  0xca   : > { %s10351_s17 = scalar_select %p8963_p10, 1, 0 }
  0xcb   : > { %s747_s27 = sshll.u32 %s740_s14, 4  ;;  %p8981_p6 = pneg %p8963_p10  ;;  %s8974_s27 = int_to_ptr.vmem [resolvable:$true] %s747_s27 }
  0xcd   : > { %s10353_s11 = scalar_select %p8981_p6, 1, 0 }
  0xcf   : > { %s8971_s30 = scalar_lea.hbm %s10352_s16, %s8958_s6  ;;  %s8150_s13 = scalar_lea.hbm %s10352_s16, 96 }
  0xd0   : > { %s8145_s10 = scalar_lea.hbm %s8971_s30, 16  ;;  %p8151_p7 = scmp.lt.u32.totalorder %s8971_s30, %s10352_s16 }
  0xd1   : > { %p8146_p12 = scmp.ne.s32.totalorder %s8971_s30, %s8145_s10  ;;  %p8152_p0 = scmp.lt.u32.totalorder %s8150_s13, %s8145_s10 }
  0xd2   : > { %p8154_p2 = scmp.lt.u32.totalorder %s8145_s10, %s8971_s30 }
  0xd3   : > { %p8148_p13 = pnand %p8981_p6, %p8146_p12  ;;  %p8153_p1 = por %p8152_p0, %p8151_p7 }
  0xd5   : > { %p8149_p4 = pneg %p8148_p13  ;;  %p8155_p3 = por %p8154_p2, %p8153_p1 }
  0xd7   : > { %p8156_p8 = pnand %p8155_p3, %p8149_p4 }
  0xd9   : > { %8159 = shalt.err (!%p8156_p8)
}
  0xda   : > { %s8160_s9 = scalar_lea.vmem %s8974_s27, 16  ;;  %s8611_s25 = smov [#allocation8]  }
  0xdb   : > { %p8161_p12 = scmp.ne.s32.totalorder %s8974_s27, %s8160_s9  ;;  %s8165_s26 = sshll.u32 %s8611_s25, 4  ;;  %s8166_s26 = int_to_ptr.vmem [resolvable:$false] %s8165_s26 }
  0xdc   : > { %s8167_s19 = scalar_lea.vmem %s8166_s26, 32  ;;  %p8168_p9 = scmp.lt.s32.totalorder %s8974_s27, %s8166_s26 }
  0xdd   : > { %p8163_p13 = pnand %p8161_p12, %p8981_p6  ;;  %p8169_p11 = scmp.lt.s32.totalorder %s8167_s19, %s8160_s9 }
  0xdf   : > { %p8164_p5 = pneg %p8163_p13  ;;  %p8170_p7 = por %p8169_p11, %p8168_p9 }
  0xe1   : > { %p8171_p0 = pnand %p8170_p7, %p8164_p5 }
  0xe3   : > { %8174 = shalt.err (!%p8171_p0)
}
  0xe4   : > { %s10354_s10 = scalar_lea.sflag [#allocation9], %s8961_s0  ;;  %s7438_s13 = smul.u32 12, %s8955_s23 }
  0xe5   : > { %7532 = dma.hbm_to_vmem [thread:$0]  (!%p8963_p10), %s8971_s30, 16, %s8974_s27, %s10354_s10  }
  0xe6   : > { %s7439_s14 = smul.u32 192, %s8599_s29  ;;  %s6498_s25 = sshll.u32 %s8955_s23, 3 }
  0xe7   : > { %s10355_s19 = sld [smem:[#allocation55_spill]]  ;;  %s787_s21 = scalar_lea.vmem [#allocation11], %s7438_s13 }
  0xe8   : > { %s795_s3 = sshll.u32 %s787_s21, 4  ;;  %s6850_s28 = sshll.u32 %s8599_s29, 7  ;;  %s9014_s3 = int_to_ptr.vmem [resolvable:$true] %s795_s3 }
  0xe9   : > { %s10309_s15 = scalar_lea.sflag [#allocation12], %s8961_s0 }
  0xed   : > { %s9012_s16 = scalar_lea.hbm %s10355_s19, %s7439_s14  ;;  %s8180_s10 = scalar_lea.hbm %s10355_s19, 1152 }
  0xee   : > { %s8175_s4 = scalar_lea.hbm %s9012_s16, 192  ;;  %p8181_p4 = scmp.lt.u32.totalorder %s9012_s16, %s10355_s19 }
  0xef   : > { %p8176_p9 = scmp.ne.s32.totalorder %s9012_s16, %s8175_s4  ;;  %p8182_p1 = scmp.lt.u32.totalorder %s8180_s10, %s8175_s4 }
  0xf0   : > { %p8184_p3 = scmp.lt.u32.totalorder %s8175_s4, %s9012_s16 }
  0xf1   : > { %p8178_p11 = pnand %p8176_p9, %p8981_p6  ;;  %p8183_p2 = por %p8182_p1, %p8181_p4 }
  0xf3   : > { %p8179_p5 = pneg %p8178_p11  ;;  %p8185_p8 = por %p8184_p3, %p8183_p2 }
  0xf5   : > { %p8186_p12 = pnand %p8185_p8, %p8179_p5 }
  0xf7   : > { %8189 = shalt.err (!%p8186_p12)
}
  0xf8   : > { %s8190_s21 = scalar_lea.vmem %s9014_s3, 192  ;;  %s8612_s13 = smov [#allocation11]  }
  0xf9   : > { %p8191_p13 = scmp.ne.s32.totalorder %s9014_s3, %s8190_s21  ;;  %s8195_s26 = sshll.u32 %s8612_s13, 4  ;;  %s8196_s26 = int_to_ptr.vmem [resolvable:$false] %s8195_s26 }
  0xfa   : > { %s8197_s30 = scalar_lea.vmem %s8196_s26, 384  ;;  %p8198_p9 = scmp.lt.s32.totalorder %s9014_s3, %s8196_s26 }
  0xfb   : > { %p8193_p7 = pnand %p8191_p13, %p8981_p6  ;;  %p8199_p11 = scmp.lt.s32.totalorder %s8197_s30, %s8190_s21 }
  0xfd   : > { %p8194_p0 = pneg %p8193_p7  ;;  %p8200_p4 = por %p8199_p11, %p8198_p9 }
  0xff   : > { %p8201_p1 = pnand %p8200_p4, %p8194_p0 }
 0x101   : > { %8204 = shalt.err (!%p8201_p1)
}
 0x102   : > { %7538 = dma.hbm_to_vmem [thread:$0]  (!%p8963_p10), %s9012_s16, 192, %s9014_s3, %s10309_s15  }
 0x103   : > { %s10356_s10 = sld [smem:[#allocation57_spill]]  ;;  %s827_s9 = scalar_lea.vmem [#allocation14], %s6498_s25 }
 0x104   : > { %s835_s21 = sshll.u32 %s827_s9, 4  ;;  %s10313_s13 = scalar_lea.sflag [#allocation15], %s8961_s0  ;;  %s836_s21 = int_to_ptr.vmem [resolvable:$true] %s835_s21 }
 0x109   : > { %s9046_s14 = scalar_lea.hbm %s10356_s10, %s6850_s28  ;;  %s8210_s30 = scalar_lea.hbm %s10356_s10, 768 }
 0x10a   : > { %s8205_s26 = scalar_lea.hbm %s9046_s14, 128  ;;  %p8211_p8 = scmp.lt.u32.totalorder %s9046_s14, %s10356_s10 }
 0x10b   : > { %p8206_p5 = scmp.ne.s32.totalorder %s9046_s14, %s8205_s26  ;;  %p8212_p12 = scmp.lt.u32.totalorder %s8210_s30, %s8205_s26 }
 0x10c   : > { %p8214_p7 = scmp.lt.u32.totalorder %s8205_s26, %s9046_s14 }
 0x10d   : > { %p8208_p2 = pnand %p8206_p5, %p8981_p6  ;;  %p8213_p13 = por %p8212_p12, %p8211_p8 }
 0x10f   : > { %p8209_p3 = pneg %p8208_p2  ;;  %p8215_p0 = por %p8214_p7, %p8213_p13 }
 0x111   : > { %p8216_p9 = pnand %p8215_p0, %p8209_p3 }
 0x113   : > { %8219 = shalt.err (!%p8216_p9)
}
 0x114   : > { %s8220_s25 = scalar_lea.vmem %s836_s21, 128  ;;  %s8613_s27 = smov [#allocation14]  }
 0x115   : > { %p8221_p11 = scmp.ne.s32.totalorder %s836_s21, %s8220_s25  ;;  %s8225_s9 = sshll.u32 %s8613_s27, 4  ;;  %s8226_s9 = int_to_ptr.vmem [resolvable:$false] %s8225_s9 }
 0x116   : > { %s8227_s3 = scalar_lea.vmem %s8226_s9, 256  ;;  %p8228_p5 = scmp.lt.s32.totalorder %s836_s21, %s8226_s9 }
 0x117   : > { %p8223_p4 = pnand %p8221_p11, %p8981_p6  ;;  %p8229_p2 = scmp.lt.s32.totalorder %s8227_s3, %s8220_s25 }
 0x119   : > { %p8224_p1 = pneg %p8223_p4  ;;  %p8230_p10 = por %p8229_p2, %p8228_p5 }
 0x11b   : > { %p8231_p8 = pnand %p8230_p10, %p8224_p1 }
 0x11d   : > { %8234 = shalt.err (!%p8231_p8)
}
 0x11e   : > { %p10357_p12 = scmp.ne.s32.totalorder %s10351_s17, 0  ;;  %s8614_s26 = smov [#allocation22]  }
 0x11f   : > { %s629_s16 = sshll.u32 %s8614_s26, 4  ;;  %s8615_s30 = smov [#allocation25]   ;;  %s630_s16 = int_to_ptr.vmem [resolvable:$true] %s629_s16 }
 0x120   : > { %7544 = dma.hbm_to_vmem [thread:$0]  (!%p10357_p12), %s9046_s14, 128, %s836_s21, %s10313_s13  }
 0x121   : > { %s663_s28 = sshll.u32 %s8615_s30, 4  ;;  %s8235_s9 = scalar_lea.hbm %s10264_s12, 16  ;;  %s664_s28 = int_to_ptr.vmem [resolvable:$true] %s663_s28 }
 0x122   : > { %p8236_p10 = scmp.ne.s32.totalorder %s10264_s12, %s8235_s9  ;;  %p10358_p3 = scmp.ne.s32.totalorder %s10341_s24, 0 }
 0x123   : > { %p8242_p0 = scmp.lt.u32.totalorder %s8235_s9, %s10264_s12 }
 0x124   : > { %p8238_p13 = pnand %p8236_p10, %p10358_p3 }
 0x126   : > { %p8239_p7 = pneg %p8238_p13 }
 0x128   : > { %p8244_p9 = pnand %p8242_p0, %p8239_p7 }
 0x12a   : > { %8247 = shalt.err (!%p8244_p9)
}
 0x12b   : > { %s8248_s14 = scalar_lea.vmem %s630_s16, 16  ;;  %s8255_s21 = scalar_lea.vmem %s630_s16, 32 }
 0x12c   : > { %p8249_p11 = scmp.ne.s32.totalorder %s630_s16, %s8248_s14  ;;  %p8256_p5 = scmp.lt.s32.totalorder %s630_s16, %s630_s16 }
 0x12d   : > { %p8257_p2 = scmp.lt.s32.totalorder %s8255_s21, %s8248_s14 }
 0x12e   : > { %p8251_p4 = pnand %p8249_p11, %p10358_p3 }
 0x12f   : > { %p8258_p8 = por %p8257_p2, %p8256_p5 }
 0x130   : > { %p8252_p1 = pneg %p8251_p4 }
 0x132   : > { %p8259_p12 = pnand %p8258_p8, %p8252_p1 }
 0x134   : > { %8262 = shalt.err (!%p8259_p12)
}
 0x135   : > { %p10359_p10 = scmp.ne.s32.totalorder %s10339_s5, 0  ;;  %s8263_s4 = scalar_lea.hbm %s10270_s18, 16 }
 0x136   : > { %p8264_p13 = scmp.ne.s32.totalorder %s10270_s18, %s8263_s4  ;;  %p8270_p12 = scmp.lt.u32.totalorder %s8263_s4, %s10270_s18 }
 0x137   : > { %7507 = dma.hbm_to_vmem [thread:$0]  (!%p10359_p10), %s10264_s12, 16, %s630_s16, [#allocation21]  }
 0x138   : > { %p8266_p7 = pnand %p8264_p13, %p10358_p3 }
 0x13a   : > { %p8267_p0 = pneg %p8266_p7 }
 0x13c   : > { %p8272_p9 = pnand %p8270_p12, %p8267_p0 }
 0x13e   : > { %8275 = shalt.err (!%p8272_p9)
}
 0x13f   : > { %s8276_s14 = scalar_lea.vmem %s664_s28, 16  ;;  %s8283_s16 = scalar_lea.vmem %s664_s28, 32 }
 0x140   : > { %p8277_p11 = scmp.ne.s32.totalorder %s664_s28, %s8276_s14  ;;  %p8284_p5 = scmp.lt.s32.totalorder %s664_s28, %s664_s28 }
 0x141   : > { %p8285_p2 = scmp.lt.s32.totalorder %s8283_s16, %s8276_s14 }
 0x142   : > { %p8279_p4 = pnand %p8277_p11, %p10358_p3 }
 0x143   : > { %p8286_p8 = por %p8285_p2, %p8284_p5 }
 0x144   : > { %p8280_p1 = pneg %p8279_p4 }
 0x146   : > { %p8287_p6 = pnand %p8286_p8, %p8280_p1 }
 0x148   : > { %8290 = shalt.err (!%p8287_p6)
}
 0x149   : > { %7513 = dma.hbm_to_vmem [thread:$0]  (!%p10359_p10), %s10270_s18, 16, %s664_s28, [#allocation24]  }
 0x14a   : > { %s8616_s30 = smov [#allocation28]   ;;  %s8617_s10 = smov [#allocation31]  }
 0x14b   : > { %s685_s15 = sshll.u32 %s8616_s30, 4  ;;  %s709_s4 = sshll.u32 %s8617_s10, 4  ;;  %s686_s15 = int_to_ptr.vmem [resolvable:$true] %s685_s15  ;;  %s710_s4 = int_to_ptr.vmem [resolvable:$true] %s709_s4 }
 0x14c   : > { %s8291_s25 = scalar_lea.hbm %s10272_s20, 16 }
 0x14d   : > { %p8292_p6 = scmp.ne.s32.totalorder %s10272_s20, %s8291_s25  ;;  %p8298_p0 = scmp.lt.u32.totalorder %s8291_s25, %s10272_s20 }
 0x14f   : > { %p8294_p13 = pnand %p8292_p6, %p10358_p3 }
 0x151   : > { %p8295_p7 = pneg %p8294_p13 }
 0x153   : > { %p8300_p12 = pnand %p8298_p0, %p8295_p7 }
 0x155   : > { %8303 = shalt.err (!%p8300_p12)
}
 0x156   : > { %s8304_s28 = scalar_lea.vmem %s686_s15, 16  ;;  %s8311_s26 = scalar_lea.vmem %s686_s15, 32 }
 0x157   : > { %p8305_p9 = scmp.ne.s32.totalorder %s686_s15, %s8304_s28  ;;  %p8312_p1 = scmp.lt.s32.totalorder %s686_s15, %s686_s15 }
 0x158   : > { %p8313_p5 = scmp.lt.s32.totalorder %s8311_s26, %s8304_s28 }
 0x159   : > { %p8307_p11 = pnand %p8305_p9, %p10358_p3 }
 0x15a   : > { %p8314_p2 = por %p8313_p5, %p8312_p1 }
 0x15b   : > { %p8308_p4 = pneg %p8307_p11 }
 0x15d   : > { %p8315_p8 = pnand %p8314_p2, %p8308_p4 }
 0x15f   : > { %8318 = shalt.err (!%p8315_p8)
}
 0x160   : > { %7519 = dma.hbm_to_vmem [thread:$0]  (!%p10359_p10), %s10272_s20, 16, %s686_s15, [#allocation27]  }
 0x161   : > { %s8319_s25 = scalar_lea.hbm %s10274_s22, 16 }
 0x162   : > { %p8320_p6 = scmp.ne.s32.totalorder %s10274_s22, %s8319_s25  ;;  %p8326_p0 = scmp.lt.u32.totalorder %s8319_s25, %s10274_s22 }
 0x164   : > { %p8322_p13 = pnand %p8320_p6, %p10358_p3 }
 0x166   : > { %p8323_p7 = pneg %p8322_p13 }
 0x168   : > { %p8328_p12 = pnand %p8326_p0, %p8323_p7 }
 0x16a   : > { %8331 = shalt.err (!%p8328_p12)
}
 0x16b   : > { %s8332_s28 = scalar_lea.vmem %s710_s4, 16  ;;  %s8339_s15 = scalar_lea.vmem %s710_s4, 32 }
 0x16c   : > { %p8333_p9 = scmp.ne.s32.totalorder %s710_s4, %s8332_s28  ;;  %p8340_p1 = scmp.lt.s32.totalorder %s710_s4, %s710_s4 }
 0x16d   : > { %p8341_p5 = scmp.lt.s32.totalorder %s8339_s15, %s8332_s28 }
 0x16e   : > { %p8335_p11 = pnand %p8333_p9, %p10358_p3 }
 0x16f   : > { %p8342_p2 = por %p8341_p5, %p8340_p1 }
 0x170   : > { %p8336_p4 = pneg %p8335_p11 }
 0x172   : > { %p8343_p8 = pnand %p8342_p2, %p8336_p4 }
 0x174   : > { %8346 = shalt.err (!%p8343_p8)
}
 0x175   : > { %7525 = dma.hbm_to_vmem [thread:$0]  (!%p10359_p10), %s10274_s22, 16, %s710_s4, [#allocation30]  }
 0x176   : > { %s10360_s27 = sld [smem:[#allocation51_spill]]  ;;  %s723_s5 = scalar_lea.vmem [#allocation5], %s8955_s23 }
 0x177   : > { %s730_s25 = sshll.u32 %s723_s5, 4  ;;  %s7436_s3 = smul.u32 768, %s8955_s23  ;;  %s9150_s25 = int_to_ptr.vmem [resolvable:$true] %s730_s25 }
 0x178   : > { %s7437_s14 = smul.u32 12288, %s8599_s29  ;;  %s721_s16 = scalar_lea.sflag [#allocation6], %s8955_s23 }
 0x179   : > { %p10361_p6 = scmp.ne.s32.totalorder %s10353_s11, 0 }
 0x17c   : > { %s9146_s9 = scalar_lea.hbm %s10360_s27, %s8958_s6  ;;  %s8352_s15 = scalar_lea.hbm %s10360_s27, 96 }
 0x17d   : > { %s8347_s21 = scalar_lea.hbm %s9146_s9, 16  ;;  %p8353_p7 = scmp.lt.u32.totalorder %s9146_s9, %s10360_s27 }
 0x17e   : > { %p8348_p3 = scmp.ne.s32.totalorder %s9146_s9, %s8347_s21  ;;  %p8354_p0 = scmp.lt.u32.totalorder %s8352_s15, %s8347_s21 }
 0x17f   : > { %p8356_p9 = scmp.lt.u32.totalorder %s8347_s21, %s9146_s9 }
 0x180   : > { %p8350_p10 = pnand %p8348_p3, %p10361_p6  ;;  %p8355_p12 = por %p8354_p0, %p8353_p7 }
 0x182   : > { %p8351_p13 = pneg %p8350_p10  ;;  %p8357_p11 = por %p8356_p9, %p8355_p12 }
 0x184   : > { %p8358_p4 = pnand %p8357_p11, %p8351_p13 }
 0x186   : > { %8361 = shalt.err (!%p8358_p4)
}
 0x187   : > { %s8362_s24 = scalar_lea.vmem %s9150_s25, 16  ;;  %s8618_s10 = smov [#allocation5]  }
 0x188   : > { %p8363_p1 = scmp.ne.s32.totalorder %s9150_s25, %s8362_s24  ;;  %s8367_s5 = sshll.u32 %s8618_s10, 4  ;;  %s8368_s5 = int_to_ptr.vmem [resolvable:$false] %s8367_s5 }
 0x189   : > { %s8369_s4 = scalar_lea.vmem %s8368_s5, 32  ;;  %p8370_p8 = scmp.lt.s32.totalorder %s9150_s25, %s8368_s5 }
 0x18a   : > { %p8365_p5 = pnand %p8363_p1, %p10361_p6  ;;  %p8371_p3 = scmp.lt.s32.totalorder %s8369_s4, %s8362_s24 }
 0x18c   : > { %p8366_p2 = pneg %p8365_p5  ;;  %p8372_p10 = por %p8371_p3, %p8370_p8 }
 0x18e   : > { %p8373_p7 = pnand %p8372_p10, %p8366_p2 }
 0x190   : > { %8376 = shalt.err (!%p8373_p7)
}
 0x191   : > { %p10362_p13 = scmp.ne.s32.totalorder %s10351_s17, 0  ;;  %s10363_s15 = sld [smem:[#allocation54_spill]] }
 0x192   : > { %s766_s30 = scalar_lea.vmem [#allocation10], %s7436_s3 }
 0x193   : > { %7529 = dma.hbm_to_vmem [thread:$0]  (!%p10362_p13), %s9146_s9, 16, %s9150_s25, %s721_s16  }
 0x194   : > { %s773_s24 = sshll.u32 %s766_s30, 4  ;;  %s9184_s24 = int_to_ptr.vmem [resolvable:$true] %s773_s24 }
 0x197   : > { %s9180_s26 = scalar_lea.hbm %s10363_s15, %s7437_s14  ;;  %s8382_s16 = scalar_lea.hbm %s10363_s15, 73728 }
 0x198   : > { %s8377_s10 = scalar_lea.hbm %s9180_s26, 12288  ;;  %p8383_p11 = scmp.lt.u32.totalorder %s9180_s26, %s10363_s15 }
 0x199   : > { %p8378_p0 = scmp.ne.s32.totalorder %s9180_s26, %s8377_s10  ;;  %p8384_p4 = scmp.lt.u32.totalorder %s8382_s16, %s8377_s10 }
 0x19a   : > { %p8386_p5 = scmp.lt.u32.totalorder %s8377_s10, %s9180_s26 }
 0x19b   : > { %p8380_p12 = pnand %p8378_p0, %p10361_p6  ;;  %p8385_p1 = por %p8384_p4, %p8383_p11 }
 0x19d   : > { %p8381_p9 = pneg %p8380_p12  ;;  %p8387_p2 = por %p8386_p5, %p8385_p1 }
 0x19f   : > { %p8388_p8 = pnand %p8387_p2, %p8381_p9 }
 0x1a1   : > { %8391 = shalt.err (!%p8388_p8)
}
 0x1a2   : > { %s8392_s3 = scalar_lea.vmem %s9184_s24, 12288  ;;  %s8619_s4 = smov [#allocation10]  }
 0x1a3   : > { %p8393_p3 = scmp.ne.s32.totalorder %s9184_s24, %s8392_s3  ;;  %s8397_s21 = sshll.u32 %s8619_s4, 4  ;;  %s8398_s21 = int_to_ptr.vmem [resolvable:$false] %s8397_s21 }
 0x1a4   : > { %s8399_s28 = scalar_lea.vmem %s8398_s21, 24576  ;;  %p8400_p0 = scmp.lt.s32.totalorder %s9184_s24, %s8398_s21 }
 0x1a5   : > { %p8395_p10 = pnand %p8393_p3, %p10361_p6  ;;  %p8401_p12 = scmp.lt.s32.totalorder %s8399_s28, %s8392_s3 }
 0x1a7   : > { %p8396_p7 = pneg %p8395_p10  ;;  %p8402_p11 = por %p8401_p12, %p8400_p0 }
 0x1a9   : > { %p8403_p4 = pnand %p8402_p11, %p8396_p7 }
 0x1ab   : > { %8406 = shalt.err (!%p8403_p4)
}
 0x1ac   : > { %s8620_s30 = smov 768   ;;  %s8621_s10 = smov 48  }
 0x1ad   : > { %s10364_s9 = scalar_lea.sflag [#allocation9], %s8961_s0  ;;  %s6495_s25 = sshll.u32 %s8955_s23, 9 }
 0x1ae   : > { %7535 = dma.hbm_to_vmem [thread:$0]  (!%p10362_p13), %s9180_s26, 12288, %s9184_s24, %s10364_s9, %s8620_s30, %s8620_s30, %s8621_s10  }
 0x1af   : > { %s6849_s16 = sshll.u32 %s8599_s29, 13  ;;  %s10365_s3 = sld [smem:[#allocation56_spill]] }
 0x1b0   : > { %s806_s21 = scalar_lea.vmem [#allocation13], %s6495_s25 }
 0x1b1   : > { %s813_s28 = sshll.u32 %s806_s21, 4  ;;  %s9216_s28 = int_to_ptr.vmem [resolvable:$true] %s813_s28 }
 0x1b5   : > { %s9214_s4 = scalar_lea.hbm %s10365_s3, %s6849_s16  ;;  %s8412_s30 = scalar_lea.hbm %s10365_s3, 49152 }
 0x1b6   : > { %s8407_s13 = scalar_lea.hbm %s9214_s4, 8192  ;;  %p8413_p2 = scmp.lt.u32.totalorder %s9214_s4, %s10365_s3 }
 0x1b7   : > { %p8408_p9 = scmp.ne.s32.totalorder %s9214_s4, %s8407_s13  ;;  %p8414_p8 = scmp.lt.u32.totalorder %s8412_s30, %s8407_s13 }
 0x1b8   : > { %p8416_p10 = scmp.lt.u32.totalorder %s8407_s13, %s9214_s4 }
 0x1b9   : > { %p8410_p1 = pnand %p8408_p9, %p10361_p6  ;;  %p8415_p3 = por %p8414_p8, %p8413_p2 }
 0x1bb   : > { %p8411_p5 = pneg %p8410_p1  ;;  %p8417_p7 = por %p8416_p10, %p8415_p3 }
 0x1bd   : > { %p8418_p0 = pnand %p8417_p7, %p8411_p5 }
 0x1bf   : > { %8421 = shalt.err (!%p8418_p0)
}
 0x1c0   : > { %s8422_s25 = scalar_lea.vmem %s9216_s28, 8192  ;;  %s8622_s16 = smov [#allocation13]  }
 0x1c1   : > { %p8423_p12 = scmp.ne.s32.totalorder %s9216_s28, %s8422_s25  ;;  %s8427_s14 = sshll.u32 %s8622_s16, 4  ;;  %s8428_s14 = int_to_ptr.vmem [resolvable:$false] %s8427_s14 }
 0x1c2   : > { %s8429_s5 = scalar_lea.vmem %s8428_s14, 16384  ;;  %p8430_p9 = scmp.lt.s32.totalorder %s9216_s28, %s8428_s14 }
 0x1c3   : > { %p8425_p11 = pnand %p8423_p12, %p10361_p6  ;;  %p8431_p1 = scmp.lt.s32.totalorder %s8429_s5, %s8422_s25 }
 0x1c5   : > { %p8426_p4 = pneg %p8425_p11  ;;  %p8432_p2 = por %p8431_p1, %p8430_p9 }
 0x1c7   : > { %p8433_p8 = pnand %p8432_p2, %p8426_p4 }
 0x1c9   : > { %8436 = shalt.err (!%p8433_p8)
}
 0x1ca   : > { %s8623_s13 = smov 512   ;;  %s8624_s21 = smov 32  }
 0x1cb   : > { %s10366_s26 = scalar_lea.sflag [#allocation12], %s8961_s0  ;;  %s6501_s24 = sshll.u32 %s8955_s23, 8 }
 0x1cc   : > { %7541 = dma.hbm_to_vmem [thread:$0]  (!%p10362_p13), %s9214_s4, 8192, %s9216_s28, %s10366_s26, %s8623_s13, %s8623_s13, %s8624_s21  }
 0x1cd   : > { %s6851_s30 = sshll.u32 %s8599_s29, 12  ;;  %s846_s16 = scalar_lea.vmem [#allocation16], %s6501_s24 }
 0x1ce   : > { %s9246_s25 = scalar_lea.hbm %s10260_s8, %s6851_s30  ;;  %s853_s14 = sshll.u32 %s846_s16, 4  ;;  %s9248_s14 = int_to_ptr.vmem [resolvable:$true] %s853_s14 }
 0x1cf   : > { %s8437_s5 = scalar_lea.hbm %s9246_s25, 4096  ;;  %s8442_s28 = scalar_lea.hbm %s10260_s8, 24576 }
 0x1d0   : > { %p8438_p5 = scmp.ne.s32.totalorder %s9246_s25, %s8437_s5  ;;  %p8443_p7 = scmp.lt.u32.totalorder %s9246_s25, %s10260_s8 }
 0x1d1   : > { %p8444_p0 = scmp.lt.u32.totalorder %s8442_s28, %s8437_s5  ;;  %p8446_p11 = scmp.lt.u32.totalorder %s8437_s5, %s9246_s25 }
 0x1d2   : > { %p8440_p3 = pnand %p8438_p5, %p10361_p6 }
 0x1d3   : > { %p8445_p12 = por %p8444_p0, %p8443_p7 }
 0x1d4   : > { %p8441_p10 = pneg %p8440_p3 }
 0x1d5   : > { %p8447_p4 = por %p8446_p11, %p8445_p12 }
 0x1d7   : > { %p8448_p9 = pnand %p8447_p4, %p8441_p10 }
 0x1d9   : > { %8451 = shalt.err (!%p8448_p9)
}
 0x1da   : > { %s8452_s26 = scalar_lea.vmem %s9248_s14, 4096  ;;  %s8625_s24 = smov [#allocation16]  }
 0x1db   : > { %p8453_p1 = scmp.ne.s32.totalorder %s9248_s14, %s8452_s26  ;;  %s8457_s30 = sshll.u32 %s8625_s24, 4  ;;  %s8458_s30 = int_to_ptr.vmem [resolvable:$false] %s8457_s30 }
 0x1dc   : > { %s8459_s10 = scalar_lea.vmem %s8458_s30, 8192  ;;  %p8460_p5 = scmp.lt.s32.totalorder %s9248_s14, %s8458_s30 }
 0x1dd   : > { %p8455_p2 = pnand %p8453_p1, %p10361_p6  ;;  %p8461_p3 = scmp.lt.s32.totalorder %s8459_s10, %s8452_s26 }
 0x1df   : > { %p8456_p8 = pneg %p8455_p2  ;;  %p8462_p7 = por %p8461_p3, %p8460_p5 }
 0x1e1   : > { %p8463_p0 = pnand %p8462_p7, %p8456_p8 }
 0x1e3   : > { %8466 = shalt.err (!%p8463_p0)
}
 0x1e4   : > { %s10367_s9 = smov 4   ;;  %s10368_s16 = scalar_lea.sflag [#allocation15], %s8961_s0 }
 0x1e5   : > { %7547 = dma.hbm_to_vmem [thread:$0]  (!%p10362_p13), %s9246_s25, 4096, %s9248_s14, %s10368_s16, %s10346_s2, %s10346_s2, %s10367_s9  }
 0x1e6   : > { %s10369_s29 = sld [smem:[#allocation58_spill]]  ;;  %s866_s21 = scalar_lea.vmem [#allocation17], %s8955_s23 }
 0x1e7   : > { %s873_s26 = sshll.u32 %s866_s21, 4  ;;  %s864_s24 = scalar_lea.sflag [#allocation18], %s8961_s0  ;;  %s874_s26 = int_to_ptr.vmem [resolvable:$true] %s873_s26 }
 0x1ec   : > { %s10370_s13 = smov %s10369_s29  ;;  %s9280_s28 = scalar_lea.hbm %s10369_s29, %s8958_s6 }
 0x1ed   : > { %s8467_s30 = scalar_lea.hbm %s9280_s28, 16  ;;  %s8472_s25 = scalar_lea.hbm %s10370_s13, 96 }
 0x1ee   : > { %p8468_p10 = scmp.ne.s32.totalorder %s9280_s28, %s8467_s30  ;;  %p8473_p4 = scmp.lt.u32.totalorder %s9280_s28, %s10370_s13 }
 0x1ef   : > { %p8474_p9 = scmp.lt.u32.totalorder %s8472_s25, %s8467_s30  ;;  %p8476_p2 = scmp.lt.u32.totalorder %s8467_s30, %s9280_s28 }
 0x1f0   : > { %p8470_p12 = pnand %p8468_p10, %p10361_p6 }
 0x1f1   : > { %p8475_p1 = por %p8474_p9, %p8473_p4 }
 0x1f2   : > { %p8471_p11 = pneg %p8470_p12 }
 0x1f3   : > { %p8477_p8 = por %p8476_p2, %p8475_p1 }
 0x1f5   : > { %p8478_p5 = pnand %p8477_p8, %p8471_p11 }
 0x1f7   : > { %8481 = shalt.err (!%p8478_p5)
}
 0x1f8   : > { %s8482_s23 = scalar_lea.vmem %s874_s26, 16  ;;  %s8626_s0 = smov [#allocation17]  }
 0x1f9   : > { %p8483_p3 = scmp.ne.s32.totalorder %s874_s26, %s8482_s23  ;;  %s8487_s9 = sshll.u32 %s8626_s0, 4  ;;  %s8488_s9 = int_to_ptr.vmem [resolvable:$false] %s8487_s9 }
 0x1fa   : > { %s8489_s16 = scalar_lea.vmem %s8488_s9, 32  ;;  %p8490_p10 = scmp.lt.s32.totalorder %s874_s26, %s8488_s9 }
 0x1fb   : > { %p8485_p7 = pnand %p8483_p3, %p10361_p6  ;;  %p8491_p12 = scmp.lt.s32.totalorder %s8489_s16, %s8482_s23 }
 0x1fd   : > { %p8486_p0 = pneg %p8485_p7  ;;  %p8492_p13 = por %p8491_p12, %p8490_p10 }
 0x1ff   : > { %p8493_p4 = pnand %p8492_p13, %p8486_p0 }
 0x201   : > { %8496 = shalt.err (!%p8493_p4)
}
 0x202   : > { %p10371_p9 = scmp.ne.s32.totalorder %s10351_s17, 0  ;;  %s10372_s5 = sld [smem:[#allocation47_spill]] }
 0x204   : > { %7550 = dma.hbm_to_vmem [thread:$0]  (!%p10371_p9), %s9280_s28, 16, %s874_s26, %s864_s24  }
 0x208   : > { %p10373_p11 = scmp.ne.s32.totalorder %s10372_s5, 0 }
 0x209   : > { %s9304_s11 = sand.u32 (!%p10373_p11), 1, %s8591_s7   ;;  %p10374_p6 = scmp.ne.s32.totalorder (!%p10373_p11), %s10350_s1, 0 }
 0x20a   : > { %882 = sbr.rel (%p10373_p11) target bundleno = 8036 (0x1f64), region = 108  ;;  %s885_s4 = scalar_lea.sflag (!%p10373_p11), [#allocation6], %s9304_s11 }
 0x20b   : > { %s887_s29 = scalar_lea.vmem (!%p10373_p11), [#allocation5], %s9304_s11 }
 0x211   : > { %8542 = dma.done.wait (%p10374_p6), %s885_s4, 16  }
 0x212   : > { %8544 = vsyncadd (%p10374_p6), %s885_s4, 4294967280  ;;  %s10375_s21 = sld [smem:[#allocation46_spill]]  ;;  %s895_s26 = scalar_lea.vmem [#allocation8], %s9304_s11 }
 0x218   : > { %s892_s17 = sand.u32 1, %s10375_s21  }
 0x219   : > { %s893_s28 = scalar_lea.sflag [#allocation9], %s892_s17 }
 0x21a   : > { %8546 = dma.done.wait (%p10374_p6), %s893_s28, 12304  }
 0x21b   : > { %8548 = vsyncadd (%p10374_p6), %s893_s28, 4294954992  ;;  %s7440_s24 = smul.u32 768, %s9304_s11  ;;  %s910_s2 = scalar_lea.sflag [#allocation12], %s892_s17 }
 0x21c   : > { %s7441_s30 = smul.u32 12, %s9304_s11 }
 0x21d   : > { %s9320_s10 = scalar_lea.vmem [#allocation10], %s7440_s24 }
 0x21e   : > { %s9322_s25 = scalar_lea.vmem [#allocation11], %s7441_s30 }
 0x21f   : > { %8550 = dma.done.wait (%p10374_p6), %s910_s2, 8384  }
 0x220   : > { %8552 = vsyncadd (%p10374_p6), %s910_s2, 4294958912  ;;  %s6506_s14 = sshll.u32 %s9304_s11, 9  ;;  %s6507_s6 = sshll.u32 %s9304_s11, 3 }
 0x221   : > { %s9330_s23 = scalar_lea.vmem [#allocation13], %s6506_s14  ;;  %s928_s0 = scalar_lea.sflag [#allocation15], %s892_s17 }
 0x222   : > { %s9332_s9 = scalar_lea.vmem [#allocation14], %s6507_s6 }
 0x223   : > { %8554 = dma.done.wait (%p10374_p6), %s928_s0, 4224  }
 0x224   : > { %8556 = vsyncadd (%p10374_p6), %s928_s0, 4294963072  ;;  %s6508_s16 = sshll.u32 %s9304_s11, 8  ;;  %s946_s4 = scalar_lea.sflag [#allocation18], %s892_s17 }
 0x225   : > { %s9339_s5 = scalar_lea.vmem [#allocation16], %s6508_s16  ;;  %s9342_s28 = scalar_lea.vmem [#allocation17], %s9304_s11 }
 0x226   : > { %8558 = dma.done.wait (%p10374_p6), %s946_s4, 16  }
 0x227   : > { %8560 = vsyncadd (%p10374_p6), %s946_s4, 4294967280  ;;  %p10376_p13 = scmp.eq.s32.totalorder %s10375_s21, 0 }
 0x229   : > { %8562 = dma.done.wait (%p10376_p13), [#allocation18], 256   ;;  %p10377_p1 = pmov %p10376_p13 }
 0x22b   : > { %8564 = vsyncadd (%p10377_p1), [#allocation18], 4294967040  ;;  %p10378_p2 = pmov %p10377_p1 }
 0x22c   : > { %p10379_p8 = pmov %p10377_p1 }
 0x22d   : > { %8566 = dma.done.wait (%p10378_p2), [#allocation21], 144  }
 0x22e   : > { %8568 = vsyncadd (%p10379_p8), [#allocation21], 4294967152  ;;  %p10380_p5 = pmov %p10377_p1 }
 0x22f   : > { %p10381_p3 = pmov %p10377_p1 }
 0x230   : > { %8570 = dma.done.wait (%p10380_p5), [#allocation24], 144  }
 0x231   : > { %8572 = vsyncadd (%p10381_p3), [#allocation24], 4294967152  ;;  %p10382_p7 = pmov %p10377_p1 }
 0x232   : > { %p10383_p0 = pmov %p10377_p1 }
 0x233   : > { %8574 = dma.done.wait (%p10382_p7), [#allocation27], 32  }
 0x234   : > { %8576 = vsyncadd (%p10383_p0), [#allocation27], 4294967264  ;;  %p10384_p10 = pmov %p10383_p0 }
 0x235   : > { %p10385_p12 = pmov %p10383_p0 }
 0x236   : > { %8578 = dma.done.wait (%p10384_p10), [#allocation30], 1040  }
 0x237   : > { %8580 = vsyncadd (%p10385_p12), [#allocation30], 4294966256  ;;  %p1077_p4 = scmp.lt.s32.totalorder %s10375_s21, 5  ;;  %s10386_s2 = sld [smem:[#allocation53_spill]]  ;;  %v9375_v0 = vld [vmem:[#allocation25] ss:$0 sm:$0xff] }
 0x238   : > { %p10387_p9 = scmp.ne.s32.totalorder %s10375_s21, 0 }
 0x239   : > { %s1078_s1 = scalar_select %p1077_p4, %s10375_s21, 5 }
 0x23a   : > { %1087 = sbr.rel (%p10387_p9) target bundleno = 796 (0x31c), region = 180  ;;  %v7638_v1 = vld [vmem:[#allocation20] sm:$0xff] (!%p10387_p9)   ;;  %v8627_v2 = vmov (!%p10387_p9), 0.0   ;;  %v1088_v3 = vld [vmem:[#allocation19] sm:$0xff] (!%p10387_p9)  ;;  %v1089_v4 = vld [vmem:[#allocation19 + $0x8] sm:$0xff] (!%p10387_p9)  ;;  %vm8628_vm0 = vmmov (!%p10387_p9), 0  }
 0x23b   : > { %s6852_s17 = sshll.u32 %s1078_s1, 2  ;;  %7018 = vmatprep.subr.bf16.mxu0 (!%p10387_p9), %v8627_v2  ;;  %7020 = vmatprep.mubr.msk.bf16.mxu0 (!%p10387_p9), %vm8628_vm0, %v8627_v2  ;;  %v1090_v5 = vpack.c.bf16 (!%p10387_p9), %v1089_v4, %v1088_v3  ;;  %vm1106_vm1 = vcmask (!%p10387_p9), 130048   ;;  %v6521_v6 = vld [vmem:[#allocation22] ss:$0 sm:$0xff] (!%p10387_p9)  ;;  %v1151_v8 = vld [vmem:[#allocation23] sm:$0xff] (!%p10387_p9)  ;;  %s10388_s21 = sld [smem:[#allocation62_spill]] (!%p10387_p9) }
 0x23c   : > { %7019 = vmatpush3.bf16.msra.mxu0 (!%p10387_p9), %v7638_v1 }
 0x23d   : > { %s9373_s14 = scalar_lea.vmem %s10386_s2, %s6852_s17 }
 0x23f   : > { %7021 = vmatmul.mubr.msk.bf16.vlgmr.msra.gmra.mrb[0].mxu0 (!%p10387_p9), %vm1106_vm1, %v1090_v5 }
 0x241   : > { %v6524_v11 = vld [vmem:[%s10388_s21] ss:$0 sm:$0xff]  ;;  %v6525_v16 = vld [vmem:[%s10388_s21 + $0x1] ss:$0 sm:$0xff] }
 0x312   : > { %v1144_v7 = vpop.f32.mrb[0].mxu0 }
 0x313   : > { %v1145_v9 = vadd.f32 %v6521_v6, %v1144_v7  ;;  %v7022_v10 = vpop.f32.mrb[1].mxu0 }
 0x314   : > { %v1147_v12 = vpop.f32.mrb[2].mxu0 }
 0x315   : > { %v1152_v13 = vadd.f32 %v1151_v8, %v1145_v9  ;;  %v1148_v14 = vadd.f32 %v6521_v6, %v1147_v12  ;;  %v7023_v15 = vpop.f32.mrb[3].mxu0 }
 0x317   : > { %v1168_v17 = vadd.f32 %v6524_v11, %v1152_v13  ;;  %v1153_v18 = vadd.f32 %v1151_v8, %v1148_v14 }
 0x319   : > { %1170 = vst [vmem:[#allocation2] sm:$0xff] %v1168_v17  ;;  %v1169_v19 = vadd.f32 %v6525_v16, %v1153_v18 }
 0x31b   : > { %1171 = vst [vmem:[#allocation2 + $0x8] sm:$0xff] %v1169_v19 }
 0x31c PF: > { %s10389_s1 = sld [smem:[#allocation46_spill]]  ;;  %v1238_v38 = vlaneseq  ;;  %v6529_v40 = vld.sshfl [vmem:[%s9373_s14] sm:$0x33 pattern:$0x75316420] }
 0x31d   : > { %v1231_v41 = vcombine.high %v6529_v40, %v6529_v40  ;;  %v6527_v43 = vld [vmem:[%s887_s29] ss:$0 sm:$0xff]  ;;  %v1234_v44 = vadd.f32 1.0, %v6529_v40  ;;  %v1250_v51 = vrot.slane %v6529_v40, 1 }
 0x31e   : > { %v9398_v39 = vshrl.u32 %v1238_v38, 7  ;;  %v6528_v47 = vld [vmem:[%s895_s26] ss:$0 sm:$0xff] }
 0x31f   : > { %v1235_v49 = vadd.f32 1.0, %v1231_v41  ;;  %v1251_v54 = vrot.slane %v1231_v41, 1 }
 0x320   : > { %v9385_v20 = vld [vmem:[#allocation2] sm:$0xff]  ;;  %v9404_v45 = vsub.s32 0, %v9398_v39 }
 0x321   : > { %1174 = vadd.xlane.f32.xlu0 %v9385_v20 }
 0x322   : > { %v9388_v21 = vld [vmem:[#allocation2 + $0x8] sm:$0xff]  ;;  %s9396_s17 = sld [smem:[#allocation4 + %s10389_s1]]  ;;  %v1241_v52 = vrot.slane %v1234_v44, %v9404_v45  ;;  %v1245_v56 = vrot.slane %v1235_v49, %v9404_v45  ;;  %v1255_v58 = vrot.slane %v1250_v51, %v9404_v45  ;;  %v1259_v60 = vrot.slane %v1251_v54, %v9404_v45 }
 0x325   : > { %1176 = vadd.xlane.f32.xlu0 %v9388_v21 }
 0x328   : > { %p6530_p11 = scmp.ne.s32.totalorder %s9396_s17, 0 }
 0x329   : > { %v7643_v3 = vld [vmem:[%s9320_s10 + $0x4] ss:$48 sps:$4 sm:$0xff] (!%p6530_p11)   ;;  %v7645_v4 = vld [vmem:[%s9320_s10] ss:$48 sps:$4 sm:$0xff] (!%p6530_p11)   ;;  %v8629_v5 = vmov (!%p6530_p11), 0   ;;  %vm8631_vm2 = vmmov (!%p6530_p11), 0  }
 0x32a   : > { %1942 = vmatprep.mubr.bf16.mxu0 (!%p6530_p11), %v8629_v5  ;;  %1985 = vmatprep.mubr.bf16.mxu1 (!%p6530_p11), %v8629_v5  ;;  %v7646_v6 = vld [vmem:[%s9320_s10 + $0x64] ss:$48 sps:$4 sm:$0xff] (!%p6530_p11)   ;;  %v7648_v7 = vld [vmem:[%s9320_s10 + $0x60] ss:$48 sps:$4 sm:$0xff] (!%p6530_p11)   ;;  %v7691_v17 = vld [vmem:[%s9320_s10 + $0xc] ss:$48 sps:$4 sm:$0xff] (!%p6530_p11)  }
 0x32b   : > { %1910 = vmatprep.subr.bf16.mxu0 (!%p6530_p11), %v7643_v3  ;;  %v7649_v8 = vld [vmem:[%s9320_s10 + $0xc4] ss:$48 sps:$4 sm:$0xff] (!%p6530_p11)   ;;  %v7651_v9 = vld [vmem:[%s9320_s10 + $0xc0] ss:$48 sps:$4 sm:$0xff] (!%p6530_p11)   ;;  %v7693_v18 = vld [vmem:[%s9320_s10 + $0x8] ss:$48 sps:$4 sm:$0xff] (!%p6530_p11)   ;;  %1953 = vmatprep.subr.bf16.mxu1 (!%p6530_p11), %v7691_v17 }
 0x32c   : > { %1911 = vmatpush1.bf16.msra.mxu0 (!%p6530_p11), %v7645_v4  ;;  %v7652_v10 = vld [vmem:[%s9320_s10 + $0x124] ss:$48 sps:$4 sm:$0xff] (!%p6530_p11)   ;;  %v7654_v11 = vld [vmem:[%s9320_s10 + $0x120] ss:$48 sps:$4 sm:$0xff] (!%p6530_p11)   ;;  %1954 = vmatpush1.bf16.msra.mxu1 (!%p6530_p11), %v7693_v18  ;;  %v7708_v41 = vld [vmem:[%s9320_s10 + $0x1e8] ss:$48 sps:$4 sm:$0xff] (!%p6530_p11)  }
 0x32d   : > { %1912 = vmatprep.subr.bf16.mxu0 (!%p6530_p11), %v7646_v6  ;;  %v7655_v12 = vld [vmem:[%s9320_s10 + $0x184] ss:$48 sps:$4 sm:$0xff] (!%p6530_p11)   ;;  %v7657_v13 = vld [vmem:[%s9320_s10 + $0x180] ss:$48 sps:$4 sm:$0xff] (!%p6530_p11)   ;;  %v7717_v51 = vld [vmem:[%s9320_s10 + $0x1c] ss:$48 sps:$4 sm:$0xff] (!%p6530_p11)  }
 0x32e   : > { %v7658_v14 = vld [vmem:[%s9320_s10 + $0x1e4] ss:$48 sps:$4 sm:$0xff] (!%p6530_p11)   ;;  %v7660_v15 = vld [vmem:[%s9320_s10 + $0x1e0] ss:$48 sps:$4 sm:$0xff] (!%p6530_p11)   ;;  %v7715_v54 = vld [vmem:[%s9320_s10 + $0x18] ss:$48 sps:$4 sm:$0xff] (!%p6530_p11)  }
 0x32f   : > { %v7661_v16 = vld [vmem:[%s9320_s10 + $0x244] ss:$48 sps:$4 sm:$0xff] (!%p6530_p11)   ;;  %v7663_v19 = vld [vmem:[%s9320_s10 + $0x240] ss:$48 sps:$4 sm:$0xff] (!%p6530_p11)   ;;  %v7727_v3 = vld [vmem:[%s9320_s10 + $0x198] ss:$48 sps:$4 sm:$0xff] (!%p6530_p11)  }
 0x330   : > { %1913 = vmatpush1.bf16.msra.mxu0 (!%p6530_p11), %v7648_v7  ;;  %v7673_v38 = vld [vmem:[%s9320_s10 + $0xd0] ss:$48 sps:$4 sm:$0xff] (!%p6530_p11)   ;;  %v7678_v40 = vld [vmem:[%s9320_s10 + $0x134] ss:$48 sps:$4 sm:$0xff] (!%p6530_p11)   ;;  %v7732_v4 = vld [vmem:[%s9320_s10 + $0x1fc] ss:$48 sps:$4 sm:$0xff] (!%p6530_p11)  }
 0x331   : > { %1914 = vmatprep.subr.bf16.mxu0 (!%p6530_p11), %v7649_v8  ;;  %v7681_v44 = vld [vmem:[%s9320_s10 + $0x194] ss:$48 sps:$4 sm:$0xff] (!%p6530_p11)   ;;  %v7730_v6 = vld [vmem:[%s9320_s10 + $0x1f8] ss:$48 sps:$4 sm:$0xff] (!%p6530_p11)   ;;  %v7735_v7 = vld [vmem:[%s9320_s10 + $0x25c] ss:$48 sps:$4 sm:$0xff] (!%p6530_p11)  }
 0x332   : > { %v7684_v49 = vld [vmem:[%s9320_s10 + $0x1f4] ss:$48 sps:$4 sm:$0xff] (!%p6530_p11)   ;;  %v7733_v8 = vld [vmem:[%s9320_s10 + $0x258] ss:$48 sps:$4 sm:$0xff] (!%p6530_p11)   ;;  %v7748_v18 = vld [vmem:[%s9320_s10 + $0x80] ss:$48 sps:$4 sm:$0xff] (!%p6530_p11)  }
 0x333   : > { %v7750_v17 = vld [vmem:[%s9320_s10 + $0x84] ss:$48 sps:$4 sm:$0xff] (!%p6530_p11)   ;;  %vm2365_vm3 = vcmask (!%p6530_p11), 1043456   ;;  %s10390_s26 = sld [smem:[#allocation64_spill]] (!%p6530_p11)  ;;  %vm2335_vm4 = vcmask (!%p6530_p11), 64512  }
 0x334   : > { %1915 = vmatpush1.bf16.msra.mxu0 (!%p6530_p11), %v7651_v9  ;;  %v7738_v9 = vld [vmem:[%s9320_s10 + $0x2bc] ss:$48 sps:$4 sm:$0xff] (!%p6530_p11)  }
 0x335   : > { %1916 = vmatprep.subr.bf16.mxu0 (!%p6530_p11), %v7652_v10  ;;  %v7736_v10 = vld [vmem:[%s9320_s10 + $0x2b8] ss:$48 sps:$4 sm:$0xff] (!%p6530_p11)  }
 0x338   : > { %1917 = vmatpush1.bf16.msra.mxu0 (!%p6530_p11), %v7654_v11  ;;  %v7741_v11 = vld [vmem:[%s9320_s10 + $0x2c] ss:$48 sps:$4 sm:$0xff] (!%p6530_p11)  }
 0x339   : > { %1918 = vmatprep.subr.bf16.mxu0 (!%p6530_p11), %v7655_v12  ;;  %v7739_v12 = vld [vmem:[%s9320_s10 + $0x28] ss:$48 sps:$4 sm:$0xff] (!%p6530_p11)  }
 0x33c   : > { %1919 = vmatpush1.bf16.msra.mxu0 (!%p6530_p11), %v7657_v13  ;;  %v7744_v13 = vld [vmem:[%s9320_s10 + $0x24] ss:$48 sps:$4 sm:$0xff] (!%p6530_p11)  }
 0x33d   : > { %1920 = vmatprep.subr.bf16.mxu0 (!%p6530_p11), %v7658_v14  ;;  %v7742_v14 = vld [vmem:[%s9320_s10 + $0x20] ss:$48 sps:$4 sm:$0xff] (!%p6530_p11)  }
 0x340   : > { %1921 = vmatpush1.bf16.msra.mxu0 (!%p6530_p11), %v7660_v15  ;;  %v7747_v15 = vld [vmem:[%s9320_s10 + $0x8c] ss:$48 sps:$4 sm:$0xff] (!%p6530_p11)  }
 0x341   : > { %1922 = vmatprep.subr.bf16.mxu0 (!%p6530_p11), %v7661_v16  ;;  %v7745_v16 = vld [vmem:[%s9320_s10 + $0x88] ss:$48 sps:$4 sm:$0xff] (!%p6530_p11)  }
 0x344   : > { %1923 = vmatpush1.bf16.msra.mxu0 (!%p6530_p11), %v7663_v19  ;;  %v7751_v19 = vld [vmem:[%s9320_s10 + $0xe8] ss:$48 sps:$4 sm:$0xff] (!%p6530_p11)  }
 0x3ae   : > { %v1175_v22 = vpop.xlane.xlu0 %1174 }
 0x3af   : > { %v1178_v23 = vmul.f32 0.03125, %v1175_v22  ;;  %v7694_v22 = vld [vmem:[%s9320_s10 + $0x6c] ss:$48 sps:$4 sm:$0xff] (!%p6530_p11)  }
 0x3b0   : > { %1955 = vmatprep.subr.bf16.mxu1 (!%p6530_p11), %v7694_v22  ;;  %v7754_v22 = vld [vmem:[%s9320_s10 + $0xe0] ss:$48 sps:$4 sm:$0xff] (!%p6530_p11)  }
 0x3b1   : > { %v1180_v24 = vsub.f32 %v9385_v20, %v1178_v23  ;;  %v7664_v23 = vld [vmem:[%s9320_s10 + $0x2a4] ss:$48 sps:$4 sm:$0xff] (!%p6530_p11)  }
 0x3b2   : > { %v1177_v25 = vpop.xlane.xlu0 %1176  ;;  %1924 = vmatprep.subr.bf16.mxu0 (!%p6530_p11), %v7664_v23  ;;  %v7756_v23 = vld [vmem:[%s9320_s10 + $0xe4] ss:$48 sps:$4 sm:$0xff] (!%p6530_p11)  }
 0x3b3   : > { %v1179_v26 = vmul.f32 0.03125, %v1177_v25  ;;  %v1188_v27 = vmul.f32 %v9375_v0, %v1180_v24  ;;  %v7696_v24 = vld [vmem:[%s9320_s10 + $0x68] ss:$48 sps:$4 sm:$0xff] (!%p6530_p11)   ;;  %v7697_v25 = vld [vmem:[%s9320_s10 + $0xcc] ss:$48 sps:$4 sm:$0xff] (!%p6530_p11)  }
 0x3b4   : > { %1956 = vmatpush1.bf16.msra.mxu1 (!%p6530_p11), %v7696_v24  ;;  %v7759_v24 = vld [vmem:[%s9320_s10 + $0x14c] ss:$48 sps:$4 sm:$0xff] (!%p6530_p11)  }
 0x3b5   : > { %v1181_v28 = vsub.f32 %v9388_v21, %v1179_v26  ;;  %v1190_v29 = vmul.f32 %v1188_v27, %v1188_v27  ;;  %v7666_v26 = vld [vmem:[%s9320_s10 + $0x2a0] ss:$48 sps:$4 sm:$0xff] (!%p6530_p11)   ;;  %1957 = vmatprep.subr.bf16.mxu1 (!%p6530_p11), %v7697_v25  ;;  %v7757_v25 = vld [vmem:[%s9320_s10 + $0x148] ss:$48 sps:$4 sm:$0xff] (!%p6530_p11)  }
 0x3b6   : > { %1925 = vmatpush1.bf16.msra.mxu0 (!%p6530_p11), %v7666_v26  ;;  %v7762_v26 = vld [vmem:[%s9320_s10 + $0x144] ss:$48 sps:$4 sm:$0xff] (!%p6530_p11)  }
 0x3b7   : > { %v1189_v30 = vmul.f32 %v9375_v0, %v1181_v28  ;;  %1192 = vadd.xlane.f32.xlu1 %v1190_v29  ;;  %v7699_v28 = vld [vmem:[%s9320_s10 + $0xc8] ss:$48 sps:$4 sm:$0xff] (!%p6530_p11)   ;;  %v7700_v29 = vld [vmem:[%s9320_s10 + $0x12c] ss:$48 sps:$4 sm:$0xff] (!%p6530_p11)  }
 0x3b8   : > { %1958 = vmatpush1.bf16.msra.mxu1 (!%p6530_p11), %v7699_v28  ;;  %v7765_v28 = vld [vmem:[%s9320_s10 + $0x1ac] ss:$48 sps:$4 sm:$0xff] (!%p6530_p11)  }
 0x3b9   : > { %v1191_v31 = vmul.f32 %v1189_v30, %v1189_v30  ;;  %1959 = vmatprep.subr.bf16.mxu1 (!%p6530_p11), %v7700_v29  ;;  %v7768_v29 = vld [vmem:[%s9320_s10 + $0x1a4] ss:$48 sps:$4 sm:$0xff] (!%p6530_p11)  }
 0x3bb   : > { %1194 = vadd.xlane.f32.xlu1 %v1191_v31  ;;  %v7672_v31 = vld [vmem:[%s9320_s10 + $0x74] ss:$48 sps:$4 sm:$0xff] (!%p6530_p11)  }
 0x444   : > { %v1193_v32 = vpop.xlane.xlu1 %1192 }
 0x445   : > { %v1196_v33 = vmul.f32 0.03125, %v1193_v32  ;;  %v7702_v32 = vld [vmem:[%s9320_s10 + $0x128] ss:$48 sps:$4 sm:$0xff] (!%p6530_p11)  }
 0x446   : > { %1960 = vmatpush1.bf16.msra.mxu1 (!%p6530_p11), %v7702_v32  ;;  %v7771_v32 = vld [vmem:[%s9320_s10 + $0x20c] ss:$48 sps:$4 sm:$0xff] (!%p6530_p11)  }
 0x447   : > { %v1198_v34 = vadd.f32 1e-05, %v1196_v33  ;;  %v7703_v33 = vld [vmem:[%s9320_s10 + $0x18c] ss:$48 sps:$4 sm:$0xff] (!%p6530_p11)  }
 0x448   : > { %v1195_v35 = vpop.xlane.xlu1 %1194  ;;  %1961 = vmatprep.subr.bf16.mxu1 (!%p6530_p11), %v7703_v33  ;;  %v7774_v33 = vld [vmem:[%s9320_s10 + $0x204] ss:$48 sps:$4 sm:$0xff] (!%p6530_p11)  }
 0x449   : > { %7639 = vrsqrt.f32 %v1198_v34  ;;  %v1197_v36 = vmul.f32 0.03125, %v1195_v35  ;;  %v7670_v34 = vld [vmem:[%s9320_s10 + $0x70] ss:$48 sps:$4 sm:$0xff] (!%p6530_p11)   ;;  %v7675_v35 = vld [vmem:[%s9320_s10 + $0xd4] ss:$48 sps:$4 sm:$0xff] (!%p6530_p11)  }
 0x44b   : > { %v1199_v37 = vadd.f32 1e-05, %v1197_v36  ;;  %v7705_v36 = vld [vmem:[%s9320_s10 + $0x188] ss:$48 sps:$4 sm:$0xff] (!%p6530_p11)  }
 0x44c   : > { %1962 = vmatpush1.bf16.msra.mxu1 (!%p6530_p11), %v7705_v36  ;;  %v7777_v36 = vld [vmem:[%s9320_s10 + $0x26c] ss:$48 sps:$4 sm:$0xff] (!%p6530_p11)  }
 0x44d   : > { %7641 = vrsqrt.f32 %v1199_v37  ;;  %v7706_v37 = vld [vmem:[%s9320_s10 + $0x1ec] ss:$48 sps:$4 sm:$0xff] (!%p6530_p11)  }
 0x44e   : > { %1963 = vmatprep.subr.bf16.mxu1 (!%p6530_p11), %v7706_v37  ;;  %v7780_v37 = vld [vmem:[%s9320_s10 + $0x264] ss:$48 sps:$4 sm:$0xff] (!%p6530_p11)  }
 0x450   : > { %1964 = vmatpush1.bf16.msra.mxu1 (!%p6530_p11), %v7708_v41  ;;  %v7783_v41 = vld [vmem:[%s9320_s10 + $0x2cc] ss:$48 sps:$4 sm:$0xff] (!%p6530_p11)  }
 0x453   : > { %v7640_v42 = vpop.eup %7639 }
 0x454   : > { %v1202_v46 = vmul.f32 %v7640_v42, %v1188_v27  ;;  %v7669_v27 = vld [vmem:[%s9320_s10 + $0x14] ss:$48 sps:$4 sm:$0xff] (!%p6530_p11)   ;;  %v7676_v42 = vld [vmem:[%s9320_s10 + $0x130] ss:$48 sps:$4 sm:$0xff] (!%p6530_p11)  }
 0x455   : > { %1996 = vmatprep.subr.bf16.mxu0 (!%p6530_p11), %v7669_v27  ;;  %v7760_v27 = vld [vmem:[%s9320_s10 + $0x140] ss:$48 sps:$4 sm:$0xff] (!%p6530_p11)  }
 0x456   : > { %v1211_v48 = vmul.f32 %v6527_v43, %v1202_v46  ;;  %v7711_v46 = vld [vmem:[%s9320_s10 + $0x248] ss:$48 sps:$4 sm:$0xff] (!%p6530_p11)  }
 0x457   : > { %v7642_v50 = vpop.eup %7641 }
 0x458   : > { %v1220_v53 = vadd.f32 %v6528_v47, %v1211_v48  ;;  %v1203_v55 = vmul.f32 %v7642_v50, %v1189_v30  ;;  %v7667_v30 = vld [vmem:[%s9320_s10 + $0x10] ss:$48 sps:$4 sm:$0xff] (!%p6530_p11)   ;;  %v7714_v50 = vld [vmem:[%s9320_s10 + $0x2a8] ss:$48 sps:$4 sm:$0xff] (!%p6530_p11)  }
 0x459   : > { %v7679_v48 = vld [vmem:[%s9320_s10 + $0x190] ss:$48 sps:$4 sm:$0xff] (!%p6530_p11)  }
 0x45a   : > { %v1212_v57 = vmul.f32 %v6527_v43, %v1203_v55  ;;  %v1248_v59 = vmul.f32 %v1241_v52, %v1220_v53  ;;  %v7709_v43 = vld [vmem:[%s9320_s10 + $0x24c] ss:$48 sps:$4 sm:$0xff] (!%p6530_p11)   ;;  %v7682_v52 = vld [vmem:[%s9320_s10 + $0x1f0] ss:$48 sps:$4 sm:$0xff] (!%p6530_p11)   ;;  %v7687_v53 = vld [vmem:[%s9320_s10 + $0x254] ss:$48 sps:$4 sm:$0xff] (!%p6530_p11)  }
 0x45b   : > { %1965 = vmatprep.subr.bf16.mxu1 (!%p6530_p11), %v7709_v43  ;;  %v7720_v55 = vld [vmem:[%s9320_s10 + $0x7c] ss:$48 sps:$4 sm:$0xff] (!%p6530_p11)   ;;  %v7781_v43 = vld [vmem:[%s9320_s10 + $0x2c8] ss:$48 sps:$4 sm:$0xff] (!%p6530_p11)  }
 0x45c   : > { %v1221_v61 = vadd.f32 %v6528_v47, %v1212_v57  ;;  %v1262_v63 = vadd.f32 %v1255_v58, %v1248_v59  ;;  %1269 = sbr.rel (%p6530_p11) target bundleno = 4020 (0xfb4), region = 184  ;;  %v7712_v47 = vld [vmem:[%s9320_s10 + $0x2ac] ss:$48 sps:$4 sm:$0xff] (!%p6530_p11)   ;;  %1966 = vmatpush1.bf16.msra.mxu1 (!%p6530_p11), %v7711_v46  ;;  %v7690_v57 = vld [vmem:[%s9320_s10 + $0x2b4] ss:$48 sps:$4 sm:$0xff] (!%p6530_p11)   ;;  %v8630_v46 = vmov (!%p6530_p11), 0.0  }
 0x45d   : > { %1967 = vmatprep.subr.bf16.mxu1 (!%p6530_p11), %v7712_v47  ;;  %v7718_v58 = vld [vmem:[%s9320_s10 + $0x78] ss:$48 sps:$4 sm:$0xff] (!%p6530_p11)   ;;  %v7723_v59 = vld [vmem:[%s9320_s10 + $0xdc] ss:$48 sps:$4 sm:$0xff] (!%p6530_p11)   ;;  %v1376_v47 = vsub.s32 (!%p6530_p11), 1, %v9398_v39 }
 0x45e   : > { %v1249_v62 = vmul.f32 %v1245_v56, %v1221_v61  ;;  %v7685_v56 = vld [vmem:[%s9320_s10 + $0x250] ss:$48 sps:$4 sm:$0xff] (!%p6530_p11)   ;;  %v7721_v61 = vld [vmem:[%s9320_s10 + $0xd8] ss:$48 sps:$4 sm:$0xff] (!%p6530_p11)  }
 0x460   : > { %v1263_v1 = vadd.f32 %v1259_v60, %v1249_v62  ;;  %1968 = vmatpush1.bf16.msra.mxu1 (!%p6530_p11), %v7714_v50  ;;  %v7688_v60 = vld [vmem:[%s9320_s10 + $0x2b0] ss:$48 sps:$4 sm:$0xff] (!%p6530_p11)   ;;  %v7726_v62 = vld [vmem:[%s9320_s10 + $0x13c] ss:$48 sps:$4 sm:$0xff] (!%p6530_p11)  }
 0x461   : > { %2039 = vmatprep.subr.bf16.mxu1 (!%p6530_p11), %v7717_v51 }
 0x462   : > { %v9412_v2 = vpack.c.bf16 %v1263_v1, %v1262_v63  ;;  %v7724_v63 = vld [vmem:[%s9320_s10 + $0x138] ss:$48 sps:$4 sm:$0xff] (!%p6530_p11)   ;;  %v7729_v1 = vld [vmem:[%s9320_s10 + $0x19c] ss:$48 sps:$4 sm:$0xff] (!%p6530_p11)  }
 0x464   : > { %1943 = vmatmul.mubr.bf16.vlgmr.msra.gmra.mrb[0].mxu0 %v9412_v2  ;;  %1986 = vmatmul.mubr.bf16.vlgmr.msra.gmra.mrb[0].mxu1 %v9412_v2 }
 0x465   : > { %1997 = vmatpush1.bf16.msra.mxu0 %v7667_v30  ;;  %2028 = vmatprep.mubr.bf16.mxu0 %v8629_v5  ;;  %v7763_v30 = vld [vmem:[%s9320_s10 + $0x1a8] ss:$48 sps:$4 sm:$0xff]  }
 0x466   : > { %1998 = vmatprep.subr.bf16.mxu0 %v7672_v31  ;;  %2040 = vmatpush1.bf16.msra.mxu1 %v7715_v54  ;;  %v7766_v31 = vld [vmem:[%s9320_s10 + $0x1a0] ss:$48 sps:$4 sm:$0xff]  }
 0x467   : > { %2071 = vmatprep.mubr.bf16.mxu1 %v8629_v5  ;;  %2041 = vmatprep.subr.bf16.mxu1 %v7720_v55  ;;  %v1380_v55 = vsub.s32 2, %v9398_v39 }
 0x469   : > { %1999 = vmatpush1.bf16.msra.mxu0 %v7670_v34  ;;  %v7769_v34 = vld [vmem:[%s9320_s10 + $0x208] ss:$48 sps:$4 sm:$0xff]  }
 0x46a   : > { %2000 = vmatprep.subr.bf16.mxu0 %v7675_v35  ;;  %2042 = vmatpush1.bf16.msra.mxu1 %v7718_v58  ;;  %v7772_v35 = vld [vmem:[%s9320_s10 + $0x200] ss:$48 sps:$4 sm:$0xff]  }
 0x46b   : > { %2043 = vmatprep.subr.bf16.mxu1 %v7723_v59 }
 0x46d   : > { %2001 = vmatpush1.bf16.msra.mxu0 %v7673_v38  ;;  %v7775_v38 = vld [vmem:[%s9320_s10 + $0x268] ss:$48 sps:$4 sm:$0xff]  }
 0x46e   : > { %2002 = vmatprep.subr.bf16.mxu0 %v7678_v40  ;;  %2044 = vmatpush1.bf16.msra.mxu1 %v7721_v61  ;;  %v7778_v40 = vld [vmem:[%s9320_s10 + $0x260] ss:$48 sps:$4 sm:$0xff]   ;;  %v1388_v61 = vsub.s32 4, %v9398_v39 }
 0x46f   : > { %2045 = vmatprep.subr.bf16.mxu1 %v7726_v62 }
 0x471   : > { %2003 = vmatpush1.bf16.msra.mxu0 %v7676_v42  ;;  %v7786_v42 = vld [vmem:[%s9320_s10 + $0x2c4] ss:$48 sps:$4 sm:$0xff]  }
 0x472   : > { %2004 = vmatprep.subr.bf16.mxu0 %v7681_v44  ;;  %2046 = vmatpush1.bf16.msra.mxu1 %v7724_v63  ;;  %v7784_v44 = vld [vmem:[%s9320_s10 + $0x2c0] ss:$48 sps:$4 sm:$0xff]   ;;  %v1392_v63 = vsub.s32 5, %v9398_v39 }
 0x473   : > { %2047 = vmatprep.subr.bf16.mxu1 %v7729_v1 }
 0x475   : > { %2005 = vmatpush1.bf16.msra.mxu0 %v7679_v48  ;;  %v9531_v48 = vld [vmem:[%s9322_s25] sm:$0xff] }
 0x476   : > { %2006 = vmatprep.subr.bf16.mxu0 %v7684_v49  ;;  %2048 = vmatpush1.bf16.msra.mxu1 %v7727_v3  ;;  %v1377_v51 = vrot.slane %v9531_v48, %v1376_v47  ;;  %v1389_v1 = vrot.slane %v9531_v48, %v1388_v61  ;;  %v1393_v3 = vrot.slane %v9531_v48, %v1392_v63 }
 0x477   : > { %2049 = vmatprep.subr.bf16.mxu1 %v7732_v4 }
 0x479   : > { %2007 = vmatpush1.bf16.msra.mxu0 %v7682_v52 }
 0x47a   : > { %2008 = vmatprep.subr.bf16.mxu0 %v7687_v53  ;;  %2050 = vmatpush1.bf16.msra.mxu1 %v7730_v6 }
 0x47b   : > { %2051 = vmatprep.subr.bf16.mxu1 %v7735_v7 }
 0x47d   : > { %2009 = vmatpush1.bf16.msra.mxu0 %v7685_v56  ;;  %v9538_v56 = vrot.slane %v9531_v48, %v1380_v55 }
 0x47e   : > { %2010 = vmatprep.subr.bf16.mxu0 %v7690_v57  ;;  %2052 = vmatpush1.bf16.msra.mxu1 %v7733_v8  ;;  %v1373_v8 = vrot.slane %v9531_v48, %v9404_v45 }
 0x47f   : > { %2053 = vmatprep.subr.bf16.mxu1 %v7738_v9 }
 0x481   : > { %2011 = vmatpush1.bf16.msra.mxu0 %v7688_v60 }
 0x482   : > { %2054 = vmatpush1.bf16.msra.mxu1 %v7736_v10  ;;  %2082 = vmatprep.subr.bf16.mxu0 %v7744_v13 }
 0x483   : > { %2125 = vmatprep.subr.bf16.mxu1 %v7741_v11 }
 0x484   : > { %2029 = vmatmul.mubr.bf16.vlgmr.msra.gmra.mrb[4].mxu0 %v9412_v2 }
 0x485   : > { %2114 = vmatprep.mubr.bf16.mxu0 %v8629_v5  ;;  %2072 = vmatmul.mubr.bf16.vlgmr.msra.gmra.mrb[4].mxu1 %v9412_v2 }
 0x486   : > { %2126 = vmatpush1.bf16.msra.mxu1 %v7739_v12  ;;  %2157 = vmatprep.mubr.bf16.mxu1 %v8629_v5  ;;  %v7753_v5 = vld [vmem:[%s9320_s10 + $0xec] ss:$48 sps:$4 sm:$0xff]  }
 0x487   : > { %2083 = vmatpush1.bf16.msra.mxu0 %v7742_v14  ;;  %2127 = vmatprep.subr.bf16.mxu1 %v7747_v15 }
 0x488   : > { %2084 = vmatprep.subr.bf16.mxu0 %v7750_v17 }
 0x48a   : > { %2128 = vmatpush1.bf16.msra.mxu1 %v7745_v16 }
 0x48b   : > { %2085 = vmatpush1.bf16.msra.mxu0 %v7748_v18  ;;  %2129 = vmatprep.subr.bf16.mxu1 %v7753_v5 }
 0x48c   : > { %2086 = vmatprep.subr.bf16.mxu0 %v7756_v23  ;;  %v1396_v23 = vsub.s32 6, %v9398_v39 }
 0x48e   : > { %2130 = vmatpush1.bf16.msra.mxu1 %v7751_v19 }
 0x48f   : > { %2087 = vmatpush1.bf16.msra.mxu0 %v7754_v22  ;;  %2131 = vmatprep.subr.bf16.mxu1 %v7759_v24 }
 0x490   : > { %2088 = vmatprep.subr.bf16.mxu0 %v7762_v26 }
 0x492   : > { %2132 = vmatpush1.bf16.msra.mxu1 %v7757_v25  ;;  %v9566_v25 = vrot.slane %v9531_v48, %v1396_v23 }
 0x493   : > { %2089 = vmatpush1.bf16.msra.mxu0 %v7760_v27  ;;  %2133 = vmatprep.subr.bf16.mxu1 %v7765_v28 }
 0x494   : > { %2090 = vmatprep.subr.bf16.mxu0 %v7768_v29 }
 0x496   : > { %2134 = vmatpush1.bf16.msra.mxu1 %v7763_v30 }
 0x497   : > { %2091 = vmatpush1.bf16.msra.mxu0 %v7766_v31  ;;  %2135 = vmatprep.subr.bf16.mxu1 %v7771_v32  ;;  %v1367_v31 = vld [vmem:[%s9322_s25 + $0x8] sm:$0xf]  ;;  %v1384_v32 = vsub.s32 3, %v9398_v39 }
 0x498   : > { %2092 = vmatprep.subr.bf16.mxu0 %v7774_v33  ;;  %v1413_v33 = vrot.slane %v1367_v31, %v1380_v55 }
 0x49a   : > { %2136 = vmatpush1.bf16.msra.mxu1 %v7769_v34  ;;  %v1417_v34 = vrot.slane %v1367_v31, %v1384_v32 }
 0x49b   : > { %2093 = vmatpush1.bf16.msra.mxu0 %v7772_v35  ;;  %2137 = vmatprep.subr.bf16.mxu1 %v7777_v36  ;;  %v1405_v35 = vrot.slane %v1367_v31, %v9404_v45  ;;  %v1409_v36 = vrot.slane %v1367_v31, %v1376_v47 }
 0x49c   : > { %2094 = vmatprep.subr.bf16.mxu0 %v7780_v37 }
 0x49e   : > { %2138 = vmatpush1.bf16.msra.mxu1 %v7775_v38 }
 0x49f   : > { %2095 = vmatpush1.bf16.msra.mxu0 %v7778_v40  ;;  %2139 = vmatprep.subr.bf16.mxu1 %v7783_v41 }
 0x4a0   : > { %2096 = vmatprep.subr.bf16.mxu0 %v7786_v42 }
 0x4a2   : > { %2140 = vmatpush1.bf16.msra.mxu1 %v7781_v43 }
 0x4a3   : > { %2097 = vmatpush1.bf16.msra.mxu0 %v7784_v44  ;;  %7024 = vmatprep.subr.bf16.mxu1 %v8630_v46 }
 0x4a4   : > { %7048 = vmatprep.subr.bf16.mxu0 %v8630_v46 }
 0x4a5   : > { %2158 = vmatmul.mubr.bf16.vlgmr.msra.gmra.mrb[8].mxu1 %v9412_v2 }
 0x4a6   : > { %2115 = vmatmul.mubr.bf16.vlgmr.msra.gmra.mrb[8].mxu0 %v9412_v2  ;;  %7026 = vmatprep.mubr.msk.bf16.mxu1 %vm8631_vm2, %v8630_v46 }
 0x4a7   : > { %7050 = vmatprep.mubr.msk.bf16.mxu0 %vm8631_vm2, %v8630_v46 }
 0x537   : > { %v1944_v49 = vpop.f32.mrb[0].mxu0  ;;  %v1987_v57 = vpop.f32.mrb[0].mxu1 }
 0x538   : > { %v1946_v50 = vpop.f32.mrb[1].mxu0  ;;  %v9541_v58 = vadd.f32 %v1987_v57, %v9538_v56  ;;  %v9543_v59 = vpop.f32.mrb[1].mxu1  ;;  %v1945_v15 = vadd.f32 %v1944_v49, %v1373_v8 }
 0x539   : > { %v1948_v52 = vpop.f32.mrb[2].mxu0  ;;  %v9545_v60 = vpop.f32.mrb[2].mxu1  ;;  %v1947_v16 = vadd.f32 %v1946_v50, %v1377_v51 }
 0x53a   : > { %v1950_v53 = vpop.f32.mrb[3].mxu0  ;;  %v9548_v62 = vpop.f32.mrb[3].mxu1  ;;  %v2235_v18 = vpack.c.bf16 %v1945_v15, %v1945_v15  ;;  %v1949_v22 = vadd.f32 %v1948_v52, %v1373_v8 }
 0x53b   : > { %v9534_v54 = vadd.f32 %v1950_v53, %v1377_v51  ;;  %v2456_v5 = vpack.c.bf16 %v1947_v16, %v1947_v16 }
 0x53c   : > { %v2236_v24 = vpack.c.bf16 %v1949_v22, %v1949_v22 }
 0x557   : > { %v2030_v4 = vpop.f32.mrb[4].mxu0 }
 0x558   : > { %v2031_v6 = vadd.f32 %v2030_v4, %v1389_v1  ;;  %v2032_v7 = vpop.f32.mrb[5].mxu0  ;;  %v2073_v26 = vpop.f32.mrb[4].mxu1 }
 0x559   : > { %v2033_v9 = vadd.f32 %v2032_v7, %v1393_v3  ;;  %v2034_v10 = vpop.f32.mrb[6].mxu0  ;;  %v9571_v27 = vadd.f32 %v2073_v26, %v9566_v25  ;;  %v9573_v28 = vpop.f32.mrb[5].mxu1 }
 0x55a   : > { %v2237_v11 = vpack.c.bf16 %v2031_v6, %v2031_v6  ;;  %v2036_v12 = vpop.f32.mrb[7].mxu0  ;;  %v2035_v17 = vadd.f32 %v2034_v10, %v1389_v1  ;;  %v9575_v29 = vpop.f32.mrb[6].mxu1 }
 0x55b   : > { %v2458_v13 = vpack.c.bf16 %v2033_v9, %v2033_v9  ;;  %v9555_v14 = vadd.f32 %v2036_v12, %v1393_v3  ;;  %v9577_v30 = vpop.f32.mrb[7].mxu1 }
 0x55c   : > { %7025 = vmatpush3.bf16.xpose.msra.mxu1 %v2237_v11  ;;  %v2238_v19 = vpack.c.bf16 %v2035_v17, %v2035_v17 }
 0x55d   : > { %7049 = vmatpush3.bf16.xpose.msra.mxu0 %v2458_v13  ;;  %7030 = vmatprep.subr.bf16.mxu1 %v8630_v46 }
 0x55e   : > { %7060 = vmatprep.subr.bf16.mxu0 %v8630_v46 }
 0x563   : > { %7027 = vmatmul.mubr.bf16.vlgmr.msra.gmra.mrb[12].mxu1 %v2235_v18 }
 0x564   : > { %7031 = vmatpush3.bf16.xpose.msra.mxu1 %v2238_v19  ;;  %7051 = vmatmul.mubr.bf16.vlgmr.msra.gmra.mrb[12].mxu0 %v2456_v5  ;;  %v9605_v19 = vld [vmem:[%s10390_s26] ss:$0 sm:$0xff] }
 0x565   : > { %7032 = vmatprep.mubr.msk.bf16.mxu1 %vm8631_vm2, %v8630_v46  ;;  %7036 = vmatprep.subr.bf16.mxu1 %v8630_v46 }
 0x566   : > { %7062 = vmatprep.mubr.msk.bf16.mxu0 %vm8631_vm2, %v8630_v46 }
 0x56b   : > { %7033 = vmatmul.mubr.bf16.vlgmr.msra.gmra.mrb[16].mxu1 %v2236_v24 }
 0x56c   : > { %7038 = vmatprep.mubr.msk.bf16.mxu1 %vm8631_vm2, %v8630_v46 }
 0x578   : > { %v2159_v37 = vpop.f32.mrb[8].mxu1 }
 0x579   : > { %v2160_v38 = vadd.f32 %v2159_v37, %v1413_v33  ;;  %v2161_v40 = vpop.f32.mrb[9].mxu1  ;;  %v2116_v41 = vpop.f32.mrb[8].mxu0 }
 0x57a   : > { %v2162_v42 = vadd.f32 %v2161_v40, %v1417_v34  ;;  %v2163_v43 = vpop.f32.mrb[10].mxu1  ;;  %v2117_v44 = vadd.f32 %v2116_v41, %v1405_v35  ;;  %v2118_v49 = vpop.f32.mrb[9].mxu0  ;;  %v9614_v40 = vld [vmem:[%s10390_s26 + $0x1] ss:$0 sm:$0xff] }
 0x57b   : > { %v2953_v50 = vpack.c.bf16 %v2160_v38, %v2160_v38  ;;  %v2164_v51 = vadd.f32 %v2163_v43, %v1413_v33  ;;  %v2165_v52 = vpop.f32.mrb[11].mxu1  ;;  %v2119_v53 = vadd.f32 %v2118_v49, %v1409_v36  ;;  %v2120_v55 = vpop.f32.mrb[10].mxu0 }
 0x57c   : > { %v3251_v57 = vpack.c.bf16 %v2162_v42, %v2162_v42  ;;  %v2166_v61 = vadd.f32 %v2165_v52, %v1417_v34  ;;  %v2360_v63 = vpack.c.bf16 %v2117_v44, %v2117_v44  ;;  %v2121_v1 = vadd.f32 %v2120_v55, %v1405_v35  ;;  %v2122_v3 = vpop.f32.mrb[11].mxu0 }
 0x57d   : > { %v9585_v47 = vsel %vm2365_vm3, %v2953_v50, 0  ;;  %v2954_v4 = vpack.c.bf16 %v2164_v51, %v2164_v51  ;;  %v2568_v6 = vpack.c.bf16 %v2119_v53, %v2119_v53  ;;  %v2123_v7 = vadd.f32 %v2122_v3, %v1409_v36 }
 0x57e   : > { %v9588_v8 = vsel %vm2365_vm3, %v3251_v57, 0  ;;  %v3252_v9 = vpack.c.bf16 %v2166_v61, %v2166_v61  ;;  %v2367_v10 = vsel %vm2365_vm3, %v2360_v63, 0  ;;  %v2361_v11 = vpack.c.bf16 %v2121_v1, %v2121_v1 }
 0x57f   : > { %v9592_v12 = vsel %vm2365_vm3, %v2954_v4, 0  ;;  %v2574_v13 = vsel %vm2365_vm3, %v2568_v6, 0  ;;  %v2569_v15 = vpack.c.bf16 %v2123_v7, %v2123_v7  ;;  %7037 = vmatpush3.bf16.msra.mxu1 %v2367_v10 }
 0x580   : > { %v9596_v16 = vsel %vm2365_vm3, %v3252_v9, 0  ;;  %v2413_v17 = vsel %vm2365_vm3, %v2361_v11, 0  ;;  %7061 = vmatpush3.bf16.msra.mxu0 %v2574_v13  ;;  %7042 = vmatprep.subr.bf16.mxu1 %v8630_v46 }
 0x581   : > { %v2620_v18 = vsel %vm2365_vm3, %v2569_v15, 0  ;;  %7072 = vmatprep.subr.bf16.mxu0 %v8630_v46 }
 0x636   : > { %v2273_v5 = vpop.f32.mrb[12].mxu1 }
 0x637   : > { %v2319_v22 = vmul.f32 0.35355338, %v2273_v5  ;;  %v7028_v23 = vpop.f32.mrb[13].mxu1  ;;  %v9607_v24 = vpop.f32.mrb[12].mxu0 }
 0x638   : > { %v2276_v26 = vpop.f32.mrb[14].mxu1  ;;  %v7052_v31 = vpop.f32.mrb[13].mxu0 }
 0x639   : > { %v7029_v33 = vpop.f32.mrb[15].mxu1  ;;  %v2497_v34 = vpop.f32.mrb[14].mxu0  ;;  %v2333_v35 = vadd.f32 %v9605_v19, %v2319_v22  ;;  %v2459_v22 = vpack.c.bf16 %v9555_v14, %v9555_v14 }
 0x63a   : > { %v7053_v36 = vpop.f32.mrb[15].mxu0 }
 0x63b   : > { %v2336_v37 = vsel %vm2335_vm4, %v2333_v35, -inf }
 0x63c   : > { %2337 = vmax.xlane.f32.xlu0 %v2336_v37 }
 0x63e   : > { %v2313_v38 = vpop.f32.mrb[16].mxu1 }
 0x63f   : > { %v2320_v41 = vmul.f32 0.35355338, %v2313_v38  ;;  %v7034_v42 = vpop.f32.mrb[17].mxu1 }
 0x640   : > { %v2316_v43 = vpop.f32.mrb[18].mxu1 }
 0x641   : > { %v7035_v44 = vpop.f32.mrb[19].mxu1  ;;  %v2334_v49 = vadd.f32 %v9614_v40, %v2320_v41 }
 0x643   : > { %v2339_v50 = vsel %vm2335_vm4, %v2334_v49, -inf }
 0x644   : > { %2340 = vmax.xlane.f32.xlu0 %v2339_v50 }
 0x6c9   : > { %v2338_v51 = vpop.xlane.xlu0 %2337 }
 0x6ca   : > { %v2342_v52 = vsub.f32 %v2333_v35, %v2338_v51 }
 0x6cc   : > { %v2344_v53 = vmul.f32 1.442695, %v2342_v52 }
 0x6ce   : > { %7819 = vpow2.f32 %v2344_v53 }
 0x6d1   : > { %v2341_v55 = vpop.xlane.xlu0 %2340 }
 0x6d2   : > { %v2343_v57 = vsub.f32 %v2334_v49, %v2341_v55 }
 0x6d4   : > { %v2346_v61 = vmul.f32 1.442695, %v2343_v57 }
 0x6d6   : > { %7821 = vpow2.f32 %v2346_v61 }
 0x6d8   : > { %v7820_v63 = vpop.eup %7819 }
 0x6d9   : > { %v2348_v1 = vsel %vm2335_vm4, %v7820_v63, 0.0 }
 0x6da   : > { %2349 = vadd.xlane.f32.xlu1 %v2348_v1 }
 0x6e0   : > { %v7822_v3 = vpop.eup %7821 }
 0x6e1   : > { %v2351_v4 = vsel %vm2335_vm4, %v7822_v3, 0.0 }
 0x6e2   : > { %2352 = vadd.xlane.f32.xlu1 %v2351_v4 }
 0x767   : > { %v2350_v6 = vpop.xlane.xlu1 %2349 }
 0x768   : > { %7823 = vrcp.f32 %v2350_v6 }
 0x76f   : > { %v2353_v7 = vpop.xlane.xlu1 %2352 }
 0x770   : > { %7825 = vrcp.f32 %v2353_v7 }
 0x772   : > { %v7824_v9 = vpop.eup %7823 }
 0x773   : > { %v2355_v10 = vmul.f32 %v7824_v9, %v7820_v63 }
 0x775   : > { %v2358_v11 = vpack.c.bf16 %v2355_v10, %v2355_v10 }
 0x777   : > { %7039 = vmatmul.mubr.msk.bf16.vlgmr.msra.gmra.mrb[20].mxu1 %vm2335_vm4, %v2358_v11  ;;  %v7787_v11 = vld [vmem:[%s9339_s5] sm:$0xff]  }
 0x778   : > { %7043 = vmatpush3.bf16.msra.mxu1 %v2413_v17  ;;  %7044 = vmatprep.mubr.msk.bf16.mxu1 %vm8631_vm2, %v8630_v46  ;;  %v2457_v17 = vpack.c.bf16 %v9534_v54, %v9534_v54 }
 0x779   : > { %7054 = vmatprep.subr.bf16.mxu1 %v8630_v46 }
 0x77a   : > { %v7826_v13 = vpop.eup %7825 }
 0x77b   : > { %v2357_v15 = vmul.f32 %v7826_v13, %v7822_v3 }
 0x77d   : > { %v2359_v5 = vpack.c.bf16 %v2357_v15, %v2357_v15 }
 0x77f   : > { %7045 = vmatmul.mubr.msk.bf16.vlgmr.msra.gmra.mrb[24].mxu1 %vm2335_vm4, %v2359_v5 }
 0x780   : > { %7056 = vmatprep.mubr.msk.bf16.mxu1 %vm8631_vm2, %v8630_v46 }
 0x781   : > { %7055 = vmatpush3.bf16.xpose.msra.mxu1 %v2459_v22  ;;  %v7788_v22 = vld [vmem:[%s9339_s5 + $0x8] sm:$0xff]  }
 0x782   : > { %7066 = vmatprep.subr.bf16.mxu1 %v8630_v46 }
 0x788   : > { %7057 = vmatmul.mubr.bf16.vlgmr.msra.gmra.mrb[28].mxu1 %v2457_v17  ;;  %v7795_v17 = vld [vmem:[%s9339_s5 + $0x40] sm:$0xff]  }
 0x789   : > { %7067 = vmatpush3.bf16.msra.mxu1 %v2620_v18  ;;  %7068 = vmatprep.mubr.msk.bf16.mxu1 %vm8631_vm2, %v8630_v46  ;;  %v2540_v18 = vmul.f32 0.35355338, %v9607_v24 }
 0x78a   : > { %7092 = vmatprep.subr.bf16.mxu1 %v8630_v46 }
 0x78b   : > { %v2542_v50 = vadd.f32 %v9605_v19, %v2540_v18  ;;  %v7792_v18 = vld [vmem:[%s9339_s5 + $0x28] sm:$0xff]  }
 0x78d   : > { %v2544_v51 = vsel %vm2335_vm4, %v2542_v50, -inf }
 0x84a   : > { %v9635_v23 = vpop.f32.mrb[20].mxu1 }
 0x84b   : > { %v7040_v14 = vpop.f32.mrb[21].mxu1 }
 0x84c   : > { %v2406_v26 = vpop.f32.mrb[22].mxu1 }
 0x84d   : > { %v7041_v31 = vpop.f32.mrb[23].mxu1  ;;  %v7789_v26 = vld [vmem:[%s9339_s5 + $0x10] sm:$0xff]  }
 0x84e   : > { %v7796_v31 = vld [vmem:[%s9339_s5 + $0x48] sm:$0xff]  }
 0x852   : > { %v9637_v33 = vpop.f32.mrb[24].mxu1 }
 0x853   : > { %v2455_v34 = vpack.c.bf16 %v9637_v33, %v9635_v23  ;;  %v7046_v35 = vpop.f32.mrb[25].mxu1 }
 0x854   : > { %v2452_v36 = vpop.f32.mrb[26].mxu1  ;;  %v7790_v35 = vld [vmem:[%s9339_s5 + $0x18] sm:$0xff]  }
 0x855   : > { %v7047_v54 = vpop.f32.mrb[27].mxu1  ;;  %v7797_v36 = vld [vmem:[%s9339_s5 + $0x50] sm:$0xff]  }
 0x856   : > { %v7791_v54 = vld [vmem:[%s9339_s5 + $0x20] sm:$0xff]  }
 0x85b   : > { %v2534_v37 = vpop.f32.mrb[28].mxu1 }
 0x85c   : > { %v2541_v38 = vmul.f32 0.35355338, %v2534_v37  ;;  %v7058_v41 = vpop.f32.mrb[29].mxu1  ;;  %v7798_v37 = vld [vmem:[%s9339_s5 + $0x58] sm:$0xff]  }
 0x85d   : > { %v2537_v42 = vpop.f32.mrb[30].mxu1  ;;  %v7793_v41 = vld [vmem:[%s9339_s5 + $0x30] sm:$0xff]  }
 0x85e   : > { %v7059_v43 = vpop.f32.mrb[31].mxu1  ;;  %v2543_v44 = vadd.f32 %v9614_v40, %v2541_v38  ;;  %v7799_v38 = vld [vmem:[%s9339_s5 + $0x60] sm:$0xff]   ;;  %v7800_v42 = vld [vmem:[%s9339_s5 + $0x68] sm:$0xff]  }
 0x85f   : > { %v7794_v43 = vld [vmem:[%s9339_s5 + $0x38] sm:$0xff]  }
 0x860   : > { %v2547_v49 = vsel %vm2335_vm4, %v2543_v44, -inf }
 0x861   : > { %2548 = vmax.xlane.f32.xlu0 %v2547_v49  ;;  %v7802_v49 = vld [vmem:[%s9339_s5 + $0x78] sm:$0xff]  }
 0x865   : > { %2545 = vmax.xlane.f32.xlu0 %v2544_v51 }
 0x8ee   : > { %v2549_v52 = vpop.xlane.xlu0 %2548 }
 0x8ef   : > { %v2551_v53 = vsub.f32 %v2543_v44, %v2549_v52  ;;  %v7801_v44 = vld [vmem:[%s9339_s5 + $0x70] sm:$0xff]   ;;  %v1992_v52 = vadd.f32 %v9545_v60, %v9538_v56  ;;  %v2843_v56 = vpack.c.bf16 %v9571_v27, %v9571_v27 }
 0x8f1   : > { %v2554_v55 = vmul.f32 1.442695, %v2551_v53  ;;  %v2842_v53 = vpack.c.bf16 %v1992_v52, %v1992_v52 }
 0x8f2   : > { %v2546_v57 = vpop.xlane.xlu0 %2545 }
 0x8f3   : > { %7827 = vpow2.f32 %v2554_v55  ;;  %v2550_v24 = vsub.f32 %v2542_v50, %v2546_v57  ;;  %v2078_v50 = vadd.f32 %v9575_v29, %v9566_v25 }
 0x8f5   : > { %v2552_v61 = vmul.f32 1.442695, %v2550_v24  ;;  %v2844_v51 = vpack.c.bf16 %v2078_v50, %v2078_v50 }
 0x8f7   : > { %7829 = vpow2.f32 %v2552_v61 }
 0x8fd   : > { %v7828_v63 = vpop.eup %7827 }
 0x8fe   : > { %v2559_v1 = vsel %vm2335_vm4, %v7828_v63, 0.0 }
 0x8ff   : > { %2560 = vadd.xlane.f32.xlu1 %v2559_v1 }
 0x901   : > { %v7830_v3 = vpop.eup %7829 }
 0x902   : > { %v2556_v4 = vsel %vm2335_vm4, %v7830_v3, 0.0 }
 0x903   : > { %2557 = vadd.xlane.f32.xlu1 %v2556_v4 }
 0x98c   : > { %v2561_v6 = vpop.xlane.xlu1 %2560 }
 0x98d   : > { %7831 = vrcp.f32 %v2561_v6 }
 0x990   : > { %v2558_v7 = vpop.xlane.xlu1 %2557 }
 0x991   : > { %7833 = vrcp.f32 %v2558_v7 }
 0x997   : > { %v7832_v9 = vpop.eup %7831 }
 0x998   : > { %v2565_v10 = vmul.f32 %v7832_v9, %v7828_v63 }
 0x99a   : > { %v2567_v13 = vpack.c.bf16 %v2565_v10, %v2565_v10 }
 0x99b   : > { %v7834_v15 = vpop.eup %7833 }
 0x99c   : > { %v2563_v5 = vmul.f32 %v7834_v15, %v7830_v3  ;;  %7069 = vmatmul.mubr.msk.bf16.vlgmr.msra.gmra.mrb[32].mxu1 %vm2335_vm4, %v2567_v13 }
 0x99d   : > { %7093 = vmatpush3.bf16.msra.mxu1 %v7787_v11  ;;  %7108 = vmatprep.mubr.msk.bf16.mxu1 %vm8631_vm2, %v8630_v46 }
 0x99e   : > { %7094 = vmatprep.subr.bf16.mxu1 %v8630_v46  ;;  %v2566_v14 = vpack.c.bf16 %v2563_v5, %v2563_v5 }
 0x9a0   : > { %7063 = vmatmul.mubr.msk.bf16.vlgmr.msra.gmra.mrb[16].mxu0 %vm2335_vm4, %v2566_v14 }
 0x9a1   : > { %7095 = vmatpush3.bf16.msra.mxu1 %v7788_v22  ;;  %7073 = vmatpush3.bf16.msra.mxu0 %v7795_v17 }
 0x9a2   : > { %7096 = vmatprep.subr.bf16.mxu1 %v8630_v46  ;;  %7074 = vmatprep.subr.bf16.mxu0 %v8630_v46 }
 0x9a3   : > { %7088 = vmatprep.mubr.msk.bf16.mxu0 %vm8631_vm2, %v8630_v46 }
 0x9a5   : > { %7097 = vmatpush3.bf16.msra.mxu1 %v7789_v26  ;;  %7075 = vmatpush3.bf16.msra.mxu0 %v7796_v31 }
 0x9a6   : > { %7098 = vmatprep.subr.bf16.mxu1 %v8630_v46  ;;  %7076 = vmatprep.subr.bf16.mxu0 %v8630_v46 }
 0x9a9   : > { %7099 = vmatpush3.bf16.msra.mxu1 %v7790_v35  ;;  %7077 = vmatpush3.bf16.msra.mxu0 %v7797_v36 }
 0x9aa   : > { %7100 = vmatprep.subr.bf16.mxu1 %v8630_v46  ;;  %7078 = vmatprep.subr.bf16.mxu0 %v8630_v46 }
 0x9ad   : > { %7101 = vmatpush3.bf16.msra.mxu1 %v7791_v54  ;;  %7079 = vmatpush3.bf16.msra.mxu0 %v7798_v37 }
 0x9ae   : > { %7102 = vmatprep.subr.bf16.mxu1 %v8630_v46  ;;  %7080 = vmatprep.subr.bf16.mxu0 %v8630_v46 }
 0x9b1   : > { %7103 = vmatpush3.bf16.msra.mxu1 %v7792_v18  ;;  %7081 = vmatpush3.bf16.msra.mxu0 %v7799_v38 }
 0x9b2   : > { %7104 = vmatprep.subr.bf16.mxu1 %v8630_v46  ;;  %7082 = vmatprep.subr.bf16.mxu0 %v8630_v46 }
 0x9b5   : > { %7105 = vmatpush3.bf16.msra.mxu1 %v7793_v41  ;;  %7083 = vmatpush3.bf16.msra.mxu0 %v7800_v42 }
 0x9b6   : > { %7106 = vmatprep.subr.bf16.mxu1 %v8630_v46  ;;  %7084 = vmatprep.subr.bf16.mxu0 %v8630_v46 }
 0x9b9   : > { %7107 = vmatpush3.bf16.msra.mxu1 %v7794_v43  ;;  %7085 = vmatpush3.bf16.msra.mxu0 %v7801_v44  ;;  %v1400_v44 = vsub.s32 7, %v9398_v39 }
 0x9ba   : > { %7118 = vmatprep.subr.bf16.mxu1 %v8630_v46  ;;  %7086 = vmatprep.subr.bf16.mxu0 %v8630_v46 }
 0x9bc   : > { %7109 = vmatmul.mubr.bf16.vlgmr.msra.gmra.mrb[36].mxu1 %v2455_v34 }
 0x9bd   : > { %7120 = vmatprep.mubr.msk.bf16.mxu1 %vm8631_vm2, %v8630_v46  ;;  %7087 = vmatpush3.bf16.msra.mxu0 %v7802_v49  ;;  %v1401_v49 = vrot.slane %v9531_v48, %v1400_v44  ;;  %v7806_v44 = vld [vmem:[%s9339_s5 + $0x98] sm:$0xff]  }
 0x9be   : > { %7112 = vmatprep.subr.bf16.mxu0 %v8630_v46 }
 0x9c2   : > { %7119 = vmatpush3.bf16.xpose.msra.mxu1 %v2844_v51  ;;  %v2076_v51 = vadd.f32 %v9573_v28, %v1401_v49 }
 0x9c3   : > { %7130 = vmatprep.subr.bf16.mxu1 %v8630_v46 }
 0x9c9   : > { %7121 = vmatmul.mubr.bf16.vlgmr.msra.gmra.mrb[40].mxu1 %v2842_v53  ;;  %v1385_v53 = vrot.slane %v9531_v48, %v1384_v32 }
 0x9ca   : > { %7131 = vmatpush3.bf16.msra.mxu1 %v9592_v12  ;;  %7132 = vmatprep.mubr.msk.bf16.mxu1 %vm8631_vm2, %v8630_v46  ;;  %v2841_v12 = vpack.c.bf16 %v9541_v58, %v9541_v58 }
 0x9cb   : > { %7156 = vmatprep.subr.bf16.mxu1 %v8630_v46  ;;  %v1994_v48 = vadd.f32 %v9548_v62, %v1385_v53 }
 0x9cd   : > { %v3140_v32 = vpack.c.bf16 %v1994_v48, %v1994_v48 }
 0xa6f   : > { %v2656_v25 = vpop.f32.mrb[32].mxu1 }
 0xa70   : > { %v7070_v29 = vpop.f32.mrb[33].mxu1 }
 0xa71   : > { %v2659_v23 = vpop.f32.mrb[34].mxu1  ;;  %v3141_v29 = vpack.c.bf16 %v2076_v51, %v2076_v51  ;;  %v7809_v51 = vld [vmem:[%s9339_s5 + $0xb0] sm:$0xff]  }
 0xa72   : > { %v7071_v33 = vpop.f32.mrb[35].mxu1  ;;  %v1990_v23 = vadd.f32 %v9543_v59, %v1385_v53 }
 0xa73   : > { %v2610_v34 = vpop.f32.mrb[16].mxu0  ;;  %v2080_v33 = vadd.f32 %v9577_v30, %v1401_v49  ;;  %v7807_v49 = vld [vmem:[%s9339_s5 + $0xa0] sm:$0xff]  }
 0xa74   : > { %v2662_v55 = vpack.c.bf16 %v2656_v25, %v2610_v34  ;;  %v7064_v57 = vpop.f32.mrb[17].mxu0  ;;  %v3139_v28 = vpack.c.bf16 %v1990_v23, %v1990_v23 }
 0xa75   : > { %v2613_v60 = vpop.f32.mrb[18].mxu0  ;;  %v3142_v34 = vpack.c.bf16 %v2080_v33, %v2080_v33 }
 0xa76   : > { %v7065_v24 = vpop.f32.mrb[19].mxu0  ;;  %7089 = vmatmul.mubr.bf16.vlgmr.msra.gmra.mrb[20].mxu0 %v2662_v55 }
 0xa77   : > { %7113 = vmatpush3.bf16.xpose.msra.mxu0 %v2843_v56  ;;  %7114 = vmatprep.mubr.msk.bf16.mxu0 %vm8631_vm2, %v8630_v46 }
 0xa78   : > { %7124 = vmatprep.subr.bf16.mxu0 %v8630_v46 }
 0xa7e   : > { %7115 = vmatmul.mubr.bf16.vlgmr.msra.gmra.mrb[24].mxu0 %v2841_v12 }
 0xa7f   : > { %7125 = vmatpush3.bf16.msra.mxu0 %v9585_v47  ;;  %7126 = vmatprep.mubr.msk.bf16.mxu0 %vm8631_vm2, %v8630_v46 }
 0xa80   : > { %7136 = vmatprep.subr.bf16.mxu0 %v8630_v46 }
 0xa8f   : > { %v2834_v27 = vpop.f32.mrb[36].mxu1 }
 0xa90   : > { %v7110_v61 = vpop.f32.mrb[37].mxu1 }
 0xa91   : > { %v2837_v63 = vpop.f32.mrb[38].mxu1 }
 0xa92   : > { %v7111_v1 = vpop.f32.mrb[39].mxu1 }
 0xa9c   : > { %v2919_v3 = vpop.f32.mrb[40].mxu1 }
 0xa9d   : > { %v2926_v4 = vmul.f32 0.35355338, %v2919_v3  ;;  %v7122_v6 = vpop.f32.mrb[41].mxu1 }
 0xa9e   : > { %v2922_v7 = vpop.f32.mrb[42].mxu1 }
 0xa9f   : > { %v7123_v9 = vpop.f32.mrb[43].mxu1  ;;  %v2928_v10 = vadd.f32 %v9614_v40, %v2926_v4 }
 0xaa1   : > { %v2932_v58 = vsel %vm2335_vm4, %v2928_v10, -inf }
 0xaa2   : > { %2933 = vmax.xlane.f32.xlu0 %v2932_v58 }
 0xb2f   : > { %v2934_v47 = vpop.xlane.xlu0 %2933 }
 0xb30   : > { %v2936_v11 = vsub.f32 %v2928_v10, %v2934_v47 }
 0xb32   : > { %v2939_v13 = vmul.f32 1.442695, %v2936_v11 }
 0xb34   : > { %7835 = vpow2.f32 %v2939_v13 }
 0xb3e   : > { %v7836_v15 = vpop.eup %7835 }
 0xb3f   : > { %v2944_v5 = vsel %vm2335_vm4, %v7836_v15, 0.0 }
 0xb40   : > { %2945 = vadd.xlane.f32.xlu1 %v2944_v5 }
 0xb49   : > { %v2745_v22 = vpop.f32.mrb[20].mxu0 }
 0xb4a   : > { %v9714_v17 = vadd.f32 %v2834_v27, %v2745_v22  ;;  %v7090_v14 = vpop.f32.mrb[21].mxu0 }
 0xb4b   : > { %v2748_v26 = vpop.f32.mrb[22].mxu0 }
 0xb4c   : > { %v9716_v31 = vadd.f32 %v2837_v63, %v2748_v26  ;;  %v7091_v35 = vpop.f32.mrb[23].mxu0 }
 0xb51   : > { %v2879_v36 = vpop.f32.mrb[24].mxu0 }
 0xb52   : > { %v2925_v54 = vmul.f32 0.35355338, %v2879_v36  ;;  %v7116_v37 = vpop.f32.mrb[25].mxu0 }
 0xb53   : > { %v2882_v18 = vpop.f32.mrb[26].mxu0 }
 0xb54   : > { %v7117_v38 = vpop.f32.mrb[27].mxu0  ;;  %v2927_v41 = vadd.f32 %v9605_v19, %v2925_v54 }
 0xb56   : > { %v2929_v42 = vsel %vm2335_vm4, %v2927_v41, -inf }
 0xb57   : > { %2930 = vmax.xlane.f32.xlu0 %v2929_v42  ;;  %v7804_v42 = vld [vmem:[%s9339_s5 + $0x88] sm:$0xff]  }
 0xbcd   : > { %v2946_v43 = vpop.xlane.xlu1 %2945 }
 0xbce   : > { %7837 = vrcp.f32 %v2946_v43  ;;  %v7805_v43 = vld [vmem:[%s9339_s5 + $0x90] sm:$0xff]  }
 0xbd8   : > { %v7838_v50 = vpop.eup %7837 }
 0xbd9   : > { %v2950_v52 = vmul.f32 %v7838_v50, %v7836_v15  ;;  %v7808_v50 = vld [vmem:[%s9339_s5 + $0xa8] sm:$0xff]  }
 0xbdb   : > { %v2952_v25 = vpack.c.bf16 %v2950_v52, %v2950_v52  ;;  %v7810_v52 = vld [vmem:[%s9339_s5 + $0xb8] sm:$0xff]  }
 0xbdd   : > { %7133 = vmatmul.mubr.msk.bf16.vlgmr.msra.gmra.mrb[44].mxu1 %vm2335_vm4, %v2952_v25 }
 0xbde   : > { %7157 = vmatpush3.bf16.xpose.msra.mxu1 %v3141_v29  ;;  %7158 = vmatprep.mubr.msk.bf16.mxu1 %vm8631_vm2, %v8630_v46 }
 0xbdf   : > { %7162 = vmatprep.subr.bf16.mxu1 %v8630_v46 }
 0xbe4   : > { %v2931_v59 = vpop.xlane.xlu0 %2930 }
 0xbe5   : > { %7159 = vmatmul.mubr.bf16.vlgmr.msra.gmra.mrb[48].mxu1 %v3139_v28  ;;  %v2935_v30 = vsub.f32 %v2927_v41, %v2931_v59  ;;  %v7803_v41 = vld [vmem:[%s9339_s5 + $0x80] sm:$0xff]  }
 0xbe6   : > { %7163 = vmatpush3.bf16.xpose.msra.mxu1 %v3142_v34  ;;  %7164 = vmatprep.mubr.msk.bf16.mxu1 %vm8631_vm2, %v8630_v46  ;;  %v7811_v59 = vld [vmem:[%s9339_s5 + $0xc0] sm:$0xff]  }
 0xbe7   : > { %7168 = vmatprep.subr.bf16.mxu1 %v8630_v46  ;;  %v2937_v55 = vmul.f32 1.442695, %v2935_v30 }
 0xbe9   : > { %7839 = vpow2.f32 %v2937_v55 }
 0xbed   : > { %7165 = vmatmul.mubr.bf16.vlgmr.msra.gmra.mrb[52].mxu1 %v3140_v32 }
 0xbee   : > { %7169 = vmatpush3.bf16.msra.mxu1 %v9588_v8  ;;  %7170 = vmatprep.mubr.msk.bf16.mxu1 %vm8631_vm2, %v8630_v46 }
 0xbef   : > { %7174 = vmatprep.subr.bf16.mxu1 %v8630_v46 }
 0xbf3   : > { %v7840_v3 = vpop.eup %7839 }
 0xbf4   : > { %v2941_v9 = vsel %vm2335_vm4, %v7840_v3, 0.0 }
 0xcb0   : > { %v9740_v57 = vpop.f32.mrb[44].mxu1 }
 0xcb1   : > { %v7134_v56 = vpop.f32.mrb[45].mxu1 }
 0xcb2   : > { %v3044_v60 = vpop.f32.mrb[46].mxu1 }
 0xcb3   : > { %v7135_v24 = vpop.f32.mrb[47].mxu1 }
 0xcb4   : > { %v7813_v24 = vld [vmem:[%s9339_s5 + $0xd0] sm:$0xff]  }
 0xcb8   : > { %v3177_v62 = vpop.f32.mrb[48].mxu1 }
 0xcb9   : > { %v3223_v12 = vmul.f32 0.35355338, %v3177_v62  ;;  %v7160_v27 = vpop.f32.mrb[49].mxu1  ;;  %v7815_v62 = vld [vmem:[%s9339_s5 + $0xe0] sm:$0xff]  }
 0xcba   : > { %v3180_v61 = vpop.f32.mrb[50].mxu1  ;;  %v7817_v27 = vld [vmem:[%s9339_s5 + $0xf0] sm:$0xff]  }
 0xcbb   : > { %v7161_v63 = vpop.f32.mrb[51].mxu1  ;;  %v3225_v8 = vadd.f32 %v9605_v19, %v3223_v12  ;;  %v7816_v12 = vld [vmem:[%s9339_s5 + $0xe8] sm:$0xff]   ;;  %v7818_v61 = vld [vmem:[%s9339_s5 + $0xf8] sm:$0xff]  }
 0xcbd   : > { %v3227_v1 = vsel %vm2335_vm4, %v3225_v8, -inf }
 0xcbe   : > { %3228 = vmax.xlane.f32.xlu1 %v3227_v1 }
 0xcc0   : > { %v3217_v4 = vpop.f32.mrb[52].mxu1 }
 0xcc1   : > { %v3224_v6 = vmul.f32 0.35355338, %v3217_v4  ;;  %v7166_v7 = vpop.f32.mrb[53].mxu1 }
 0xcc2   : > { %2942 = vadd.xlane.f32.xlu1 %v2941_v9  ;;  %v3220_v10 = vpop.f32.mrb[54].mxu1 }
 0xcc3   : > { %v7167_v58 = vpop.f32.mrb[55].mxu1  ;;  %v3226_v47 = vadd.f32 %v9614_v40, %v3224_v6 }
 0xcc5   : > { %v3230_v11 = vsel %vm2335_vm4, %v3226_v47, -inf }
 0xcc6   : > { %3231 = vmax.xlane.f32.xlu0 %v3230_v11 }
 0xd4b   : > { %v3229_v13 = vpop.xlane.xlu1 %3228 }
 0xd4c   : > { %v3233_v15 = vsub.f32 %v3225_v8, %v3229_v13 }
 0xd4e   : > { %v3235_v19 = vmul.f32 1.442695, %v3233_v15 }
 0xd4f   : > { %v2943_v5 = vpop.xlane.xlu1 %2942 }
 0xd50   : > { %7841 = vpow2.f32 %v3235_v19  ;;  %v6669_v19 = vld [vmem:[%s9342_s28] ss:$0 sm:$0xff] }
 0xd51   : > { %7843 = vrcp.f32 %v2943_v5 }
 0xd53   : > { %v3232_v22 = vpop.xlane.xlu0 %3231 }
 0xd54   : > { %v3234_v14 = vsub.f32 %v3226_v47, %v3232_v22 }
 0xd56   : > { %v3237_v26 = vmul.f32 1.442695, %v3234_v14 }
 0xd58   : > { %7845 = vpow2.f32 %v3237_v26 }
 0xd5a   : > { %v7842_v35 = vpop.eup %7841 }
 0xd5b   : > { %v7844_v36 = vpop.eup %7843  ;;  %v3239_v40 = vsel %vm2335_vm4, %v7842_v35, 0.0 }
 0xd5c   : > { %v2948_v54 = vmul.f32 %v7844_v36, %v7840_v3  ;;  %3240 = vadd.xlane.f32.xlu0 %v3239_v40 }
 0xd5e   : > { %v2951_v37 = vpack.c.bf16 %v2948_v54, %v2948_v54 }
 0xd60   : > { %7127 = vmatmul.mubr.msk.bf16.vlgmr.msra.gmra.mrb[28].mxu0 %vm2335_vm4, %v2951_v37 }
 0xd61   : > { %7152 = vmatprep.mubr.msk.bf16.mxu0 %vm8631_vm2, %v8630_v46  ;;  %7137 = vmatpush3.bf16.msra.mxu0 %v7803_v41 }
 0xd62   : > { %v7846_v18 = vpop.eup %7845  ;;  %7138 = vmatprep.subr.bf16.mxu0 %v8630_v46 }
 0xd63   : > { %v3242_v38 = vsel %vm2335_vm4, %v7846_v18, 0.0 }
 0xd64   : > { %3243 = vadd.xlane.f32.xlu1 %v3242_v38 }
 0xd65   : > { %7139 = vmatpush3.bf16.msra.mxu0 %v7804_v42 }
 0xd66   : > { %7140 = vmatprep.subr.bf16.mxu0 %v8630_v46 }
 0xd69   : > { %7141 = vmatpush3.bf16.msra.mxu0 %v7805_v43 }
 0xd6a   : > { %7142 = vmatprep.subr.bf16.mxu0 %v8630_v46 }
 0xd6d   : > { %7143 = vmatpush3.bf16.msra.mxu0 %v7806_v44 }
 0xd6e   : > { %7144 = vmatprep.subr.bf16.mxu0 %v8630_v46 }
 0xd71   : > { %7145 = vmatpush3.bf16.msra.mxu0 %v7807_v49 }
 0xd72   : > { %7146 = vmatprep.subr.bf16.mxu0 %v8630_v46 }
 0xd75   : > { %7147 = vmatpush3.bf16.msra.mxu0 %v7808_v50 }
 0xd76   : > { %7148 = vmatprep.subr.bf16.mxu0 %v8630_v46 }
 0xd79   : > { %7149 = vmatpush3.bf16.msra.mxu0 %v7809_v51 }
 0xd7a   : > { %7150 = vmatprep.subr.bf16.mxu0 %v8630_v46 }
 0xd7d   : > { %7151 = vmatpush3.bf16.msra.mxu0 %v7810_v52 }
 0xd7e   : > { %7180 = vmatprep.subr.bf16.mxu0 %v8630_v46 }
 0xde9   : > { %v3241_v53 = vpop.xlane.xlu0 %3240 }
 0xdea   : > { %7847 = vrcp.f32 %v3241_v53 }
 0xdf1   : > { %v3244_v25 = vpop.xlane.xlu1 %3243 }
 0xdf2   : > { %7849 = vrcp.f32 %v3244_v25 }
 0xdf4   : > { %v7848_v29 = vpop.eup %7847 }
 0xdf5   : > { %v3246_v23 = vmul.f32 %v7848_v29, %v7842_v35 }
 0xdf7   : > { %v3249_v33 = vpack.c.bf16 %v3246_v23, %v3246_v23 }
 0xdf9   : > { %7171 = vmatmul.mubr.msk.bf16.vlgmr.msra.gmra.mrb[56].mxu1 %vm2335_vm4, %v3249_v33 }
 0xdfa   : > { %7175 = vmatpush3.bf16.msra.mxu1 %v9596_v16  ;;  %7176 = vmatprep.mubr.msk.bf16.mxu1 %vm8631_vm2, %v8630_v46  ;;  %v7812_v16 = vld [vmem:[%s9339_s5 + $0xc8] sm:$0xff]  }
 0xdfc   : > { %v7850_v28 = vpop.eup %7849 }
 0xdfd   : > { %v3248_v34 = vmul.f32 %v7850_v28, %v7846_v18 }
 0xdff   : > { %v3250_v48 = vpack.c.bf16 %v3248_v34, %v3248_v34 }
 0xe01   : > { %7177 = vmatmul.mubr.msk.bf16.vlgmr.msra.gmra.mrb[60].mxu1 %vm2335_vm4, %v3250_v48 }
 0xe33   : > { %v2995_v32 = vpop.f32.mrb[28].mxu0 }
 0xe34   : > { %v3047_v30 = vpack.c.bf16 %v9740_v57, %v2995_v32  ;;  %v7128_v55 = vpop.f32.mrb[29].mxu0  ;;  %v7814_v57 = vld [vmem:[%s9339_s5 + $0xd8] sm:$0xff]  }
 0xe35   : > { %v2998_v56 = vpop.f32.mrb[30].mxu0 }
 0xe36   : > { %v7129_v60 = vpop.f32.mrb[31].mxu0  ;;  %7153 = vmatmul.mubr.bf16.vlgmr.msra.gmra.mrb[32].mxu0 %v3047_v30 }
 0xe37   : > { %7181 = vmatpush3.bf16.msra.mxu0 %v7811_v59  ;;  %7196 = vmatprep.mubr.msk.bf16.mxu0 %vm8631_vm2, %v8630_v46 }
 0xe38   : > { %7182 = vmatprep.subr.bf16.mxu0 %v8630_v46 }
 0xe3b   : > { %7183 = vmatpush3.bf16.msra.mxu0 %v7812_v16 }
 0xe3c   : > { %7184 = vmatprep.subr.bf16.mxu0 %v8630_v46 }
 0xe3f   : > { %7185 = vmatpush3.bf16.msra.mxu0 %v7813_v24 }
 0xe40   : > { %7186 = vmatprep.subr.bf16.mxu0 %v8630_v46 }
 0xe43   : > { %7187 = vmatpush3.bf16.msra.mxu0 %v7814_v57 }
 0xe44   : > { %7188 = vmatprep.subr.bf16.mxu0 %v8630_v46 }
 0xe47   : > { %7189 = vmatpush3.bf16.msra.mxu0 %v7815_v62 }
 0xe48   : > { %7190 = vmatprep.subr.bf16.mxu0 %v8630_v46 }
 0xe4b   : > { %7191 = vmatpush3.bf16.msra.mxu0 %v7816_v12 }
 0xe4c   : > { %7192 = vmatprep.subr.bf16.mxu0 %v8630_v46 }
 0xe4f   : > { %7193 = vmatpush3.bf16.msra.mxu0 %v7817_v27 }
 0xe50   : > { %7194 = vmatprep.subr.bf16.mxu0 %v8630_v46 }
 0xe53   : > { %7195 = vmatpush3.bf16.msra.mxu0 %v7818_v61 }
 0xecc   : > { %v3293_v63 = vpop.f32.mrb[56].mxu1 }
 0xecd   : > { %v7172_v8 = vpop.f32.mrb[57].mxu1 }
 0xece   : > { %v3296_v1 = vpop.f32.mrb[58].mxu1 }
 0xecf   : > { %v7173_v3 = vpop.f32.mrb[59].mxu1 }
 0xed4   : > { %v3339_v4 = vpop.f32.mrb[60].mxu1 }
 0xed5   : > { %v3345_v6 = vpack.c.bf16 %v3339_v4, %v3293_v63  ;;  %v7178_v7 = vpop.f32.mrb[61].mxu1 }
 0xed6   : > { %v3342_v9 = vpop.f32.mrb[62].mxu1 }
 0xed7   : > { %v7179_v10 = vpop.f32.mrb[63].mxu1  ;;  %7197 = vmatmul.mubr.bf16.vlgmr.msra.gmra.mrb[36].mxu0 %v3345_v6 }
 0xf09   : > { %v3130_v58 = vpop.f32.mrb[32].mxu0 }
 0xf0a   : > { %v3137_v47 = vadd.f32 %v3130_v58, %v9714_v17  ;;  %v7154_v11 = vpop.f32.mrb[33].mxu0 }
 0xf0b   : > { %v3133_v13 = vpop.f32.mrb[34].mxu0 }
 0xf0c   : > { %v3138_v46 = vadd.f32 %v3133_v13, %v9716_v31  ;;  %v7155_v15 = vpop.f32.mrb[35].mxu0 }
 0xfaa   : > { %v3428_v5 = vpop.f32.mrb[36].mxu0 }
 0xfab   : > { %v3435_v22 = vadd.f32 %v3428_v5, %v3137_v47  ;;  %v7198_v14 = vpop.f32.mrb[37].mxu0 }
 0xfac   : > { %v3431_v26 = vpop.f32.mrb[38].mxu0 }
 0xfad   : > { %v3443_v35 = vadd.f32 %v6669_v19, %v3435_v22  ;;  %v3436_v36 = vadd.f32 %v3431_v26, %v3138_v46  ;;  %v7199_v40 = vpop.f32.mrb[39].mxu0 }
 0xfaf   : > { %v3445_v54 = vadd.f32 %v3443_v35, %v9385_v20  ;;  %v3444_v37 = vadd.f32 %v6669_v19, %v3436_v36 }
 0xfb1   : > { %3447 = vst [vmem:[#allocation2] sm:$0xff] %v3445_v54  ;;  %v3446_v18 = vadd.f32 %v3444_v37, %v9388_v21 }
 0xfb3   : > { %3448 = vst [vmem:[#allocation2 + $0x8] sm:$0xff] %v3446_v18 }
 0xfb4 PF: > { %p6670_p6 = scmp.ne.s32.totalorder %s9396_s17, 1 }
 0xfb5   : > { %v7851_v17 = vld [vmem:[%s9320_s10 + $0x4] ss:$48 sps:$4 sm:$0xff] (!%p6670_p6)   ;;  %v7853_v31 = vld [vmem:[%s9320_s10 + $0xc] ss:$48 sps:$4 sm:$0xff] (!%p6670_p6)   ;;  %v8632_v38 = vmov (!%p6670_p6), 0   ;;  %s10391_s6 = sld [smem:[#allocation63_spill]] (!%p6670_p6) }
 0xfb6   : > { %3452 = sbr.rel (%p6670_p6) target bundleno = 6958 (0x1b2e), region = 188  ;;  %3699 = vmatprep.mubr.bf16.mxu0 (!%p6670_p6), %v8632_v38  ;;  %3742 = vmatprep.mubr.bf16.mxu1 (!%p6670_p6), %v8632_v38  ;;  %v7855_v41 = vld [vmem:[%s9320_s10] ss:$48 sps:$4 sm:$0xff] (!%p6670_p6)   ;;  %v7856_v42 = vld [vmem:[%s9320_s10 + $0x8] ss:$48 sps:$4 sm:$0xff] (!%p6670_p6)   ;;  %vm8635_vm5 = vmmov (!%p6670_p6), 0  }
 0xfb7   : > { %3667 = vmatprep.subr.bf16.mxu0 (!%p6670_p6), %v7851_v17  ;;  %3710 = vmatprep.subr.bf16.mxu1 (!%p6670_p6), %v7853_v31  ;;  %v7857_v43 = vld [vmem:[%s9320_s10 + $0x64] ss:$48 sps:$4 sm:$0xff] (!%p6670_p6)   ;;  %v7859_v44 = vld [vmem:[%s9320_s10 + $0x6c] ss:$48 sps:$4 sm:$0xff] (!%p6670_p6)   ;;  %v7861_v49 = vld [vmem:[%s9320_s10 + $0x60] ss:$48 sps:$4 sm:$0xff] (!%p6670_p6)  }
 0xfb8   : > { %3668 = vmatpush1.bf16.msra.mxu0 (!%p6670_p6), %v7855_v41  ;;  %3711 = vmatpush1.bf16.msra.mxu1 (!%p6670_p6), %v7856_v42  ;;  %v7862_v50 = vld [vmem:[%s9320_s10 + $0x68] ss:$48 sps:$4 sm:$0xff] (!%p6670_p6)   ;;  %v7863_v51 = vld [vmem:[%s9320_s10 + $0xc4] ss:$48 sps:$4 sm:$0xff] (!%p6670_p6)   ;;  %v7865_v52 = vld [vmem:[%s9320_s10 + $0xcc] ss:$48 sps:$4 sm:$0xff] (!%p6670_p6)  }
 0xfb9   : > { %3669 = vmatprep.subr.bf16.mxu0 (!%p6670_p6), %v7857_v43  ;;  %3712 = vmatprep.subr.bf16.mxu1 (!%p6670_p6), %v7859_v44  ;;  %v7867_v53 = vld [vmem:[%s9320_s10 + $0xc0] ss:$48 sps:$4 sm:$0xff] (!%p6670_p6)   ;;  %v7868_v25 = vld [vmem:[%s9320_s10 + $0xc8] ss:$48 sps:$4 sm:$0xff] (!%p6670_p6)   ;;  %v7869_v29 = vld [vmem:[%s9320_s10 + $0x124] ss:$48 sps:$4 sm:$0xff] (!%p6670_p6)  }
 0xfba   : > { %v7871_v23 = vld [vmem:[%s9320_s10 + $0x12c] ss:$48 sps:$4 sm:$0xff] (!%p6670_p6)   ;;  %v7873_v33 = vld [vmem:[%s9320_s10 + $0x120] ss:$48 sps:$4 sm:$0xff] (!%p6670_p6)   ;;  %v7874_v28 = vld [vmem:[%s9320_s10 + $0x128] ss:$48 sps:$4 sm:$0xff] (!%p6670_p6)  }
 0xfbb   : > { %v7875_v34 = vld [vmem:[%s9320_s10 + $0x184] ss:$48 sps:$4 sm:$0xff] (!%p6670_p6)   ;;  %v7877_v48 = vld [vmem:[%s9320_s10 + $0x18c] ss:$48 sps:$4 sm:$0xff] (!%p6670_p6)   ;;  %v7879_v32 = vld [vmem:[%s9320_s10 + $0x180] ss:$48 sps:$4 sm:$0xff] (!%p6670_p6)  }
 0xfbc   : > { %3670 = vmatpush1.bf16.msra.mxu0 (!%p6670_p6), %v7861_v49  ;;  %3713 = vmatpush1.bf16.msra.mxu1 (!%p6670_p6), %v7862_v50  ;;  %v7880_v59 = vld [vmem:[%s9320_s10 + $0x188] ss:$48 sps:$4 sm:$0xff] (!%p6670_p6)   ;;  %v7881_v30 = vld [vmem:[%s9320_s10 + $0x1e4] ss:$48 sps:$4 sm:$0xff] (!%p6670_p6)   ;;  %v7883_v55 = vld [vmem:[%s9320_s10 + $0x1ec] ss:$48 sps:$4 sm:$0xff] (!%p6670_p6)  }
 0xfbd   : > { %3671 = vmatprep.subr.bf16.mxu0 %v7863_v51  ;;  %3714 = vmatprep.subr.bf16.mxu1 %v7865_v52  ;;  %v7885_v56 = vld [vmem:[%s9320_s10 + $0x1e0] ss:$48 sps:$4 sm:$0xff]   ;;  %v7886_v60 = vld [vmem:[%s9320_s10 + $0x1e8] ss:$48 sps:$4 sm:$0xff]   ;;  %v7887_v16 = vld [vmem:[%s9320_s10 + $0x244] ss:$48 sps:$4 sm:$0xff]  }
 0xfbe   : > { %v7889_v24 = vld [vmem:[%s9320_s10 + $0x24c] ss:$48 sps:$4 sm:$0xff]   ;;  %v7891_v57 = vld [vmem:[%s9320_s10 + $0x240] ss:$48 sps:$4 sm:$0xff]   ;;  %v7892_v62 = vld [vmem:[%s9320_s10 + $0x248] ss:$48 sps:$4 sm:$0xff]  }
 0xfbf   : > { %v7893_v12 = vld [vmem:[%s9320_s10 + $0x2a4] ss:$48 sps:$4 sm:$0xff]   ;;  %v7895_v27 = vld [vmem:[%s9320_s10 + $0x2ac] ss:$48 sps:$4 sm:$0xff]   ;;  %v7897_v3 = vld [vmem:[%s9320_s10 + $0x2a0] ss:$48 sps:$4 sm:$0xff]  }
 0xfc0   : > { %3672 = vmatpush1.bf16.msra.mxu0 %v7867_v53  ;;  %3715 = vmatpush1.bf16.msra.mxu1 %v7868_v25  ;;  %v3767_v61 = vld [vmem:[%s9330_s23] sm:$0xff]  ;;  %v3768_v8 = vld [vmem:[%s9330_s23 + $0x8] sm:$0xff]  ;;  %vm4602_vm6 = vcmask 1040384   ;;  %s10392_s4 = sld [smem:[#allocation65_spill]]  ;;  %vm4572_vm7 = vcmask 15360  }
 0xfc1   : > { %3673 = vmatprep.subr.bf16.mxu0 %v7869_v29  ;;  %3716 = vmatprep.subr.bf16.mxu1 %v7871_v23  ;;  %v3771_v63 = vld [vmem:[%s9330_s23 + $0x20] sm:$0xff]  ;;  %v3772_v1 = vld [vmem:[%s9330_s23 + $0x28] sm:$0xff] }
 0xfc2   : > { %v7898_v4 = vld [vmem:[%s9320_s10 + $0x2a8] ss:$48 sps:$4 sm:$0xff]   ;;  %v6704_v6 = vcombine.high %v3767_v61, %v3771_v63  ;;  %v6706_v7 = vcombine.high %v3768_v8, %v3772_v1  ;;  %v3776_v58 = vld [vmem:[%s9330_s23 + $0x48] sm:$0xff]  ;;  %v6703_v11 = vcombine.low %v3767_v61, %v3771_v63  ;;  %v6705_v13 = vcombine.low %v3768_v8, %v3772_v1 }
 0xfc3   : > { %v3775_v9 = vld [vmem:[%s9330_s23 + $0x40] sm:$0xff]  ;;  %v3780_v47 = vld [vmem:[%s9330_s23 + $0x68] sm:$0xff] }
 0xfc4   : > { %3674 = vmatpush1.bf16.msra.mxu0 %v7873_v33  ;;  %3717 = vmatpush1.bf16.msra.mxu1 %v7874_v28  ;;  %v3779_v10 = vld [vmem:[%s9330_s23 + $0x60] sm:$0xff]  ;;  %v3784_v19 = vld [vmem:[%s9330_s23 + $0x88] sm:$0xff]  ;;  %v6714_v14 = vcombine.high %v3776_v58, %v3780_v47  ;;  %v6713_v35 = vcombine.low %v3776_v58, %v3780_v47 }
 0xfc5   : > { %3675 = vmatprep.subr.bf16.mxu0 %v7875_v34  ;;  %3718 = vmatprep.subr.bf16.mxu1 %v7877_v48  ;;  %v3783_v46 = vld [vmem:[%s9330_s23 + $0x80] sm:$0xff]  ;;  %v3788_v5 = vld [vmem:[%s9330_s23 + $0xa8] sm:$0xff]  ;;  %v6712_v22 = vcombine.high %v3775_v9, %v3779_v10  ;;  %v6711_v26 = vcombine.low %v3775_v9, %v3779_v10  ;;  %v8633_v48 = vmov 1983009808  }
 0xfc6   : > { %v3787_v15 = vld [vmem:[%s9330_s23 + $0xa0] sm:$0xff]  ;;  %v3792_v54 = vld [vmem:[%s9330_s23 + $0xc8] sm:$0xff]  ;;  %v6722_v17 = vcombine.high %v3784_v19, %v3788_v5  ;;  %v6721_v41 = vcombine.low %v3784_v19, %v3788_v5 }
 0xfc7   : > { %v3791_v36 = vld [vmem:[%s9330_s23 + $0xc0] sm:$0xff]  ;;  %v3796_v37 = vld [vmem:[%s9330_s23 + $0xe8] sm:$0xff]  ;;  %v6720_v18 = vcombine.high %v3783_v46, %v3787_v15  ;;  %v6719_v31 = vcombine.low %v3783_v46, %v3787_v15 }
 0xfc8   : > { %3676 = vmatpush1.bf16.msra.mxu0 %v7879_v32  ;;  %3719 = vmatpush1.bf16.msra.mxu1 %v7880_v59  ;;  %v3795_v40 = vld [vmem:[%s9330_s23 + $0xe0] sm:$0xff]  ;;  %v3800_v44 = vld [vmem:[%s9330_s23 + $0x108] sm:$0xff]  ;;  %v6730_v51 = vcombine.high %v3792_v54, %v3796_v37  ;;  %v6729_v53 = vcombine.low %v3792_v54, %v3796_v37  ;;  %v3759_v32 = vunpack.c.l.s4 %v8633_v48  ;;  %v3778_v54 = vld [vmem:[%s9330_s23 + $0x58] sm:$0xff] }
 0xfc9   : > { %3677 = vmatprep.subr.bf16.mxu0 %v7881_v30  ;;  %3720 = vmatprep.subr.bf16.mxu1 %v7883_v55  ;;  %v3799_v42 = vld [vmem:[%s9330_s23 + $0x100] sm:$0xff]  ;;  %v3804_v49 = vld [vmem:[%s9330_s23 + $0x128] sm:$0xff]  ;;  %v6728_v50 = vcombine.high %v3791_v36, %v3795_v40  ;;  %v6727_v52 = vcombine.low %v3791_v36, %v3795_v40  ;;  %v3769_v36 = vld [vmem:[%s9330_s23 + $0x10] sm:$0xff] }
 0xfca   : > { %v3803_v43 = vld [vmem:[%s9330_s23 + $0x120] sm:$0xff]  ;;  %v3808_v23 = vld [vmem:[%s9330_s23 + $0x148] sm:$0xff]  ;;  %v6738_v34 = vcombine.high %v3800_v44, %v3804_v49  ;;  %v6737_v30 = vcombine.low %v3800_v44, %v3804_v49  ;;  %v3773_v40 = vld [vmem:[%s9330_s23 + $0x30] sm:$0xff] }
 0xfcb   : > { %v3807_v25 = vld [vmem:[%s9330_s23 + $0x140] sm:$0xff]  ;;  %v3812_v33 = vld [vmem:[%s9330_s23 + $0x168] sm:$0xff]  ;;  %v6736_v28 = vcombine.high %v3799_v42, %v3803_v43  ;;  %v6735_v59 = vcombine.low %v3799_v42, %v3803_v43  ;;  %v6707_v37 = vcombine.low %v3769_v36, %v3773_v40  ;;  %v3786_v44 = vld [vmem:[%s9330_s23 + $0x98] sm:$0xff] }
 0xfcc   : > { %3678 = vmatpush1.bf16.msra.mxu0 %v7885_v56  ;;  %3721 = vmatpush1.bf16.msra.mxu1 %v7886_v60  ;;  %v3811_v29 = vld [vmem:[%s9330_s23 + $0x160] sm:$0xff]  ;;  %v3816_v60 = vld [vmem:[%s9330_s23 + $0x188] sm:$0xff]  ;;  %v6745_v63 = vcombine.low %v3808_v23, %v3812_v33  ;;  %v3790_v49 = vld [vmem:[%s9330_s23 + $0xb8] sm:$0xff] }
 0xfcd   : > { %3679 = vmatprep.subr.bf16.mxu0 %v7887_v16  ;;  %3722 = vmatprep.subr.bf16.mxu1 %v7889_v24  ;;  %v3815_v55 = vld [vmem:[%s9330_s23 + $0x180] sm:$0xff]  ;;  %v3820_v16 = vld [vmem:[%s9330_s23 + $0x1a8] sm:$0xff]  ;;  %v6744_v24 = vcombine.high %v3807_v25, %v3811_v29  ;;  %v6743_v61 = vcombine.low %v3807_v25, %v3811_v29  ;;  %v3798_v25 = vld [vmem:[%s9330_s23 + $0xf8] sm:$0xff] }
 0xfce   : > { %v3819_v56 = vld [vmem:[%s9330_s23 + $0x1a0] sm:$0xff]  ;;  %v6753_v47 = vcombine.low %v3816_v60, %v3820_v16  ;;  %v3797_v48 = vld [vmem:[%s9330_s23 + $0xf0] sm:$0xff] }
 0xfcf   : > { %v3823_v8 = vld [vmem:[%s9330_s23 + $0x1c0] sm:$0xff]  ;;  %v6751_v58 = vcombine.low %v3815_v55, %v3819_v56 }
 0xfd0   : > { %3680 = vmatpush1.bf16.msra.mxu0 %v7891_v57  ;;  %3723 = vmatpush1.bf16.msra.mxu1 %v7892_v62  ;;  %v6746_v57 = vcombine.high %v3808_v23, %v3812_v33  ;;  %v3753_v62 = vld [vmem:[%s10391_s6] sm:$0x3]  ;;  %v3827_v1 = vld [vmem:[%s9330_s23 + $0x1e0] sm:$0xff]  ;;  %v6725_v23 = vcombine.low %v3786_v44, %v3790_v49 }
 0xfd1   : > { %3681 = vmatprep.subr.bf16.mxu0 %v7893_v12  ;;  %3724 = vmatprep.subr.bf16.mxu1 %v7895_v27  ;;  %v3754_v12 = vld [vmem:[%s10391_s6 + $0x2] sm:$0x3]  ;;  %v3760_v27 = vunpack.c.0.s8 %v3759_v32  ;;  %v6759_v15 = vcombine.low %v3823_v8, %v3827_v1  ;;  %v3802_v32 = vld [vmem:[%s9330_s23 + $0x118] sm:$0xff] }
 0xfd2   : > { %v3757_v9 = vcombine.low %v3753_v62, %v3754_v12  ;;  %v3814_v62 = vld [vmem:[%s9330_s23 + $0x178] sm:$0xff] }
 0xfd3   : > { %v9874_v10 = vsub.s32 %v3760_v27, %v9398_v39 }
 0xfd4   : > { %3682 = vmatpush1.bf16.msra.mxu0 %v7897_v3  ;;  %3725 = vmatpush1.bf16.msra.mxu1 %v7898_v4  ;;  %v6752_v3 = vcombine.high %v3815_v55, %v3819_v56  ;;  %v6754_v4 = vcombine.high %v3816_v60, %v3820_v16  ;;  %v3801_v16 = vld [vmem:[%s9330_s23 + $0x110] sm:$0xff] }
 0xfd5   : > { %4193 = vmatprep.subr.bf16.mxu0 %v6704_v6  ;;  %4234 = vmatprep.subr.bf16.mxu1 %v6706_v7  ;;  %v3824_v6 = vld [vmem:[%s9330_s23 + $0x1c8] sm:$0xff]  ;;  %v3764_v46 = vrot.slane %v3757_v9, %v9874_v10 }
 0xfd6   : > { %v3828_v7 = vld [vmem:[%s9330_s23 + $0x1e8] sm:$0xff] }
 0xfd7   : > { %3700 = vmatmul.mubr.bf16.vlgmr.msra.gmra.mrb[0].mxu0 %v9412_v2  ;;  %3743 = vmatmul.mubr.bf16.vlgmr.msra.gmra.mrb[0].mxu1 %v9412_v2  ;;  %v6761_v19 = vcombine.low %v3824_v6, %v3828_v7  ;;  %v9877_v5 = vpack.c.bf16 %v3764_v46, %v3764_v46  ;;  %v3821_v46 = vld [vmem:[%s9330_s23 + $0x1b0] sm:$0xff] }
 0xfd8   : > { %4194 = vmatpush1.bf16.msra.mxu0 %v6703_v11  ;;  %4235 = vmatpush1.bf16.msra.mxu1 %v6705_v13  ;;  %v6760_v11 = vcombine.high %v3823_v8, %v3827_v1  ;;  %v6762_v13 = vcombine.high %v3824_v6, %v3828_v7  ;;  %v3809_v8 = vld [vmem:[%s9330_s23 + $0x150] sm:$0xff] }
 0xfd9   : > { %4195 = vmatprep.subr.bf16.mxu0 %v6712_v22  ;;  %4236 = vmatprep.subr.bf16.mxu1 %v6714_v14  ;;  %v3770_v22 = vld [vmem:[%s9330_s23 + $0x18] sm:$0xff]  ;;  %v3813_v1 = vld [vmem:[%s9330_s23 + $0x170] sm:$0xff] }
 0xfda   : > { %4225 = vmatprep.mubr.bf16.mxu0 %v8632_v38  ;;  %4266 = vmatprep.mubr.bf16.mxu1 %v8632_v38  ;;  %v3774_v14 = vld [vmem:[%s9330_s23 + $0x38] sm:$0xff]  ;;  %v6748_v9 = vcombine.high %v3809_v8, %v3813_v1 }
 0xfdc   : > { %4196 = vmatpush1.bf16.msra.mxu0 %v6711_v26  ;;  %4237 = vmatpush1.bf16.msra.mxu1 %v6713_v35  ;;  %v6710_v26 = vcombine.high %v3770_v22, %v3774_v14  ;;  %v6709_v35 = vcombine.low %v3770_v22, %v3774_v14  ;;  %v3830_v22 = vld [vmem:[%s9330_s23 + $0x1f8] sm:$0xff] }
 0xfdd   : > { %4197 = vmatprep.subr.bf16.mxu0 %v6720_v18  ;;  %4238 = vmatprep.subr.bf16.mxu1 %v6722_v17  ;;  %v6708_v18 = vcombine.high %v3769_v36, %v3773_v40  ;;  %v3782_v17 = vld [vmem:[%s9330_s23 + $0x78] sm:$0xff]  ;;  %v3825_v36 = vld [vmem:[%s9330_s23 + $0x1d0] sm:$0xff] }
 0xfde   : > { %v6718_v42 = vcombine.high %v3778_v54, %v3782_v17  ;;  %v3829_v40 = vld [vmem:[%s9330_s23 + $0x1f0] sm:$0xff] }
 0xfe0   : > { %4198 = vmatpush1.bf16.msra.mxu0 %v6719_v31  ;;  %4239 = vmatpush1.bf16.msra.mxu1 %v6721_v41  ;;  %v3777_v31 = vld [vmem:[%s9330_s23 + $0x50] sm:$0xff]  ;;  %v6717_v41 = vcombine.low %v3778_v54, %v3782_v17  ;;  %v6764_v54 = vcombine.high %v3825_v36, %v3829_v40  ;;  %v3497_v17 = vsub.s32 2, %v9398_v39 }
 0xfe1   : > { %4199 = vmatprep.subr.bf16.mxu0 %v6728_v50  ;;  %4240 = vmatprep.subr.bf16.mxu1 %v6730_v51  ;;  %v3785_v50 = vld [vmem:[%s9330_s23 + $0x90] sm:$0xff]  ;;  %v6726_v51 = vcombine.high %v3786_v44, %v3790_v49 }
 0xfe4   : > { %4200 = vmatpush1.bf16.msra.mxu0 %v6727_v52  ;;  %4241 = vmatpush1.bf16.msra.mxu1 %v6729_v53  ;;  %v3789_v52 = vld [vmem:[%s9330_s23 + $0xb0] sm:$0xff]  ;;  %v3794_v53 = vld [vmem:[%s9330_s23 + $0xd8] sm:$0xff] }
 0xfe5   : > { %4201 = vmatprep.subr.bf16.mxu0 %v6736_v28  ;;  %4242 = vmatprep.subr.bf16.mxu1 %v6738_v34  ;;  %v6724_v33 = vcombine.high %v3785_v50, %v3789_v52  ;;  %v6734_v28 = vcombine.high %v3794_v53, %v3798_v25  ;;  %v3793_v34 = vld [vmem:[%s9330_s23 + $0xd0] sm:$0xff]  ;;  %v6733_v55 = vcombine.low %v3794_v53, %v3798_v25 }
 0xfe6   : > { %v6732_v56 = vcombine.high %v3793_v34, %v3797_v48  ;;  %v6731_v12 = vcombine.low %v3793_v34, %v3797_v48 }
 0xfe8   : > { %4202 = vmatpush1.bf16.msra.mxu0 %v6735_v59  ;;  %4243 = vmatpush1.bf16.msra.mxu1 %v6737_v30  ;;  %v3806_v59 = vld [vmem:[%s9330_s23 + $0x138] sm:$0xff]  ;;  %v6723_v30 = vcombine.low %v3785_v50, %v3789_v52 }
 0xfe9   : > { %4203 = vmatprep.subr.bf16.mxu0 %v6744_v24  ;;  %4244 = vmatprep.subr.bf16.mxu1 %v6746_v57  ;;  %v6742_v60 = vcombine.high %v3802_v32, %v3806_v59  ;;  %v3805_v24 = vld [vmem:[%s9330_s23 + $0x130] sm:$0xff]  ;;  %v3810_v57 = vld [vmem:[%s9330_s23 + $0x158] sm:$0xff]  ;;  %v6741_v27 = vcombine.low %v3802_v32, %v3806_v59  ;;  %v3831_v32 = vld [vmem:[%s9332_s9] sm:$0xff] }
 0xfea   : > { %v6739_v6 = vcombine.low %v3801_v16, %v3805_v24  ;;  %v6749_v7 = vcombine.low %v3810_v57, %v3814_v62  ;;  %v3836_v59 = vrot.slane %v3831_v32, %v9404_v45 }
 0xfec   : > { %4204 = vmatpush1.bf16.msra.mxu0 %v6743_v61  ;;  %4245 = vmatpush1.bf16.msra.mxu1 %v6745_v63  ;;  %v6740_v61 = vcombine.high %v3801_v16, %v3805_v24  ;;  %v6750_v63 = vcombine.high %v3810_v57, %v3814_v62 }
 0xfed   : > { %4205 = vmatprep.subr.bf16.mxu0 %v6752_v3  ;;  %4246 = vmatprep.subr.bf16.mxu1 %v6754_v4  ;;  %v3818_v3 = vld [vmem:[%s9330_s23 + $0x198] sm:$0xff] }
 0xfee   : > { %v3822_v4 = vld [vmem:[%s9330_s23 + $0x1b8] sm:$0xff] }
 0xff0   : > { %4206 = vmatpush1.bf16.msra.mxu0 %v6751_v58  ;;  %4247 = vmatpush1.bf16.msra.mxu1 %v6753_v47  ;;  %v6758_v58 = vcombine.high %v3818_v3, %v3822_v4  ;;  %v6747_v47 = vcombine.low %v3809_v8, %v3813_v1 }
 0xff1   : > { %4207 = vmatprep.subr.bf16.mxu0 %v6760_v11  ;;  %4248 = vmatprep.subr.bf16.mxu1 %v6762_v13  ;;  %v6757_v11 = vcombine.low %v3818_v3, %v3822_v4  ;;  %v3817_v13 = vld [vmem:[%s9330_s23 + $0x190] sm:$0xff] }
 0xff2   : > { %v6755_v14 = vcombine.low %v3817_v13, %v3821_v46 }
 0xff4   : > { %4208 = vmatpush1.bf16.msra.mxu0 %v6759_v15  ;;  %4249 = vmatpush1.bf16.msra.mxu1 %v6761_v19  ;;  %v3826_v15 = vld [vmem:[%s9330_s23 + $0x1d8] sm:$0xff]  ;;  %v6756_v19 = vcombine.high %v3817_v13, %v3821_v46 }
 0xff5   : > { %4316 = vmatprep.subr.bf16.mxu1 %v6710_v26  ;;  %4275 = vmatprep.subr.bf16.mxu0 %v6708_v18  ;;  %v6765_v26 = vcombine.low %v3826_v15, %v3830_v22  ;;  %v8634_v18 = vmov 0.0  }
 0xff7   : > { %4226 = vmatmul.mubr.bf16.vlgmr.msra.gmra.mrb[4].mxu0 %v9877_v5  ;;  %4267 = vmatmul.mubr.bf16.vlgmr.msra.gmra.mrb[4].mxu1 %v9877_v5 }
 0xff8   : > { %4348 = vmatprep.mubr.bf16.mxu1 %v8632_v38  ;;  %4307 = vmatprep.mubr.bf16.mxu0 %v8632_v38  ;;  %v3781_v38 = vld [vmem:[%s9330_s23 + $0x70] sm:$0xff] }
 0xff9   : > { %4317 = vmatpush1.bf16.msra.mxu1 %v6709_v35  ;;  %v6716_v43 = vcombine.high %v3777_v31, %v3781_v38  ;;  %4276 = vmatpush1.bf16.msra.mxu0 %v6707_v37  ;;  %v6715_v29 = vcombine.low %v3777_v31, %v3781_v38  ;;  %v6766_v35 = vcombine.high %v3826_v15, %v3830_v22  ;;  %v3485_v31 = vld [vmem:[%s9322_s25] sm:$0xf]  ;;  %v3501_v38 = vsub.s32 3, %v9398_v39 }
 0xffa   : > { %4318 = vmatprep.subr.bf16.mxu1 %v6718_v42  ;;  %v6763_v37 = vcombine.low %v3825_v36, %v3829_v40  ;;  %v3493_v42 = vsub.s32 1, %v9398_v39 }
 0xffb   : > { %4277 = vmatprep.subr.bf16.mxu0 %v6716_v43  ;;  %v3502_v43 = vrot.slane %v3485_v31, %v3501_v38 }
 0xffc   : > { %v3494_v52 = vrot.slane %v3485_v31, %v3493_v42 }
 0xffd   : > { %4319 = vmatpush1.bf16.msra.mxu1 %v6717_v41  ;;  %4278 = vmatpush1.bf16.msra.mxu0 %v6715_v29  ;;  %v3498_v41 = vrot.slane %v3485_v31, %v3497_v17 }
 0xffe   : > { %4320 = vmatprep.subr.bf16.mxu1 %v6726_v51  ;;  %4279 = vmatprep.subr.bf16.mxu0 %v6724_v33 }
0x1001   : > { %4321 = vmatpush1.bf16.msra.mxu1 %v6725_v23  ;;  %4280 = vmatpush1.bf16.msra.mxu0 %v6723_v30  ;;  %v3844_v30 = vrot.slane %v3831_v32, %v3497_v17  ;;  %v3851_v17 = vsub.s32 4, %v9398_v39 }
0x1002   : > { %4322 = vmatprep.subr.bf16.mxu1 %v6734_v28  ;;  %4281 = vmatprep.subr.bf16.mxu0 %v6732_v56  ;;  %v3848_v56 = vrot.slane %v3831_v32, %v3501_v38  ;;  %v3855_v38 = vsub.s32 5, %v9398_v39 }
0x1005   : > { %4323 = vmatpush1.bf16.msra.mxu1 %v6733_v55  ;;  %4282 = vmatpush1.bf16.msra.mxu0 %v6731_v12  ;;  %v3840_v55 = vrot.slane %v3831_v32, %v3493_v42 }
0x1006   : > { %4324 = vmatprep.subr.bf16.mxu1 %v6742_v60  ;;  %4283 = vmatprep.subr.bf16.mxu0 %v6740_v61 }
0x1009   : > { %4325 = vmatpush1.bf16.msra.mxu1 %v6741_v27  ;;  %4284 = vmatpush1.bf16.msra.mxu0 %v6739_v6 }
0x100a   : > { %4326 = vmatprep.subr.bf16.mxu1 %v6750_v63  ;;  %4285 = vmatprep.subr.bf16.mxu0 %v6748_v9 }
0x100d   : > { %4327 = vmatpush1.bf16.msra.mxu1 %v6749_v7  ;;  %4286 = vmatpush1.bf16.msra.mxu0 %v6747_v47 }
0x100e   : > { %4328 = vmatprep.subr.bf16.mxu1 %v6758_v58  ;;  %4287 = vmatprep.subr.bf16.mxu0 %v6756_v19 }
0x1011   : > { %4329 = vmatpush1.bf16.msra.mxu1 %v6757_v11  ;;  %4288 = vmatpush1.bf16.msra.mxu0 %v6755_v14  ;;  %v3490_v11 = vrot.slane %v3485_v31, %v9404_v45 }
0x1012   : > { %4330 = vmatprep.subr.bf16.mxu1 %v6766_v35  ;;  %4289 = vmatprep.subr.bf16.mxu0 %v6764_v54  ;;  %v3859_v54 = vsub.s32 6, %v9398_v39 }
0x1014   : > { %v3860_v31 = vrot.slane %v3831_v32, %v3859_v54 }
0x1015   : > { %4331 = vmatpush1.bf16.msra.mxu1 %v6765_v26  ;;  %4290 = vmatpush1.bf16.msra.mxu0 %v6763_v37  ;;  %v3863_v37 = vsub.s32 7, %v9398_v39 }
0x1016   : > { %7200 = vmatprep.subr.bf16.mxu1 %v8634_v18  ;;  %7224 = vmatprep.subr.bf16.mxu0 %v8634_v18 }
0x1018   : > { %4349 = vmatmul.mubr.bf16.vlgmr.msra.gmra.mrb[8].mxu1 %v9877_v5  ;;  %4308 = vmatmul.mubr.bf16.vlgmr.msra.gmra.mrb[8].mxu0 %v9877_v5 }
0x1019   : > { %7202 = vmatprep.mubr.msk.bf16.mxu1 %vm8635_vm5, %v8634_v18  ;;  %7226 = vmatprep.mubr.msk.bf16.mxu0 %vm8635_vm5, %v8634_v18 }
0x10aa   : > { %v3701_v44 = vpop.f32.mrb[0].mxu0  ;;  %v3744_v49 = vpop.f32.mrb[0].mxu1 }
0x10ab   : > { %v9927_v5 = vadd.f32 %v3744_v49, %v3498_v41  ;;  %v3703_v50 = vpop.f32.mrb[1].mxu0  ;;  %v3746_v51 = vpop.f32.mrb[1].mxu1  ;;  %v3702_v19 = vadd.f32 %v3701_v44, %v3490_v11 }
0x10ac   : > { %v9929_v53 = vadd.f32 %v3746_v51, %v3502_v43  ;;  %v3705_v25 = vpop.f32.mrb[2].mxu0  ;;  %v3748_v29 = vpop.f32.mrb[2].mxu1  ;;  %v3704_v26 = vadd.f32 %v3703_v50, %v3494_v52  ;;  %v3856_v50 = vrot.slane %v3831_v32, %v3855_v38 }
0x10ad   : > { %v9931_v23 = vadd.f32 %v3748_v29, %v3498_v41  ;;  %v3707_v33 = vpop.f32.mrb[3].mxu0  ;;  %v3750_v28 = vpop.f32.mrb[3].mxu1  ;;  %v4472_v14 = vpack.c.bf16 %v3702_v19, %v3702_v19  ;;  %v3706_v36 = vadd.f32 %v3705_v25, %v3490_v11  ;;  %v3864_v41 = vrot.slane %v3831_v32, %v3863_v37 }
0x10ae   : > { %v9933_v34 = vadd.f32 %v3707_v33, %v3494_v52  ;;  %v9935_v48 = vadd.f32 %v3750_v28, %v3502_v43  ;;  %v4693_v45 = vpack.c.bf16 %v3704_v26, %v3704_v26  ;;  %v3852_v43 = vrot.slane %v3831_v32, %v3851_v17  ;;  %v9995_v17 = vld [vmem:[%s10392_s4] ss:$0 sm:$0xff] }
0x10af   : > { %v4473_v40 = vpack.c.bf16 %v3706_v36, %v3706_v36 }
0x10ca   : > { %v4227_v60 = vpop.f32.mrb[4].mxu0  ;;  %v4268_v16 = vpop.f32.mrb[4].mxu1 }
0x10cb   : > { %v4228_v24 = vadd.f32 %v4227_v60, %v3836_v59  ;;  %v4269_v57 = vadd.f32 %v4268_v16, %v3844_v30  ;;  %v4229_v62 = vpop.f32.mrb[5].mxu0  ;;  %v4270_v12 = vpop.f32.mrb[5].mxu1 }
0x10cc   : > { %v4230_v27 = vadd.f32 %v4229_v62, %v3840_v55  ;;  %v4271_v61 = vadd.f32 %v4270_v12, %v3848_v56  ;;  %v4231_v63 = vpop.f32.mrb[6].mxu0  ;;  %v4272_v8 = vpop.f32.mrb[6].mxu1 }
0x10cd   : > { %v4232_v1 = vpop.f32.mrb[7].mxu0  ;;  %v4273_v3 = vpop.f32.mrb[7].mxu1 }
0x10ce   : > { %v4361_v4 = vcombine.low %v4228_v24, %v4230_v27  ;;  %v4362_v6 = vcombine.low %v4269_v57, %v4271_v61 }
0x10d0   : > { %v4369_v7 = vrot.slane %v4361_v4, %v9874_v10  ;;  %v9941_v9 = vrot.slane %v4362_v6, %v9874_v10 }
0x10d2   : > { %v4377_v58 = vcombine.low %v4369_v7, %v9941_v9  ;;  %v9945_v47 = vcombine.high %v4369_v7, %v9941_v9 }
0x10d4   : > { %v4474_v13 = vpack.c.bf16 %v4377_v58, %v4377_v58  ;;  %v4701_v46 = vrot.slane %v4377_v58, %v9874_v10  ;;  %v4475_v35 = vpack.c.bf16 %v9945_v47, %v9945_v47 }
0x10d6   : > { %7201 = vmatpush3.bf16.xpose.msra.mxu1 %v4474_v13  ;;  %v4702_v15 = vcombine.high %v4701_v46, %v4701_v46 }
0x10d7   : > { %7206 = vmatprep.subr.bf16.mxu1 %v8634_v18 }
0x10d8   : > { %v4713_v22 = vpack.c.bf16 %v4702_v15, %v4702_v15 }
0x10da   : > { %7225 = vmatpush3.bf16.xpose.msra.mxu0 %v4713_v22 }
0x10db   : > { %7236 = vmatprep.subr.bf16.mxu0 %v8634_v18 }
0x10dd   : > { %7203 = vmatmul.mubr.bf16.vlgmr.msra.gmra.mrb[12].mxu1 %v4472_v14 }
0x10de   : > { %7207 = vmatpush3.bf16.xpose.msra.mxu1 %v4475_v35  ;;  %7208 = vmatprep.mubr.msk.bf16.mxu1 %vm8635_vm5, %v8634_v18 }
0x10df   : > { %7212 = vmatprep.subr.bf16.mxu1 %v8634_v18 }
0x10e1   : > { %7227 = vmatmul.mubr.bf16.vlgmr.msra.gmra.mrb[12].mxu0 %v4693_v45 }
0x10e2   : > { %7238 = vmatprep.mubr.msk.bf16.mxu0 %vm8635_vm5, %v8634_v18 }
0x10e5   : > { %7209 = vmatmul.mubr.bf16.vlgmr.msra.gmra.mrb[16].mxu1 %v4473_v40 }
0x10e6   : > { %7214 = vmatprep.mubr.msk.bf16.mxu1 %vm8635_vm5, %v8634_v18 }
0x10eb   : > { %v4350_v42 = vpop.f32.mrb[8].mxu1  ;;  %v4309_v25 = vpop.f32.mrb[8].mxu0 }
0x10ec   : > { %v4351_v44 = vadd.f32 %v4350_v42, %v3860_v31  ;;  %v4352_v49 = vpop.f32.mrb[9].mxu1  ;;  %v4310_v28 = vadd.f32 %v4309_v25, %v3852_v43  ;;  %v4311_v59 = vpop.f32.mrb[9].mxu0 }
0x10ed   : > { %v4353_v51 = vadd.f32 %v4352_v49, %v3864_v41  ;;  %v4354_v52 = vpop.f32.mrb[10].mxu1  ;;  %v4312_v30 = vadd.f32 %v4311_v59, %v3856_v50  ;;  %v4313_v55 = vpop.f32.mrb[10].mxu0 }
0x10ee   : > { %v4355_v29 = vpop.f32.mrb[11].mxu1  ;;  %v4314_v56 = vpop.f32.mrb[11].mxu0 }
0x10ef   : > { %v4386_v33 = vcombine.low %v4351_v44, %v4353_v51  ;;  %v4385_v16 = vcombine.low %v4310_v28, %v4312_v30  ;;  %v10004_v29 = vld [vmem:[%s10392_s4 + $0x1] ss:$0 sm:$0xff] }
0x10f1   : > { %v4400_v60 = vrot.slane %v4386_v33, %v9874_v10  ;;  %v4393_v39 = vrot.slane %v4385_v16, %v9874_v10 }
0x10f3   : > { %v4401_v24 = vcombine.low %v4393_v39, %v4400_v60  ;;  %v4402_v57 = vcombine.high %v4393_v39, %v4400_v60  ;;  %v6792_v27 = vcombine.high %v4400_v60, %v4400_v60  ;;  %v6791_v63 = vcombine.low %v4400_v60, %v4400_v60 }
0x10f5   : > { %v4597_v62 = vpack.c.bf16 %v4401_v24, %v4401_v24  ;;  %v4829_v32 = vrot.slane %v4401_v24, %v9874_v10  ;;  %v4598_v12 = vpack.c.bf16 %v4402_v57, %v4402_v57  ;;  %v4837_v61 = vrot.slane %v4402_v57, %v9874_v10 }
0x10f6   : > { %v5259_v4 = vrot.slane %v6792_v27, %v9874_v10  ;;  %v5251_v7 = vrot.slane %v6791_v63, %v9874_v10 }
0x10f7   : > { %v4604_v8 = vsel %vm4602_vm6, %v4597_v62, 0  ;;  %v4830_v1 = vcombine.high %v4829_v32, %v4829_v32  ;;  %v9970_v3 = vsel %vm4602_vm6, %v4598_v12, 0  ;;  %v4838_v6 = vcombine.high %v4837_v61, %v4837_v61 }
0x10f8   : > { %7213 = vmatpush3.bf16.msra.mxu1 %v4604_v8  ;;  %v5263_v11 = vpack.c.bf16 %v5259_v4, %v5259_v4  ;;  %v5262_v46 = vpack.c.bf16 %v5251_v7, %v5251_v7  ;;  %v5564_v15 = vcombine.high %v5251_v7, %v5251_v7  ;;  %v5565_v19 = vcombine.high %v5259_v4, %v5259_v4 }
0x10f9   : > { %v4841_v58 = vpack.c.bf16 %v4830_v1, %v4830_v1  ;;  %7218 = vmatprep.subr.bf16.mxu1 %v8634_v18  ;;  %v4842_v13 = vpack.c.bf16 %v4838_v6, %v4838_v6  ;;  %v4709_v7 = vrot.slane %v9945_v47, %v9874_v10  ;;  %v4694_v47 = vpack.c.bf16 %v9933_v34, %v9933_v34 }
0x10fa   : > { %v9977_v14 = vsel %vm4602_vm6, %v5263_v11, 0  ;;  %v9983_v35 = vsel %vm4602_vm6, %v5262_v46, 0  ;;  %v5568_v45 = vpack.c.bf16 %v5564_v15, %v5564_v15  ;;  %v5569_v36 = vpack.c.bf16 %v5565_v19, %v5565_v19 }
0x10fb   : > { %v4847_v22 = vsel %vm4602_vm6, %v4841_v58, 0  ;;  %v9980_v26 = vsel %vm4602_vm6, %v4842_v13, 0  ;;  %v4710_v13 = vcombine.high %v4709_v7, %v4709_v7  ;;  %v7901_v7 = vld [vmem:[%s9339_s5 + $0x10] sm:$0xff]  }
0x10fc   : > { %7237 = vmatpush3.bf16.msra.mxu0 %v4847_v22  ;;  %v9987_v40 = vsel %vm4602_vm6, %v5568_v45, 0  ;;  %v9990_v54 = vsel %vm4602_vm6, %v5569_v36, 0 }
0x10fd   : > { %7248 = vmatprep.subr.bf16.mxu0 %v8634_v18  ;;  %v4714_v15 = vpack.c.bf16 %v4710_v13, %v4710_v13  ;;  %v7909_v13 = vld [vmem:[%s9339_s5 + $0x50] sm:$0xff]  }
0x11b0   : > { %v4510_v37 = vpop.f32.mrb[12].mxu1 }
0x11b1   : > { %v4556_v31 = vmul.f32 0.35355338, %v4510_v37  ;;  %v7204_v38 = vpop.f32.mrb[13].mxu1 }
0x11b2   : > { %v4513_v41 = vpop.f32.mrb[14].mxu1 }
0x11b3   : > { %v7205_v42 = vpop.f32.mrb[15].mxu1  ;;  %v4570_v43 = vadd.f32 %v9995_v17, %v4556_v31 }
0x11b4   : > { %v9998_v44 = vpop.f32.mrb[12].mxu0 }
0x11b5   : > { %v7228_v49 = vpop.f32.mrb[13].mxu0  ;;  %v4573_v50 = vsel %vm4572_vm7, %v4570_v43, -inf }
0x11b6   : > { %v4752_v51 = vpop.f32.mrb[14].mxu0  ;;  %4574 = vmax.xlane.f32.xlu0 %v4573_v50 }
0x11b7   : > { %v7229_v52 = vpop.f32.mrb[15].mxu0 }
0x11b8   : > { %v4550_v25 = vpop.f32.mrb[16].mxu1 }
0x11b9   : > { %v4557_v33 = vmul.f32 0.35355338, %v4550_v25  ;;  %v7210_v28 = vpop.f32.mrb[17].mxu1 }
0x11ba   : > { %v4553_v59 = vpop.f32.mrb[18].mxu1 }
0x11bb   : > { %v7211_v30 = vpop.f32.mrb[19].mxu1  ;;  %v4571_v55 = vadd.f32 %v10004_v29, %v4557_v33 }
0x11bd   : > { %v4576_v56 = vsel %vm4572_vm7, %v4571_v55, -inf }
0x11be   : > { %4577 = vmax.xlane.f32.xlu0 %v4576_v56 }
0x1243   : > { %v4575_v60 = vpop.xlane.xlu0 %4574 }
0x1244   : > { %v4579_v16 = vsub.f32 %v4570_v43, %v4575_v60 }
0x1246   : > { %v4581_v39 = vmul.f32 1.442695, %v4579_v16 }
0x1248   : > { %7931 = vpow2.f32 %v4581_v39 }
0x124b   : > { %v4578_v24 = vpop.xlane.xlu0 %4577 }
0x124c   : > { %v4580_v57 = vsub.f32 %v4571_v55, %v4578_v24 }
0x124e   : > { %v4583_v62 = vmul.f32 1.442695, %v4580_v57 }
0x1250   : > { %7933 = vpow2.f32 %v4583_v62 }
0x1252   : > { %v7932_v32 = vpop.eup %7931 }
0x1253   : > { %v4585_v12 = vsel %vm4572_vm7, %v7932_v32, 0.0 }
0x1254   : > { %4586 = vadd.xlane.f32.xlu1 %v4585_v12 }
0x125a   : > { %v7934_v27 = vpop.eup %7933 }
0x125b   : > { %v4588_v61 = vsel %vm4572_vm7, %v7934_v27, 0.0 }
0x125c   : > { %4589 = vadd.xlane.f32.xlu1 %v4588_v61 }
0x12e1   : > { %v4587_v63 = vpop.xlane.xlu1 %4586 }
0x12e2   : > { %7935 = vrcp.f32 %v4587_v63 }
0x12e9   : > { %v4590_v8 = vpop.xlane.xlu1 %4589 }
0x12ea   : > { %7937 = vrcp.f32 %v4590_v8 }
0x12ec   : > { %v7936_v1 = vpop.eup %7935 }
0x12ed   : > { %v4592_v4 = vmul.f32 %v7936_v1, %v7932_v32  ;;  %v7900_v1 = vld [vmem:[%s9339_s5 + $0x8] sm:$0xff]  }
0x12ef   : > { %v4595_v6 = vpack.c.bf16 %v4592_v4, %v4592_v4  ;;  %v7907_v4 = vld [vmem:[%s9339_s5 + $0x40] sm:$0xff]  }
0x12f1   : > { %7215 = vmatmul.mubr.msk.bf16.vlgmr.msra.gmra.mrb[20].mxu1 %vm4572_vm7, %v4595_v6 }
0x12f2   : > { %7219 = vmatpush3.bf16.msra.mxu1 %v9970_v3  ;;  %7220 = vmatprep.mubr.msk.bf16.mxu1 %vm8635_vm5, %v8634_v18 }
0x12f3   : > { %7230 = vmatprep.subr.bf16.mxu1 %v8634_v18 }
0x12f4   : > { %v7938_v58 = vpop.eup %7937 }
0x12f5   : > { %v4594_v11 = vmul.f32 %v7938_v58, %v7934_v27  ;;  %v7899_v27 = vld [vmem:[%s9339_s5] sm:$0xff]   ;;  %v7908_v58 = vld [vmem:[%s9339_s5 + $0x48] sm:$0xff]  }
0x12f7   : > { %v4596_v46 = vpack.c.bf16 %v4594_v11, %v4594_v11  ;;  %v7902_v11 = vld [vmem:[%s9339_s5 + $0x18] sm:$0xff]  }
0x12f9   : > { %7221 = vmatmul.mubr.msk.bf16.vlgmr.msra.gmra.mrb[24].mxu1 %vm4572_vm7, %v4596_v46  ;;  %v7903_v46 = vld [vmem:[%s9339_s5 + $0x20] sm:$0xff]  }
0x12fa   : > { %7232 = vmatprep.mubr.msk.bf16.mxu1 %vm8635_vm5, %v8634_v18 }
0x12fb   : > { %7231 = vmatpush3.bf16.xpose.msra.mxu1 %v4714_v15  ;;  %v7910_v15 = vld [vmem:[%s9339_s5 + $0x58] sm:$0xff]  }
0x12fc   : > { %7242 = vmatprep.subr.bf16.mxu1 %v8634_v18 }
0x1302   : > { %7233 = vmatmul.mubr.bf16.vlgmr.msra.gmra.mrb[28].mxu1 %v4694_v47  ;;  %v7904_v47 = vld [vmem:[%s9339_s5 + $0x28] sm:$0xff]  }
0x1303   : > { %7243 = vmatpush3.bf16.msra.mxu1 %v9980_v26  ;;  %7244 = vmatprep.mubr.msk.bf16.mxu1 %vm8635_vm5, %v8634_v18  ;;  %v4795_v26 = vmul.f32 0.35355338, %v9998_v44 }
0x1304   : > { %7268 = vmatprep.subr.bf16.mxu1 %v8634_v18 }
0x1305   : > { %v4797_v25 = vadd.f32 %v9995_v17, %v4795_v26 }
0x1307   : > { %v4799_v33 = vsel %vm4572_vm7, %v4797_v25, -inf }
0x13c4   : > { %v10027_v3 = vpop.f32.mrb[20].mxu1 }
0x13c5   : > { %v7216_v19 = vpop.f32.mrb[21].mxu1 }
0x13c6   : > { %v4643_v22 = vpop.f32.mrb[22].mxu1  ;;  %v7911_v19 = vld [vmem:[%s9339_s5 + $0x60] sm:$0xff]  }
0x13c7   : > { %v7217_v45 = vpop.f32.mrb[23].mxu1  ;;  %v7905_v22 = vld [vmem:[%s9339_s5 + $0x30] sm:$0xff]  }
0x13c8   : > { %v7912_v45 = vld [vmem:[%s9339_s5 + $0x68] sm:$0xff]  }
0x13cc   : > { %v10029_v36 = vpop.f32.mrb[24].mxu1 }
0x13cd   : > { %v4692_v37 = vpack.c.bf16 %v10029_v36, %v10027_v3  ;;  %v7222_v31 = vpop.f32.mrb[25].mxu1  ;;  %v6789_v3 = vcombine.low %v9941_v9, %v9941_v9 }
0x13ce   : > { %v4689_v34 = vpop.f32.mrb[26].mxu1  ;;  %v7906_v31 = vld [vmem:[%s9339_s5 + $0x38] sm:$0xff]  }
0x13cf   : > { %v7223_v38 = vpop.f32.mrb[27].mxu1  ;;  %v7913_v34 = vld [vmem:[%s9339_s5 + $0x70] sm:$0xff]  }
0x13d0   : > { %v6790_v38 = vcombine.high %v9941_v9, %v9941_v9  ;;  %v5114_v9 = vpack.c.bf16 %v9927_v5, %v9927_v5 }
0x13d2   : > { %v10083_v26 = vrot.slane %v6790_v38, %v9874_v10 }
0x13d4   : > { %v5451_v38 = vcombine.high %v10083_v26, %v10083_v26 }
0x13d5   : > { %v4789_v41 = vpop.f32.mrb[28].mxu1 }
0x13d6   : > { %v4796_v42 = vmul.f32 0.35355338, %v4789_v41  ;;  %v7234_v43 = vpop.f32.mrb[29].mxu1  ;;  %v7914_v41 = vld [vmem:[%s9339_s5 + $0x78] sm:$0xff]  }
0x13d7   : > { %v4792_v49 = vpop.f32.mrb[30].mxu1  ;;  %v5115_v43 = vpack.c.bf16 %v9931_v23, %v9931_v23 }
0x13d8   : > { %v7235_v50 = vpop.f32.mrb[31].mxu1  ;;  %v4798_v51 = vadd.f32 %v10004_v29, %v4796_v42  ;;  %v5135_v42 = vpack.c.bf16 %v10083_v26, %v10083_v26 }
0x13d9   : > { %v5123_v50 = vrot.slane %v6789_v3, %v9874_v10 }
0x13da   : > { %v4802_v52 = vsel %vm4572_vm7, %v4798_v51, -inf }
0x13db   : > { %4803 = vmax.xlane.f32.xlu0 %v4802_v52 }
0x13df   : > { %4800 = vmax.xlane.f32.xlu0 %v4799_v33 }
0x1468   : > { %v4804_v28 = vpop.xlane.xlu0 %4803 }
0x1469   : > { %v4806_v59 = vsub.f32 %v4798_v51, %v4804_v28  ;;  %v5134_v28 = vpack.c.bf16 %v5123_v50, %v5123_v50 }
0x146b   : > { %v4809_v30 = vmul.f32 1.442695, %v4806_v59 }
0x146c   : > { %v4801_v55 = vpop.xlane.xlu0 %4800 }
0x146d   : > { %7939 = vpow2.f32 %v4809_v30  ;;  %v4805_v44 = vsub.f32 %v4797_v25, %v4801_v55 }
0x146f   : > { %v4807_v56 = vmul.f32 1.442695, %v4805_v44 }
0x1471   : > { %7941 = vpow2.f32 %v4807_v56 }
0x1477   : > { %v7940_v60 = vpop.eup %7939 }
0x1478   : > { %v4814_v16 = vsel %vm4572_vm7, %v7940_v60, 0.0 }
0x1479   : > { %4815 = vadd.xlane.f32.xlu1 %v4814_v16 }
0x147b   : > { %v7942_v39 = vpop.eup %7941 }
0x147c   : > { %v4811_v24 = vsel %vm4572_vm7, %v7942_v39, 0.0 }
0x147d   : > { %4812 = vadd.xlane.f32.xlu1 %v4811_v24 }
0x1506   : > { %v4816_v57 = vpop.xlane.xlu1 %4815 }
0x1507   : > { %7943 = vrcp.f32 %v4816_v57 }
0x150a   : > { %v4813_v62 = vpop.xlane.xlu1 %4812 }
0x150b   : > { %7945 = vrcp.f32 %v4813_v62 }
0x1511   : > { %v7944_v32 = vpop.eup %7943 }
0x1512   : > { %v4820_v12 = vmul.f32 %v7944_v32, %v7940_v60 }
0x1514   : > { %v4822_v61 = vpack.c.bf16 %v4820_v12, %v4820_v12 }
0x1515   : > { %v7946_v63 = vpop.eup %7945 }
0x1516   : > { %v4818_v8 = vmul.f32 %v7946_v63, %v7942_v39  ;;  %7245 = vmatmul.mubr.msk.bf16.vlgmr.msra.gmra.mrb[32].mxu1 %vm4572_vm7, %v4822_v61 }
0x1517   : > { %7269 = vmatpush3.bf16.msra.mxu1 %v7899_v27  ;;  %7284 = vmatprep.mubr.msk.bf16.mxu1 %vm8635_vm5, %v8634_v18 }
0x1518   : > { %7270 = vmatprep.subr.bf16.mxu1 %v8634_v18  ;;  %v4821_v6 = vpack.c.bf16 %v4818_v8, %v4818_v8 }
0x151a   : > { %7239 = vmatmul.mubr.msk.bf16.vlgmr.msra.gmra.mrb[16].mxu0 %vm4572_vm7, %v4821_v6 }
0x151b   : > { %7271 = vmatpush3.bf16.msra.mxu1 %v7900_v1  ;;  %7249 = vmatpush3.bf16.msra.mxu0 %v7907_v4 }
0x151c   : > { %7272 = vmatprep.subr.bf16.mxu1 %v8634_v18  ;;  %7250 = vmatprep.subr.bf16.mxu0 %v8634_v18 }
0x151d   : > { %7264 = vmatprep.mubr.msk.bf16.mxu0 %vm8635_vm5, %v8634_v18 }
0x151f   : > { %7273 = vmatpush3.bf16.msra.mxu1 %v7901_v7  ;;  %7251 = vmatpush3.bf16.msra.mxu0 %v7908_v58 }
0x1520   : > { %7274 = vmatprep.subr.bf16.mxu1 %v8634_v18  ;;  %7252 = vmatprep.subr.bf16.mxu0 %v8634_v18 }
0x1523   : > { %7275 = vmatpush3.bf16.msra.mxu1 %v7902_v11  ;;  %7253 = vmatpush3.bf16.msra.mxu0 %v7909_v13 }
0x1524   : > { %7276 = vmatprep.subr.bf16.mxu1 %v8634_v18  ;;  %7254 = vmatprep.subr.bf16.mxu0 %v8634_v18 }
0x1527   : > { %7277 = vmatpush3.bf16.msra.mxu1 %v7903_v46  ;;  %7255 = vmatpush3.bf16.msra.mxu0 %v7910_v15 }
0x1528   : > { %7278 = vmatprep.subr.bf16.mxu1 %v8634_v18  ;;  %7256 = vmatprep.subr.bf16.mxu0 %v8634_v18 }
0x152b   : > { %7279 = vmatpush3.bf16.msra.mxu1 %v7904_v47  ;;  %7257 = vmatpush3.bf16.msra.mxu0 %v7911_v19 }
0x152c   : > { %7280 = vmatprep.subr.bf16.mxu1 %v8634_v18  ;;  %7258 = vmatprep.subr.bf16.mxu0 %v8634_v18 }
0x152f   : > { %7281 = vmatpush3.bf16.msra.mxu1 %v7905_v22  ;;  %7259 = vmatpush3.bf16.msra.mxu0 %v7912_v45  ;;  %v5450_v22 = vcombine.high %v5123_v50, %v5123_v50 }
0x1530   : > { %7282 = vmatprep.subr.bf16.mxu1 %v8634_v18  ;;  %7260 = vmatprep.subr.bf16.mxu0 %v8634_v18 }
0x1533   : > { %7283 = vmatpush3.bf16.msra.mxu1 %v7906_v31  ;;  %7261 = vmatpush3.bf16.msra.mxu0 %v7913_v34  ;;  %v5454_v34 = vpack.c.bf16 %v5450_v22, %v5450_v22 }
0x1534   : > { %7294 = vmatprep.subr.bf16.mxu1 %v8634_v18  ;;  %7262 = vmatprep.subr.bf16.mxu0 %v8634_v18 }
0x1536   : > { %7285 = vmatmul.mubr.bf16.vlgmr.msra.gmra.mrb[36].mxu1 %v4692_v37 }
0x1537   : > { %7296 = vmatprep.mubr.msk.bf16.mxu1 %vm8635_vm5, %v8634_v18  ;;  %7263 = vmatpush3.bf16.msra.mxu0 %v7914_v41  ;;  %v5448_v41 = vpack.c.bf16 %v9929_v53, %v9929_v53 }
0x1538   : > { %7288 = vmatprep.subr.bf16.mxu0 %v8634_v18 }
0x153c   : > { %7295 = vmatpush3.bf16.xpose.msra.mxu1 %v5135_v42  ;;  %v5455_v42 = vpack.c.bf16 %v5451_v38, %v5451_v38 }
0x153d   : > { %7306 = vmatprep.subr.bf16.mxu1 %v8634_v18 }
0x1543   : > { %7297 = vmatmul.mubr.bf16.vlgmr.msra.gmra.mrb[40].mxu1 %v5115_v43  ;;  %v5449_v43 = vpack.c.bf16 %v9935_v48, %v9935_v48 }
0x1544   : > { %7307 = vmatpush3.bf16.msra.mxu1 %v9977_v14  ;;  %7308 = vmatprep.mubr.msk.bf16.mxu1 %vm8635_vm5, %v8634_v18 }
0x1545   : > { %7332 = vmatprep.subr.bf16.mxu1 %v8634_v18 }
0x15e9   : > { %v4929_v36 = vpop.f32.mrb[32].mxu1 }
0x15ea   : > { %v7246_v37 = vpop.f32.mrb[33].mxu1 }
0x15eb   : > { %v4932_v49 = vpop.f32.mrb[34].mxu1 }
0x15ec   : > { %v7247_v51 = vpop.f32.mrb[35].mxu1 }
0x15ed   : > { %v4883_v52 = vpop.f32.mrb[16].mxu0 }
0x15ee   : > { %v4935_v25 = vpack.c.bf16 %v4929_v36, %v4883_v52  ;;  %v7240_v23 = vpop.f32.mrb[17].mxu0 }
0x15ef   : > { %v4886_v33 = vpop.f32.mrb[18].mxu0 }
0x15f0   : > { %v7241_v14 = vpop.f32.mrb[19].mxu0  ;;  %7265 = vmatmul.mubr.bf16.vlgmr.msra.gmra.mrb[20].mxu0 %v4935_v25 }
0x15f1   : > { %7289 = vmatpush3.bf16.xpose.msra.mxu0 %v5134_v28  ;;  %7290 = vmatprep.mubr.msk.bf16.mxu0 %vm8635_vm5, %v8634_v18 }
0x15f2   : > { %7300 = vmatprep.subr.bf16.mxu0 %v8634_v18 }
0x15f8   : > { %7291 = vmatmul.mubr.bf16.vlgmr.msra.gmra.mrb[24].mxu0 %v5114_v9 }
0x15f9   : > { %7301 = vmatpush3.bf16.msra.mxu0 %v9983_v35  ;;  %7302 = vmatprep.mubr.msk.bf16.mxu0 %vm8635_vm5, %v8634_v18 }
0x15fa   : > { %7312 = vmatprep.subr.bf16.mxu0 %v8634_v18 }
0x1609   : > { %v5107_v10 = vpop.f32.mrb[36].mxu1 }
0x160a   : > { %v7286_v59 = vpop.f32.mrb[37].mxu1 }
0x160b   : > { %v5110_v30 = vpop.f32.mrb[38].mxu1 }
0x160c   : > { %v7287_v55 = vpop.f32.mrb[39].mxu1 }
0x1616   : > { %v5210_v44 = vpop.f32.mrb[40].mxu1 }
0x1617   : > { %v5217_v56 = vmul.f32 0.35355338, %v5210_v44  ;;  %v7298_v60 = vpop.f32.mrb[41].mxu1 }
0x1618   : > { %v5213_v16 = vpop.f32.mrb[42].mxu1 }
0x1619   : > { %v7299_v39 = vpop.f32.mrb[43].mxu1  ;;  %v5219_v24 = vadd.f32 %v10004_v29, %v5217_v56 }
0x161b   : > { %v5223_v5 = vsel %vm4572_vm7, %v5219_v24, -inf }
0x161c   : > { %5224 = vmax.xlane.f32.xlu0 %v5223_v5 }
0x16a9   : > { %v5225_v35 = vpop.xlane.xlu0 %5224 }
0x16aa   : > { %v5227_v57 = vsub.f32 %v5219_v24, %v5225_v35 }
0x16ac   : > { %v5230_v62 = vmul.f32 1.442695, %v5227_v57 }
0x16ae   : > { %7947 = vpow2.f32 %v5230_v62 }
0x16b8   : > { %v7948_v32 = vpop.eup %7947 }
0x16b9   : > { %v5235_v12 = vsel %vm4572_vm7, %v7948_v32, 0.0 }
0x16ba   : > { %5236 = vadd.xlane.f32.xlu1 %v5235_v12 }
0x16c3   : > { %v5018_v27 = vpop.f32.mrb[20].mxu0 }
0x16c4   : > { %v10112_v61 = vadd.f32 %v5107_v10, %v5018_v27  ;;  %v7266_v63 = vpop.f32.mrb[21].mxu0 }
0x16c5   : > { %v5021_v8 = vpop.f32.mrb[22].mxu0 }
0x16c6   : > { %v10114_v1 = vadd.f32 %v5110_v30, %v5021_v8  ;;  %v7267_v4 = vpop.f32.mrb[23].mxu0  ;;  %v7915_v8 = vld [vmem:[%s9339_s5 + $0x80] sm:$0xff]  }
0x16c7   : > { %v7916_v4 = vld [vmem:[%s9339_s5 + $0x88] sm:$0xff]  }
0x16cb   : > { %v5170_v6 = vpop.f32.mrb[24].mxu0 }
0x16cc   : > { %v5216_v7 = vmul.f32 0.35355338, %v5170_v6  ;;  %v7292_v58 = vpop.f32.mrb[25].mxu0  ;;  %v7917_v6 = vld [vmem:[%s9339_s5 + $0x90] sm:$0xff]  }
0x16cd   : > { %v5173_v11 = vpop.f32.mrb[26].mxu0  ;;  %v7919_v58 = vld [vmem:[%s9339_s5 + $0xa0] sm:$0xff]  }
0x16ce   : > { %v7293_v13 = vpop.f32.mrb[27].mxu0  ;;  %v5218_v46 = vadd.f32 %v9995_v17, %v5216_v7  ;;  %v7918_v7 = vld [vmem:[%s9339_s5 + $0x98] sm:$0xff]   ;;  %v7920_v11 = vld [vmem:[%s9339_s5 + $0xa8] sm:$0xff]  }
0x16cf   : > { %v7921_v13 = vld [vmem:[%s9339_s5 + $0xb0] sm:$0xff]  }
0x16d0   : > { %v5220_v15 = vsel %vm4572_vm7, %v5218_v46, -inf }
0x16d1   : > { %5221 = vmax.xlane.f32.xlu0 %v5220_v15 }
0x1747   : > { %v5237_v47 = vpop.xlane.xlu1 %5236 }
0x1748   : > { %7949 = vrcp.f32 %v5237_v47 }
0x1752   : > { %v7950_v19 = vpop.eup %7949 }
0x1753   : > { %v5241_v45 = vmul.f32 %v7950_v19, %v7948_v32 }
0x1755   : > { %v5243_v31 = vpack.c.bf16 %v5241_v45, %v5241_v45 }
0x1757   : > { %7309 = vmatmul.mubr.msk.bf16.vlgmr.msra.gmra.mrb[44].mxu1 %vm4572_vm7, %v5243_v31 }
0x1758   : > { %7333 = vmatpush3.bf16.xpose.msra.mxu1 %v5454_v34  ;;  %7334 = vmatprep.mubr.msk.bf16.mxu1 %vm8635_vm5, %v8634_v18 }
0x1759   : > { %7338 = vmatprep.subr.bf16.mxu1 %v8634_v18 }
0x175e   : > { %v5222_v53 = vpop.xlane.xlu0 %5221 }
0x175f   : > { %7335 = vmatmul.mubr.bf16.vlgmr.msra.gmra.mrb[48].mxu1 %v5448_v41  ;;  %v5226_v26 = vsub.f32 %v5218_v46, %v5222_v53  ;;  %v7922_v46 = vld [vmem:[%s9339_s5 + $0xb8] sm:$0xff]  }
0x1760   : > { %7339 = vmatpush3.bf16.xpose.msra.mxu1 %v5455_v42  ;;  %7340 = vmatprep.mubr.msk.bf16.mxu1 %vm8635_vm5, %v8634_v18  ;;  %v7923_v42 = vld [vmem:[%s9339_s5 + $0xc0] sm:$0xff]  }
0x1761   : > { %7344 = vmatprep.subr.bf16.mxu1 %v8634_v18  ;;  %v5228_v3 = vmul.f32 1.442695, %v5226_v26 }
0x1763   : > { %7951 = vpow2.f32 %v5228_v3 }
0x1767   : > { %7341 = vmatmul.mubr.bf16.vlgmr.msra.gmra.mrb[52].mxu1 %v5449_v43 }
0x1768   : > { %7345 = vmatpush3.bf16.msra.mxu1 %v9987_v40  ;;  %7346 = vmatprep.mubr.msk.bf16.mxu1 %vm8635_vm5, %v8634_v18 }
0x1769   : > { %7350 = vmatprep.subr.bf16.mxu1 %v8634_v18 }
0x176d   : > { %v7952_v28 = vpop.eup %7951 }
0x176e   : > { %v5232_v59 = vsel %vm4572_vm7, %v7952_v28, 0.0 }
0x182a   : > { %v10135_v36 = vpop.f32.mrb[44].mxu1 }
0x182b   : > { %v7310_v37 = vpop.f32.mrb[45].mxu1 }
0x182c   : > { %v5353_v49 = vpop.f32.mrb[46].mxu1  ;;  %v7925_v37 = vld [vmem:[%s9339_s5 + $0xd0] sm:$0xff]  }
0x182d   : > { %v7311_v50 = vpop.f32.mrb[47].mxu1  ;;  %v7927_v49 = vld [vmem:[%s9339_s5 + $0xe0] sm:$0xff]  }
0x182e   : > { %v7928_v50 = vld [vmem:[%s9339_s5 + $0xe8] sm:$0xff]  }
0x1832   : > { %v5490_v51 = vpop.f32.mrb[48].mxu1 }
0x1833   : > { %v5536_v52 = vmul.f32 0.35355338, %v5490_v51  ;;  %v7336_v48 = vpop.f32.mrb[49].mxu1  ;;  %v7929_v51 = vld [vmem:[%s9339_s5 + $0xf0] sm:$0xff]  }
0x1834   : > { %v5493_v25 = vpop.f32.mrb[50].mxu1 }
0x1835   : > { %v7337_v23 = vpop.f32.mrb[51].mxu1  ;;  %v5538_v40 = vadd.f32 %v9995_v17, %v5536_v52  ;;  %v7930_v52 = vld [vmem:[%s9339_s5 + $0xf8] sm:$0xff]  }
0x1837   : > { %v5540_v33 = vsel %vm4572_vm7, %v5538_v40, -inf }
0x1838   : > { %5541 = vmax.xlane.f32.xlu1 %v5540_v33 }
0x183a   : > { %v5530_v14 = vpop.f32.mrb[52].mxu1 }
0x183b   : > { %v5537_v9 = vmul.f32 0.35355338, %v5530_v14  ;;  %v7342_v10 = vpop.f32.mrb[53].mxu1 }
0x183c   : > { %5233 = vadd.xlane.f32.xlu1 %v5232_v59  ;;  %v5533_v30 = vpop.f32.mrb[54].mxu1 }
0x183d   : > { %v7343_v55 = vpop.f32.mrb[55].mxu1  ;;  %v5539_v44 = vadd.f32 %v10004_v29, %v5537_v9 }
0x183f   : > { %v5543_v56 = vsel %vm4572_vm7, %v5539_v44, -inf }
0x1840   : > { %5544 = vmax.xlane.f32.xlu0 %v5543_v56 }
0x18c5   : > { %v5542_v60 = vpop.xlane.xlu1 %5541 }
0x18c6   : > { %v5546_v16 = vsub.f32 %v5538_v40, %v5542_v60  ;;  %v6813_v60 = vld [vmem:[%s9342_s28] ss:$0 sm:$0xff] }
0x18c8   : > { %v5548_v17 = vmul.f32 1.442695, %v5546_v16 }
0x18c9   : > { %v5234_v39 = vpop.xlane.xlu1 %5233 }
0x18ca   : > { %7953 = vpow2.f32 %v5548_v17 }
0x18cb   : > { %7955 = vrcp.f32 %v5234_v39 }
0x18cd   : > { %v5545_v24 = vpop.xlane.xlu0 %5544 }
0x18ce   : > { %v5547_v5 = vsub.f32 %v5539_v44, %v5545_v24 }
0x18d0   : > { %v5550_v35 = vmul.f32 1.442695, %v5547_v5 }
0x18d2   : > { %7957 = vpow2.f32 %v5550_v35 }
0x18d4   : > { %v7954_v57 = vpop.eup %7953 }
0x18d5   : > { %v7956_v62 = vpop.eup %7955  ;;  %v5552_v29 = vsel %vm4572_vm7, %v7954_v57, 0.0 }
0x18d6   : > { %v5239_v32 = vmul.f32 %v7956_v62, %v7952_v28  ;;  %5553 = vadd.xlane.f32.xlu0 %v5552_v29 }
0x18d8   : > { %v5242_v12 = vpack.c.bf16 %v5239_v32, %v5239_v32 }
0x18da   : > { %7303 = vmatmul.mubr.msk.bf16.vlgmr.msra.gmra.mrb[28].mxu0 %vm4572_vm7, %v5242_v12 }
0x18db   : > { %7328 = vmatprep.mubr.msk.bf16.mxu0 %vm8635_vm5, %v8634_v18  ;;  %7313 = vmatpush3.bf16.msra.mxu0 %v7915_v8 }
0x18dc   : > { %v7958_v27 = vpop.eup %7957  ;;  %7314 = vmatprep.subr.bf16.mxu0 %v8634_v18 }
0x18dd   : > { %v5555_v63 = vsel %vm4572_vm7, %v7958_v27, 0.0 }
0x18de   : > { %5556 = vadd.xlane.f32.xlu1 %v5555_v63 }
0x18df   : > { %7315 = vmatpush3.bf16.msra.mxu0 %v7916_v4 }
0x18e0   : > { %7316 = vmatprep.subr.bf16.mxu0 %v8634_v18 }
0x18e3   : > { %7317 = vmatpush3.bf16.msra.mxu0 %v7917_v6 }
0x18e4   : > { %7318 = vmatprep.subr.bf16.mxu0 %v8634_v18 }
0x18e7   : > { %7319 = vmatpush3.bf16.msra.mxu0 %v7918_v7 }
0x18e8   : > { %7320 = vmatprep.subr.bf16.mxu0 %v8634_v18 }
0x18eb   : > { %7321 = vmatpush3.bf16.msra.mxu0 %v7919_v58 }
0x18ec   : > { %7322 = vmatprep.subr.bf16.mxu0 %v8634_v18 }
0x18ef   : > { %7323 = vmatpush3.bf16.msra.mxu0 %v7920_v11 }
0x18f0   : > { %7324 = vmatprep.subr.bf16.mxu0 %v8634_v18 }
0x18f3   : > { %7325 = vmatpush3.bf16.msra.mxu0 %v7921_v13 }
0x18f4   : > { %7326 = vmatprep.subr.bf16.mxu0 %v8634_v18 }
0x18f7   : > { %7327 = vmatpush3.bf16.msra.mxu0 %v7922_v46 }
0x18f8   : > { %7356 = vmatprep.subr.bf16.mxu0 %v8634_v18 }
0x1963   : > { %v5554_v15 = vpop.xlane.xlu0 %5553 }
0x1964   : > { %7959 = vrcp.f32 %v5554_v15 }
0x196b   : > { %v5557_v47 = vpop.xlane.xlu1 %5556 }
0x196c   : > { %7961 = vrcp.f32 %v5557_v47 }
0x196e   : > { %v7960_v19 = vpop.eup %7959 }
0x196f   : > { %v5559_v22 = vmul.f32 %v7960_v19, %v7954_v57 }
0x1971   : > { %v5562_v45 = vpack.c.bf16 %v5559_v22, %v5559_v22 }
0x1973   : > { %7347 = vmatmul.mubr.msk.bf16.vlgmr.msra.gmra.mrb[56].mxu1 %vm4572_vm7, %v5562_v45 }
0x1974   : > { %7351 = vmatpush3.bf16.msra.mxu1 %v9990_v54  ;;  %7352 = vmatprep.mubr.msk.bf16.mxu1 %vm8635_vm5, %v8634_v18  ;;  %v7924_v54 = vld [vmem:[%s9339_s5 + $0xc8] sm:$0xff]  }
0x1976   : > { %v7962_v31 = vpop.eup %7961 }
0x1977   : > { %v5561_v34 = vmul.f32 %v7962_v31, %v7958_v27 }
0x1979   : > { %v5563_v38 = vpack.c.bf16 %v5561_v34, %v5561_v34 }
0x197b   : > { %7353 = vmatmul.mubr.msk.bf16.vlgmr.msra.gmra.mrb[60].mxu1 %vm4572_vm7, %v5563_v38 }
0x19ad   : > { %v5304_v41 = vpop.f32.mrb[28].mxu0 }
0x19ae   : > { %v5356_v43 = vpack.c.bf16 %v10135_v36, %v5304_v41  ;;  %v7304_v53 = vpop.f32.mrb[29].mxu0  ;;  %v7926_v36 = vld [vmem:[%s9339_s5 + $0xd8] sm:$0xff]  }
0x19af   : > { %v5307_v26 = vpop.f32.mrb[30].mxu0 }
0x19b0   : > { %v7305_v3 = vpop.f32.mrb[31].mxu0  ;;  %7329 = vmatmul.mubr.bf16.vlgmr.msra.gmra.mrb[32].mxu0 %v5356_v43 }
0x19b1   : > { %7357 = vmatpush3.bf16.msra.mxu0 %v7923_v42  ;;  %7372 = vmatprep.mubr.msk.bf16.mxu0 %vm8635_vm5, %v8634_v18 }
0x19b2   : > { %7358 = vmatprep.subr.bf16.mxu0 %v8634_v18 }
0x19b5   : > { %7359 = vmatpush3.bf16.msra.mxu0 %v7924_v54 }
0x19b6   : > { %7360 = vmatprep.subr.bf16.mxu0 %v8634_v18 }
0x19b9   : > { %7361 = vmatpush3.bf16.msra.mxu0 %v7925_v37 }
0x19ba   : > { %7362 = vmatprep.subr.bf16.mxu0 %v8634_v18 }
0x19bd   : > { %7363 = vmatpush3.bf16.msra.mxu0 %v7926_v36 }
0x19be   : > { %7364 = vmatprep.subr.bf16.mxu0 %v8634_v18 }
0x19c1   : > { %7365 = vmatpush3.bf16.msra.mxu0 %v7927_v49 }
0x19c2   : > { %7366 = vmatprep.subr.bf16.mxu0 %v8634_v18 }
0x19c5   : > { %7367 = vmatpush3.bf16.msra.mxu0 %v7928_v50 }
0x19c6   : > { %7368 = vmatprep.subr.bf16.mxu0 %v8634_v18 }
0x19c9   : > { %7369 = vmatpush3.bf16.msra.mxu0 %v7929_v51 }
0x19ca   : > { %7370 = vmatprep.subr.bf16.mxu0 %v8634_v18 }
0x19cd   : > { %7371 = vmatpush3.bf16.msra.mxu0 %v7930_v52 }
0x1a46   : > { %v5610_v48 = vpop.f32.mrb[56].mxu1 }
0x1a47   : > { %v7348_v25 = vpop.f32.mrb[57].mxu1 }
0x1a48   : > { %v5613_v23 = vpop.f32.mrb[58].mxu1 }
0x1a49   : > { %v7349_v40 = vpop.f32.mrb[59].mxu1 }
0x1a4e   : > { %v5656_v33 = vpop.f32.mrb[60].mxu1 }
0x1a4f   : > { %v5662_v28 = vpack.c.bf16 %v5656_v33, %v5610_v48  ;;  %v7354_v14 = vpop.f32.mrb[61].mxu1 }
0x1a50   : > { %v5659_v9 = vpop.f32.mrb[62].mxu1 }
0x1a51   : > { %v7355_v10 = vpop.f32.mrb[63].mxu1  ;;  %7373 = vmatmul.mubr.bf16.vlgmr.msra.gmra.mrb[36].mxu0 %v5662_v28 }
0x1a83   : > { %v5439_v59 = vpop.f32.mrb[32].mxu0 }
0x1a84   : > { %v5446_v30 = vadd.f32 %v5439_v59, %v10112_v61  ;;  %v7330_v55 = vpop.f32.mrb[33].mxu0 }
0x1a85   : > { %v5442_v44 = vpop.f32.mrb[34].mxu0 }
0x1a86   : > { %v5447_v18 = vadd.f32 %v5442_v44, %v10114_v1  ;;  %v7331_v56 = vpop.f32.mrb[35].mxu0 }
0x1b24   : > { %v5745_v16 = vpop.f32.mrb[36].mxu0 }
0x1b25   : > { %v5752_v17 = vadd.f32 %v5745_v16, %v5446_v30  ;;  %v7374_v39 = vpop.f32.mrb[37].mxu0 }
0x1b26   : > { %v5748_v24 = vpop.f32.mrb[38].mxu0 }
0x1b27   : > { %v5760_v5 = vadd.f32 %v6813_v60, %v5752_v17  ;;  %v5753_v35 = vadd.f32 %v5748_v24, %v5447_v18  ;;  %v7375_v57 = vpop.f32.mrb[39].mxu0 }
0x1b29   : > { %v5762_v62 = vadd.f32 %v5760_v5, %v9385_v20  ;;  %v5761_v29 = vadd.f32 %v6813_v60, %v5753_v35 }
0x1b2b   : > { %5764 = vst [vmem:[#allocation2] sm:$0xff] %v5762_v62  ;;  %v5763_v32 = vadd.f32 %v5761_v29, %v9388_v21 }
0x1b2d   : > { %5765 = vst [vmem:[#allocation2 + $0x8] sm:$0xff] %v5763_v32 }
0x1b2e PF: > { %p6814_p13 = scmp.ne.s32.totalorder %s9396_s17, 2 }
0x1b2f   : > { %v8636_v61 = vmov (!%p6814_p13), 0.0   ;;  %v7963_v1 = vld [vmem:[%s9320_s10] ss:$48 sps:$4 sm:$0xff] (!%p6814_p13)   ;;  %vm8637_vm8 = vmmov (!%p6814_p13), 0   ;;  %v7971_v58 = vld [vmem:[%s9339_s5] sm:$0xff] (!%p6814_p13)   ;;  %v7973_v13 = vld [vmem:[%s9339_s5 + $0x10] sm:$0xff] (!%p6814_p13)  }
0x1b30   : > { %5769 = sbr.rel (%p6814_p13) target bundleno = 7457 (0x1d21), region = 192  ;;  %7376 = vmatprep.subr.bf16.mxu0 (!%p6814_p13), %v8636_v61  ;;  %7392 = vmatprep.mubr.msk.bf16.mxu0 (!%p6814_p13), %vm8637_vm8, %v8636_v61  ;;  %v7964_v12 = vld [vmem:[%s9320_s10 + $0x60] ss:$48 sps:$4 sm:$0xff] (!%p6814_p13)   ;;  %v7975_v15 = vld [vmem:[%s9339_s5 + $0x20] sm:$0xff] (!%p6814_p13)  }
0x1b31   : > { %7396 = vmatprep.subr.bf16.mxu1 (!%p6814_p13), %v8636_v61  ;;  %7412 = vmatprep.mubr.msk.bf16.mxu1 (!%p6814_p13), %vm8637_vm8, %v8636_v61  ;;  %v7965_v27 = vld [vmem:[%s9320_s10 + $0xc0] ss:$48 sps:$4 sm:$0xff] (!%p6814_p13)   ;;  %v6824_v10 = vld [vmem:[%s9342_s28] ss:$0 sm:$0xff] (!%p6814_p13) }
0x1b32   : > { %7377 = vmatpush3.bf16.msra.mxu0 (!%p6814_p13), %v7963_v1  ;;  %v7966_v63 = vld [vmem:[%s9320_s10 + $0x120] ss:$48 sps:$4 sm:$0xff] (!%p6814_p13)   ;;  %7397 = vmatpush3.bf16.msra.mxu1 (!%p6814_p13), %v7971_v58 }
0x1b33   : > { %7378 = vmatprep.subr.bf16.mxu0 (!%p6814_p13), %v8636_v61  ;;  %v7967_v8 = vld [vmem:[%s9320_s10 + $0x180] ss:$48 sps:$4 sm:$0xff] (!%p6814_p13)   ;;  %7398 = vmatprep.subr.bf16.mxu1 (!%p6814_p13), %v8636_v61 }
0x1b34   : > { %v7968_v4 = vld [vmem:[%s9320_s10 + $0x1e0] ss:$48 sps:$4 sm:$0xff] (!%p6814_p13)  }
0x1b35   : > { %v7969_v6 = vld [vmem:[%s9320_s10 + $0x240] ss:$48 sps:$4 sm:$0xff] (!%p6814_p13)  }
0x1b36   : > { %7379 = vmatpush3.bf16.msra.mxu0 (!%p6814_p13), %v7964_v12  ;;  %v7970_v7 = vld [vmem:[%s9320_s10 + $0x2a0] ss:$48 sps:$4 sm:$0xff] (!%p6814_p13)  }
0x1b37   : > { %7380 = vmatprep.subr.bf16.mxu0 %v8636_v61  ;;  %v7972_v11 = vld [vmem:[%s9339_s5 + $0x8] sm:$0xff]   ;;  %v7974_v46 = vld [vmem:[%s9339_s5 + $0x18] sm:$0xff]  }
0x1b38   : > { %7399 = vmatpush3.bf16.msra.mxu1 %v7972_v11  ;;  %v7976_v47 = vld [vmem:[%s9339_s5 + $0x28] sm:$0xff]   ;;  %v7978_v19 = vld [vmem:[%s9339_s5 + $0x38] sm:$0xff]  }
0x1b39   : > { %7400 = vmatprep.subr.bf16.mxu1 %v8636_v61  ;;  %v6815_v22 = vld [vmem:[%s9322_s25] ss:$0 sm:$0xff] }
0x1b3a   : > { %7381 = vmatpush3.bf16.msra.mxu0 %v7965_v27 }
0x1b3b   : > { %7382 = vmatprep.subr.bf16.mxu0 %v8636_v61 }
0x1b3c   : > { %7401 = vmatpush3.bf16.msra.mxu1 %v7973_v13 }
0x1b3d   : > { %7402 = vmatprep.subr.bf16.mxu1 %v8636_v61 }
0x1b3e   : > { %7383 = vmatpush3.bf16.msra.mxu0 %v7966_v63 }
0x1b3f   : > { %7384 = vmatprep.subr.bf16.mxu0 %v8636_v61 }
0x1b40   : > { %7403 = vmatpush3.bf16.msra.mxu1 %v7974_v46 }
0x1b41   : > { %7404 = vmatprep.subr.bf16.mxu1 %v8636_v61 }
0x1b42   : > { %7385 = vmatpush3.bf16.msra.mxu0 %v7967_v8 }
0x1b43   : > { %7386 = vmatprep.subr.bf16.mxu0 %v8636_v61 }
0x1b44   : > { %7405 = vmatpush3.bf16.msra.mxu1 %v7975_v15 }
0x1b45   : > { %7406 = vmatprep.subr.bf16.mxu1 %v8636_v61 }
0x1b46   : > { %7387 = vmatpush3.bf16.msra.mxu0 %v7968_v4 }
0x1b47   : > { %7388 = vmatprep.subr.bf16.mxu0 %v8636_v61 }
0x1b48   : > { %7407 = vmatpush3.bf16.msra.mxu1 %v7976_v47 }
0x1b49   : > { %7408 = vmatprep.subr.bf16.mxu1 %v8636_v61 }
0x1b4a   : > { %7389 = vmatpush3.bf16.msra.mxu0 %v7969_v6 }
0x1b4b   : > { %7390 = vmatprep.subr.bf16.mxu0 %v8636_v61 }
0x1b4e   : > { %7391 = vmatpush3.bf16.msra.mxu0 %v7970_v7 }
0x1b51   : > { %7393 = vmatmul.mubr.bf16.vlgmr.msra.gmra.mrb[0].mxu0 %v9412_v2  ;;  %v7977_v2 = vld [vmem:[%s9339_s5 + $0x30] sm:$0xff]  }
0x1b52   : > { %7409 = vmatpush3.bf16.msra.mxu1 %v7977_v2 }
0x1b53   : > { %7410 = vmatprep.subr.bf16.mxu1 %v8636_v61 }
0x1b56   : > { %7411 = vmatpush3.bf16.msra.mxu1 %v7978_v19 }
0x1c24   : > { %v5875_v45 = vpop.f32.mrb[0].mxu0 }
0x1c25   : > { %v5876_v31 = vadd.f32 %v6815_v22, %v5875_v45  ;;  %v7394_v34 = vpop.f32.mrb[1].mxu0 }
0x1c26   : > { %v5878_v38 = vpop.f32.mrb[2].mxu0 }
0x1c27   : > { %v5882_v41 = vmul.f32 %v5876_v31, %v5876_v31  ;;  %v5879_v42 = vadd.f32 %v6815_v22, %v5878_v38  ;;  %v7395_v43 = vpop.f32.mrb[3].mxu0 }
0x1c29   : > { %v5884_v53 = vmul.f32 %v5882_v41, %v5876_v31  ;;  %v5883_v26 = vmul.f32 %v5879_v42, %v5879_v42 }
0x1c2b   : > { %v5886_v3 = vmul.f32 0.044715, %v5884_v53  ;;  %v5885_v54 = vmul.f32 %v5883_v26, %v5879_v42 }
0x1c2d   : > { %v5888_v37 = vadd.f32 %v5886_v3, %v5876_v31  ;;  %v5887_v36 = vmul.f32 0.044715, %v5885_v54 }
0x1c2f   : > { %v5890_v49 = vmul.f32 0.7978846, %v5888_v37  ;;  %v5889_v50 = vadd.f32 %v5887_v36, %v5879_v42 }
0x1c31   : > { %7979 = vtanh.f32 %v5890_v49  ;;  %v5891_v51 = vmul.f32 0.7978846, %v5889_v50 }
0x1c33   : > { %7981 = vtanh.f32 %v5891_v51 }
0x1c3b   : > { %v7980_v52 = vpop.eup %7979 }
0x1c3c   : > { %v5894_v48 = vadd.f32 1.0, %v7980_v52 }
0x1c3d   : > { %v7982_v25 = vpop.eup %7981 }
0x1c3e   : > { %v5895_v23 = vadd.f32 1.0, %v7982_v25  ;;  %v5896_v40 = vmul.f32 0.5, %v5894_v48 }
0x1c40   : > { %v5897_v33 = vmul.f32 0.5, %v5895_v23  ;;  %v5898_v28 = vmul.f32 %v5896_v40, %v5876_v31 }
0x1c42   : > { %v5899_v14 = vmul.f32 %v5897_v33, %v5879_v42 }
0x1c44   : > { %v5900_v9 = vpack.c.bf16 %v5899_v14, %v5898_v28 }
0x1c46   : > { %7413 = vmatmul.mubr.bf16.vlgmr.msra.gmra.mrb[0].mxu1 %v5900_v9 }
0x1d19   : > { %v6006_v59 = vpop.f32.mrb[0].mxu1 }
0x1d1a   : > { %v6007_v30 = vadd.f32 %v6824_v10, %v6006_v59  ;;  %v7414_v55 = vpop.f32.mrb[1].mxu1 }
0x1d1b   : > { %v6009_v44 = vpop.f32.mrb[2].mxu1 }
0x1d1c   : > { %v6013_v18 = vadd.f32 %v6007_v30, %v9385_v20  ;;  %v6010_v56 = vadd.f32 %v6824_v10, %v6009_v44  ;;  %v7415_v60 = vpop.f32.mrb[3].mxu1 }
0x1d1e   : > { %6015 = vst [vmem:[#allocation2] sm:$0xff] %v6013_v18  ;;  %v6014_v16 = vadd.f32 %v6010_v56, %v9388_v21 }
0x1d20   : > { %6016 = vst [vmem:[#allocation2 + $0x8] sm:$0xff] %v6014_v16 }
0x1d21 PF: > { %s10393_s10 = sld [smem:[#allocation46_spill]] }
0x1d27   : > { %p6833_p1 = scmp.ne.s32.totalorder %s10393_s10, 5 }
0x1d28   : > { %v6021_v17 = vld [vmem:[#allocation2] sm:$0xff] (!%p6833_p1)  ;;  %v6022_v39 = vld [vmem:[#allocation2 + $0x8] sm:$0xff] (!%p6833_p1)  ;;  %v8638_v5 = vmov (!%p6833_p1), 0.0   ;;  %v7985_v63 = vld [vmem:[#allocation29 + $0x10] sm:$0xff] (!%p6833_p1)   ;;  %vm8639_vm9 = vmmov (!%p6833_p1), 0  }
0x1d29   : > { %6020 = sbr.rel (%p6833_p1) target bundleno = 8001 (0x1f41), region = 196  ;;  %6023 = vadd.xlane.f32.xlu0 (!%p6833_p1), %v6021_v17  ;;  %v7983_v24 = vld [vmem:[#allocation29] sm:$0xff] (!%p6833_p1)   ;;  %7416 = vmatprep.subr.bf16.mxu0 (!%p6833_p1), %v8638_v5  ;;  %v7984_v27 = vld [vmem:[#allocation29 + $0x8] sm:$0xff] (!%p6833_p1)   ;;  %v7986_v8 = vld [vmem:[#allocation29 + $0x18] sm:$0xff] (!%p6833_p1)  }
0x1d2a   : > { %7417 = vmatpush3.bf16.msra.mxu0 (!%p6833_p1), %v7983_v24  ;;  %v7987_v4 = vld [vmem:[#allocation29 + $0x20] sm:$0xff] (!%p6833_p1)   ;;  %7432 = vmatprep.mubr.msk.bf16.mxu0 (!%p6833_p1), %vm8639_vm9, %v8638_v5  ;;  %v7988_v6 = vld [vmem:[#allocation29 + $0x28] sm:$0xff] (!%p6833_p1)   ;;  %v7990_v7 = vld [vmem:[#allocation29 + $0x38] sm:$0xff] (!%p6833_p1)  }
0x1d2b   : > { %7418 = vmatprep.subr.bf16.mxu0 (!%p6833_p1), %v8638_v5  ;;  %v6834_v22 = vld [vmem:[#allocation26] ss:$0 sm:$0xff] (!%p6833_p1)  ;;  %v6835_v38 = vld [vmem:[#allocation28] ss:$0 sm:$0xff] (!%p6833_p1)  ;;  %v6836_v26 = vld [vmem:[#allocation31] ss:$0 sm:$0xff] (!%p6833_p1) }
0x1d2d   : > { %6025 = vadd.xlane.f32.xlu0 (!%p6833_p1), %v6022_v39 }
0x1d2e   : > { %7419 = vmatpush3.bf16.msra.mxu0 (!%p6833_p1), %v7984_v27 }
0x1d2f   : > { %7420 = vmatprep.subr.bf16.mxu0 (!%p6833_p1), %v8638_v5 }
0x1d32   : > { %7421 = vmatpush3.bf16.msra.mxu0 %v7985_v63 }
0x1d33   : > { %7422 = vmatprep.subr.bf16.mxu0 %v8638_v5 }
0x1d36   : > { %7423 = vmatpush3.bf16.msra.mxu0 %v7986_v8 }
0x1d37   : > { %7424 = vmatprep.subr.bf16.mxu0 %v8638_v5 }
0x1d3a   : > { %7425 = vmatpush3.bf16.msra.mxu0 %v7987_v4 }
0x1d3b   : > { %7426 = vmatprep.subr.bf16.mxu0 %v8638_v5 }
0x1d3e   : > { %7427 = vmatpush3.bf16.msra.mxu0 %v7988_v6 }
0x1d3f   : > { %7428 = vmatprep.subr.bf16.mxu0 %v8638_v5 }
0x1db6   : > { %v6024_v20 = vpop.xlane.xlu0 %6023 }
0x1db7   : > { %v6027_v35 = vmul.f32 0.03125, %v6024_v20 }
0x1db9   : > { %v6029_v57 = vsub.f32 %v6021_v17, %v6027_v35 }
0x1dba   : > { %v6026_v62 = vpop.xlane.xlu0 %6025 }
0x1dbb   : > { %v6028_v29 = vmul.f32 0.03125, %v6026_v62  ;;  %v6031_v21 = vmul.f32 %v9375_v0, %v6029_v57 }
0x1dbd   : > { %v6030_v32 = vsub.f32 %v6022_v39, %v6028_v29  ;;  %v6033_v61 = vmul.f32 %v6031_v21, %v6031_v21 }
0x1dbf   : > { %v6032_v1 = vmul.f32 %v9375_v0, %v6030_v32  ;;  %6035 = vadd.xlane.f32.xlu1 %v6033_v61  ;;  %v7989_v0 = vld [vmem:[#allocation29 + $0x30] sm:$0xff]  }
0x1dc0   : > { %7429 = vmatpush3.bf16.msra.mxu0 %v7989_v0 }
0x1dc1   : > { %v6034_v12 = vmul.f32 %v6032_v1, %v6032_v1  ;;  %7430 = vmatprep.subr.bf16.mxu0 %v8638_v5 }
0x1dc3   : > { %6037 = vadd.xlane.f32.xlu1 %v6034_v12 }
0x1dc4   : > { %7431 = vmatpush3.bf16.msra.mxu0 %v7990_v7 }
0x1e4c   : > { %v6036_v58 = vpop.xlane.xlu1 %6035 }
0x1e4d   : > { %v6039_v11 = vmul.f32 0.03125, %v6036_v58 }
0x1e4f   : > { %v6041_v13 = vadd.f32 1e-05, %v6039_v11 }
0x1e50   : > { %v6038_v46 = vpop.xlane.xlu1 %6037 }
0x1e51   : > { %7991 = vrsqrt.f32 %v6041_v13  ;;  %v6040_v15 = vmul.f32 0.03125, %v6038_v46 }
0x1e53   : > { %v6042_v47 = vadd.f32 1e-05, %v6040_v15 }
0x1e55   : > { %7993 = vrsqrt.f32 %v6042_v47 }
0x1e5b   : > { %v7992_v2 = vpop.eup %7991 }
0x1e5c   : > { %v6045_v19 = vmul.f32 %v7992_v2, %v6031_v21 }
0x1e5e   : > { %v6054_v34 = vmul.f32 %v6834_v22, %v6045_v19 }
0x1e5f   : > { %v7994_v45 = vpop.eup %7993 }
0x1e60   : > { %v6046_v31 = vmul.f32 %v7994_v45, %v6032_v1  ;;  %v6063_v42 = vadd.f32 %v6835_v38, %v6054_v34 }
0x1e62   : > { %v6055_v41 = vmul.f32 %v6834_v22, %v6046_v31 }
0x1e64   : > { %v6064_v43 = vadd.f32 %v6835_v38, %v6055_v41 }
0x1e66   : > { %v6065_v53 = vpack.c.bf16 %v6064_v43, %v6063_v42 }
0x1e68   : > { %7433 = vmatmul.mubr.bf16.vlgmr.msra.gmra.mrb[0].mxu0 %v6065_v53 }
0x1f3b   : > { %v6171_v3 = vpop.f32.mrb[0].mxu0 }
0x1f3c   : > { %v6172_v54 = vadd.f32 %v6836_v26, %v6171_v3  ;;  %v7434_v37 = vpop.f32.mrb[1].mxu0 }
0x1f3d   : > { %v6174_v36 = vpop.f32.mrb[2].mxu0 }
0x1f3e   : > { %6178 = vst [vmem:[#allocation32] sm:$0xff] %v6172_v54  ;;  %v6175_v49 = vadd.f32 %v6836_v26, %v6174_v36  ;;  %v7435_v50 = vpop.f32.mrb[3].mxu0 }
0x1f40   : > { %6179 = vst [vmem:[#allocation32 + $0x8] sm:$0xff] %v6175_v49 }
0x1f41 PF: > { %s10394_s25 = sld [smem:[#allocation46_spill]]  ;;  %s8640_s5 = smov [#allocation32]  }
0x1f42   : > { %s6186_s28 = sshll.u32 %s8640_s5, 4  ;;  %s6187_s28 = int_to_ptr.vmem [resolvable:$true] %s6186_s28 }
0x1f43   : > { %s8497_s17 = scalar_lea.vmem %s6187_s28, 256  ;;  %p8504_p7 = scmp.lt.s32.totalorder %s6187_s28, %s6187_s28 }
0x1f44   : > { %p8498_p8 = scmp.ne.s32.totalorder %s6187_s28, %s8497_s17  ;;  %p8505_p0 = scmp.lt.s32.totalorder %s8497_s17, %s8497_s17 }
0x1f46   : > { %p8506_p10 = por %p8505_p0, %p8504_p7 }
0x1f47   : > { %p7570_p2 = scmp.eq.s32.totalorder %s10394_s25, 5 }
0x1f49   : > { %p8499_p5 = pnand %p8498_p8, %p7570_p2 }
0x1f4b   : > { %p8500_p3 = pneg %p8499_p5 }
0x1f4d   : > { %p8507_p12 = pnand %p8506_p10, %p8500_p3 }
0x1f4f   : > { %8510 = shalt.err (!%p8507_p12)
}
0x1f50   : > { %s10395_s30 = sld [smem:[#allocation68_spill]] }
0x1f56   : > { %s8511_s2 = scalar_lea.hbm %s10395_s30, 256 }
0x1f57   : > { %p8512_p4 = scmp.ne.s32.totalorder %s10395_s30, %s8511_s2  ;;  %p8517_p6 = scmp.lt.u32.totalorder %s8511_s2, %s10395_s30 }
0x1f59   : > { %p8513_p9 = pnand %p8512_p4, %p7570_p2 }
0x1f5b   : > { %p8514_p11 = pneg %p8513_p9 }
0x1f5d   : > { %p8519_p13 = pnand %p8517_p6, %p8514_p11 }
0x1f5f   : > { %8522 = shalt.err (!%p8519_p13)
}
0x1f60   : > { %s8641_s9 = smov 128   ;;  %s8642_s1 = smov 8  }
0x1f61   : > { %7495 = dma.vmem_to_hbm [thread:$0]  (%p7570_p2), %s6187_s28, 256, %s10395_s30, [#allocation7], %s8641_s9, %s8641_s9, %s8642_s1  }
0x1f62   : > { %8582 = dma.done.wait (%p7570_p2), [#allocation7], 256  }
0x1f63   : > { %8584 = vsyncadd (%p7570_p2), [#allocation7], 4294967040 }
0x1f64 PF: > { %s10396_s29 = sld [smem:[#allocation48_spill]]  ;;  %s10397_s5 = sld [smem:[#allocation45_spill]] }
0x1f65   : > { %s10398_s28 = sld [smem:[#allocation49_spill]]  ;;  %s10399_s17 = smov %s8591_s7 }
0x1f6a   : > { %p54_p1 = scmp.ge.s32.totalorder %s10396_s29, 8   ;;  %s10400_s7 = smov %s10397_s5 }
0x1f6c   :  { %56 = sbr.rel (!%p54_p1) target bundleno = 44 (0x2c), region = 289 }
0x1f73   :  { %6202 = vsyncpa [#allocation6], 1 }
0x1f74   :  { %6204 = vsyncpa [#allocation6 + $0x1], 1 }
0x1f75   :  { %6205 = vsyncpa [#allocation9], 1 }
0x1f76   :  { %6207 = vsyncpa [#allocation9 + $0x1], 1 }
0x1f77   :  { %6208 = vsyncpa [#allocation12], 1 }
0x1f78   :  { %6210 = vsyncpa [#allocation12 + $0x1], 1 }
0x1f79   :  { %6211 = vsyncpa [#allocation15], 1 }
0x1f7a   :  { %6213 = vsyncpa [#allocation15 + $0x1], 1 }
0x1f7b   :  { %6214 = vsyncpa [#allocation18], 1 }
0x1f7c   :  { %6216 = vsyncpa [#allocation18 + $0x1], 1 }
0x1f7d   :  { %6217 = vsyncpa [#allocation21], 1 }
0x1f7e   :  { %6218 = vsyncpa [#allocation24], 1 }
0x1f7f   :  { %6219 = vsyncpa [#allocation27], 1 }
0x1f80   :  { %6220 = vsyncpa [#allocation30], 1 }
0x1f81   :  { %6221 = vsyncpa [#allocation7], 1 }
0x1f82   :  { %6223 = vsyncpa [#allocation7 + $0x1], 1 }

</bundles_post_ra>
